<compile_context>
chip_gen: v5e
topology: v5e:2x2
jax: 0.10.0
libtpu: 0.0.40
codegen_flags: <defaults>
</compile_context>

<pallas_src>
import jax
import jax.numpy as jnp
from jax.experimental import pallas as pl
from jax.experimental.pallas import tpu as pltpu


# ---------------------------------------------------------------------------
# Kernels
# ---------------------------------------------------------------------------
def _head_kernel_single(x_ref, w_ref, o_ref):
    """Single-step fused mean-pool + Linear(F, 1).

    x_ref: (b_tile, K)    flattened NCHW feature tile, K = F*HW (lane-dense)
    w_ref: (1, K)         expanded fc weight, w_exp[f*HW + hw] = w[f] / HW
    o_ref: (b_tile, 128)  lane-dense logit slab (wrapper slices [:, :1])
    """
    x = x_ref[...].astype(jnp.float32)                    # f32 accumulate (bf16-safe)
    w = w_ref[...].astype(jnp.float32)
    s = jnp.sum(x * w, axis=-1, keepdims=True)            # one VPU mul + one lane reduce
    o_ref[...] = jnp.broadcast_to(s, o_ref.shape)


def _head_kernel_multi(x_ref, w_ref, o_ref):
    """K-tiled variant: (b_tile, 128) output block is resident across the
    reduction (last, "arbitrary") grid axis and used as the accumulator."""
    k = pl.program_id(1)

    @pl.when(k == 0)
    def _init():
        o_ref[...] = jnp.zeros_like(o_ref)

    x = x_ref[...].astype(jnp.float32)
    w = w_ref[...].astype(jnp.float32)
    s = jnp.sum(x * w, axis=-1, keepdims=True)            # (b_tile, 1)
    o_ref[...] = o_ref[...] + s                           # broadcast over 128 lanes


# ---------------------------------------------------------------------------
# Tile-size / budget selection
# ---------------------------------------------------------------------------
def _chip_budgets():
    """(target_tile_bytes, vmem_limit_cap) per TPU generation."""
    try:
        info = pltpu.get_tpu_info()
        vmem_phys = int(getattr(info, "vmem_capacity_bytes", 0) or 0)
    except Exception:
        vmem_phys = 0
    if vmem_phys >= (100 << 20):          # v5e / v6e: 128 MiB physical VMEM
        return 12 << 20, 96 << 20
    # v7x (64 MiB physical) or unknown -> conservative
    return 6 << 20, 48 << 20


def _pick_b_tile(B):
    """Largest multiple of 8 (<= 64) that divides B, else the full batch."""
    if B % 8 == 0:
        for cand in (64, 56, 48, 40, 32, 24, 16, 8):
            if cand <= B and B % cand == 0:
                return cand
    return B


def _pick_k_tile(K, b_tile, itemsize, target_bytes):
    """Largest multiple of 128 dividing K within the budget, else full K."""
    if b_tile * K * itemsize <= target_bytes or K % 128 != 0:
        return K
    cap = (target_bytes // (b_tile * itemsize)) // 128 * 128
    k = int(min(max(cap, 128), K))
    while k >= 128:
        if K % k == 0:
            return k
        k -= 128
    return K


# ---------------------------------------------------------------------------
# Wrapper
# ---------------------------------------------------------------------------
def deepfake_classifier_head(feat_nchw, fc_weight, fc_bias):
    """feat_nchw: (B, F, H, W) float32 or bfloat16 (encoder.forward_features output)
    fc_weight:  (1, F) float32  (PyTorch Linear weight layout)
    fc_bias:    (1,)   float32
    returns:    (B, 1) float32 logits
    """
    B, F, H, W = feat_nchw.shape
    HW = H * W
    K = F * HW

    # Free contiguous view of NCHW -> lane-dense (B, F*HW); no transpose.
    x = feat_nchw.reshape(B, K)

    # Expanded fc weight with the 1/HW of the mean pool folded in:
    # w_exp[f*HW + hw] = w[f] / HW.  Built once in the wrapper (f32 for accuracy).
    w_exp = jnp.repeat(
        fc_weight.reshape(F).astype(jnp.float32) * (1.0 / HW), HW
    ).reshape(1, K)

    target_bytes, vmem_cap = _chip_budgets()
    itemsize = x.dtype.itemsize

    b_tile = _pick_b_tile(B)
    k_tile = _pick_k_tile(K, b_tile, itemsize, target_bytes)

    def _footprint(bt, kt):
        # double-buffered input + weight + output, plus headroom
        in_b = bt * kt * itemsize
        w_b = 8 * kt * 4                  # (1, kt) pads to (8, kt)
        out_b = bt * 128 * 4
        return 2 * (in_b + w_b + out_b) + (4 << 20)

    # If the footprint exceeds the per-chip cap (e.g. odd shapes forcing a full-K
    # tile), shrink the batch tile instead of silently blowing the VMEM limit.
    while _footprint(b_tile, k_tile) > vmem_cap and b_tile > 8 and b_tile % 8 == 0:
        nb = b_tile - 8
        while nb > 8 and B % nb != 0:
            nb -= 8
        b_tile = nb
        k_tile = _pick_k_tile(K, b_tile, itemsize, target_bytes)

    vmem_limit = int(max(16 << 20, min(vmem_cap, _footprint(b_tile, k_tile))))
    k_steps = K // k_tile

    if k_steps == 1:
        # Single-step: no reduction grid axis, no accumulator.
        out_padded = pl.pallas_call(
            _head_kernel_single,
            out_shape=jax.ShapeDtypeStruct((B, 128), jnp.float32),
            grid=(B // b_tile,),
            in_specs=[
                pl.BlockSpec((b_tile, K), lambda b: (b, 0)),
                pl.BlockSpec((1, K), lambda b: (0, 0)),
            ],
            out_specs=pl.BlockSpec((b_tile, 128), lambda b: (b, 0)),
            compiler_params=pltpu.CompilerParams(
                dimension_semantics=("parallel",),
                vmem_limit_bytes=vmem_limit,
            ),
        )(x, w_exp)
    else:
        # K-tiled: batch axis parallel (megacore), reduction axis last/arbitrary.
        out_padded = pl.pallas_call(
            _head_kernel_multi,
            out_shape=jax.ShapeDtypeStruct((B, 128), jnp.float32),
            grid=(B // b_tile, k_steps),
            in_specs=[
                pl.BlockSpec((b_tile, k_tile), lambda b, k: (b, k)),
                pl.BlockSpec((1, k_tile), lambda b, k: (0, k)),
            ],
            out_specs=pl.BlockSpec((b_tile, 128), lambda b, k: (b, 0)),
            compiler_params=pltpu.CompilerParams(
                dimension_semantics=("parallel", "arbitrary"),
                vmem_limit_bytes=vmem_limit,
            ),
        )(x, w_exp)

    # Dropout(p=0.0) is the identity; bias is added here (no SMEM bias in-kernel).
    logits = out_padded[:, :1] + fc_bias.reshape(1, 1).astype(jnp.float32)
    return logits


if __name__ == "__main__":
    # 'tf_efficientnet_b3_ns' backbone -> 1536 feature channels; small 8x8 map, batch 2.
    B, F, H, W = 2, 1536, 8, 8

    key = jax.random.PRNGKey(0)
    k_x, k_w, k_b = jax.random.split(key, 3)

    feat = jax.random.normal(k_x, (B, F, H, W), dtype=jnp.float32)
    # Deterministic synthetic Linear(F, 1) parameters (PyTorch layout).
    bound = 1.0 / (F ** 0.5)
    fc_w = jax.random.uniform(k_w, (1, F), minval=-bound, maxval=bound,
                              dtype=jnp.float32)
    fc_b = jax.random.uniform(k_b, (1,), minval=-bound, maxval=bound,
                              dtype=jnp.float32)

    out = deepfake_classifier_head(feat, fc_w, fc_b)
    out = jax.block_until_ready(out)

    # Pure-JAX reference (avg pool + linear).
    ref = jnp.mean(feat, axis=(2, 3)) @ fc_w.T + fc_b
    assert out.shape == (B, 1)
    assert jnp.allclose(out, ref, atol=1e-4, rtol=1e-4)

    print("KERNEL_OK")
</pallas_src>

<mosaic_0001>
module attributes {stable_mosaic.version = 11 : i64} {
  func.func @_head_kernel_single(%arg0: i32, %arg1: memref<2x98304xf32, #tpu.memory_space<vmem>>, %arg2: memref<1x98304xf32, #tpu.memory_space<vmem>>, %arg3: memref<2x128xf32, #tpu.memory_space<vmem>>) attributes {dimension_semantics = [#tpu.dimension_semantics<parallel>], iteration_bounds = array<i64: 1>, scalar_prefetch = 0 : i64, scratch_operands = 0 : i64, tpu.core_type = #tpu.core_type<tc>, window_params = [{transform_indices = @transform_0, window_bounds = array<i64: 2, 98304>}, {pipeline_mode = #tpu.pipeline_mode<synchronous>, transform_indices = @transform_1, window_bounds = array<i64: 1, 98304>}, {transform_indices = @transform_2, window_bounds = array<i64: 2, 128>}]} {
    %c0 = arith.constant 0 : index
    %c0_0 = arith.constant 0 : index
    %0 = vector.load %arg1[%c0, %c0_0] : memref<2x98304xf32, #tpu.memory_space<vmem>>, vector<2x98304xf32>
    %c0_1 = arith.constant 0 : index
    %c0_2 = arith.constant 0 : index
    %1 = vector.load %arg2[%c0_1, %c0_2] : memref<1x98304xf32, #tpu.memory_space<vmem>>, vector<1x98304xf32>
    %2 = vector.broadcast %1 : vector<1x98304xf32> to vector<2x98304xf32>
    %3 = arith.mulf %0, %2 : vector<2x98304xf32>
    %cst = arith.constant dense<0.000000e+00> : vector<2xf32>
    %4 = vector.multi_reduction <add>, %3, %cst [1] : vector<2x98304xf32> to vector<2xf32>
    %5 = vector.shape_cast %4 : vector<2xf32> to vector<2x1xf32>
    %6 = vector.shape_cast %5 : vector<2x1xf32> to vector<2x1xf32>
    %7 = vector.broadcast %6 : vector<2x1xf32> to vector<2x128xf32>
    %c0_3 = arith.constant 0 : index
    %c0_4 = arith.constant 0 : index
    %8 = vector.load %arg3[%c0_3, %c0_4] : memref<2x128xf32, #tpu.memory_space<vmem>>, vector<2x128xf32>
    tpu.vector_store %arg3[%c0_3, %c0_4], %7 {strides = array<i32>} : memref<2x128xf32, #tpu.memory_space<vmem>>, vector<2x128xf32>,
    return
  }
  func.func @transform_0(%arg0: i32) -> (i32, i32) {
    %c0_i32 = arith.constant 0 : i32
    %c0_i32_0 = arith.constant 0 : i32
    return %arg0, %c0_i32 : i32, i32
  }
  func.func @transform_1(%arg0: i32) -> (i32, i32) {
    %c0_i32 = arith.constant 0 : i32
    %c0_i32_0 = arith.constant 0 : i32
    %c0_i32_1 = arith.constant 0 : i32
    return %c0_i32, %c0_i32_0 : i32, i32
  }
  func.func @transform_2(%arg0: i32) -> (i32, i32) {
    %c0_i32 = arith.constant 0 : i32
    %c0_i32_0 = arith.constant 0 : i32
    return %arg0, %c0_i32 : i32, i32
  }
}

</mosaic_0001>

<bundles_post_ra>
// kernel: tpu_custom_call.1
= control target key start
LH: loop header
LB: loop body
LE: loop exit
PB: predicated region body
PF: predicated region fallthrough
CT: control target
= control target key end

     0   :  { %7 = vsyncpa [#allocation3], 0  ;;  %s12324_s0 = inlined_call_operand.hbm [shape: f32[2,98304], index: 0, kind: input, shape index: {}]   ;;  %s12325_s1 = inlined_call_operand.hbm [shape: f32[1,98304], index: 1, kind: input, shape index: {}]   ;;  %s12326_s2 = inlined_call_operand.hbm [shape: f32[2,128], index: 2, kind: output, shape index: {}]  }
   0x1   :  { %8 = vsyncpa [#allocation6], 0 }
   0x2   :  { %9 = vsyncpa [#allocation4], 0  ;;  %s15_s11 = sshll.u32 %s12324_s0, 4  ;;  %s6289_s12 = smov [#allocation2]   ;;  %s16_s11 = int_to_ptr.hbm [resolvable:$true] %s15_s11 }
   0x3   :  { %s17_s13 = sshll.u32 %s6289_s12, 4  ;;  %s26_s16 = sshll.u32 %s12325_s1, 4  ;;  %s18_s13 = int_to_ptr.vmem [resolvable:$true] %s17_s13  ;;  %s27_s16 = int_to_ptr.hbm [resolvable:$true] %s26_s16 }
   0x4   :  { %20 = dma.hbm_to_vmem [thread:$0]  %s16_s11, 24576, %s18_s13, [#allocation3]  }
   0x5   :  { %s6290_s17 = smov [#allocation5]  }
   0x6   :  { %s28_s18 = sshll.u32 %s6290_s17, 4  ;;  %s29_s18 = int_to_ptr.vmem [resolvable:$true] %s28_s18 }
   0x7   :  { %31 = dma.hbm_to_vmem [thread:$0]  %s27_s16, 12288, %s29_s18, [#allocation6]  }
   0x8   :  { %6283 = dma.done.wait [#allocation3], 24576  }
   0x9   :  { %6284 = vsyncadd [#allocation3], 4294942720 }
   0xa   :  { %6285 = dma.done.wait [#allocation6], 12288  }
   0xb   :  { %6286 = vsyncadd [#allocation6], 4294955008  ;;  %v6313_v0 = vld [vmem:[#allocation5] sm:$0xff]  ;;  %v6315_v1 = vld [vmem:[#allocation5 + $0x8] sm:$0xff]  ;;  %vm1768_vm0 = vcmask 1041408   ;;  %vm1770_vm1 = vcmask 1045508  }
   0xc   :  { %v424_v2 = vperm.slane %v6313_v0, 0  ;;  %v425_v3 = vperm.slane %v6313_v0, 1  ;;  %v426_v4 = vperm.slane %v6313_v0, 2  ;;  %v427_v5 = vperm.slane %v6313_v0, 3  ;;  %v6321_v6 = vld [vmem:[#allocation5 + $0x10] sm:$0xff]  ;;  %v6331_v15 = vld [vmem:[#allocation5 + $0x18] sm:$0xff] }
   0xd   :  { %v428_v7 = vperm.slane %v6313_v0, 4  ;;  %v429_v8 = vperm.slane %v6313_v0, 5  ;;  %v430_v9 = vperm.slane %v6313_v0, 6  ;;  %v431_v10 = vperm.slane %v6313_v0, 7  ;;  %v6341_v24 = vld [vmem:[#allocation5 + $0x20] sm:$0xff]  ;;  %v6351_v33 = vld [vmem:[#allocation5 + $0x28] sm:$0xff] }
   0xe   :  { %v432_v11 = vperm.slane %v6315_v1, 0  ;;  %v433_v12 = vperm.slane %v6315_v1, 1  ;;  %v434_v13 = vperm.slane %v6315_v1, 2  ;;  %v435_v14 = vperm.slane %v6315_v1, 3  ;;  %v6369_v50 = vld [vmem:[#allocation5 + $0x30] sm:$0xff]  ;;  %v6375_v61 = vld [vmem:[#allocation5 + $0x38] sm:$0xff] }
   0xf   :  { %v436_v16 = vperm.slane %v6315_v1, 4  ;;  %v437_v17 = vperm.slane %v6315_v1, 5  ;;  %v438_v18 = vperm.slane %v6315_v1, 6  ;;  %v439_v19 = vperm.slane %v6315_v1, 7  ;;  %s6291_s0 = smov [#allocation7]   ;;  %s6197_s21 = sshll.u32 %s12326_s2, 4  ;;  %s6198_s21 = int_to_ptr.hbm [resolvable:$true] %s6197_s21 }
  0x10   :  { %v440_v20 = vperm.slane %v6321_v6, 0  ;;  %v441_v21 = vperm.slane %v6321_v6, 1  ;;  %v442_v22 = vperm.slane %v6321_v6, 2  ;;  %v443_v23 = vperm.slane %v6321_v6, 3  ;;  %s6195_s1 = sshll.u32 %s6291_s0, 4  ;;  %s6196_s1 = int_to_ptr.vmem [resolvable:$true] %s6195_s1 }
  0x11   :  { %v444_v25 = vperm.slane %v6321_v6, 4  ;;  %v445_v26 = vperm.slane %v6321_v6, 5  ;;  %v446_v27 = vperm.slane %v6321_v6, 6  ;;  %v447_v28 = vperm.slane %v6321_v6, 7 }
  0x12   :  { %v448_v29 = vperm.slane %v6331_v15, 0  ;;  %v449_v30 = vperm.slane %v6331_v15, 1  ;;  %v450_v31 = vperm.slane %v6331_v15, 2  ;;  %v451_v32 = vperm.slane %v6331_v15, 3 }
  0x13   :  { %v452_v34 = vperm.slane %v6331_v15, 4  ;;  %v453_v35 = vperm.slane %v6331_v15, 5  ;;  %v454_v36 = vperm.slane %v6331_v15, 6  ;;  %v455_v37 = vperm.slane %v6331_v15, 7 }
  0x14   :  { %v456_v38 = vperm.slane %v6341_v24, 0  ;;  %v457_v39 = vperm.slane %v6341_v24, 1  ;;  %v458_v40 = vperm.slane %v6341_v24, 2  ;;  %v459_v41 = vperm.slane %v6341_v24, 3 }
  0x15   :  { %v460_v42 = vperm.slane %v6341_v24, 4  ;;  %v461_v43 = vperm.slane %v6341_v24, 5  ;;  %v462_v44 = vperm.slane %v6341_v24, 6  ;;  %v463_v45 = vperm.slane %v6341_v24, 7 }
  0x16   :  { %v464_v46 = vperm.slane %v6351_v33, 0  ;;  %v465_v47 = vperm.slane %v6351_v33, 1  ;;  %v466_v48 = vperm.slane %v6351_v33, 2  ;;  %v467_v49 = vperm.slane %v6351_v33, 3 }
  0x17   :  { %v1192_v52 = vrot.slane %v425_v3, 6  ;;  %v1193_v53 = vrot.slane %v426_v4, 4  ;;  %v1194_v54 = vrot.slane %v427_v5, 2  ;;  %v1195_v55 = vrot.slane %v429_v8, 6  ;;  %v6392_v4 = vld [vmem:[#allocation5 + $0x40] sm:$0xff] }
  0x18   :  { %v1196_v56 = vrot.slane %v430_v9, 4  ;;  %v1197_v57 = vrot.slane %v431_v10, 2  ;;  %v469_v58 = vperm.slane %v6351_v33, 5  ;;  %v470_v59 = vperm.slane %v6351_v33, 6  ;;  %v6410_v9 = vld [vmem:[#allocation5 + $0x48] sm:$0xff] }
  0x19   :  { %v471_v60 = vperm.slane %v6351_v33, 7  ;;  %v1769_v10 = vsel %vm1768_vm0, %v424_v2, %v1192_v52  ;;  %v1771_v51 = vsel %vm1770_vm1, %v1193_v53, %v1194_v54  ;;  %vm1772_vm2 = vcmask 1043456   ;;  %v40_v53 = vld [vmem:[#allocation2] sm:$0xff]  ;;  %v41_v54 = vld [vmem:[#allocation2 + $0x8] sm:$0xff]  ;;  %v6424_v2 = vld [vmem:[#allocation5 + $0x50] sm:$0xff] }
  0x1a   :  { %v1774_v62 = vsel %vm1768_vm0, %v428_v7, %v1195_v55  ;;  %v1775_v3 = vsel %vm1770_vm1, %v1196_v56, %v1197_v57  ;;  %v479_v5 = vperm.slane %v6369_v50, 7  ;;  %v1773_v57 = vsel %vm1772_vm2, %v1769_v10, %v1771_v51 }
  0x1b   :  { %v1776_v8 = vsel %vm1772_vm2, %v1774_v62, %v1775_v3  ;;  %v1198_v7 = vrot.slane %v433_v12, 6  ;;  %v1199_v56 = vrot.slane %v434_v13, 4  ;;  %v1200_v51 = vrot.slane %v435_v14, 2  ;;  %v6440_v14 = vld [vmem:[#allocation5 + $0x58] sm:$0xff] }
  0x1c   :  { %v1201_v62 = vrot.slane %v437_v17, 6  ;;  %v1202_v3 = vrot.slane %v438_v18, 4  ;;  %v1203_v10 = vrot.slane %v439_v19, 2  ;;  %v2539_v0 = vmul.f32 %v1773_v57, %v40_v53  ;;  %v6498_v53 = vld [vmem:[#allocation5 + $0x68] sm:$0xff] }
  0x1d   :  { %v2540_v52 = vmul.f32 %v1776_v8, %v41_v54  ;;  %v1777_v54 = vsel %vm1768_vm0, %v432_v11, %v1198_v7  ;;  %v1778_v57 = vsel %vm1770_vm1, %v1199_v56, %v1200_v51  ;;  %v42_v7 = vld [vmem:[#allocation2 + $0x10] sm:$0xff]  ;;  %v1204_v56 = vrot.slane %v441_v21, 6 }
  0x1e   :  { %2923 = vst [vmem:[#allocation1] ss:$4 sm:$0xff] %v2539_v0  ;;  %v1780_v0 = vsel %vm1768_vm0, %v436_v16, %v1201_v62  ;;  %v1781_v19 = vsel %vm1770_vm1, %v1202_v3, %v1203_v10  ;;  %v1779_v1 = vsel %vm1772_vm2, %v1777_v54, %v1778_v57  ;;  %v43_v16 = vld [vmem:[#allocation2 + $0x18] sm:$0xff]  ;;  %v1205_v51 = vrot.slane %v442_v22, 4  ;;  %v6479_v22 = vld [vmem:[#allocation5 + $0x60] sm:$0xff] }
  0x1f   :  { %2925 = vst [vmem:[#allocation1 + $0x20] ss:$4 sm:$0xff] %v2540_v52  ;;  %v1782_v11 = vsel %vm1772_vm2, %v1780_v0, %v1781_v19  ;;  %v1206_v54 = vrot.slane %v443_v23, 2  ;;  %v1207_v57 = vrot.slane %v445_v26, 6  ;;  %v1208_v62 = vrot.slane %v446_v27, 4 }
  0x20   :  { %v1209_v19 = vrot.slane %v447_v28, 2  ;;  %v2541_v0 = vmul.f32 %v1779_v1, %v42_v7  ;;  %v2542_v52 = vmul.f32 %v1782_v11, %v43_v16  ;;  %v1783_v16 = vsel %vm1768_vm0, %v440_v20, %v1204_v56  ;;  %v44_v56 = vld [vmem:[#allocation2 + $0x20] sm:$0xff]  ;;  %v6556_v1 = vld [vmem:[#allocation5 + $0x78] sm:$0xff] }
  0x21   :  { %v1784_v8 = vsel %vm1770_vm1, %v1205_v51, %v1206_v54  ;;  %v1210_v51 = vrot.slane %v449_v30, 6  ;;  %v1211_v54 = vrot.slane %v450_v31, 4  ;;  %v6537_v31 = vld [vmem:[#allocation5 + $0x70] sm:$0xff]  ;;  %12353 = vst [vmem:[#allocation11_spill] sm:$0xff] %v6556_v1  ;;  %v12361_v12 = vperm.slane %v6369_v50, 5 }
  0x22   :  { %v1787_v11 = vsel %vm1770_vm1, %v1208_v62, %v1209_v19  ;;  %v1785_v6 = vsel %vm1772_vm2, %v1783_v16, %v1784_v8  ;;  %v1212_v8 = vrot.slane %v451_v32, 2  ;;  %v1213_v16 = vrot.slane %v453_v35, 6 }
  0x23   :  { %v1214_v62 = vrot.slane %v454_v36, 4 }
  0x24   :  { %v1790_v17 = vsel %vm1770_vm1, %v1211_v54, %v1212_v8  ;;  %v1216_v54 = vrot.slane %v457_v39, 6  ;;  %v1217_v8 = vrot.slane %v458_v40, 4  ;;  %v6595_v40 = vld [vmem:[#allocation5 + $0x80] sm:$0xff] }
  0x25   :  { %v6473_v10 = vld.sshfl [vmem:[#allocation1] sm:$0xff pattern:$0x73625140]  ;;  %v6475_v21 = vld.sshfl [vmem:[#allocation1 + $0x8] sm:$0xff pattern:$0x73625140] }
  0x26   :  { %v6477_v3 = vld.sshfl [vmem:[#allocation1 + $0x10] sm:$0xff pattern:$0x73625140]  ;;  %v6481_v23 = vld.sshfl [vmem:[#allocation1 + $0x18] sm:$0xff pattern:$0x73625140] }
  0x27   :  { %v6483_v18 = vld.sshfl [vmem:[#allocation1 + $0x20] sm:$0xff pattern:$0x73625140]  ;;  %v6485_v26 = vld.sshfl [vmem:[#allocation1 + $0x28] sm:$0xff pattern:$0x73625140] }
  0x28   :  { %v6487_v27 = vld.sshfl [vmem:[#allocation1 + $0x30] sm:$0xff pattern:$0x73625140]  ;;  %v6490_v7 = vld.sshfl [vmem:[#allocation1 + $0x38] sm:$0xff pattern:$0x73625140] }
  0x29   :  { %2934 = vst [vmem:[#allocation1] ss:$4 sm:$0xff] %v2541_v0  ;;  %v1786_v0 = vsel %vm1768_vm0, %v444_v25, %v1207_v57  ;;  %v45_v25 = vld [vmem:[#allocation2 + $0x28] sm:$0xff] }
  0x2a   :  { %2935 = vst [vmem:[#allocation1 + $0x20] ss:$4 sm:$0xff] %v2542_v52  ;;  %v1788_v20 = vsel %vm1772_vm2, %v1786_v0, %v1787_v11  ;;  %v1215_v11 = vrot.slane %v455_v37, 2  ;;  %v2543_v0 = vmul.f32 %v1785_v6, %v44_v56  ;;  %v6614_v6 = vld [vmem:[#allocation5 + $0x88] sm:$0xff] }
  0x2b   :  { %v2544_v52 = vmul.f32 %v1788_v20, %v45_v25  ;;  %v1789_v25 = vsel %vm1768_vm0, %v448_v29, %v1210_v51  ;;  %v46_v51 = vld [vmem:[#allocation2 + $0x30] sm:$0xff]  ;;  %12354 = vst [vmem:[#allocation12_spill] sm:$0xff] %v6595_v40  ;;  %v12365_v40 = vperm.slane %v6369_v50, 4 }
  0x2c   :  { %v1793_v20 = vsel %vm1770_vm1, %v1214_v62, %v1215_v11  ;;  %v1791_v15 = vsel %vm1772_vm2, %v1789_v25, %v1790_v17  ;;  %v1218_v17 = vrot.slane %v459_v41, 2  ;;  %v1219_v25 = vrot.slane %v461_v43, 6  ;;  %12355 = vst [vmem:[#allocation13_spill] sm:$0xff] %v6614_v6 }
  0x2d   :  { %v1220_v62 = vrot.slane %v462_v44, 4 }
  0x2e   :  { %v1796_v63 = vsel %vm1770_vm1, %v1217_v8, %v1218_v17  ;;  %v1222_v8 = vrot.slane %v465_v47, 6  ;;  %v1223_v17 = vrot.slane %v466_v48, 4 }
  0x30   :  { %v6531_v19 = vld.sshfl [vmem:[#allocation1] sm:$0xff pattern:$0x73625140]  ;;  %v6533_v30 = vld.sshfl [vmem:[#allocation1 + $0x8] sm:$0xff pattern:$0x73625140] }
  0x31   :  { %v6535_v57 = vld.sshfl [vmem:[#allocation1 + $0x10] sm:$0xff pattern:$0x73625140]  ;;  %v6539_v32 = vld.sshfl [vmem:[#allocation1 + $0x18] sm:$0xff pattern:$0x73625140] }
  0x32   :  { %v6541_v28 = vld.sshfl [vmem:[#allocation1 + $0x20] sm:$0xff pattern:$0x73625140]  ;;  %v6543_v35 = vld.sshfl [vmem:[#allocation1 + $0x28] sm:$0xff pattern:$0x73625140] }
  0x33   :  { %v6545_v36 = vld.sshfl [vmem:[#allocation1 + $0x30] sm:$0xff pattern:$0x73625140]  ;;  %v6548_v56 = vld.sshfl [vmem:[#allocation1 + $0x38] sm:$0xff pattern:$0x73625140] }
  0x34   :  { %2944 = vst [vmem:[#allocation1] ss:$4 sm:$0xff] %v2543_v0  ;;  %v1792_v0 = vsel %vm1768_vm0, %v452_v34, %v1213_v16  ;;  %v47_v34 = vld [vmem:[#allocation2 + $0x38] sm:$0xff] }
  0x35   :  { %2945 = vst [vmem:[#allocation1 + $0x20] ss:$4 sm:$0xff] %v2544_v52  ;;  %v1794_v29 = vsel %vm1772_vm2, %v1792_v0, %v1793_v20  ;;  %v1221_v20 = vrot.slane %v463_v45, 2  ;;  %v2545_v0 = vmul.f32 %v1791_v15, %v46_v51  ;;  %v12357_v15 = vperm.slane %v6351_v33, 4 }
  0x36   :  { %v2546_v52 = vmul.f32 %v1794_v29, %v47_v34  ;;  %v1795_v34 = vsel %vm1768_vm0, %v456_v38, %v1216_v54  ;;  %v48_v54 = vld [vmem:[#allocation2 + $0x40] sm:$0xff]  ;;  %v1231_v33 = vrot.slane %v12361_v12, 6 }
  0x37   :  { %v1799_v29 = vsel %vm1770_vm1, %v1220_v62, %v1221_v20  ;;  %v1797_v24 = vsel %vm1772_vm2, %v1795_v34, %v1796_v63  ;;  %v1224_v63 = vrot.slane %v467_v49, 2  ;;  %v1225_v34 = vrot.slane %v469_v58, 6 }
  0x38   :  { %v1226_v62 = vrot.slane %v470_v59, 4 }
  0x39   :  { %v1804_v59 = vsel %vm1768_vm0, %v12357_v15, %v1225_v34  ;;  %v12358_v15 = vperm.slane %v6369_v50, 1 }
  0x3b   :  { %v6589_v11 = vld.sshfl [vmem:[#allocation1] sm:$0xff pattern:$0x73625140]  ;;  %v6591_v39 = vld.sshfl [vmem:[#allocation1 + $0x8] sm:$0xff pattern:$0x73625140] }
  0x3c   :  { %v6593_v16 = vld.sshfl [vmem:[#allocation1 + $0x10] sm:$0xff pattern:$0x73625140]  ;;  %v6597_v41 = vld.sshfl [vmem:[#allocation1 + $0x18] sm:$0xff pattern:$0x73625140] }
  0x3d   :  { %v6599_v37 = vld.sshfl [vmem:[#allocation1 + $0x20] sm:$0xff pattern:$0x73625140]  ;;  %v6601_v43 = vld.sshfl [vmem:[#allocation1 + $0x28] sm:$0xff pattern:$0x73625140] }
  0x3e   :  { %v6603_v44 = vld.sshfl [vmem:[#allocation1 + $0x30] sm:$0xff pattern:$0x73625140]  ;;  %v6606_v51 = vld.sshfl [vmem:[#allocation1 + $0x38] sm:$0xff pattern:$0x73625140] }
  0x3f   :  { %2954 = vst [vmem:[#allocation1] ss:$4 sm:$0xff] %v2545_v0  ;;  %v1798_v0 = vsel %vm1768_vm0, %v460_v42, %v1219_v25  ;;  %v49_v42 = vld [vmem:[#allocation2 + $0x48] sm:$0xff] }
  0x40   :  { %2955 = vst [vmem:[#allocation1 + $0x20] ss:$4 sm:$0xff] %v2546_v52  ;;  %v1800_v38 = vsel %vm1772_vm2, %v1798_v0, %v1799_v29  ;;  %v1227_v29 = vrot.slane %v471_v60, 2  ;;  %v2547_v0 = vmul.f32 %v1797_v24, %v48_v54  ;;  %v6664_v60 = vld [vmem:[#allocation5 + $0x90] sm:$0xff]  ;;  %v1801_v24 = vsel %vm1768_vm0, %v464_v46, %v1222_v8 }
  0x41   :  { %v2548_v52 = vmul.f32 %v1800_v38, %v49_v42  ;;  %12356 = vst [vmem:[#allocation14_spill] sm:$0xff] %v6664_v60  ;;  %v1802_v42 = vsel %vm1770_vm1, %v1223_v17, %v1224_v63  ;;  %v4653_v38 = vsel %vm1768_vm0, %v6475_v21, 0.0  ;;  %v50_v8 = vld [vmem:[#allocation2 + $0x50] sm:$0xff]  ;;  %v1228_v17 = vrot.slane %v12358_v15, 6  ;;  %v51_v21 = vld [vmem:[#allocation2 + $0x58] sm:$0xff] }
  0x42   :  { %v1805_v55 = vsel %vm1770_vm1, %v1226_v62, %v1227_v29  ;;  %v1803_v62 = vsel %vm1772_vm2, %v1801_v24, %v1802_v42  ;;  %v12359_v63 = vperm.slane %v6369_v50, 2  ;;  %v12360_v29 = vperm.slane %v6369_v50, 3 }
  0x43   :  { %v12362_v15 = vperm.slane %v6369_v50, 6  ;;  %v1233_v24 = vrot.slane %v479_v5, 2  ;;  %v2549_v42 = vmul.f32 %v1803_v62, %v50_v8 }
  0x44   :  { %v1229_v34 = vrot.slane %v12359_v63, 4 }
  0x45   :  { %v1232_v54 = vrot.slane %v12362_v15, 4 }
  0x46   :  { %v6647_v20 = vld.sshfl [vmem:[#allocation1] sm:$0xff pattern:$0x73625140]  ;;  %v6649_v47 = vld.sshfl [vmem:[#allocation1 + $0x8] sm:$0xff pattern:$0x73625140] }
  0x47   :  { %v6651_v25 = vld.sshfl [vmem:[#allocation1 + $0x10] sm:$0xff pattern:$0x73625140]  ;;  %v6653_v48 = vld.sshfl [vmem:[#allocation1 + $0x18] sm:$0xff pattern:$0x73625140] }
  0x48   :  { %v6655_v49 = vld.sshfl [vmem:[#allocation1 + $0x20] sm:$0xff pattern:$0x73625140]  ;;  %v6657_v45 = vld.sshfl [vmem:[#allocation1 + $0x28] sm:$0xff pattern:$0x73625140] }
  0x49   :  { %v6659_v58 = vld.sshfl [vmem:[#allocation1 + $0x30] sm:$0xff pattern:$0x73625140]  ;;  %v6662_v13 = vld.sshfl [vmem:[#allocation1 + $0x38] sm:$0xff pattern:$0x73625140] }
  0x4a   :  { %2964 = vst [vmem:[#allocation1] ss:$4 sm:$0xff] %v2547_v0  ;;  %v4652_v0 = vsel %vm1768_vm0, %v6473_v10, 0.0  ;;  %v4657_v10 = vsel %vm1768_vm0, %v6481_v23, 0.0  ;;  %v4659_v23 = vsel %vm1768_vm0, %v6483_v18, 0.0 }
  0x4b   :  { %2965 = vst [vmem:[#allocation1 + $0x20] ss:$4 sm:$0xff] %v2548_v52  ;;  %v4654_v46 = vadd.f32 %v4653_v38, %v4652_v0  ;;  %v4655_v52 = vsel %vm1768_vm0, %v6477_v3, 0.0  ;;  %v1230_v38 = vrot.slane %v12360_v29, 2  ;;  %v1806_v3 = vsel %vm1772_vm2, %v1804_v59, %v1805_v55 }
  0x4c   :  { %v4661_v29 = vsel %vm1768_vm0, %v6485_v26, 0.0  ;;  %v4663_v55 = vsel %vm1768_vm0, %v6487_v27, 0.0  ;;  %v2550_v59 = vmul.f32 %v1806_v3, %v51_v21  ;;  %v6724_v21 = vld [vmem:[#allocation5 + $0x98] sm:$0xff]  ;;  %v12368_v26 = vperm.slane %v6375_v61, 3 }
  0x4d   :  { %v4656_v0 = vadd.f32 %v4655_v52, %v4654_v46  ;;  %12363 = vst [vmem:[#allocation15_spill] sm:$0xff] %v6724_v21 }
  0x4f   :  { %v4658_v63 = vadd.f32 %v4657_v10, %v4656_v0  ;;  %v12364_v0 = vperm.slane %v6369_v50, 0 }
  0x51   :  { %v6707_v46 = vld.sshfl [vmem:[#allocation1] sm:$0xff pattern:$0x73625140]  ;;  %v6709_v12 = vld.sshfl [vmem:[#allocation1 + $0x8] sm:$0xff pattern:$0x73625140]  ;;  %v4660_v18 = vadd.f32 %v4659_v23, %v4658_v63  ;;  %v1807_v6 = vsel %vm1768_vm0, %v12364_v0, %v1228_v17  ;;  %v1808_v23 = vsel %vm1770_vm1, %v1229_v34, %v1230_v38 }
  0x52   :  { %v6711_v52 = vld.sshfl [vmem:[#allocation1 + $0x10] sm:$0xff pattern:$0x73625140]  ;;  %v6713_v15 = vld.sshfl [vmem:[#allocation1 + $0x18] sm:$0xff pattern:$0x73625140]  ;;  %v1809_v50 = vsel %vm1772_vm2, %v1807_v6, %v1808_v23 }
  0x53   :  { %v6715_v5 = vld.sshfl [vmem:[#allocation1 + $0x20] sm:$0xff pattern:$0x73625140]  ;;  %v6717_v8 = vld.sshfl [vmem:[#allocation1 + $0x28] sm:$0xff pattern:$0x73625140]  ;;  %v4662_v27 = vadd.f32 %v4661_v29, %v4660_v18  ;;  %v1811_v29 = vsel %vm1770_vm1, %v1232_v54, %v1233_v24 }
  0x54   :  { %v6719_v62 = vld.sshfl [vmem:[#allocation1 + $0x30] sm:$0xff pattern:$0x73625140]  ;;  %v6722_v10 = vld.sshfl [vmem:[#allocation1 + $0x38] sm:$0xff pattern:$0x73625140] }
  0x55   :  { %2974 = vst [vmem:[#allocation1] ss:$4 sm:$0xff] %v2549_v42  ;;  %v4665_v63 = vsel %vm1768_vm0, %v6490_v7, 0.0  ;;  %v1810_v42 = vsel %vm1768_vm0, %v12365_v40, %v1231_v33  ;;  %v4664_v18 = vadd.f32 %v4663_v55, %v4662_v27  ;;  %v4667_v34 = vsel %vm1768_vm0, %v6531_v19, 0.0  ;;  %v52_v38 = vld [vmem:[#allocation2 + $0x60] sm:$0xff]  ;;  %v53_v33 = vld [vmem:[#allocation2 + $0x68] sm:$0xff] }
  0x56   :  { %2975 = vst [vmem:[#allocation1 + $0x20] ss:$4 sm:$0xff] %v2550_v59  ;;  %v12366_v54 = vperm.slane %v6375_v61, 1  ;;  %v12367_v55 = vperm.slane %v6375_v61, 2  ;;  %v1812_v0 = vsel %vm1772_vm2, %v1810_v42, %v1811_v29  ;;  %v4669_v19 = vsel %vm1768_vm0, %v6533_v30, 0.0 }
  0x57   :  { %v4666_v40 = vadd.f32 %v4665_v63, %v4664_v18  ;;  %v1236_v7 = vrot.slane %v12368_v26, 2  ;;  %v12369_v59 = vperm.slane %v6375_v61, 5  ;;  %v12370_v6 = vperm.slane %v6375_v61, 6 }
  0x58   :  { %v1234_v24 = vrot.slane %v12366_v54, 6  ;;  %v1235_v27 = vrot.slane %v12367_v55, 4  ;;  %v12371_v18 = vperm.slane %v6375_v61, 7  ;;  %v2551_v1 = vmul.f32 %v1809_v50, %v52_v38 }
  0x59   :  { %v1237_v17 = vrot.slane %v12369_v59, 6  ;;  %v1238_v23 = vrot.slane %v12370_v6, 4  ;;  %v4668_v63 = vadd.f32 %v4667_v34, %v4666_v40  ;;  %v4671_v42 = vsel %vm1768_vm0, %v6535_v57, 0.0 }
  0x5a   :  { %v1239_v54 = vrot.slane %v12371_v18, 2  ;;  %v4673_v30 = vsel %vm1768_vm0, %v6539_v32, 0.0  ;;  %v2552_v29 = vmul.f32 %v1812_v0, %v53_v33  ;;  %v4675_v32 = vsel %vm1768_vm0, %v6541_v28, 0.0 }
  0x5b   :  { %v4670_v3 = vadd.f32 %v4669_v19, %v4668_v63  ;;  %v12373_v0 = vperm.slane %v6375_v61, 0  ;;  %v1814_v63 = vsel %vm1770_vm1, %v1235_v27, %v1236_v7  ;;  %v4677_v28 = vsel %vm1768_vm0, %v6543_v35, 0.0  ;;  %v54_v27 = vld [vmem:[#allocation2 + $0x70] sm:$0xff] }
  0x5c   :  { %v6765_v55 = vld.sshfl [vmem:[#allocation1] sm:$0xff pattern:$0x73625140]  ;;  %v6767_v26 = vld.sshfl [vmem:[#allocation1 + $0x8] sm:$0xff pattern:$0x73625140] }
  0x5d   :  { %v6769_v59 = vld.sshfl [vmem:[#allocation1 + $0x10] sm:$0xff pattern:$0x73625140]  ;;  %v6771_v6 = vld.sshfl [vmem:[#allocation1 + $0x18] sm:$0xff pattern:$0x73625140]  ;;  %v4672_v57 = vadd.f32 %v4671_v42, %v4670_v3  ;;  %v1813_v19 = vsel %vm1768_vm0, %v12373_v0, %v1234_v24 }
  0x5e   :  { %v6773_v34 = vld.sshfl [vmem:[#allocation1 + $0x20] sm:$0xff pattern:$0x73625140]  ;;  %v6775_v40 = vld.sshfl [vmem:[#allocation1 + $0x28] sm:$0xff pattern:$0x73625140] }
  0x5f   :  { %v6777_v38 = vld.sshfl [vmem:[#allocation1 + $0x30] sm:$0xff pattern:$0x73625140]  ;;  %v6779_v50 = vld.sshfl [vmem:[#allocation1 + $0x38] sm:$0xff pattern:$0x73625140]  ;;  %v4674_v18 = vadd.f32 %v4673_v30, %v4672_v57 }
  0x60   :  { %12372 = vst [vmem:[#allocation16_spill] sm:$0xff] %v6779_v50  ;;  %v12374_v3 = vperm.slane %v6375_v61, 4  ;;  %v12376_v35 = vperm.slane %v6392_v4, 2  ;;  %v12377_v0 = vperm.slane %v6392_v4, 3  ;;  %v12378_v33 = vperm.slane %v6392_v4, 5  ;;  %v6817_v50 = vld [vmem:[#allocation5 + $0xa0] sm:$0xff] }
  0x61   :  { %2984 = vst [vmem:[#allocation1] ss:$4 sm:$0xff] %v2551_v1  ;;  %v1817_v1 = vsel %vm1770_vm1, %v1238_v23, %v1239_v54  ;;  %v4676_v7 = vadd.f32 %v4675_v32, %v4674_v18  ;;  %v4679_v23 = vsel %vm1768_vm0, %v6545_v36, 0.0  ;;  %v55_v54 = vld [vmem:[#allocation2 + $0x78] sm:$0xff]  ;;  %v4681_v36 = vsel %vm1768_vm0, %v6548_v56, 0.0 }
  0x62   :  { %2985 = vst [vmem:[#allocation1 + $0x20] ss:$4 sm:$0xff] %v2552_v29  ;;  %v1816_v42 = vsel %vm1768_vm0, %v12374_v3, %v1237_v17  ;;  %v12375_v29 = vperm.slane %v6392_v4, 1  ;;  %v1815_v17 = vsel %vm1772_vm2, %v1813_v19, %v1814_v63  ;;  %v1241_v57 = vrot.slane %v12376_v35, 4 }
  0x63   :  { %v1242_v3 = vrot.slane %v12377_v0, 2  ;;  %v1818_v32 = vsel %vm1772_vm2, %v1816_v42, %v1817_v1  ;;  %v4678_v18 = vadd.f32 %v4677_v28, %v4676_v7  ;;  %v1243_v30 = vrot.slane %v12378_v33, 6  ;;  %12381 = vst [vmem:[#allocation17_spill] sm:$0xff] %v6817_v50 }
  0x64   :  { %v1240_v61 = vrot.slane %v12375_v29, 6  ;;  %v12379_v29 = vperm.slane %v6392_v4, 6  ;;  %v12380_v19 = vperm.slane %v6392_v4, 7  ;;  %v2553_v35 = vmul.f32 %v1815_v17, %v54_v27 }
  0x65   :  { %v4680_v60 = vadd.f32 %v4679_v23, %v4678_v18  ;;  %v4683_v42 = vsel %vm1768_vm0, %v6589_v11, 0.0  ;;  %v4685_v1 = vsel %vm1768_vm0, %v6591_v39, 0.0  ;;  %v2554_v33 = vmul.f32 %v1818_v32, %v55_v54 }
  0x66   :  { %v1244_v24 = vrot.slane %v12379_v29, 4  ;;  %v1245_v63 = vrot.slane %v12380_v19, 2  ;;  %v12383_v32 = vperm.slane %v6392_v4, 0  ;;  %v1820_v21 = vsel %vm1770_vm1, %v1241_v57, %v1242_v3  ;;  %v56_v3 = vld [vmem:[#allocation2 + $0x80] sm:$0xff] }
  0x67   :  { %v4682_v19 = vadd.f32 %v4681_v36, %v4680_v60  ;;  %v4687_v60 = vsel %vm1768_vm0, %v6593_v16, 0.0  ;;  %v12384_v11 = vperm.slane %v6392_v4, 4  ;;  %v4689_v57 = vsel %vm1768_vm0, %v6597_v41, 0.0 }
  0x68   :  { %v6823_v28 = vld.sshfl [vmem:[#allocation1] sm:$0xff pattern:$0x73625140]  ;;  %v6825_v7 = vld.sshfl [vmem:[#allocation1 + $0x8] sm:$0xff pattern:$0x73625140]  ;;  %v1819_v18 = vsel %vm1768_vm0, %v12383_v32, %v1240_v61 }
  0x69   :  { %v6827_v0 = vld.sshfl [vmem:[#allocation1 + $0x10] sm:$0xff pattern:$0x73625140]  ;;  %v6829_v29 = vld.sshfl [vmem:[#allocation1 + $0x18] sm:$0xff pattern:$0x73625140]  ;;  %v4684_v39 = vadd.f32 %v4683_v42, %v4682_v19  ;;  %v1821_v4 = vsel %vm1772_vm2, %v1819_v18, %v1820_v21 }
  0x6a   :  { %v6831_v56 = vld.sshfl [vmem:[#allocation1 + $0x20] sm:$0xff pattern:$0x73625140]  ;;  %v6833_v27 = vld.sshfl [vmem:[#allocation1 + $0x28] sm:$0xff pattern:$0x73625140]  ;;  %v2555_v19 = vmul.f32 %v1821_v4, %v56_v3 }
  0x6b   :  { %v6835_v17 = vld.sshfl [vmem:[#allocation1 + $0x30] sm:$0xff pattern:$0x73625140]  ;;  %v6838_v23 = vld.sshfl [vmem:[#allocation1 + $0x38] sm:$0xff pattern:$0x73625140]  ;;  %v4686_v42 = vadd.f32 %v4685_v1, %v4684_v39 }
  0x6c   :  { %12382 = vst [vmem:[#allocation18_spill] sm:$0xff] %v6838_v23  ;;  %v1822_v23 = vsel %vm1768_vm0, %v12384_v11, %v1243_v30  ;;  %v57_v11 = vld [vmem:[#allocation2 + $0x88] sm:$0xff]  ;;  %v12386_v1 = vperm.slane %v6410_v9, 2  ;;  %v4691_v41 = vsel %vm1768_vm0, %v6599_v37, 0.0  ;;  %v12387_v54 = vperm.slane %v6410_v9, 3 }
  0x6d   :  { %2994 = vst [vmem:[#allocation1] ss:$4 sm:$0xff] %v2553_v35  ;;  %v1823_v35 = vsel %vm1770_vm1, %v1244_v24, %v1245_v63  ;;  %v4688_v30 = vadd.f32 %v4687_v60, %v4686_v42  ;;  %v12385_v24 = vperm.slane %v6410_v9, 1  ;;  %v12389_v21 = vperm.slane %v6410_v9, 6 }
  0x6e   :  { %2995 = vst [vmem:[#allocation1 + $0x20] ss:$4 sm:$0xff] %v2554_v33  ;;  %v1247_v39 = vrot.slane %v12386_v1, 4  ;;  %v1824_v32 = vsel %vm1772_vm2, %v1822_v23, %v1823_v35  ;;  %v1248_v16 = vrot.slane %v12387_v54, 2  ;;  %v12388_v33 = vperm.slane %v6410_v9, 5  ;;  %v6879_v35 = vld [vmem:[#allocation5 + $0xa8] sm:$0xff] }
  0x6f   :  { %v1246_v63 = vrot.slane %v12385_v24, 6  ;;  %v1250_v18 = vrot.slane %v12389_v21, 4  ;;  %v4690_v60 = vadd.f32 %v4689_v57, %v4688_v30  ;;  %v12390_v42 = vperm.slane %v6410_v9, 7  ;;  %12391 = vst [vmem:[#allocation19_spill] sm:$0xff] %v6879_v35 }
  0x70   :  { %v1249_v61 = vrot.slane %v12388_v33, 6  ;;  %v4693_v23 = vsel %vm1768_vm0, %v6601_v43, 0.0  ;;  %v4695_v37 = vsel %vm1768_vm0, %v6603_v44, 0.0  ;;  %v2556_v54 = vmul.f32 %v1824_v32, %v57_v11 }
  0x71   :  { %v1251_v24 = vrot.slane %v12390_v42, 2  ;;  %v4692_v57 = vadd.f32 %v4691_v41, %v4690_v60  ;;  %v4697_v11 = vsel %vm1768_vm0, %v6606_v51, 0.0  ;;  %v12394_v42 = vperm.slane %v6410_v9, 0 }
  0x72   :  { %v1826_v60 = vsel %vm1770_vm1, %v1247_v39, %v1248_v16  ;;  %v4699_v51 = vsel %vm1768_vm0, %v6647_v20, 0.0  ;;  %v58_v39 = vld [vmem:[#allocation2 + $0x90] sm:$0xff]  ;;  %v12397_v20 = vperm.slane %v6424_v2, 2 }
  0x73   :  { %v4694_v4 = vadd.f32 %v4693_v23, %v4692_v57  ;;  %v1825_v41 = vsel %vm1768_vm0, %v12394_v42, %v1246_v63  ;;  %v12395_v23 = vperm.slane %v6410_v9, 4  ;;  %v12398_v42 = vperm.slane %v6424_v2, 3 }
  0x74   :  { %v6881_v1 = vld.sshfl [vmem:[#allocation1] sm:$0xff pattern:$0x73625140]  ;;  %v6883_v33 = vld.sshfl [vmem:[#allocation1 + $0x8] sm:$0xff pattern:$0x73625140] }
  0x75   :  { %v6885_v36 = vld.sshfl [vmem:[#allocation1 + $0x10] sm:$0xff pattern:$0x73625140]  ;;  %v6887_v30 = vld.sshfl [vmem:[#allocation1 + $0x18] sm:$0xff pattern:$0x73625140]  ;;  %v4696_v50 = vadd.f32 %v4695_v37, %v4694_v4  ;;  %v1828_v57 = vsel %vm1768_vm0, %v12395_v23, %v1249_v61  ;;  %v1827_v61 = vsel %vm1772_vm2, %v1825_v41, %v1826_v60 }
  0x76   :  { %v6889_v21 = vld.sshfl [vmem:[#allocation1 + $0x20] sm:$0xff pattern:$0x73625140]  ;;  %v6891_v3 = vld.sshfl [vmem:[#allocation1 + $0x28] sm:$0xff pattern:$0x73625140]  ;;  %v2557_v32 = vmul.f32 %v1827_v61, %v58_v39 }
  0x77   :  { %12392 = vst [vmem:[#allocation20_spill] sm:$0xff] %v6891_v3  ;;  %v6893_v43 = vld.sshfl [vmem:[#allocation1 + $0x30] sm:$0xff pattern:$0x73625140]  ;;  %v4698_v16 = vadd.f32 %v4697_v11, %v4696_v50  ;;  %v1253_v4 = vrot.slane %v12397_v20, 4  ;;  %v1254_v23 = vrot.slane %v12398_v42, 2 }
  0x78   :  { %v6895_v44 = vld.sshfl [vmem:[#allocation1 + $0x38] sm:$0xff pattern:$0x73625140]  ;;  %3004 = vst [vmem:[#allocation1] ss:$4 sm:$0xff] %v2555_v19  ;;  %v1829_v19 = vsel %vm1770_vm1, %v1250_v18, %v1251_v24  ;;  %v4701_v18 = vsel %vm1768_vm0, %v6649_v47, 0.0 }
  0x79   :  { %12393 = vst [vmem:[#allocation21_spill] sm:$0xff] %v6895_v44  ;;  %v59_v24 = vld [vmem:[#allocation2 + $0x98] sm:$0xff]  ;;  %v1830_v50 = vsel %vm1772_vm2, %v1828_v57, %v1829_v19  ;;  %v4700_v11 = vadd.f32 %v4699_v51, %v4698_v16  ;;  %v12399_v63 = vperm.slane %v6424_v2, 5  ;;  %v12401_v41 = vperm.slane %v6424_v2, 7 }
  0x7a   :  { %3005 = vst [vmem:[#allocation1 + $0x20] ss:$4 sm:$0xff] %v2556_v54  ;;  %v12396_v54 = vperm.slane %v6424_v2, 1  ;;  %v4703_v47 = vsel %vm1768_vm0, %v6651_v25, 0.0  ;;  %v4705_v42 = vsel %vm1768_vm0, %v6653_v48, 0.0  ;;  %v4707_v57 = vsel %vm1768_vm0, %v6655_v49, 0.0 }
  0x7b   :  { %v1255_v37 = vrot.slane %v12399_v63, 6  ;;  %v1257_v60 = vrot.slane %v12401_v41, 2  ;;  %v4702_v20 = vadd.f32 %v4701_v18, %v4700_v11  ;;  %v2558_v19 = vmul.f32 %v1830_v50, %v59_v24 }
  0x7c   :  { %v1252_v9 = vrot.slane %v12396_v54, 6  ;;  %v12400_v54 = vperm.slane %v6424_v2, 6  ;;  %v12405_v11 = vperm.slane %v6424_v2, 0  ;;  %v12406_v49 = vperm.slane %v6424_v2, 4 }
  0x7d   :  { %v4704_v39 = vadd.f32 %v4703_v47, %v4702_v20  ;;  %v4709_v47 = vsel %vm1768_vm0, %v6657_v45, 0.0  ;;  %v12409_v20 = vperm.slane %v6440_v14, 3 }
  0x7e   :  { %v1256_v44 = vrot.slane %v12400_v54, 4  ;;  %v6943_v54 = vld [vmem:[#allocation5 + $0xb0] sm:$0xff]  ;;  %v1831_v3 = vsel %vm1768_vm0, %v12405_v11, %v1252_v9 }
  0x7f   :  { %v6937_v51 = vld.sshfl [vmem:[#allocation1] sm:$0xff pattern:$0x73625140]  ;;  %v6939_v63 = vld.sshfl [vmem:[#allocation1 + $0x8] sm:$0xff pattern:$0x73625140]  ;;  %v4706_v24 = vadd.f32 %v4705_v42, %v4704_v39 }
  0x80   :  { %v6941_v16 = vld.sshfl [vmem:[#allocation1 + $0x10] sm:$0xff pattern:$0x73625140]  ;;  %12402 = vst [vmem:[#allocation22_spill] sm:$0xff] %v6943_v54  ;;  %v1260_v45 = vrot.slane %v12409_v20, 2 }
  0x81   :  { %v6945_v41 = vld.sshfl [vmem:[#allocation1 + $0x18] sm:$0xff pattern:$0x73625140]  ;;  %v6947_v25 = vld.sshfl [vmem:[#allocation1 + $0x20] sm:$0xff pattern:$0x73625140]  ;;  %v4708_v42 = vadd.f32 %v4707_v57, %v4706_v24 }
  0x82   :  { %12403 = vst [vmem:[#allocation23_spill] sm:$0xff] %v6945_v41  ;;  %v6949_v61 = vld.sshfl [vmem:[#allocation1 + $0x28] sm:$0xff pattern:$0x73625140]  ;;  %v1832_v41 = vsel %vm1770_vm1, %v1253_v4, %v1254_v23  ;;  %v4711_v4 = vsel %vm1768_vm0, %v6659_v58, 0.0  ;;  %v12408_v57 = vperm.slane %v6440_v14, 2 }
  0x83   :  { %v6951_v48 = vld.sshfl [vmem:[#allocation1 + $0x30] sm:$0xff pattern:$0x73625140]  ;;  %v6954_v18 = vld.sshfl [vmem:[#allocation1 + $0x38] sm:$0xff pattern:$0x73625140]  ;;  %v1833_v2 = vsel %vm1772_vm2, %v1831_v3, %v1832_v41 }
  0x84   :  { %12404 = vst [vmem:[#allocation24_spill] sm:$0xff] %v6954_v18  ;;  %v1834_v18 = vsel %vm1768_vm0, %v12406_v49, %v1255_v37  ;;  %v60_v23 = vld [vmem:[#allocation2 + $0xa0] sm:$0xff]  ;;  %v4710_v37 = vadd.f32 %v4709_v47, %v4708_v42  ;;  %v61_v49 = vld [vmem:[#allocation2 + $0xa8] sm:$0xff]  ;;  %v1259_v24 = vrot.slane %v12408_v57, 4  ;;  %v4713_v58 = vsel %vm1768_vm0, %v6662_v13, 0.0 }
  0x85   :  { %3014 = vst [vmem:[#allocation1] ss:$4 sm:$0xff] %v2557_v32  ;;  %v1835_v32 = vsel %vm1770_vm1, %v1256_v44, %v1257_v60  ;;  %v12407_v44 = vperm.slane %v6440_v14, 1  ;;  %v12411_v3 = vperm.slane %v6440_v14, 6  ;;  %v12412_v42 = vperm.slane %v6440_v14, 7 }
  0x86   :  { %3015 = vst [vmem:[#allocation1 + $0x20] ss:$4 sm:$0xff] %v2558_v19  ;;  %v1836_v11 = vsel %vm1772_vm2, %v1834_v18, %v1835_v32  ;;  %v12410_v19 = vperm.slane %v6440_v14, 5  ;;  %v4712_v47 = vadd.f32 %v4711_v4, %v4710_v37  ;;  %v2559_v50 = vmul.f32 %v1833_v2, %v60_v23 }
  0x87   :  { %v1258_v60 = vrot.slane %v12407_v44, 6  ;;  %v1262_v41 = vrot.slane %v12411_v3, 4  ;;  %v1263_v44 = vrot.slane %v12412_v42, 2  ;;  %v4715_v18 = vsel %vm1768_vm0, %v6707_v46, 0.0  ;;  %v7001_v3 = vld [vmem:[#allocation5 + $0xb8] sm:$0xff] }
  0x88   :  { %v1261_v9 = vrot.slane %v12410_v19, 6  ;;  %v4717_v13 = vsel %vm1768_vm0, %v6709_v12, 0.0  ;;  %v2560_v32 = vmul.f32 %v1836_v11, %v61_v49  ;;  %v4714_v39 = vadd.f32 %v4713_v58, %v4712_v47  ;;  %12413 = vst [vmem:[#allocation25_spill] sm:$0xff] %v7001_v3 }
  0x89   :  { %v4719_v49 = vsel %vm1768_vm0, %v6711_v52, 0.0  ;;  %v12416_v58 = vperm.slane %v6440_v14, 0  ;;  %v1838_v42 = vsel %vm1770_vm1, %v1259_v24, %v1260_v45  ;;  %v4721_v52 = vsel %vm1768_vm0, %v6713_v15, 0.0  ;;  %v62_v24 = vld [vmem:[#allocation2 + $0xb0] sm:$0xff] }
  0x8a   :  { %v4716_v2 = vadd.f32 %v4715_v18, %v4714_v39  ;;  %v12417_v39 = vperm.slane %v6440_v14, 4  ;;  %v12419_v15 = vperm.slane %v6479_v22, 2  ;;  %v12421_v11 = vperm.slane %v6479_v22, 5 }
  0x8b   :  { %v1837_v47 = vsel %vm1768_vm0, %v12416_v58, %v1258_v60  ;;  %v12420_v58 = vperm.slane %v6479_v22, 3 }
  0x8c   :  { %v6995_v57 = vld.sshfl [vmem:[#allocation1] sm:$0xff pattern:$0x73625140]  ;;  %v6997_v20 = vld.sshfl [vmem:[#allocation1 + $0x8] sm:$0xff pattern:$0x73625140]  ;;  %v4718_v35 = vadd.f32 %v4717_v13, %v4716_v2  ;;  %v1840_v18 = vsel %vm1768_vm0, %v12417_v39, %v1261_v9  ;;  %v1839_v9 = vsel %vm1772_vm2, %v1837_v47, %v1838_v42 }
  0x8d   :  { %v6999_v19 = vld.sshfl [vmem:[#allocation1 + $0x10] sm:$0xff pattern:$0x73625140]  ;;  %v7003_v4 = vld.sshfl [vmem:[#allocation1 + $0x18] sm:$0xff pattern:$0x73625140] }
  0x8e   :  { %v7005_v37 = vld.sshfl [vmem:[#allocation1 + $0x20] sm:$0xff pattern:$0x73625140]  ;;  %v7007_v23 = vld.sshfl [vmem:[#allocation1 + $0x28] sm:$0xff pattern:$0x73625140]  ;;  %v4720_v45 = vadd.f32 %v4719_v49, %v4718_v35 }
  0x8f   :  { %12414 = vst [vmem:[#allocation26_spill] sm:$0xff] %v7007_v23  ;;  %v7009_v46 = vld.sshfl [vmem:[#allocation1 + $0x30] sm:$0xff pattern:$0x73625140]  ;;  %v1265_v2 = vrot.slane %v12419_v15, 4  ;;  %v1266_v39 = vrot.slane %v12420_v58, 2 }
  0x90   :  { %v7011_v12 = vld.sshfl [vmem:[#allocation1 + $0x38] sm:$0xff pattern:$0x73625140]  ;;  %3024 = vst [vmem:[#allocation1] ss:$4 sm:$0xff] %v2559_v50  ;;  %v1841_v50 = vsel %vm1770_vm1, %v1262_v41, %v1263_v44  ;;  %v4723_v41 = vsel %vm1768_vm0, %v6715_v5, 0.0  ;;  %v4722_v49 = vadd.f32 %v4721_v52, %v4720_v45 }
  0x91   :  { %12415 = vst [vmem:[#allocation27_spill] sm:$0xff] %v7011_v12  ;;  %v63_v44 = vld [vmem:[#allocation2 + $0xb8] sm:$0xff]  ;;  %v1842_v35 = vsel %vm1772_vm2, %v1840_v18, %v1841_v50  ;;  %v1267_v13 = vrot.slane %v12421_v11, 6  ;;  %v12423_v47 = vperm.slane %v6479_v22, 7  ;;  %v4725_v5 = vsel %vm1768_vm0, %v6717_v8, 0.0 }
  0x92   :  { %3025 = vst [vmem:[#allocation1 + $0x20] ss:$4 sm:$0xff] %v2560_v32  ;;  %v12418_v32 = vperm.slane %v6479_v22, 1  ;;  %v2561_v12 = vmul.f32 %v1839_v9, %v62_v24  ;;  %v4724_v15 = vadd.f32 %v4723_v41, %v4722_v49  ;;  %v4727_v58 = vsel %vm1768_vm0, %v6719_v62, 0.0 }
  0x93   :  { %v1269_v42 = vrot.slane %v12423_v47, 2  ;;  %v4729_v18 = vsel %vm1768_vm0, %v6722_v10, 0.0  ;;  %v2562_v50 = vmul.f32 %v1842_v35, %v63_v44  ;;  %v12426_v49 = vperm.slane %v6479_v22, 0 }
  0x94   :  { %v1264_v14 = vrot.slane %v12418_v32, 6  ;;  %v12422_v32 = vperm.slane %v6479_v22, 6  ;;  %v4726_v24 = vadd.f32 %v4725_v5, %v4724_v15  ;;  %v1844_v54 = vsel %vm1770_vm1, %v1265_v2, %v1266_v39  ;;  %v64_v39 = vld [vmem:[#allocation2 + $0xc0] sm:$0xff] }
  0x95   :  { %v4731_v5 = vsel %vm1768_vm0, %v6765_v55, 0.0  ;;  %v12427_v10 = vperm.slane %v6479_v22, 4  ;;  %v4733_v2 = vsel %vm1768_vm0, %v6767_v26, 0.0  ;;  %v4735_v26 = vsel %vm1768_vm0, %v6769_v59, 0.0 }
  0x96   :  { %v1268_v60 = vrot.slane %v12422_v32, 4  ;;  %v7059_v32 = vld [vmem:[#allocation5 + $0xc0] sm:$0xff]  ;;  %v4728_v44 = vadd.f32 %v4727_v58, %v4726_v24  ;;  %v1843_v23 = vsel %vm1768_vm0, %v12426_v49, %v1264_v14  ;;  %v12430_v35 = vperm.slane %v6498_v53, 3 }
  0x97   :  { %v7053_v52 = vld.sshfl [vmem:[#allocation1] sm:$0xff pattern:$0x73625140]  ;;  %v7055_v11 = vld.sshfl [vmem:[#allocation1 + $0x8] sm:$0xff pattern:$0x73625140]  ;;  %v1845_v22 = vsel %vm1772_vm2, %v1843_v23, %v1844_v54 }
  0x98   :  { %v7057_v45 = vld.sshfl [vmem:[#allocation1 + $0x10] sm:$0xff pattern:$0x73625140]  ;;  %12424 = vst [vmem:[#allocation28_spill] sm:$0xff] %v7059_v32  ;;  %v4730_v58 = vadd.f32 %v4729_v18, %v4728_v44  ;;  %v12429_v18 = vperm.slane %v6498_v53, 2  ;;  %v1272_v55 = vrot.slane %v12430_v35, 2  ;;  %v2563_v24 = vmul.f32 %v1845_v22, %v64_v39 }
  0x99   :  { %v7061_v47 = vld.sshfl [vmem:[#allocation1 + $0x18] sm:$0xff pattern:$0x73625140]  ;;  %v7063_v8 = vld.sshfl [vmem:[#allocation1 + $0x20] sm:$0xff pattern:$0x73625140] }
  0x9a   :  { %v7065_v9 = vld.sshfl [vmem:[#allocation1 + $0x28] sm:$0xff pattern:$0x73625140]  ;;  %v7067_v62 = vld.sshfl [vmem:[#allocation1 + $0x30] sm:$0xff pattern:$0x73625140] }
  0x9b   :  { %v7070_v41 = vld.sshfl [vmem:[#allocation1 + $0x38] sm:$0xff pattern:$0x73625140]  ;;  %3034 = vst [vmem:[#allocation1] ss:$4 sm:$0xff] %v2561_v12  ;;  %v1847_v12 = vsel %vm1770_vm1, %v1268_v60, %v1269_v42  ;;  %v12428_v60 = vperm.slane %v6498_v53, 1 }
  0x9c   :  { %12425 = vst [vmem:[#allocation29_spill] sm:$0xff] %v7070_v41  ;;  %v1846_v41 = vsel %vm1768_vm0, %v12427_v10, %v1267_v13  ;;  %v4732_v13 = vadd.f32 %v4731_v5, %v4730_v58  ;;  %v65_v10 = vld [vmem:[#allocation2 + $0xc8] sm:$0xff]  ;;  %v1271_v44 = vrot.slane %v12429_v18, 4  ;;  %v12432_v54 = vperm.slane %v6498_v53, 6 }
  0x9d   :  { %3035 = vst [vmem:[#allocation1 + $0x20] ss:$4 sm:$0xff] %v2562_v50  ;;  %v1270_v42 = vrot.slane %v12428_v60, 6  ;;  %v1848_v49 = vsel %vm1772_vm2, %v1846_v41, %v1847_v12  ;;  %v12431_v50 = vperm.slane %v6498_v53, 5  ;;  %v12433_v58 = vperm.slane %v6498_v53, 7 }
  0x9e   :  { %v1274_v23 = vrot.slane %v12432_v54, 4  ;;  %v4734_v5 = vadd.f32 %v4733_v2, %v4732_v13  ;;  %v4737_v41 = vsel %vm1768_vm0, %v6771_v6, 0.0  ;;  %v4739_v59 = vsel %vm1768_vm0, %v6773_v34, 0.0 }
  0x9f   :  { %v1273_v14 = vrot.slane %v12431_v50, 6  ;;  %v1275_v60 = vrot.slane %v12433_v58, 2  ;;  %v2564_v12 = vmul.f32 %v1848_v49, %v65_v10  ;;  %v4741_v34 = vsel %vm1768_vm0, %v6775_v40, 0.0  ;;  %v7129_v10 = vld [vmem:[#allocation5 + $0xc8] sm:$0xff] }
  0xa0   :  { %v4736_v15 = vadd.f32 %v4735_v26, %v4734_v5  ;;  %12436 = vst [vmem:[#allocation32_spill] sm:$0xff] %v7129_v10  ;;  %v12437_v26 = vperm.slane %v6498_v53, 0  ;;  %v1850_v58 = vsel %vm1770_vm1, %v1271_v44, %v1272_v55  ;;  %v66_v44 = vld [vmem:[#allocation2 + $0xd0] sm:$0xff] }
  0xa1   :  { %v1853_v40 = vsel %vm1770_vm1, %v1274_v23, %v1275_v60  ;;  %v67_v60 = vld [vmem:[#allocation2 + $0xd8] sm:$0xff] }
  0xa2   :  { %v7111_v18 = vld.sshfl [vmem:[#allocation1] sm:$0xff pattern:$0x73625140]  ;;  %v7113_v35 = vld.sshfl [vmem:[#allocation1 + $0x8] sm:$0xff pattern:$0x73625140]  ;;  %v4738_v6 = vadd.f32 %v4737_v41, %v4736_v15  ;;  %v1849_v5 = vsel %vm1768_vm0, %v12437_v26, %v1270_v42 }
  0xa3   :  { %v7115_v50 = vld.sshfl [vmem:[#allocation1 + $0x10] sm:$0xff pattern:$0x73625140]  ;;  %v7117_v54 = vld.sshfl [vmem:[#allocation1 + $0x18] sm:$0xff pattern:$0x73625140] }
  0xa4   :  { %v7119_v2 = vld.sshfl [vmem:[#allocation1 + $0x20] sm:$0xff pattern:$0x73625140]  ;;  %v7121_v13 = vld.sshfl [vmem:[#allocation1 + $0x28] sm:$0xff pattern:$0x73625140]  ;;  %v4740_v3 = vadd.f32 %v4739_v59, %v4738_v6 }
  0xa5   :  { %v7123_v39 = vld.sshfl [vmem:[#allocation1 + $0x30] sm:$0xff pattern:$0x73625140]  ;;  %v7125_v22 = vld.sshfl [vmem:[#allocation1 + $0x38] sm:$0xff pattern:$0x73625140] }
  0xa6   :  { %12434 = vst [vmem:[#allocation30_spill] sm:$0xff] %v7123_v39  ;;  %v12438_v41 = vperm.slane %v6498_v53, 4  ;;  %v4742_v55 = vadd.f32 %v4741_v34, %v4740_v3  ;;  %v12440_v6 = vld [vmem:[#allocation16_spill] sm:$0xff]  ;;  %v12443_v42 = vperm.slane %v6537_v31, 5 }
  0xa7   :  { %12435 = vst [vmem:[#allocation31_spill] sm:$0xff] %v7125_v22  ;;  %v4743_v22 = vsel %vm1768_vm0, %v6777_v38, 0.0  ;;  %v4745_v23 = vsel %vm1768_vm0, %v12440_v6, 0.0  ;;  %v12441_v38 = vperm.slane %v6537_v31, 2  ;;  %v4747_v6 = vsel %vm1768_vm0, %v6823_v28, 0.0 }
  0xa8   :  { %3044 = vst [vmem:[#allocation1] ss:$4 sm:$0xff] %v2563_v24  ;;  %v1852_v24 = vsel %vm1768_vm0, %v12438_v41, %v1273_v14  ;;  %v1851_v14 = vsel %vm1772_vm2, %v1849_v5, %v1850_v58  ;;  %v12442_v41 = vperm.slane %v6537_v31, 3  ;;  %v4744_v34 = vadd.f32 %v4743_v22, %v4742_v55 }
  0xa9   :  { %3045 = vst [vmem:[#allocation1 + $0x20] ss:$4 sm:$0xff] %v2564_v12  ;;  %v12439_v12 = vperm.slane %v6537_v31, 1  ;;  %v1277_v26 = vrot.slane %v12441_v38, 4  ;;  %v1854_v3 = vsel %vm1772_vm2, %v1852_v24, %v1853_v40  ;;  %v1279_v59 = vrot.slane %v12443_v42, 6 }
  0xaa   :  { %v1278_v39 = vrot.slane %v12442_v41, 2  ;;  %v12445_v5 = vperm.slane %v6537_v31, 7  ;;  %v2565_v15 = vmul.f32 %v1851_v14, %v66_v44  ;;  %v4746_v38 = vadd.f32 %v4745_v23, %v4744_v34 }
  0xab   :  { %v1276_v53 = vrot.slane %v12439_v12, 6  ;;  %v12444_v12 = vperm.slane %v6537_v31, 6  ;;  %v4749_v41 = vsel %vm1768_vm0, %v6825_v7, 0.0  ;;  %v4751_v22 = vsel %vm1768_vm0, %v6827_v0, 0.0 }
  0xac   :  { %v1281_v58 = vrot.slane %v12445_v5, 2  ;;  %v2566_v24 = vmul.f32 %v1854_v3, %v67_v60  ;;  %v4748_v28 = vadd.f32 %v4747_v6, %v4746_v38  ;;  %v7186_v60 = vld [vmem:[#allocation5 + $0xd0] sm:$0xff]  ;;  %v12450_v34 = vperm.slane %v6537_v31, 0 }
  0xad   :  { %v1280_v49 = vrot.slane %v12444_v12, 4  ;;  %12449 = vst [vmem:[#allocation35_spill] sm:$0xff] %v7186_v60  ;;  %v1856_v6 = vsel %vm1770_vm1, %v1277_v26, %v1278_v39  ;;  %v4753_v38 = vsel %vm1768_vm0, %v6829_v29, 0.0  ;;  %v4755_v39 = vsel %vm1768_vm0, %v6831_v56, 0.0  ;;  %v68_v26 = vld [vmem:[#allocation2 + $0xe0] sm:$0xff] }
  0xae   :  { %v4750_v0 = vadd.f32 %v4749_v41, %v4748_v28  ;;  %v1855_v32 = vsel %vm1768_vm0, %v12450_v34, %v1276_v53  ;;  %v4757_v56 = vsel %vm1768_vm0, %v6833_v27, 0.0 }
  0xaf   :  { %v7169_v40 = vld.sshfl [vmem:[#allocation1] sm:$0xff pattern:$0x73625140]  ;;  %v7171_v42 = vld.sshfl [vmem:[#allocation1 + $0x8] sm:$0xff pattern:$0x73625140]  ;;  %v1859_v41 = vsel %vm1770_vm1, %v1280_v49, %v1281_v58 }
  0xb0   :  { %v7173_v55 = vld.sshfl [vmem:[#allocation1 + $0x10] sm:$0xff pattern:$0x73625140]  ;;  %v7175_v12 = vld.sshfl [vmem:[#allocation1 + $0x18] sm:$0xff pattern:$0x73625140]  ;;  %v4752_v28 = vadd.f32 %v4751_v22, %v4750_v0 }
  0xb1   :  { %v7177_v5 = vld.sshfl [vmem:[#allocation1 + $0x20] sm:$0xff pattern:$0x73625140]  ;;  %v7179_v44 = vld.sshfl [vmem:[#allocation1 + $0x28] sm:$0xff pattern:$0x73625140] }
  0xb2   :  { %12446 = vst [vmem:[#allocation16_spill] sm:$0xff] %v7179_v44  ;;  %v7181_v14 = vld.sshfl [vmem:[#allocation1 + $0x30] sm:$0xff pattern:$0x73625140] }
  0xb3   :  { %12447 = vst [vmem:[#allocation33_spill] sm:$0xff] %v7181_v14  ;;  %v7184_v23 = vld.sshfl [vmem:[#allocation1 + $0x38] sm:$0xff pattern:$0x73625140]  ;;  %v12452_v49 = vld [vmem:[#allocation11_spill] sm:$0xff] }
  0xb4   :  { %12448 = vst [vmem:[#allocation34_spill] sm:$0xff] %v7184_v23  ;;  %v12451_v23 = vperm.slane %v6537_v31, 4  ;;  %v1857_v31 = vsel %vm1772_vm2, %v1855_v32, %v1856_v6  ;;  %v12453_v58 = vperm.slane %v12452_v49, 1  ;;  %v12454_v0 = vperm.slane %v12452_v49, 2 }
  0xb5   :  { %3054 = vst [vmem:[#allocation1] ss:$4 sm:$0xff] %v2565_v15  ;;  %v12455_v53 = vperm.slane %v12452_v49, 3  ;;  %v12457_v32 = vperm.slane %v12452_v49, 6  ;;  %v2567_v3 = vmul.f32 %v1857_v31, %v68_v26 }
  0xb6   :  { %3055 = vst [vmem:[#allocation1 + $0x20] ss:$4 sm:$0xff] %v2566_v24  ;;  %v1858_v15 = vsel %vm1768_vm0, %v12451_v23, %v1279_v59  ;;  %v4754_v59 = vadd.f32 %v4753_v38, %v4752_v28  ;;  %v69_v23 = vld [vmem:[#allocation2 + $0xe8] sm:$0xff]  ;;  %v1282_v22 = vrot.slane %v12453_v58, 6  ;;  %v1283_v34 = vrot.slane %v12454_v0, 4 }
  0xb7   :  { %v1860_v7 = vsel %vm1772_vm2, %v1858_v15, %v1859_v41  ;;  %v1284_v29 = vrot.slane %v12455_v53, 2  ;;  %v12456_v24 = vperm.slane %v12452_v49, 5  ;;  %v1286_v6 = vrot.slane %v12457_v32, 4  ;;  %v12459_v41 = vld [vmem:[#allocation18_spill] sm:$0xff] }
  0xb8   :  { %v4756_v38 = vadd.f32 %v4755_v39, %v4754_v59  ;;  %v12458_v28 = vperm.slane %v12452_v49, 7  ;;  %v4759_v15 = vsel %vm1768_vm0, %v6835_v17, 0.0  ;;  %v4761_v27 = vsel %vm1768_vm0, %v12459_v41, 0.0 }
  0xb9   :  { %v1285_v14 = vrot.slane %v12456_v24, 6  ;;  %v2568_v0 = vmul.f32 %v1860_v7, %v69_v23  ;;  %v4763_v7 = vsel %vm1768_vm0, %v6881_v1, 0.0  ;;  %v4765_v1 = vsel %vm1768_vm0, %v6883_v33, 0.0 }
  0xba   :  { %v1287_v58 = vrot.slane %v12458_v28, 2  ;;  %v4758_v44 = vadd.f32 %v4757_v56, %v4756_v38  ;;  %v12463_v28 = vperm.slane %v12452_v49, 0  ;;  %v1862_v38 = vsel %vm1770_vm1, %v1283_v34, %v1284_v29  ;;  %v70_v34 = vld [vmem:[#allocation2 + $0xf0] sm:$0xff] }
  0xbc   :  { %v7227_v10 = vld.sshfl [vmem:[#allocation1] sm:$0xff pattern:$0x73625140]  ;;  %v7229_v53 = vld.sshfl [vmem:[#allocation1 + $0x8] sm:$0xff pattern:$0x73625140]  ;;  %v4760_v17 = vadd.f32 %v4759_v15, %v4758_v44  ;;  %v1861_v56 = vsel %vm1768_vm0, %v12463_v28, %v1282_v22 }
  0xbd   :  { %v7231_v24 = vld.sshfl [vmem:[#allocation1 + $0x10] sm:$0xff pattern:$0x73625140]  ;;  %v7233_v32 = vld.sshfl [vmem:[#allocation1 + $0x18] sm:$0xff pattern:$0x73625140] }
  0xbe   :  { %v7235_v39 = vld.sshfl [vmem:[#allocation1 + $0x20] sm:$0xff pattern:$0x73625140]  ;;  %v7237_v59 = vld.sshfl [vmem:[#allocation1 + $0x28] sm:$0xff pattern:$0x73625140]  ;;  %v4762_v41 = vadd.f32 %v4761_v27, %v4760_v17 }
  0xbf   :  { %12460 = vst [vmem:[#allocation11_spill] sm:$0xff] %v7237_v59  ;;  %v7239_v26 = vld.sshfl [vmem:[#allocation1 + $0x30] sm:$0xff pattern:$0x73625140]  ;;  %v12464_v44 = vperm.slane %v12452_v49, 4  ;;  %v7279_v59 = vld [vmem:[#allocation5 + $0xd8] sm:$0xff] }
  0xc0   :  { %12461 = vst [vmem:[#allocation18_spill] sm:$0xff] %v7239_v26  ;;  %v7241_v31 = vld.sshfl [vmem:[#allocation1 + $0x38] sm:$0xff pattern:$0x73625140]  ;;  %v4764_v29 = vadd.f32 %v4763_v7, %v4762_v41 }
  0xc1   :  { %12462 = vst [vmem:[#allocation36_spill] sm:$0xff] %v7241_v31  ;;  %v1864_v15 = vsel %vm1768_vm0, %v12464_v44, %v1285_v14  ;;  %v1863_v14 = vsel %vm1772_vm2, %v1861_v56, %v1862_v38 }
  0xc2   :  { %3064 = vst [vmem:[#allocation1] ss:$4 sm:$0xff] %v2567_v3  ;;  %v1865_v3 = vsel %vm1770_vm1, %v1286_v6, %v1287_v58  ;;  %v4767_v6 = vsel %vm1768_vm0, %v6885_v36, 0.0  ;;  %v71_v58 = vld [vmem:[#allocation2 + $0xf8] sm:$0xff]  ;;  %v4766_v41 = vadd.f32 %v4765_v1, %v4764_v29  ;;  %v4769_v36 = vsel %vm1768_vm0, %v6887_v30, 0.0 }
  0xc3   :  { %3065 = vst [vmem:[#allocation1 + $0x20] ss:$4 sm:$0xff] %v2568_v0  ;;  %v12465_v0 = vld [vmem:[#allocation12_spill] sm:$0xff]  ;;  %v1866_v7 = vsel %vm1772_vm2, %v1864_v15, %v1865_v3  ;;  %v4771_v15 = vsel %vm1768_vm0, %v6889_v21, 0.0 }
  0xc4   :  { %v12466_v17 = vperm.slane %v12465_v0, 1  ;;  %v12467_v33 = vperm.slane %v12465_v0, 2  ;;  %v12468_v44 = vperm.slane %v12465_v0, 3  ;;  %v12469_v27 = vperm.slane %v12465_v0, 5  ;;  %12472 = vst [vmem:[#allocation12_spill] sm:$0xff] %v7279_v59  ;;  %v12473_v3 = vld [vmem:[#allocation20_spill] sm:$0xff] }
  0xc5   :  { %v12471_v56 = vperm.slane %v12465_v0, 7  ;;  %v4768_v60 = vadd.f32 %v4767_v6, %v4766_v41  ;;  %v4773_v1 = vsel %vm1768_vm0, %v12473_v3, 0.0  ;;  %v2570_v29 = vmul.f32 %v1866_v7, %v71_v58 }
  0xc6   :  { %v1288_v49 = vrot.slane %v12466_v17, 6  ;;  %v1289_v28 = vrot.slane %v12467_v33, 4  ;;  %v1290_v23 = vrot.slane %v12468_v44, 2  ;;  %v1291_v22 = vrot.slane %v12469_v27, 6 }
  0xc7   :  { %v12470_v17 = vperm.slane %v12465_v0, 6  ;;  %v1293_v38 = vrot.slane %v12471_v56, 2  ;;  %v2569_v33 = vmul.f32 %v1863_v14, %v70_v34  ;;  %v4770_v26 = vadd.f32 %v4769_v36, %v4768_v60 }
  0xc8   :  { %v12477_v41 = vperm.slane %v12465_v0, 0  ;;  %v4775_v60 = vsel %vm1768_vm0, %v6893_v43, 0.0  ;;  %v12478_v21 = vperm.slane %v12465_v0, 4 }
  0xc9   :  { %v1292_v31 = vrot.slane %v12470_v17, 4  ;;  %v7285_v27 = vld.sshfl [vmem:[#allocation1] sm:$0xff pattern:$0x73625140]  ;;  %v4772_v58 = vadd.f32 %v4771_v15, %v4770_v26 }
  0xca   :  { %v7287_v44 = vld.sshfl [vmem:[#allocation1 + $0x8] sm:$0xff pattern:$0x73625140]  ;;  %v7289_v17 = vld.sshfl [vmem:[#allocation1 + $0x10] sm:$0xff pattern:$0x73625140]  ;;  %v1867_v3 = vsel %vm1768_vm0, %v12477_v41, %v1288_v49 }
  0xcb   :  { %v7291_v56 = vld.sshfl [vmem:[#allocation1 + $0x18] sm:$0xff pattern:$0x73625140]  ;;  %v7293_v30 = vld.sshfl [vmem:[#allocation1 + $0x20] sm:$0xff pattern:$0x73625140]  ;;  %v1871_v26 = vsel %vm1770_vm1, %v1292_v31, %v1293_v38 }
  0xcc   :  { %12474 = vst [vmem:[#allocation20_spill] sm:$0xff] %v7291_v56  ;;  %v7295_v34 = vld.sshfl [vmem:[#allocation1 + $0x28] sm:$0xff pattern:$0x73625140]  ;;  %v1868_v56 = vsel %vm1770_vm1, %v1289_v28, %v1290_v23  ;;  %v12479_v23 = vld [vmem:[#allocation21_spill] sm:$0xff] }
  0xcd   :  { %v7297_v14 = vld.sshfl [vmem:[#allocation1 + $0x30] sm:$0xff pattern:$0x73625140]  ;;  %v7300_v6 = vld.sshfl [vmem:[#allocation1 + $0x38] sm:$0xff pattern:$0x73625140]  ;;  %v1869_v0 = vsel %vm1772_vm2, %v1867_v3, %v1868_v56 }
  0xce   :  { %12475 = vst [vmem:[#allocation37_spill] sm:$0xff] %v7297_v14  ;;  %v4777_v28 = vsel %vm1768_vm0, %v12479_v23, 0.0  ;;  %v12480_v31 = vld [vmem:[#allocation13_spill] sm:$0xff]  ;;  %v4779_v23 = vsel %vm1768_vm0, %v6937_v51, 0.0  ;;  %v4783_v51 = vsel %vm1768_vm0, %v6941_v16, 0.0 }
  0xcf   :  { %12476 = vst [vmem:[#allocation38_spill] sm:$0xff] %v7300_v6  ;;  %v1870_v6 = vsel %vm1768_vm0, %v12478_v21, %v1291_v22  ;;  %v73_v21 = vld [vmem:[#allocation2 + $0x108] sm:$0xff]  ;;  %v12481_v38 = vperm.slane %v12480_v31, 1  ;;  %v12483_v15 = vperm.slane %v12480_v31, 3  ;;  %v12484_v41 = vperm.slane %v12480_v31, 5 }
  0xd0   :  { %3074 = vst [vmem:[#allocation1] ss:$4 sm:$0xff] %v2569_v33  ;;  %v4774_v33 = vadd.f32 %v4773_v1, %v4772_v58  ;;  %v12482_v58 = vperm.slane %v12480_v31, 2  ;;  %v1872_v49 = vsel %vm1772_vm2, %v1870_v6, %v1871_v26  ;;  %v12485_v56 = vperm.slane %v12480_v31, 6  ;;  %v7341_v26 = vld [vmem:[#allocation5 + $0xe0] sm:$0xff] }
  0xd1   :  { %3075 = vst [vmem:[#allocation1 + $0x20] ss:$4 sm:$0xff] %v2570_v29  ;;  %v72_v29 = vld [vmem:[#allocation2 + $0x100] sm:$0xff]  ;;  %v1294_v1 = vrot.slane %v12481_v38, 6  ;;  %v1296_v43 = vrot.slane %v12483_v15, 2  ;;  %v1297_v36 = vrot.slane %v12484_v41, 6  ;;  %v2572_v15 = vmul.f32 %v1872_v49, %v73_v21 }
  0xd2   :  { %v4776_v22 = vadd.f32 %v4775_v60, %v4774_v33  ;;  %v1295_v7 = vrot.slane %v12482_v58, 4  ;;  %v1298_v3 = vrot.slane %v12485_v56, 4  ;;  %v12486_v33 = vperm.slane %v12480_v31, 7  ;;  %v12492_v49 = vld [vmem:[#allocation23_spill] sm:$0xff] }
  0xd3   :  { %v2571_v59 = vmul.f32 %v1869_v0, %v72_v29  ;;  %v4781_v6 = vsel %vm1768_vm0, %v6939_v63, 0.0  ;;  %v4785_v21 = vsel %vm1768_vm0, %v12492_v49, 0.0  ;;  %v4787_v49 = vsel %vm1768_vm0, %v6947_v25, 0.0 }
  0xd4   :  { %v4778_v60 = vadd.f32 %v4777_v28, %v4776_v22  ;;  %v1299_v38 = vrot.slane %v12486_v33, 2 }
  0xd6   :  { %v4780_v28 = vadd.f32 %v4779_v23, %v4778_v60  ;;  %v1874_v60 = vsel %vm1770_vm1, %v1295_v7, %v1296_v43  ;;  %v74_v43 = vld [vmem:[#allocation2 + $0x110] sm:$0xff] }
  0xd7   :  { %v7343_v58 = vld.sshfl [vmem:[#allocation1] sm:$0xff pattern:$0x73625140]  ;;  %v7345_v41 = vld.sshfl [vmem:[#allocation1 + $0x8] sm:$0xff pattern:$0x73625140] }
  0xd8   :  { %v7347_v14 = vld.sshfl [vmem:[#allocation1 + $0x10] sm:$0xff pattern:$0x73625140]  ;;  %v7349_v22 = vld.sshfl [vmem:[#allocation1 + $0x18] sm:$0xff pattern:$0x73625140]  ;;  %v4782_v0 = vadd.f32 %v4781_v6, %v4780_v28 }
  0xd9   :  { %12487 = vst [vmem:[#allocation21_spill] sm:$0xff] %v7347_v14  ;;  %v7351_v56 = vld.sshfl [vmem:[#allocation1 + $0x20] sm:$0xff pattern:$0x73625140]  ;;  %v12493_v14 = vperm.slane %v12480_v31, 0  ;;  %v12494_v6 = vperm.slane %v12480_v31, 4 }
  0xda   :  { %12488 = vst [vmem:[#allocation13_spill] sm:$0xff] %v7351_v56  ;;  %v7353_v29 = vld.sshfl [vmem:[#allocation1 + $0x28] sm:$0xff pattern:$0x73625140]  ;;  %v4784_v56 = vadd.f32 %v4783_v51, %v4782_v0 }
  0xdb   :  { %12489 = vst [vmem:[#allocation39_spill] sm:$0xff] %v7353_v29  ;;  %v7355_v63 = vld.sshfl [vmem:[#allocation1 + $0x30] sm:$0xff pattern:$0x73625140]  ;;  %v1873_v23 = vsel %vm1768_vm0, %v12493_v14, %v1294_v1  ;;  %v1876_v28 = vsel %vm1768_vm0, %v12494_v6, %v1297_v36  ;;  %v12495_v51 = vld [vmem:[#allocation14_spill] sm:$0xff] }
  0xdc   :  { %12490 = vst [vmem:[#allocation40_spill] sm:$0xff] %v7355_v63  ;;  %v7357_v16 = vld.sshfl [vmem:[#allocation1 + $0x38] sm:$0xff pattern:$0x73625140]  ;;  %v4786_v7 = vadd.f32 %v4785_v21, %v4784_v56  ;;  %v1875_v36 = vsel %vm1772_vm2, %v1873_v23, %v1874_v60  ;;  %v12497_v25 = vperm.slane %v12495_v51, 2  ;;  %v12498_v6 = vperm.slane %v12495_v51, 3 }
  0xdd   :  { %12491 = vst [vmem:[#allocation41_spill] sm:$0xff] %v7357_v16  ;;  %v12499_v14 = vperm.slane %v12495_v51, 5  ;;  %v12501_v23 = vperm.slane %v12495_v51, 7  ;;  %v2573_v29 = vmul.f32 %v1875_v36, %v74_v43  ;;  %v12502_v63 = vld [vmem:[#allocation24_spill] sm:$0xff] }
  0xde   :  { %3084 = vst [vmem:[#allocation1] ss:$4 sm:$0xff] %v2571_v59  ;;  %v1877_v59 = vsel %vm1770_vm1, %v1298_v3, %v1299_v38  ;;  %v4789_v3 = vsel %vm1768_vm0, %v6949_v61, 0.0  ;;  %v75_v38 = vld [vmem:[#allocation2 + $0x118] sm:$0xff]  ;;  %v1301_v0 = vrot.slane %v12497_v25, 4  ;;  %v1302_v16 = vrot.slane %v12498_v6, 2 }
  0xdf   :  { %3085 = vst [vmem:[#allocation1 + $0x20] ss:$4 sm:$0xff] %v2572_v15  ;;  %v12496_v15 = vperm.slane %v12495_v51, 1  ;;  %v1878_v56 = vsel %vm1772_vm2, %v1876_v28, %v1877_v59  ;;  %v4788_v21 = vadd.f32 %v4787_v49, %v4786_v7  ;;  %v1303_v1 = vrot.slane %v12499_v14, 6 }
  0xe0   :  { %v1305_v60 = vrot.slane %v12501_v23, 2  ;;  %v4791_v61 = vsel %vm1768_vm0, %v6951_v48, 0.0  ;;  %v4793_v6 = vsel %vm1768_vm0, %v12502_v63, 0.0  ;;  %v4795_v28 = vsel %vm1768_vm0, %v6995_v57, 0.0 }
  0xe1   :  { %v1300_v31 = vrot.slane %v12496_v15, 6  ;;  %v12500_v15 = vperm.slane %v12495_v51, 6  ;;  %v4790_v25 = vadd.f32 %v4789_v3, %v4788_v21  ;;  %v2574_v59 = vmul.f32 %v1878_v56, %v75_v38 }
  0xe2   :  { %v12508_v21 = vperm.slane %v12495_v51, 0  ;;  %v12509_v57 = vperm.slane %v12495_v51, 4 }
  0xe3   :  { %v1304_v33 = vrot.slane %v12500_v15, 4  ;;  %v7405_v15 = vld [vmem:[#allocation5 + $0xe8] sm:$0xff]  ;;  %v4792_v43 = vadd.f32 %v4791_v61, %v4790_v25  ;;  %v4797_v61 = vsel %vm1768_vm0, %v6997_v20, 0.0 }
  0xe5   :  { %v7399_v49 = vld.sshfl [vmem:[#allocation1] sm:$0xff pattern:$0x73625140]  ;;  %v7401_v14 = vld.sshfl [vmem:[#allocation1 + $0x8] sm:$0xff pattern:$0x73625140]  ;;  %v4794_v38 = vadd.f32 %v4793_v6, %v4792_v43 }
  0xe6   :  { %v7403_v7 = vld.sshfl [vmem:[#allocation1 + $0x10] sm:$0xff pattern:$0x73625140]  ;;  %v7407_v23 = vld.sshfl [vmem:[#allocation1 + $0x18] sm:$0xff pattern:$0x73625140] }
  0xe7   :  { %12503 = vst [vmem:[#allocation23_spill] sm:$0xff] %v7403_v7  ;;  %v7409_v48 = vld.sshfl [vmem:[#allocation1 + $0x20] sm:$0xff pattern:$0x73625140]  ;;  %v1879_v7 = vsel %vm1768_vm0, %v12508_v21, %v1300_v31  ;;  %v4796_v6 = vadd.f32 %v4795_v28, %v4794_v38 }
  0xe8   :  { %12504 = vst [vmem:[#allocation14_spill] sm:$0xff] %v7407_v23  ;;  %v7411_v36 = vld.sshfl [vmem:[#allocation1 + $0x28] sm:$0xff pattern:$0x73625140]  ;;  %v1880_v23 = vsel %vm1770_vm1, %v1301_v0, %v1302_v16  ;;  %v4799_v16 = vsel %vm1768_vm0, %v6999_v19, 0.0  ;;  %v4801_v19 = vsel %vm1768_vm0, %v7003_v4, 0.0 }
  0xe9   :  { %12505 = vst [vmem:[#allocation24_spill] sm:$0xff] %v7411_v36  ;;  %v7413_v63 = vld.sshfl [vmem:[#allocation1 + $0x30] sm:$0xff pattern:$0x73625140]  ;;  %v76_v0 = vld [vmem:[#allocation2 + $0x120] sm:$0xff]  ;;  %v1881_v51 = vsel %vm1772_vm2, %v1879_v7, %v1880_v23 }
  0xea   :  { %12506 = vst [vmem:[#allocation42_spill] sm:$0xff] %v7413_v63  ;;  %v7416_v3 = vld.sshfl [vmem:[#allocation1 + $0x38] sm:$0xff pattern:$0x73625140]  ;;  %v2575_v43 = vmul.f32 %v1881_v51, %v76_v0 }
  0xeb   :  { %12507 = vst [vmem:[#allocation43_spill] sm:$0xff] %v7416_v3  ;;  %v1882_v3 = vsel %vm1768_vm0, %v12509_v57, %v1303_v1  ;;  %v4798_v1 = vadd.f32 %v4797_v61, %v4796_v6  ;;  %v77_v57 = vld [vmem:[#allocation2 + $0x128] sm:$0xff] }
  0xec   :  { %3094 = vst [vmem:[#allocation1] ss:$4 sm:$0xff] %v2573_v29  ;;  %v1883_v29 = vsel %vm1770_vm1, %v1304_v33, %v1305_v60  ;;  %v12510_v33 = vld [vmem:[#allocation15_spill] sm:$0xff] }
  0xed   :  { %3095 = vst [vmem:[#allocation1 + $0x20] ss:$4 sm:$0xff] %v2574_v59  ;;  %v12511_v60 = vperm.slane %v12510_v33, 1  ;;  %v12512_v38 = vperm.slane %v12510_v33, 2  ;;  %v1884_v25 = vsel %vm1772_vm2, %v1882_v3, %v1883_v29  ;;  %v12513_v31 = vperm.slane %v12510_v33, 3  ;;  %v12517_v29 = vld [vmem:[#allocation26_spill] sm:$0xff] }
  0xee   :  { %v12514_v59 = vperm.slane %v12510_v33, 5  ;;  %v12515_v7 = vperm.slane %v12510_v33, 6  ;;  %v4800_v61 = vadd.f32 %v4799_v16, %v4798_v1  ;;  %v12516_v6 = vperm.slane %v12510_v33, 7 }
  0xef   :  { %v1306_v28 = vrot.slane %v12511_v60, 6  ;;  %v1307_v21 = vrot.slane %v12512_v38, 4  ;;  %v1308_v20 = vrot.slane %v12513_v31, 2  ;;  %v4803_v3 = vsel %vm1768_vm0, %v7005_v37, 0.0 }
  0xf0   :  { %v1309_v56 = vrot.slane %v12514_v59, 6  ;;  %v1310_v23 = vrot.slane %v12515_v7, 4  ;;  %v1311_v60 = vrot.slane %v12516_v6, 2  ;;  %v4805_v4 = vsel %vm1768_vm0, %v12517_v29, 0.0  ;;  %v7463_v7 = vld [vmem:[#allocation5 + $0xf0] sm:$0xff] }
  0xf1   :  { %v2576_v38 = vmul.f32 %v1884_v25, %v77_v57  ;;  %v4802_v36 = vadd.f32 %v4801_v19, %v4800_v61  ;;  %v4807_v25 = vsel %vm1768_vm0, %v7009_v46, 0.0  ;;  %v12522_v19 = vperm.slane %v12510_v33, 0 }
  0xf2   :  { %v1886_v29 = vsel %vm1770_vm1, %v1307_v21, %v1308_v20  ;;  %v78_v21 = vld [vmem:[#allocation2 + $0x130] sm:$0xff] }
  0xf3   :  { %v7457_v63 = vld.sshfl [vmem:[#allocation1] sm:$0xff pattern:$0x73625140]  ;;  %v7459_v31 = vld.sshfl [vmem:[#allocation1 + $0x8] sm:$0xff pattern:$0x73625140]  ;;  %v4804_v51 = vadd.f32 %v4803_v3, %v4802_v36  ;;  %v1885_v61 = vsel %vm1768_vm0, %v12522_v19, %v1306_v28 }
  0xf4   :  { %v7461_v59 = vld.sshfl [vmem:[#allocation1 + $0x10] sm:$0xff pattern:$0x73625140]  ;;  %v7465_v16 = vld.sshfl [vmem:[#allocation1 + $0x18] sm:$0xff pattern:$0x73625140] }
  0xf5   :  { %v7467_v1 = vld.sshfl [vmem:[#allocation1 + $0x20] sm:$0xff pattern:$0x73625140]  ;;  %v7469_v0 = vld.sshfl [vmem:[#allocation1 + $0x28] sm:$0xff pattern:$0x73625140] }
  0xf6   :  { %12518 = vst [vmem:[#allocation15_spill] sm:$0xff] %v7467_v1  ;;  %v7471_v37 = vld.sshfl [vmem:[#allocation1 + $0x30] sm:$0xff pattern:$0x73625140]  ;;  %v4806_v1 = vadd.f32 %v4805_v4, %v4804_v51  ;;  %v12523_v36 = vperm.slane %v12510_v33, 4 }
  0xf7   :  { %12519 = vst [vmem:[#allocation26_spill] sm:$0xff] %v7469_v0  ;;  %v7473_v6 = vld.sshfl [vmem:[#allocation1 + $0x38] sm:$0xff pattern:$0x73625140] }
  0xf8   :  { %12520 = vst [vmem:[#allocation44_spill] sm:$0xff] %v7471_v37  ;;  %v1888_v3 = vsel %vm1768_vm0, %v12523_v36, %v1309_v56  ;;  %v4808_v20 = vadd.f32 %v4807_v25, %v4806_v1  ;;  %v1887_v56 = vsel %vm1772_vm2, %v1885_v61, %v1886_v29 }
  0xf9   :  { %12521 = vst [vmem:[#allocation45_spill] sm:$0xff] %v7473_v6  ;;  %v12524_v6 = vld [vmem:[#allocation27_spill] sm:$0xff]  ;;  %v2577_v0 = vmul.f32 %v1887_v56, %v78_v21 }
  0xfa   :  { %3104 = vst [vmem:[#allocation1] ss:$4 sm:$0xff] %v2575_v43  ;;  %v1889_v43 = vsel %vm1770_vm1, %v1310_v23, %v1311_v60  ;;  %v4809_v46 = vsel %vm1768_vm0, %v12524_v6, 0.0  ;;  %v4811_v23 = vsel %vm1768_vm0, %v7053_v52, 0.0  ;;  %v79_v60 = vld [vmem:[#allocation2 + $0x138] sm:$0xff]  ;;  %v4813_v52 = vsel %vm1768_vm0, %v7055_v11, 0.0 }
  0xfb   :  { %3105 = vst [vmem:[#allocation1 + $0x20] ss:$4 sm:$0xff] %v2576_v38  ;;  %v12525_v38 = vld [vmem:[#allocation17_spill] sm:$0xff]  ;;  %v1890_v1 = vsel %vm1772_vm2, %v1888_v3, %v1889_v43  ;;  %v4810_v25 = vadd.f32 %v4809_v46, %v4808_v20  ;;  %v4817_v3 = vsel %vm1768_vm0, %v7061_v47, 0.0 }
  0xfc   :  { %v12526_v51 = vperm.slane %v12525_v38, 1  ;;  %v12527_v6 = vperm.slane %v12525_v38, 2  ;;  %v12528_v36 = vperm.slane %v12525_v38, 3  ;;  %v12529_v4 = vperm.slane %v12525_v38, 5 }
  0xfd   :  { %v12531_v61 = vperm.slane %v12525_v38, 7  ;;  %v2578_v43 = vmul.f32 %v1890_v1, %v79_v60  ;;  %v12538_v47 = vperm.slane %v12525_v38, 4 }
  0xfe   :  { %v1312_v33 = vrot.slane %v12526_v51, 6  ;;  %v1313_v19 = vrot.slane %v12527_v6, 4  ;;  %v1314_v57 = vrot.slane %v12528_v36, 2  ;;  %v1315_v28 = vrot.slane %v12529_v4, 6 }
  0xff   :  { %v12530_v51 = vperm.slane %v12525_v38, 6  ;;  %v1317_v29 = vrot.slane %v12531_v61, 2  ;;  %v4812_v6 = vadd.f32 %v4811_v23, %v4810_v25  ;;  %v4815_v36 = vsel %vm1768_vm0, %v7057_v45, 0.0 }
 0x100   :  { %v12537_v25 = vperm.slane %v12525_v38, 0 }
 0x101   :  { %v1316_v37 = vrot.slane %v12530_v51, 4  ;;  %v7515_v46 = vld.sshfl [vmem:[#allocation1] sm:$0xff pattern:$0x73625140]  ;;  %v4814_v21 = vadd.f32 %v4813_v52, %v4812_v6  ;;  %v4819_v52 = vsel %vm1768_vm0, %v7063_v8, 0.0 }
 0x102   :  { %v7517_v20 = vld.sshfl [vmem:[#allocation1 + $0x8] sm:$0xff pattern:$0x73625140]  ;;  %v7519_v4 = vld.sshfl [vmem:[#allocation1 + $0x10] sm:$0xff pattern:$0x73625140] }
 0x103   :  { %12532 = vst [vmem:[#allocation27_spill] sm:$0xff] %v7519_v4  ;;  %v7521_v51 = vld [vmem:[#allocation5 + $0xf8] sm:$0xff]  ;;  %v7523_v61 = vld.sshfl [vmem:[#allocation1 + $0x18] sm:$0xff pattern:$0x73625140]  ;;  %v4816_v60 = vadd.f32 %v4815_v36, %v4814_v21  ;;  %v1891_v4 = vsel %vm1768_vm0, %v12537_v25, %v1312_v33 }
 0x104   :  { %12533 = vst [vmem:[#allocation17_spill] sm:$0xff] %v7523_v61  ;;  %v7525_v11 = vld.sshfl [vmem:[#allocation1 + $0x20] sm:$0xff pattern:$0x73625140]  ;;  %v1892_v61 = vsel %vm1770_vm1, %v1313_v19, %v1314_v57  ;;  %v4821_v57 = vsel %vm1768_vm0, %v7065_v9, 0.0  ;;  %v80_v19 = vld [vmem:[#allocation2 + $0x140] sm:$0xff] }
 0x105   :  { %v7527_v56 = vld.sshfl [vmem:[#allocation1 + $0x28] sm:$0xff pattern:$0x73625140]  ;;  %v7529_v45 = vld.sshfl [vmem:[#allocation1 + $0x30] sm:$0xff pattern:$0x73625140]  ;;  %v4818_v36 = vadd.f32 %v4817_v3, %v4816_v60  ;;  %v1893_v38 = vsel %vm1772_vm2, %v1891_v4, %v1892_v61 }
 0x106   :  { %12534 = vst [vmem:[#allocation46_spill] sm:$0xff] %v7527_v56  ;;  %v7532_v23 = vld.sshfl [vmem:[#allocation1 + $0x38] sm:$0xff pattern:$0x73625140]  ;;  %v4823_v9 = vsel %vm1768_vm0, %v7067_v62, 0.0  ;;  %v2579_v6 = vmul.f32 %v1893_v38, %v80_v19  ;;  %v4827_v62 = vsel %vm1768_vm0, %v7111_v18, 0.0 }
 0x107   :  { %12535 = vst [vmem:[#allocation47_spill] sm:$0xff] %v7529_v45  ;;  %v4829_v18 = vsel %vm1768_vm0, %v7113_v35, 0.0 }
 0x108   :  { %12536 = vst [vmem:[#allocation48_spill] sm:$0xff] %v7532_v23  ;;  %v1894_v23 = vsel %vm1768_vm0, %v12538_v47, %v1315_v28  ;;  %v4820_v28 = vadd.f32 %v4819_v52, %v4818_v36  ;;  %v81_v47 = vld [vmem:[#allocation2 + $0x148] sm:$0xff] }
 0x109   :  { %3114 = vst [vmem:[#allocation1] ss:$4 sm:$0xff] %v2577_v0  ;;  %v1895_v0 = vsel %vm1770_vm1, %v1316_v37, %v1317_v29  ;;  %v12539_v37 = vld [vmem:[#allocation19_spill] sm:$0xff] }
 0x10a   :  { %3115 = vst [vmem:[#allocation1 + $0x20] ss:$4 sm:$0xff] %v2578_v43  ;;  %v12540_v29 = vperm.slane %v12539_v37, 1  ;;  %v12541_v60 = vperm.slane %v12539_v37, 2  ;;  %v1896_v1 = vsel %vm1772_vm2, %v1894_v23, %v1895_v0  ;;  %v12542_v33 = vperm.slane %v12539_v37, 3 }
 0x10b   :  { %v12543_v43 = vperm.slane %v12539_v37, 5  ;;  %v12544_v4 = vperm.slane %v12539_v37, 6  ;;  %v4822_v52 = vadd.f32 %v4821_v57, %v4820_v28  ;;  %v12545_v36 = vperm.slane %v12539_v37, 7 }
 0x10c   :  { %v1318_v3 = vrot.slane %v12540_v29, 6  ;;  %v1319_v25 = vrot.slane %v12541_v60, 4  ;;  %v1320_v8 = vrot.slane %v12542_v33, 2  ;;  %v12546_v60 = vld [vmem:[#allocation29_spill] sm:$0xff]  ;;  %v2580_v0 = vmul.f32 %v1896_v1, %v81_v47  ;;  %v7591_v1 = vld [vmem:[#allocation5 + $0x100] sm:$0xff] }
 0x10d   :  { %v1321_v21 = vrot.slane %v12543_v43, 6  ;;  %v1322_v61 = vrot.slane %v12544_v4, 4  ;;  %v1323_v29 = vrot.slane %v12545_v36, 2  ;;  %v4825_v23 = vsel %vm1768_vm0, %v12546_v60, 0.0 }
 0x10e   :  { %v4824_v56 = vadd.f32 %v4823_v9, %v4822_v52  ;;  %v12551_v9 = vperm.slane %v12539_v37, 0  ;;  %v1898_v60 = vsel %vm1770_vm1, %v1319_v25, %v1320_v8  ;;  %v82_v25 = vld [vmem:[#allocation2 + $0x150] sm:$0xff] }
 0x10f   :  { %v1901_v35 = vsel %vm1770_vm1, %v1322_v61, %v1323_v29  ;;  %v4833_v61 = vsel %vm1768_vm0, %v7117_v54, 0.0  ;;  %v83_v29 = vld [vmem:[#allocation2 + $0x158] sm:$0xff]  ;;  %v4835_v54 = vsel %vm1768_vm0, %v7119_v2, 0.0 }
 0x110   :  { %v7573_v45 = vld.sshfl [vmem:[#allocation1] sm:$0xff pattern:$0x73625140]  ;;  %v7575_v33 = vld.sshfl [vmem:[#allocation1 + $0x8] sm:$0xff pattern:$0x73625140]  ;;  %v4826_v38 = vadd.f32 %v4825_v23, %v4824_v56  ;;  %v1897_v52 = vsel %vm1768_vm0, %v12551_v9, %v1318_v3 }
 0x111   :  { %v7577_v43 = vld.sshfl [vmem:[#allocation1 + $0x10] sm:$0xff pattern:$0x73625140]  ;;  %v7579_v4 = vld.sshfl [vmem:[#allocation1 + $0x18] sm:$0xff pattern:$0x73625140] }
 0x112   :  { %v7581_v57 = vld.sshfl [vmem:[#allocation1 + $0x20] sm:$0xff pattern:$0x73625140]  ;;  %v7583_v28 = vld.sshfl [vmem:[#allocation1 + $0x28] sm:$0xff pattern:$0x73625140] }
 0x113   :  { %12547 = vst [vmem:[#allocation19_spill] sm:$0xff] %v7581_v57  ;;  %v7585_v19 = vld.sshfl [vmem:[#allocation1 + $0x30] sm:$0xff pattern:$0x73625140]  ;;  %v12552_v23 = vperm.slane %v12539_v37, 4  ;;  %v12560_v57 = vld [vmem:[#allocation30_spill] sm:$0xff] }
 0x114   :  { %12548 = vst [vmem:[#allocation29_spill] sm:$0xff] %v7583_v28  ;;  %v7587_v36 = vld.sshfl [vmem:[#allocation1 + $0x38] sm:$0xff pattern:$0x73625140]  ;;  %v4828_v28 = vadd.f32 %v4827_v62, %v4826_v38 }
 0x115   :  { %12549 = vst [vmem:[#allocation49_spill] sm:$0xff] %v7585_v19 }
 0x116   :  { %12550 = vst [vmem:[#allocation50_spill] sm:$0xff] %v7587_v36  ;;  %v4831_v36 = vsel %vm1768_vm0, %v7115_v50, 0.0  ;;  %v4830_v8 = vadd.f32 %v4829_v18, %v4828_v28 }
 0x117   :  { %3124 = vst [vmem:[#allocation1] ss:$4 sm:$0xff] %v2579_v6  ;;  %v1900_v6 = vsel %vm1768_vm0, %v12552_v23, %v1321_v21  ;;  %v1899_v21 = vsel %vm1772_vm2, %v1897_v52, %v1898_v60 }
 0x118   :  { %3125 = vst [vmem:[#allocation1 + $0x20] ss:$4 sm:$0xff] %v2580_v0  ;;  %v12553_v0 = vld [vmem:[#allocation22_spill] sm:$0xff]  ;;  %v1902_v28 = vsel %vm1772_vm2, %v1900_v6, %v1901_v35  ;;  %v4832_v18 = vadd.f32 %v4831_v36, %v4830_v8  ;;  %v2581_v56 = vmul.f32 %v1899_v21, %v82_v25  ;;  %v4839_v36 = vsel %vm1768_vm0, %v12560_v57, 0.0 }
 0x119   :  { %v12554_v38 = vperm.slane %v12553_v0, 1  ;;  %v12555_v50 = vperm.slane %v12553_v0, 2  ;;  %v12556_v23 = vperm.slane %v12553_v0, 3  ;;  %v12557_v3 = vperm.slane %v12553_v0, 5 }
 0x11a   :  { %v12559_v52 = vperm.slane %v12553_v0, 7  ;;  %v2582_v6 = vmul.f32 %v1902_v28, %v83_v29  ;;  %v7648_v29 = vld [vmem:[#allocation5 + $0x108] sm:$0xff] }
 0x11b   :  { %v1324_v37 = vrot.slane %v12554_v38, 6  ;;  %v1325_v9 = vrot.slane %v12555_v50, 4  ;;  %v1326_v19 = vrot.slane %v12556_v23, 2  ;;  %v1327_v62 = vrot.slane %v12557_v3, 6 }
 0x11c   :  { %v12558_v38 = vperm.slane %v12553_v0, 6  ;;  %v1329_v60 = vrot.slane %v12559_v52, 2  ;;  %v4834_v50 = vadd.f32 %v4833_v61, %v4832_v18  ;;  %v4837_v23 = vsel %vm1768_vm0, %v7121_v13, 0.0 }
 0x11d   :  { %v12566_v18 = vperm.slane %v12553_v0, 0 }
 0x11e   :  { %v1328_v47 = vrot.slane %v12558_v38, 4  ;;  %v7631_v35 = vld.sshfl [vmem:[#allocation1] sm:$0xff pattern:$0x73625140]  ;;  %v4836_v2 = vadd.f32 %v4835_v54, %v4834_v50  ;;  %v1904_v54 = vsel %vm1770_vm1, %v1325_v9, %v1326_v19  ;;  %v12567_v50 = vld [vmem:[#allocation31_spill] sm:$0xff]  ;;  %v4843_v19 = vsel %vm1768_vm0, %v7169_v40, 0.0 }
 0x11f   :  { %v7633_v3 = vld.sshfl [vmem:[#allocation1 + $0x8] sm:$0xff pattern:$0x73625140]  ;;  %v7635_v8 = vld.sshfl [vmem:[#allocation1 + $0x10] sm:$0xff pattern:$0x73625140] }
 0x120   :  { %v7637_v38 = vld.sshfl [vmem:[#allocation1 + $0x18] sm:$0xff pattern:$0x73625140]  ;;  %v7639_v52 = vld.sshfl [vmem:[#allocation1 + $0x20] sm:$0xff pattern:$0x73625140]  ;;  %v4838_v57 = vadd.f32 %v4837_v23, %v4836_v2  ;;  %v1907_v23 = vsel %vm1770_vm1, %v1328_v47, %v1329_v60 }
 0x121   :  { %12561 = vst [vmem:[#allocation22_spill] sm:$0xff] %v7637_v38  ;;  %v7641_v25 = vld.sshfl [vmem:[#allocation1 + $0x28] sm:$0xff pattern:$0x73625140]  ;;  %v1903_v38 = vsel %vm1768_vm0, %v12566_v18, %v1324_v37  ;;  %v12569_v47 = vld [vmem:[#allocation25_spill] sm:$0xff]  ;;  %v4845_v40 = vsel %vm1768_vm0, %v7171_v42, 0.0 }
 0x122   :  { %12562 = vst [vmem:[#allocation30_spill] sm:$0xff] %v7639_v52  ;;  %v7643_v21 = vld.sshfl [vmem:[#allocation1 + $0x30] sm:$0xff pattern:$0x73625140]  ;;  %v4840_v2 = vadd.f32 %v4839_v36, %v4838_v57  ;;  %v84_v9 = vld [vmem:[#allocation2 + $0x160] sm:$0xff]  ;;  %v12570_v60 = vperm.slane %v12569_v47, 1 }
 0x123   :  { %12563 = vst [vmem:[#allocation51_spill] sm:$0xff] %v7641_v25  ;;  %v7646_v61 = vld.sshfl [vmem:[#allocation1 + $0x38] sm:$0xff pattern:$0x73625140]  ;;  %v12571_v57 = vperm.slane %v12569_v47, 2  ;;  %v12572_v37 = vperm.slane %v12569_v47, 3 }
 0x124   :  { %12564 = vst [vmem:[#allocation52_spill] sm:$0xff] %v7643_v21  ;;  %v4841_v21 = vsel %vm1768_vm0, %v12567_v50, 0.0  ;;  %v1330_v36 = vrot.slane %v12570_v60, 6  ;;  %v12573_v18 = vperm.slane %v12569_v47, 5  ;;  %v4849_v42 = vsel %vm1768_vm0, %v7175_v12, 0.0 }
 0x125   :  { %12565 = vst [vmem:[#allocation53_spill] sm:$0xff] %v7646_v61  ;;  %v12568_v61 = vperm.slane %v12553_v0, 4  ;;  %v1905_v0 = vsel %vm1772_vm2, %v1903_v38, %v1904_v54  ;;  %v1331_v50 = vrot.slane %v12571_v57, 4  ;;  %v12574_v38 = vperm.slane %v12569_v47, 6 }
 0x126   :  { %3134 = vst [vmem:[#allocation1] ss:$4 sm:$0xff] %v2581_v56  ;;  %v1333_v25 = vrot.slane %v12573_v18, 6  ;;  %v2583_v28 = vmul.f32 %v1905_v0, %v84_v9  ;;  %v4851_v12 = vsel %vm1768_vm0, %v7177_v5, 0.0 }
 0x127   :  { %3135 = vst [vmem:[#allocation1 + $0x20] ss:$4 sm:$0xff] %v2582_v6  ;;  %v1906_v56 = vsel %vm1768_vm0, %v12568_v61, %v1327_v62  ;;  %v4842_v62 = vadd.f32 %v4841_v21, %v4840_v2  ;;  %v85_v61 = vld [vmem:[#allocation2 + $0x168] sm:$0xff]  ;;  %v1332_v6 = vrot.slane %v12572_v37, 2  ;;  %v1334_v21 = vrot.slane %v12574_v38, 4 }
 0x128   :  { %v1908_v13 = vsel %vm1772_vm2, %v1906_v56, %v1907_v23  ;;  %v12575_v2 = vperm.slane %v12569_v47, 7  ;;  %v4847_v56 = vsel %vm1768_vm0, %v7173_v55, 0.0 }
 0x129   :  { %v4844_v54 = vadd.f32 %v4843_v19, %v4842_v62  ;;  %v2584_v23 = vmul.f32 %v1908_v13, %v85_v61  ;;  %v12582_v61 = vperm.slane %v12569_v47, 0 }
 0x12a   :  { %v1335_v60 = vrot.slane %v12575_v2, 2 }
 0x12b   :  { %v4846_v52 = vadd.f32 %v4845_v40, %v4844_v54  ;;  %v1909_v40 = vsel %vm1768_vm0, %v12582_v61, %v1330_v36  ;;  %v1910_v54 = vsel %vm1770_vm1, %v1331_v50, %v1332_v6  ;;  %v86_v50 = vld [vmem:[#allocation2 + $0x170] sm:$0xff] }
 0x12c   :  { %v12587_v61 = vld [vmem:[#allocation33_spill] sm:$0xff] }
 0x12d   :  { %v7689_v57 = vld.sshfl [vmem:[#allocation1] sm:$0xff pattern:$0x73625140]  ;;  %v7691_v37 = vld.sshfl [vmem:[#allocation1 + $0x8] sm:$0xff pattern:$0x73625140]  ;;  %v4848_v55 = vadd.f32 %v4847_v56, %v4846_v52 }
 0x12e   :  { %v7693_v18 = vld.sshfl [vmem:[#allocation1 + $0x10] sm:$0xff pattern:$0x73625140]  ;;  %v7695_v38 = vld.sshfl [vmem:[#allocation1 + $0x18] sm:$0xff pattern:$0x73625140] }
 0x12f   :  { %12576 = vst [vmem:[#allocation31_spill] sm:$0xff] %v7693_v18  ;;  %v7697_v19 = vld.sshfl [vmem:[#allocation1 + $0x20] sm:$0xff pattern:$0x73625140]  ;;  %v4850_v2 = vadd.f32 %v4849_v42, %v4848_v55  ;;  %v12583_v52 = vperm.slane %v12569_v47, 4 }
 0x130   :  { %12577 = vst [vmem:[#allocation25_spill] sm:$0xff] %v7695_v38  ;;  %v7699_v62 = vld.sshfl [vmem:[#allocation1 + $0x28] sm:$0xff pattern:$0x73625140]  ;;  %v7741_v38 = vld [vmem:[#allocation5 + $0x110] sm:$0xff] }
 0x131   :  { %12578 = vst [vmem:[#allocation54_spill] sm:$0xff] %v7697_v19  ;;  %v7701_v9 = vld.sshfl [vmem:[#allocation1 + $0x30] sm:$0xff pattern:$0x73625140]  ;;  %v1912_v56 = vsel %vm1768_vm0, %v12583_v52, %v1333_v25  ;;  %v4852_v6 = vadd.f32 %v4851_v12, %v4850_v2  ;;  %v1911_v25 = vsel %vm1772_vm2, %v1909_v40, %v1910_v54 }
 0x132   :  { %12579 = vst [vmem:[#allocation55_spill] sm:$0xff] %v7699_v62  ;;  %v7703_v0 = vld.sshfl [vmem:[#allocation1 + $0x38] sm:$0xff pattern:$0x73625140] }
 0x133   :  { %12580 = vst [vmem:[#allocation56_spill] sm:$0xff] %v7701_v9 }
 0x134   :  { %12581 = vst [vmem:[#allocation57_spill] sm:$0xff] %v7703_v0  ;;  %v12584_v0 = vld [vmem:[#allocation16_spill] sm:$0xff] }
 0x135   :  { %3144 = vst [vmem:[#allocation1] ss:$4 sm:$0xff] %v2583_v28  ;;  %v1913_v28 = vsel %vm1770_vm1, %v1334_v21, %v1335_v60  ;;  %v4853_v5 = vsel %vm1768_vm0, %v12584_v0, 0.0  ;;  %v4855_v21 = vsel %vm1768_vm0, %v12587_v61, 0.0  ;;  %v87_v60 = vld [vmem:[#allocation2 + $0x178] sm:$0xff] }
 0x136   :  { %3145 = vst [vmem:[#allocation1 + $0x20] ss:$4 sm:$0xff] %v2584_v23  ;;  %v12585_v23 = vld [vmem:[#allocation28_spill] sm:$0xff]  ;;  %v1914_v12 = vsel %vm1772_vm2, %v1912_v56, %v1913_v28  ;;  %v4854_v2 = vadd.f32 %v4853_v5, %v4852_v6  ;;  %v12593_v61 = vld [vmem:[#allocation34_spill] sm:$0xff]  ;;  %v4861_v56 = vsel %vm1768_vm0, %v7229_v53, 0.0 }
 0x137   :  { %v12586_v55 = vperm.slane %v12585_v23, 1  ;;  %v12588_v0 = vperm.slane %v12585_v23, 2  ;;  %v12589_v13 = vperm.slane %v12585_v23, 3  ;;  %v12590_v42 = vperm.slane %v12585_v23, 5 }
 0x138   :  { %v12592_v40 = vperm.slane %v12585_v23, 7  ;;  %v4857_v19 = vsel %vm1768_vm0, %v12593_v61, 0.0  ;;  %v4856_v18 = vadd.f32 %v4855_v21, %v4854_v2  ;;  %v2586_v28 = vmul.f32 %v1914_v12, %v87_v60 }
 0x139   :  { %v1336_v47 = vrot.slane %v12586_v55, 6  ;;  %v1337_v52 = vrot.slane %v12588_v0, 4  ;;  %v1338_v9 = vrot.slane %v12589_v13, 2  ;;  %v1339_v36 = vrot.slane %v12590_v42, 6 }
 0x13a   :  { %v12591_v55 = vperm.slane %v12585_v23, 6  ;;  %v1341_v54 = vrot.slane %v12592_v40, 2  ;;  %v2585_v0 = vmul.f32 %v1911_v25, %v86_v50  ;;  %v4859_v13 = vsel %vm1768_vm0, %v7227_v10, 0.0 }
 0x13b   :  { %v4858_v61 = vadd.f32 %v4857_v19, %v4856_v18  ;;  %v12599_v12 = vperm.slane %v12585_v23, 0  ;;  %v4863_v18 = vsel %vm1768_vm0, %v7231_v24, 0.0  ;;  %v12600_v10 = vperm.slane %v12585_v23, 4 }
 0x13c   :  { %v1340_v62 = vrot.slane %v12591_v55, 4  ;;  %v7747_v5 = vld.sshfl [vmem:[#allocation1] sm:$0xff pattern:$0x73625140] }
 0x13d   :  { %v7749_v6 = vld.sshfl [vmem:[#allocation1 + $0x8] sm:$0xff pattern:$0x73625140]  ;;  %v7751_v42 = vld.sshfl [vmem:[#allocation1 + $0x10] sm:$0xff pattern:$0x73625140]  ;;  %v4860_v53 = vadd.f32 %v4859_v13, %v4858_v61  ;;  %v1915_v2 = vsel %vm1768_vm0, %v12599_v12, %v1336_v47 }
 0x13e   :  { %v7753_v55 = vld.sshfl [vmem:[#allocation1 + $0x18] sm:$0xff pattern:$0x73625140]  ;;  %v7755_v40 = vld.sshfl [vmem:[#allocation1 + $0x20] sm:$0xff pattern:$0x73625140] }
 0x13f   :  { %12594 = vst [vmem:[#allocation16_spill] sm:$0xff] %v7753_v55  ;;  %v7757_v50 = vld.sshfl [vmem:[#allocation1 + $0x28] sm:$0xff pattern:$0x73625140]  ;;  %v1916_v55 = vsel %vm1770_vm1, %v1337_v52, %v1338_v9  ;;  %v4862_v13 = vadd.f32 %v4861_v56, %v4860_v53  ;;  %v4865_v9 = vsel %vm1768_vm0, %v7233_v32, 0.0  ;;  %v4867_v32 = vsel %vm1768_vm0, %v7235_v39, 0.0 }
 0x140   :  { %12595 = vst [vmem:[#allocation28_spill] sm:$0xff] %v7755_v40  ;;  %v7759_v25 = vld.sshfl [vmem:[#allocation1 + $0x30] sm:$0xff pattern:$0x73625140]  ;;  %v88_v52 = vld [vmem:[#allocation2 + $0x180] sm:$0xff]  ;;  %v1917_v23 = vsel %vm1772_vm2, %v1915_v2, %v1916_v55 }
 0x141   :  { %12596 = vst [vmem:[#allocation33_spill] sm:$0xff] %v7757_v50  ;;  %v7762_v21 = vld.sshfl [vmem:[#allocation1 + $0x38] sm:$0xff pattern:$0x73625140]  ;;  %v2587_v19 = vmul.f32 %v1917_v23, %v88_v52 }
 0x142   :  { %12597 = vst [vmem:[#allocation34_spill] sm:$0xff] %v7759_v25  ;;  %v7803_v25 = vld [vmem:[#allocation5 + $0x118] sm:$0xff] }
 0x143   :  { %12598 = vst [vmem:[#allocation58_spill] sm:$0xff] %v7762_v21  ;;  %v1918_v21 = vsel %vm1768_vm0, %v12600_v10, %v1339_v36  ;;  %v4864_v36 = vadd.f32 %v4863_v18, %v4862_v13  ;;  %v89_v10 = vld [vmem:[#allocation2 + $0x188] sm:$0xff] }
 0x144   :  { %3154 = vst [vmem:[#allocation1] ss:$4 sm:$0xff] %v2585_v0  ;;  %v1919_v0 = vsel %vm1770_vm1, %v1340_v62, %v1341_v54  ;;  %v12601_v62 = vld [vmem:[#allocation32_spill] sm:$0xff] }
 0x145   :  { %3155 = vst [vmem:[#allocation1 + $0x20] ss:$4 sm:$0xff] %v2586_v28  ;;  %v12602_v54 = vperm.slane %v12601_v62, 1  ;;  %v12603_v53 = vperm.slane %v12601_v62, 2  ;;  %v1920_v60 = vsel %vm1772_vm2, %v1918_v21, %v1919_v0  ;;  %v12604_v47 = vperm.slane %v12601_v62, 3  ;;  %v12609_v0 = vld [vmem:[#allocation18_spill] sm:$0xff] }
 0x146   :  { %v12605_v28 = vperm.slane %v12601_v62, 5  ;;  %v12606_v55 = vperm.slane %v12601_v62, 6  ;;  %v4866_v18 = vadd.f32 %v4865_v9, %v4864_v36  ;;  %v12607_v13 = vperm.slane %v12601_v62, 7 }
 0x147   :  { %v1342_v56 = vrot.slane %v12602_v54, 6  ;;  %v1343_v12 = vrot.slane %v12603_v53, 4  ;;  %v1344_v24 = vrot.slane %v12604_v47, 2  ;;  %v12608_v53 = vld [vmem:[#allocation11_spill] sm:$0xff]  ;;  %v4871_v39 = vsel %vm1768_vm0, %v12609_v0, 0.0 }
 0x148   :  { %v1345_v61 = vrot.slane %v12605_v28, 6  ;;  %v1346_v2 = vrot.slane %v12606_v55, 4  ;;  %v1347_v54 = vrot.slane %v12607_v13, 2  ;;  %v4869_v21 = vsel %vm1768_vm0, %v12608_v53, 0.0 }
 0x149   :  { %v2588_v47 = vmul.f32 %v1920_v60, %v89_v10  ;;  %v4868_v9 = vadd.f32 %v4867_v32, %v4866_v18  ;;  %v12615_v60 = vld [vmem:[#allocation36_spill] sm:$0xff]  ;;  %v1922_v18 = vsel %vm1770_vm1, %v1343_v12, %v1344_v24 }
 0x14a   :  { %v4873_v10 = vsel %vm1768_vm0, %v12615_v60, 0.0  ;;  %v4875_v60 = vsel %vm1768_vm0, %v7285_v27, 0.0 }
 0x14b   :  { %v7805_v50 = vld.sshfl [vmem:[#allocation1] sm:$0xff pattern:$0x73625140]  ;;  %v7807_v28 = vld.sshfl [vmem:[#allocation1 + $0x8] sm:$0xff pattern:$0x73625140]  ;;  %v4870_v13 = vadd.f32 %v4869_v21, %v4868_v9 }
 0x14c   :  { %v7809_v40 = vld.sshfl [vmem:[#allocation1 + $0x10] sm:$0xff pattern:$0x73625140]  ;;  %v7811_v36 = vld.sshfl [vmem:[#allocation1 + $0x18] sm:$0xff pattern:$0x73625140] }
 0x14d   :  { %12610 = vst [vmem:[#allocation32_spill] sm:$0xff] %v7809_v40  ;;  %v7813_v55 = vld.sshfl [vmem:[#allocation1 + $0x20] sm:$0xff pattern:$0x73625140]  ;;  %v12616_v40 = vperm.slane %v12601_v62, 0  ;;  %v12617_v21 = vperm.slane %v12601_v62, 4 }
 0x14e   :  { %12611 = vst [vmem:[#allocation11_spill] sm:$0xff] %v7813_v55  ;;  %v7815_v52 = vld.sshfl [vmem:[#allocation1 + $0x28] sm:$0xff pattern:$0x73625140]  ;;  %v4872_v55 = vadd.f32 %v4871_v39, %v4870_v13 }
 0x14f   :  { %12612 = vst [vmem:[#allocation18_spill] sm:$0xff] %v7815_v52  ;;  %v7817_v23 = vld.sshfl [vmem:[#allocation1 + $0x30] sm:$0xff pattern:$0x73625140]  ;;  %v1921_v32 = vsel %vm1768_vm0, %v12616_v40, %v1342_v56  ;;  %v1924_v9 = vsel %vm1768_vm0, %v12617_v21, %v1345_v61  ;;  %v90_v56 = vld [vmem:[#allocation2 + $0x190] sm:$0xff] }
 0x150   :  { %12613 = vst [vmem:[#allocation59_spill] sm:$0xff] %v7817_v23  ;;  %v7819_v53 = vld.sshfl [vmem:[#allocation1 + $0x38] sm:$0xff pattern:$0x73625140]  ;;  %v4874_v24 = vadd.f32 %v4873_v10, %v4872_v55  ;;  %v12618_v39 = vld [vmem:[#allocation35_spill] sm:$0xff]  ;;  %v1923_v61 = vsel %vm1772_vm2, %v1921_v32, %v1922_v18 }
 0x151   :  { %12614 = vst [vmem:[#allocation60_spill] sm:$0xff] %v7819_v53  ;;  %v12620_v27 = vperm.slane %v12618_v39, 2  ;;  %v12621_v21 = vperm.slane %v12618_v39, 3  ;;  %v12622_v40 = vperm.slane %v12618_v39, 5  ;;  %v12624_v32 = vperm.slane %v12618_v39, 7  ;;  %v12625_v23 = vld [vmem:[#allocation20_spill] sm:$0xff] }
 0x152   :  { %3164 = vst [vmem:[#allocation1] ss:$4 sm:$0xff] %v2587_v19  ;;  %v1925_v19 = vsel %vm1770_vm1, %v1346_v2, %v1347_v54  ;;  %v4877_v2 = vsel %vm1768_vm0, %v7287_v44, 0.0  ;;  %v91_v54 = vld [vmem:[#allocation2 + $0x198] sm:$0xff]  ;;  %v4876_v10 = vadd.f32 %v4875_v60, %v4874_v24  ;;  %v4879_v44 = vsel %vm1768_vm0, %v7289_v17, 0.0 }
 0x153   :  { %3165 = vst [vmem:[#allocation1 + $0x20] ss:$4 sm:$0xff] %v2588_v47  ;;  %v12619_v47 = vperm.slane %v12618_v39, 1  ;;  %v1349_v13 = vrot.slane %v12620_v27, 4  ;;  %v1350_v53 = vrot.slane %v12621_v21, 2  ;;  %v1926_v55 = vsel %vm1772_vm2, %v1924_v9, %v1925_v19 }
 0x154   :  { %v1351_v12 = vrot.slane %v12622_v40, 6  ;;  %v1353_v18 = vrot.slane %v12624_v32, 2  ;;  %v2589_v52 = vmul.f32 %v1923_v61, %v90_v56  ;;  %v4878_v27 = vadd.f32 %v4877_v2, %v4876_v10 }
 0x155   :  { %v1348_v62 = vrot.slane %v12619_v47, 6  ;;  %v12623_v47 = vperm.slane %v12618_v39, 6  ;;  %v4881_v21 = vsel %vm1768_vm0, %v12625_v23, 0.0  ;;  %v4883_v9 = vsel %vm1768_vm0, %v7293_v30, 0.0 }
 0x156   :  { %v2590_v19 = vmul.f32 %v1926_v55, %v91_v54  ;;  %v4880_v56 = vadd.f32 %v4879_v44, %v4878_v27  ;;  %v12632_v10 = vperm.slane %v12618_v39, 0  ;;  %v4885_v44 = vsel %vm1768_vm0, %v7295_v34, 0.0  ;;  %v12638_v55 = vld [vmem:[#allocation38_spill] sm:$0xff] }
 0x157   :  { %v1352_v0 = vrot.slane %v12623_v47, 4  ;;  %v7867_v47 = vld [vmem:[#allocation5 + $0x120] sm:$0xff]  ;;  %v12633_v30 = vperm.slane %v12618_v39, 4 }
 0x158   :  { %v4882_v54 = vadd.f32 %v4881_v21, %v4880_v56 }
 0x159   :  { %v7861_v60 = vld.sshfl [vmem:[#allocation1] sm:$0xff pattern:$0x73625140]  ;;  %v7863_v40 = vld.sshfl [vmem:[#allocation1 + $0x8] sm:$0xff pattern:$0x73625140] }
 0x15a   :  { %v7865_v24 = vld.sshfl [vmem:[#allocation1 + $0x10] sm:$0xff pattern:$0x73625140]  ;;  %v7869_v32 = vld.sshfl [vmem:[#allocation1 + $0x18] sm:$0xff pattern:$0x73625140]  ;;  %v4884_v21 = vadd.f32 %v4883_v9, %v4882_v54 }
 0x15b   :  { %12626 = vst [vmem:[#allocation36_spill] sm:$0xff] %v7865_v24  ;;  %v7871_v17 = vld.sshfl [vmem:[#allocation1 + $0x20] sm:$0xff pattern:$0x73625140]  ;;  %v1927_v24 = vsel %vm1768_vm0, %v12632_v10, %v1348_v62 }
 0x15c   :  { %12627 = vst [vmem:[#allocation35_spill] sm:$0xff] %v7869_v32  ;;  %v7873_v61 = vld.sshfl [vmem:[#allocation1 + $0x28] sm:$0xff pattern:$0x73625140]  ;;  %v1928_v32 = vsel %vm1770_vm1, %v1349_v13, %v1350_v53  ;;  %v12634_v53 = vld [vmem:[#allocation37_spill] sm:$0xff] }
 0x15d   :  { %12628 = vst [vmem:[#allocation20_spill] sm:$0xff] %v7871_v17  ;;  %v7875_v23 = vld.sshfl [vmem:[#allocation1 + $0x30] sm:$0xff pattern:$0x73625140]  ;;  %v4887_v13 = vsel %vm1768_vm0, %v12634_v53, 0.0  ;;  %v1929_v39 = vsel %vm1772_vm2, %v1927_v24, %v1928_v32  ;;  %v4889_v53 = vsel %vm1768_vm0, %v12638_v55, 0.0 }
 0x15e   :  { %12629 = vst [vmem:[#allocation61_spill] sm:$0xff] %v7873_v61  ;;  %v7878_v2 = vld.sshfl [vmem:[#allocation1 + $0x38] sm:$0xff pattern:$0x73625140]  ;;  %v4893_v55 = vsel %vm1768_vm0, %v7345_v41, 0.0 }
 0x15f   :  { %12630 = vst [vmem:[#allocation62_spill] sm:$0xff] %v7875_v23 }
 0x160   :  { %12631 = vst [vmem:[#allocation63_spill] sm:$0xff] %v7878_v2  ;;  %v1930_v2 = vsel %vm1768_vm0, %v12633_v30, %v1351_v12  ;;  %v4886_v12 = vadd.f32 %v4885_v44, %v4884_v21  ;;  %v93_v30 = vld [vmem:[#allocation2 + $0x1a8] sm:$0xff] }
 0x161   :  { %3174 = vst [vmem:[#allocation1] ss:$4 sm:$0xff] %v2589_v52  ;;  %v1931_v52 = vsel %vm1770_vm1, %v1352_v0, %v1353_v18  ;;  %v12635_v0 = vld [vmem:[#allocation12_spill] sm:$0xff] }
 0x162   :  { %3175 = vst [vmem:[#allocation1 + $0x20] ss:$4 sm:$0xff] %v2590_v19  ;;  %v92_v19 = vld [vmem:[#allocation2 + $0x1a0] sm:$0xff]  ;;  %v12636_v18 = vperm.slane %v12635_v0, 1  ;;  %v12637_v54 = vperm.slane %v12635_v0, 2  ;;  %v1932_v62 = vsel %vm1772_vm2, %v1930_v2, %v1931_v52  ;;  %v12639_v56 = vperm.slane %v12635_v0, 3 }
 0x163   :  { %v12640_v10 = vperm.slane %v12635_v0, 5  ;;  %v12641_v24 = vperm.slane %v12635_v0, 6  ;;  %v4888_v44 = vadd.f32 %v4887_v13, %v4886_v12  ;;  %v12642_v21 = vperm.slane %v12635_v0, 7 }
 0x164   :  { %v1354_v9 = vrot.slane %v12636_v18, 6  ;;  %v1355_v27 = vrot.slane %v12637_v54, 4  ;;  %v1356_v34 = vrot.slane %v12639_v56, 2  ;;  %v2591_v61 = vmul.f32 %v1929_v39, %v92_v19 }
 0x165   :  { %v1357_v23 = vrot.slane %v12640_v10, 6  ;;  %v1358_v32 = vrot.slane %v12641_v24, 4  ;;  %v1359_v18 = vrot.slane %v12642_v21, 2  ;;  %v4891_v2 = vsel %vm1768_vm0, %v7343_v58, 0.0  ;;  %v7925_v24 = vld [vmem:[#allocation5 + $0x128] sm:$0xff] }
 0x166   :  { %v2592_v52 = vmul.f32 %v1932_v62, %v93_v30  ;;  %v4890_v17 = vadd.f32 %v4889_v53, %v4888_v44  ;;  %v12650_v62 = vld [vmem:[#allocation21_spill] sm:$0xff]  ;;  %v12651_v53 = vperm.slane %v12635_v0, 0 }
 0x167   :  { %v4895_v30 = vsel %vm1768_vm0, %v12650_v62, 0.0  ;;  %v4897_v62 = vsel %vm1768_vm0, %v7349_v22, 0.0  ;;  %v12655_v22 = vperm.slane %v7341_v26, 2 }
 0x168   :  { %v7919_v54 = vld.sshfl [vmem:[#allocation1] sm:$0xff pattern:$0x73625140]  ;;  %v7921_v56 = vld.sshfl [vmem:[#allocation1 + $0x8] sm:$0xff pattern:$0x73625140]  ;;  %v4892_v39 = vadd.f32 %v4891_v2, %v4890_v17  ;;  %v1933_v44 = vsel %vm1768_vm0, %v12651_v53, %v1354_v9 }
 0x169   :  { %12643 = vst [vmem:[#allocation37_spill] sm:$0xff] %v7921_v56  ;;  %v7923_v10 = vld.sshfl [vmem:[#allocation1 + $0x10] sm:$0xff pattern:$0x73625140]  ;;  %v12652_v17 = vperm.slane %v12635_v0, 4  ;;  %v1361_v53 = vrot.slane %v12655_v22, 4 }
 0x16a   :  { %12644 = vst [vmem:[#allocation12_spill] sm:$0xff] %v7923_v10  ;;  %v7927_v13 = vld.sshfl [vmem:[#allocation1 + $0x18] sm:$0xff pattern:$0x73625140] }
 0x16b   :  { %12645 = vst [vmem:[#allocation38_spill] sm:$0xff] %v7927_v13  ;;  %v7929_v12 = vld.sshfl [vmem:[#allocation1 + $0x20] sm:$0xff pattern:$0x73625140]  ;;  %v1934_v13 = vsel %vm1770_vm1, %v1355_v27, %v1356_v34  ;;  %v1936_v2 = vsel %vm1768_vm0, %v12652_v17, %v1357_v23  ;;  %v94_v34 = vld [vmem:[#allocation2 + $0x1b0] sm:$0xff]  ;;  %v12656_v17 = vperm.slane %v7341_v26, 3 }
 0x16c   :  { %12646 = vst [vmem:[#allocation64_spill] sm:$0xff] %v7929_v12  ;;  %v7931_v19 = vld.sshfl [vmem:[#allocation1 + $0x28] sm:$0xff pattern:$0x73625140]  ;;  %v4894_v12 = vadd.f32 %v4893_v55, %v4892_v39  ;;  %v1935_v23 = vsel %vm1772_vm2, %v1933_v44, %v1934_v13  ;;  %v12654_v39 = vld [vmem:[#allocation13_spill] sm:$0xff]  ;;  %v12657_v55 = vperm.slane %v7341_v26, 5 }
 0x16d   :  { %12647 = vst [vmem:[#allocation65_spill] sm:$0xff] %v7931_v19  ;;  %v7933_v58 = vld.sshfl [vmem:[#allocation1 + $0x30] sm:$0xff pattern:$0x73625140]  ;;  %v1362_v21 = vrot.slane %v12656_v17, 2  ;;  %v12659_v13 = vperm.slane %v7341_v26, 7 }
 0x16e   :  { %12648 = vst [vmem:[#allocation66_spill] sm:$0xff] %v7933_v58  ;;  %v7935_v41 = vld.sshfl [vmem:[#allocation1 + $0x38] sm:$0xff pattern:$0x73625140]  ;;  %v4896_v27 = vadd.f32 %v4895_v30, %v4894_v12  ;;  %v1363_v9 = vrot.slane %v12657_v55, 6  ;;  %v2593_v58 = vmul.f32 %v1935_v23, %v94_v34 }
 0x16f   :  { %12649 = vst [vmem:[#allocation67_spill] sm:$0xff] %v7935_v41  ;;  %v1365_v44 = vrot.slane %v12659_v13, 2  ;;  %v12661_v10 = vld [vmem:[#allocation40_spill] sm:$0xff]  ;;  %v12662_v56 = vld [vmem:[#allocation41_spill] sm:$0xff] }
 0x170   :  { %3184 = vst [vmem:[#allocation1] ss:$4 sm:$0xff] %v2591_v61  ;;  %v1937_v61 = vsel %vm1770_vm1, %v1358_v32, %v1359_v18  ;;  %v4899_v32 = vsel %vm1768_vm0, %v12654_v39, 0.0  ;;  %v95_v18 = vld [vmem:[#allocation2 + $0x1b8] sm:$0xff]  ;;  %v4898_v30 = vadd.f32 %v4897_v62, %v4896_v27  ;;  %v12660_v39 = vld [vmem:[#allocation39_spill] sm:$0xff]  ;;  %v4903_v17 = vsel %vm1768_vm0, %v12661_v10, 0.0 }
 0x171   :  { %3185 = vst [vmem:[#allocation1 + $0x20] ss:$4 sm:$0xff] %v2592_v52  ;;  %v12653_v52 = vperm.slane %v7341_v26, 1  ;;  %v1938_v12 = vsel %vm1772_vm2, %v1936_v2, %v1937_v61  ;;  %v4901_v19 = vsel %vm1768_vm0, %v12660_v39, 0.0  ;;  %v4905_v2 = vsel %vm1768_vm0, %v12662_v56, 0.0 }
 0x172   :  { %v4900_v22 = vadd.f32 %v4899_v32, %v4898_v30  ;;  %v2594_v61 = vmul.f32 %v1938_v12, %v95_v18  ;;  %v12668_v30 = vperm.slane %v7341_v26, 0  ;;  %v12669_v56 = vperm.slane %v7341_v26, 4  ;;  %v12672_v12 = vld [vmem:[#allocation23_spill] sm:$0xff] }
 0x173   :  { %v1360_v0 = vrot.slane %v12653_v52, 6  ;;  %v12658_v52 = vperm.slane %v7341_v26, 6 }
 0x174   :  { %v4902_v34 = vadd.f32 %v4901_v19, %v4900_v22  ;;  %v4907_v19 = vsel %vm1768_vm0, %v7399_v49, 0.0 }
 0x175   :  { %v1364_v41 = vrot.slane %v12658_v52, 4  ;;  %v7983_v52 = vld [vmem:[#allocation5 + $0x130] sm:$0xff] }
 0x176   :  { %v4904_v18 = vadd.f32 %v4903_v17, %v4902_v34 }
 0x177   :  { %v7977_v62 = vld.sshfl [vmem:[#allocation1] sm:$0xff pattern:$0x73625140]  ;;  %v7979_v27 = vld.sshfl [vmem:[#allocation1 + $0x8] sm:$0xff pattern:$0x73625140] }
 0x178   :  { %v7981_v55 = vld.sshfl [vmem:[#allocation1 + $0x10] sm:$0xff pattern:$0x73625140]  ;;  %v7985_v13 = vld.sshfl [vmem:[#allocation1 + $0x18] sm:$0xff pattern:$0x73625140]  ;;  %v4906_v17 = vadd.f32 %v4905_v2, %v4904_v18 }
 0x179   :  { %12663 = vst [vmem:[#allocation21_spill] sm:$0xff] %v7981_v55  ;;  %v7987_v39 = vld.sshfl [vmem:[#allocation1 + $0x20] sm:$0xff pattern:$0x73625140]  ;;  %v1939_v55 = vsel %vm1768_vm0, %v12668_v30, %v1360_v0  ;;  %v12671_v2 = vperm.slane %v7405_v15, 2  ;;  %v12673_v0 = vperm.slane %v7405_v15, 3 }
 0x17a   :  { %12664 = vst [vmem:[#allocation13_spill] sm:$0xff] %v7985_v13  ;;  %v7989_v23 = vld.sshfl [vmem:[#allocation1 + $0x28] sm:$0xff pattern:$0x73625140]  ;;  %v1940_v13 = vsel %vm1770_vm1, %v1361_v53, %v1362_v21  ;;  %v4909_v21 = vsel %vm1768_vm0, %v7401_v14, 0.0  ;;  %v4911_v14 = vsel %vm1768_vm0, %v12672_v12, 0.0 }
 0x17b   :  { %12665 = vst [vmem:[#allocation39_spill] sm:$0xff] %v7989_v23  ;;  %v7991_v10 = vld.sshfl [vmem:[#allocation1 + $0x30] sm:$0xff pattern:$0x73625140]  ;;  %v96_v53 = vld [vmem:[#allocation2 + $0x1c0] sm:$0xff]  ;;  %v1941_v26 = vsel %vm1772_vm2, %v1939_v55, %v1940_v13  ;;  %v1367_v18 = vrot.slane %v12671_v2, 4 }
 0x17c   :  { %12666 = vst [vmem:[#allocation40_spill] sm:$0xff] %v7991_v10  ;;  %v7994_v32 = vld.sshfl [vmem:[#allocation1 + $0x38] sm:$0xff pattern:$0x73625140]  ;;  %v1368_v49 = vrot.slane %v12673_v0, 2  ;;  %v12675_v55 = vperm.slane %v7405_v15, 6  ;;  %v2595_v22 = vmul.f32 %v1941_v26, %v96_v53 }
 0x17d   :  { %12667 = vst [vmem:[#allocation41_spill] sm:$0xff] %v7994_v32  ;;  %v1942_v32 = vsel %vm1768_vm0, %v12669_v56, %v1363_v9  ;;  %v4908_v9 = vadd.f32 %v4907_v19, %v4906_v17  ;;  %v97_v56 = vld [vmem:[#allocation2 + $0x1c8] sm:$0xff]  ;;  %v12676_v17 = vperm.slane %v7405_v15, 7  ;;  %v12677_v2 = vld [vmem:[#allocation14_spill] sm:$0xff]  ;;  %v4915_v12 = vsel %vm1768_vm0, %v7409_v48, 0.0 }
 0x17e   :  { %3194 = vst [vmem:[#allocation1] ss:$4 sm:$0xff] %v2593_v58  ;;  %v1943_v58 = vsel %vm1770_vm1, %v1364_v41, %v1365_v44  ;;  %v12670_v41 = vperm.slane %v7405_v15, 1  ;;  %v1370_v13 = vrot.slane %v12675_v55, 4  ;;  %v12683_v48 = vld [vmem:[#allocation24_spill] sm:$0xff] }
 0x17f   :  { %3195 = vst [vmem:[#allocation1 + $0x20] ss:$4 sm:$0xff] %v2594_v61  ;;  %v1944_v30 = vsel %vm1772_vm2, %v1942_v32, %v1943_v58  ;;  %v12674_v61 = vperm.slane %v7405_v15, 5  ;;  %v4910_v19 = vadd.f32 %v4909_v21, %v4908_v9  ;;  %v4913_v32 = vsel %vm1768_vm0, %v12677_v2, 0.0 }
 0x180   :  { %v1366_v44 = vrot.slane %v12670_v41, 6  ;;  %v1371_v41 = vrot.slane %v12676_v17, 2  ;;  %v2596_v58 = vmul.f32 %v1944_v30, %v97_v56  ;;  %v4917_v56 = vsel %vm1768_vm0, %v12683_v48, 0.0  ;;  %v8053_v30 = vld [vmem:[#allocation5 + $0x138] sm:$0xff] }
 0x181   :  { %v1369_v34 = vrot.slane %v12674_v61, 6  ;;  %v4912_v23 = vadd.f32 %v4911_v14, %v4910_v19  ;;  %v12684_v14 = vperm.slane %v7405_v15, 0 }
 0x182   :  { %v1949_v48 = vsel %vm1770_vm1, %v1370_v13, %v1371_v41  ;;  %v99_v41 = vld [vmem:[#allocation2 + $0x1d8] sm:$0xff] }
 0x183   :  { %v4914_v26 = vadd.f32 %v4913_v32, %v4912_v23  ;;  %v1945_v19 = vsel %vm1768_vm0, %v12684_v14, %v1366_v44  ;;  %v12685_v32 = vperm.slane %v7405_v15, 4  ;;  %v12691_v44 = vperm.slane %v7463_v7, 5 }
 0x185   :  { %v8035_v10 = vld.sshfl [vmem:[#allocation1] sm:$0xff pattern:$0x73625140]  ;;  %v8037_v0 = vld.sshfl [vmem:[#allocation1 + $0x8] sm:$0xff pattern:$0x73625140] }
 0x186   :  { %v8039_v61 = vld.sshfl [vmem:[#allocation1 + $0x10] sm:$0xff pattern:$0x73625140]  ;;  %v8041_v55 = vld.sshfl [vmem:[#allocation1 + $0x18] sm:$0xff pattern:$0x73625140] }
 0x187   :  { %12678 = vst [vmem:[#allocation23_spill] sm:$0xff] %v8041_v55  ;;  %v8043_v21 = vld.sshfl [vmem:[#allocation1 + $0x20] sm:$0xff pattern:$0x73625140] }
 0x188   :  { %12679 = vst [vmem:[#allocation14_spill] sm:$0xff] %v8043_v21  ;;  %v8045_v9 = vld.sshfl [vmem:[#allocation1 + $0x28] sm:$0xff pattern:$0x73625140]  ;;  %v1946_v21 = vsel %vm1770_vm1, %v1367_v18, %v1368_v49  ;;  %v98_v18 = vld [vmem:[#allocation2 + $0x1d0] sm:$0xff] }
 0x189   :  { %12680 = vst [vmem:[#allocation68_spill] sm:$0xff] %v8045_v9  ;;  %v8047_v53 = vld.sshfl [vmem:[#allocation1 + $0x30] sm:$0xff pattern:$0x73625140]  ;;  %v4916_v9 = vadd.f32 %v4915_v12, %v4914_v26  ;;  %v1375_v12 = vrot.slane %v12691_v44, 6 }
 0x18a   :  { %12681 = vst [vmem:[#allocation69_spill] sm:$0xff] %v8047_v53  ;;  %v8049_v17 = vld.sshfl [vmem:[#allocation1 + $0x38] sm:$0xff pattern:$0x73625140]  ;;  %v12688_v26 = vld [vmem:[#allocation43_spill] sm:$0xff] }
 0x18b   :  { %12682 = vst [vmem:[#allocation70_spill] sm:$0xff] %v8049_v17  ;;  %v12686_v17 = vld [vmem:[#allocation42_spill] sm:$0xff]  ;;  %v4918_v49 = vadd.f32 %v4917_v56, %v4916_v9  ;;  %v4921_v13 = vsel %vm1768_vm0, %v12688_v26, 0.0  ;;  %v4923_v26 = vsel %vm1768_vm0, %v7457_v63, 0.0 }
 0x18c   :  { %3204 = vst [vmem:[#allocation1] ss:$4 sm:$0xff] %v2595_v22  ;;  %v1948_v22 = vsel %vm1768_vm0, %v12685_v32, %v1369_v34  ;;  %v4919_v53 = vsel %vm1768_vm0, %v12686_v17, 0.0  ;;  %v1947_v34 = vsel %vm1772_vm2, %v1945_v19, %v1946_v21  ;;  %v12689_v17 = vperm.slane %v7463_v7, 2 }
 0x18d   :  { %3205 = vst [vmem:[#allocation1 + $0x20] ss:$4 sm:$0xff] %v2596_v58  ;;  %v12687_v58 = vperm.slane %v7463_v7, 1  ;;  %v12690_v32 = vperm.slane %v7463_v7, 3  ;;  %v1950_v9 = vsel %vm1772_vm2, %v1948_v22, %v1949_v48  ;;  %v4920_v56 = vadd.f32 %v4919_v53, %v4918_v49 }
 0x18e   :  { %v1373_v14 = vrot.slane %v12689_v17, 4  ;;  %v12693_v21 = vperm.slane %v7463_v7, 7  ;;  %v2597_v23 = vmul.f32 %v1947_v34, %v98_v18  ;;  %v4927_v53 = vsel %vm1768_vm0, %v7461_v59, 0.0 }
 0x18f   :  { %v1372_v15 = vrot.slane %v12687_v58, 6  ;;  %v1374_v55 = vrot.slane %v12690_v32, 2  ;;  %v12692_v58 = vperm.slane %v7463_v7, 6  ;;  %v4922_v17 = vadd.f32 %v4921_v13, %v4920_v56 }
 0x190   :  { %v1377_v19 = vrot.slane %v12693_v21, 2  ;;  %v4925_v32 = vsel %vm1768_vm0, %v7459_v31, 0.0  ;;  %v2598_v22 = vmul.f32 %v1950_v9, %v99_v41  ;;  %v8110_v41 = vld [vmem:[#allocation5 + $0x140] sm:$0xff]  ;;  %v12701_v56 = vperm.slane %v7463_v7, 0 }
 0x191   :  { %v1376_v2 = vrot.slane %v12692_v58, 4  ;;  %v4924_v63 = vadd.f32 %v4923_v26, %v4922_v17  ;;  %v1952_v26 = vsel %vm1770_vm1, %v1373_v14, %v1374_v55  ;;  %v4929_v17 = vsel %vm1768_vm0, %v7465_v16, 0.0  ;;  %v12703_v55 = vld [vmem:[#allocation15_spill] sm:$0xff] }
 0x192   :  { %v4931_v14 = vsel %vm1768_vm0, %v12703_v55, 0.0 }
 0x193   :  { %v8093_v48 = vld.sshfl [vmem:[#allocation1] sm:$0xff pattern:$0x73625140]  ;;  %v8095_v44 = vld.sshfl [vmem:[#allocation1 + $0x8] sm:$0xff pattern:$0x73625140]  ;;  %v4926_v59 = vadd.f32 %v4925_v32, %v4924_v63  ;;  %v1955_v32 = vsel %vm1770_vm1, %v1376_v2, %v1377_v19 }
 0x194   :  { %12694 = vst [vmem:[#allocation24_spill] sm:$0xff] %v8095_v44  ;;  %v8097_v49 = vld.sshfl [vmem:[#allocation1 + $0x10] sm:$0xff pattern:$0x73625140]  ;;  %v12704_v2 = vperm.slane %v7521_v51, 1 }
 0x195   :  { %12695 = vst [vmem:[#allocation42_spill] sm:$0xff] %v8097_v49  ;;  %v8099_v58 = vld.sshfl [vmem:[#allocation1 + $0x18] sm:$0xff pattern:$0x73625140]  ;;  %v4928_v63 = vadd.f32 %v4927_v53, %v4926_v59  ;;  %v12705_v53 = vperm.slane %v7521_v51, 2 }
 0x196   :  { %12696 = vst [vmem:[#allocation43_spill] sm:$0xff] %v8099_v58  ;;  %v8101_v21 = vld.sshfl [vmem:[#allocation1 + $0x20] sm:$0xff pattern:$0x73625140]  ;;  %v1951_v58 = vsel %vm1768_vm0, %v12701_v56, %v1372_v15  ;;  %v1378_v19 = vrot.slane %v12704_v2, 6  ;;  %v12708_v56 = vperm.slane %v7521_v51, 5 }
 0x197   :  { %12697 = vst [vmem:[#allocation71_spill] sm:$0xff] %v8101_v21  ;;  %v8103_v18 = vld.sshfl [vmem:[#allocation1 + $0x28] sm:$0xff pattern:$0x73625140]  ;;  %v1379_v59 = vrot.slane %v12705_v53, 4  ;;  %v12711_v53 = vld [vmem:[#allocation44_spill] sm:$0xff] }
 0x198   :  { %12698 = vst [vmem:[#allocation72_spill] sm:$0xff] %v8103_v18  ;;  %v8105_v34 = vld.sshfl [vmem:[#allocation1 + $0x30] sm:$0xff pattern:$0x73625140]  ;;  %v12706_v15 = vld [vmem:[#allocation26_spill] sm:$0xff]  ;;  %v1381_v9 = vrot.slane %v12708_v56, 6 }
 0x199   :  { %12699 = vst [vmem:[#allocation73_spill] sm:$0xff] %v8105_v34  ;;  %v8108_v13 = vld.sshfl [vmem:[#allocation1 + $0x38] sm:$0xff pattern:$0x73625140]  ;;  %v4933_v55 = vsel %vm1768_vm0, %v12706_v15, 0.0  ;;  %v12707_v34 = vperm.slane %v7521_v51, 3 }
 0x19a   :  { %12700 = vst [vmem:[#allocation74_spill] sm:$0xff] %v8108_v13  ;;  %v12702_v13 = vperm.slane %v7463_v7, 4  ;;  %v1953_v7 = vsel %vm1772_vm2, %v1951_v58, %v1952_v26  ;;  %v12709_v58 = vperm.slane %v7521_v51, 6 }
 0x19b   :  { %3214 = vst [vmem:[#allocation1] ss:$4 sm:$0xff] %v2597_v23  ;;  %v1380_v16 = vrot.slane %v12707_v34, 2 }
 0x19c   :  { %3215 = vst [vmem:[#allocation1 + $0x20] ss:$4 sm:$0xff] %v2598_v22  ;;  %v1954_v23 = vsel %vm1768_vm0, %v12702_v13, %v1375_v12  ;;  %v100_v22 = vld [vmem:[#allocation2 + $0x1e0] sm:$0xff]  ;;  %v4930_v12 = vadd.f32 %v4929_v17, %v4928_v63  ;;  %v101_v13 = vld [vmem:[#allocation2 + $0x1e8] sm:$0xff]  ;;  %v1382_v26 = vrot.slane %v12709_v58, 4  ;;  %v12710_v63 = vperm.slane %v7521_v51, 7 }
 0x19d   :  { %v1956_v31 = vsel %vm1772_vm2, %v1954_v23, %v1955_v32  ;;  %v2599_v18 = vmul.f32 %v1953_v7, %v100_v22  ;;  %v4935_v23 = vsel %vm1768_vm0, %v12711_v53, 0.0  ;;  %v12712_v32 = vld [vmem:[#allocation45_spill] sm:$0xff]  ;;  %v12718_v53 = vperm.slane %v7521_v51, 0 }
 0x19e   :  { %v4932_v17 = vadd.f32 %v4931_v14, %v4930_v12  ;;  %v1383_v2 = vrot.slane %v12710_v63, 2  ;;  %v4937_v15 = vsel %vm1768_vm0, %v12712_v32, 0.0  ;;  %v2600_v21 = vmul.f32 %v1956_v31, %v101_v13 }
 0x19f   :  { %v4939_v31 = vsel %vm1768_vm0, %v7515_v46, 0.0  ;;  %v4941_v46 = vsel %vm1768_vm0, %v7517_v20, 0.0  ;;  %v12722_v20 = vperm.slane %v7591_v1, 2 }
 0x1a0   :  { %v4934_v44 = vadd.f32 %v4933_v55, %v4932_v17  ;;  %v1957_v55 = vsel %vm1768_vm0, %v12718_v53, %v1378_v19  ;;  %v1958_v17 = vsel %vm1770_vm1, %v1379_v59, %v1380_v16  ;;  %v12724_v59 = vperm.slane %v7591_v1, 5 }
 0x1a1   :  { %v1385_v53 = vrot.slane %v12722_v20, 4 }
 0x1a2   :  { %v8151_v49 = vld.sshfl [vmem:[#allocation1] sm:$0xff pattern:$0x73625140]  ;;  %v8153_v34 = vld.sshfl [vmem:[#allocation1 + $0x8] sm:$0xff pattern:$0x73625140]  ;;  %v4936_v7 = vadd.f32 %v4935_v23, %v4934_v44 }
 0x1a3   :  { %v8155_v56 = vld.sshfl [vmem:[#allocation1 + $0x10] sm:$0xff pattern:$0x73625140]  ;;  %v8157_v58 = vld.sshfl [vmem:[#allocation1 + $0x18] sm:$0xff pattern:$0x73625140] }
 0x1a4   :  { %12713 = vst [vmem:[#allocation15_spill] sm:$0xff] %v8157_v58  ;;  %v8159_v14 = vld.sshfl [vmem:[#allocation1 + $0x20] sm:$0xff pattern:$0x73625140]  ;;  %v4938_v32 = vadd.f32 %v4937_v15, %v4936_v7  ;;  %v12719_v44 = vperm.slane %v7521_v51, 4  ;;  %v12720_v15 = vperm.slane %v7591_v1, 1 }
 0x1a5   :  { %12714 = vst [vmem:[#allocation26_spill] sm:$0xff] %v8159_v14  ;;  %v8161_v12 = vld.sshfl [vmem:[#allocation1 + $0x28] sm:$0xff pattern:$0x73625140]  ;;  %v1387_v19 = vrot.slane %v12724_v59, 6 }
 0x1a6   :  { %12715 = vst [vmem:[#allocation44_spill] sm:$0xff] %v8161_v12  ;;  %v8163_v22 = vld.sshfl [vmem:[#allocation1 + $0x30] sm:$0xff pattern:$0x73625140]  ;;  %v1960_v23 = vsel %vm1768_vm0, %v12719_v44, %v1381_v9  ;;  %v4940_v16 = vadd.f32 %v4939_v31, %v4938_v32  ;;  %v1384_v51 = vrot.slane %v12720_v15, 6  ;;  %v1959_v9 = vsel %vm1772_vm2, %v1957_v55, %v1958_v17 }
 0x1a7   :  { %12716 = vst [vmem:[#allocation45_spill] sm:$0xff] %v8163_v22  ;;  %v8165_v63 = vld.sshfl [vmem:[#allocation1 + $0x38] sm:$0xff pattern:$0x73625140]  ;;  %v12721_v7 = vld [vmem:[#allocation27_spill] sm:$0xff]  ;;  %v12723_v44 = vperm.slane %v7591_v1, 3 }
 0x1a8   :  { %12717 = vst [vmem:[#allocation75_spill] sm:$0xff] %v8165_v63  ;;  %v4942_v32 = vadd.f32 %v4941_v46, %v4940_v16  ;;  %v12725_v15 = vperm.slane %v7591_v1, 6  ;;  %v12726_v55 = vperm.slane %v7591_v1, 7  ;;  %v8203_v22 = vld [vmem:[#allocation5 + $0x148] sm:$0xff] }
 0x1a9   :  { %3224 = vst [vmem:[#allocation1] ss:$4 sm:$0xff] %v2599_v18  ;;  %v1961_v18 = vsel %vm1770_vm1, %v1382_v26, %v1383_v2  ;;  %v4943_v26 = vsel %vm1768_vm0, %v12721_v7, 0.0  ;;  %v103_v2 = vld [vmem:[#allocation2 + $0x1f8] sm:$0xff]  ;;  %v1386_v13 = vrot.slane %v12723_v44, 2 }
 0x1aa   :  { %3225 = vst [vmem:[#allocation1 + $0x20] ss:$4 sm:$0xff] %v2600_v21  ;;  %v102_v21 = vld [vmem:[#allocation2 + $0x1f0] sm:$0xff]  ;;  %v1962_v31 = vsel %vm1772_vm2, %v1960_v23, %v1961_v18  ;;  %v1388_v63 = vrot.slane %v12725_v15, 4  ;;  %v1389_v17 = vrot.slane %v12726_v55, 2  ;;  %v4944_v14 = vadd.f32 %v4943_v26, %v4942_v32  ;;  %v12728_v18 = vld [vmem:[#allocation46_spill] sm:$0xff] }
 0x1ab   :  { %v12727_v7 = vld [vmem:[#allocation17_spill] sm:$0xff]  ;;  %v2601_v20 = vmul.f32 %v1959_v9, %v102_v21  ;;  %v4947_v23 = vsel %vm1768_vm0, %v7525_v11, 0.0  ;;  %v4949_v46 = vsel %vm1768_vm0, %v12728_v18, 0.0  ;;  %v2602_v16 = vmul.f32 %v1962_v31, %v103_v2 }
 0x1ac   :  { %v4945_v12 = vsel %vm1768_vm0, %v12727_v7, 0.0  ;;  %v12733_v32 = vperm.slane %v7591_v1, 0  ;;  %v12735_v11 = vperm.slane %v7591_v1, 4 }
 0x1ad   :  { %v4946_v58 = vadd.f32 %v4945_v12, %v4944_v14  ;;  %v12734_v14 = vld [vmem:[#allocation47_spill] sm:$0xff] }
 0x1ae   :  { %v1963_v18 = vsel %vm1768_vm0, %v12733_v32, %v1384_v51  ;;  %v4951_v12 = vsel %vm1768_vm0, %v12734_v14, 0.0  ;;  %v12739_v51 = vperm.slane %v7648_v29, 3  ;;  %v12740_v14 = vperm.slane %v7648_v29, 5 }
 0x1af   :  { %v4948_v2 = vadd.f32 %v4947_v23, %v4946_v58  ;;  %v1967_v58 = vsel %vm1770_vm1, %v1388_v63, %v1389_v17  ;;  %v12737_v63 = vperm.slane %v7648_v29, 1 }
 0x1b0   :  { %v8209_v59 = vld.sshfl [vmem:[#allocation1] sm:$0xff pattern:$0x73625140]  ;;  %v8211_v44 = vld.sshfl [vmem:[#allocation1 + $0x8] sm:$0xff pattern:$0x73625140] }
 0x1b1   :  { %v8213_v15 = vld.sshfl [vmem:[#allocation1 + $0x10] sm:$0xff pattern:$0x73625140]  ;;  %v8215_v55 = vld.sshfl [vmem:[#allocation1 + $0x18] sm:$0xff pattern:$0x73625140] }
 0x1b2   :  { %12729 = vst [vmem:[#allocation27_spill] sm:$0xff] %v8215_v55  ;;  %v8217_v7 = vld.sshfl [vmem:[#allocation1 + $0x20] sm:$0xff pattern:$0x73625140]  ;;  %v1964_v55 = vsel %vm1770_vm1, %v1385_v53, %v1386_v13  ;;  %v12736_v13 = vld [vmem:[#allocation48_spill] sm:$0xff]  ;;  %v1390_v17 = vrot.slane %v12737_v63, 6 }
 0x1b3   :  { %v8219_v21 = vld.sshfl [vmem:[#allocation1 + $0x28] sm:$0xff pattern:$0x73625140]  ;;  %v8221_v9 = vld.sshfl [vmem:[#allocation1 + $0x30] sm:$0xff pattern:$0x73625140]  ;;  %v1965_v1 = vsel %vm1772_vm2, %v1963_v18, %v1964_v55 }
 0x1b4   :  { %12730 = vst [vmem:[#allocation17_spill] sm:$0xff] %v8219_v21  ;;  %v8224_v26 = vld.sshfl [vmem:[#allocation1 + $0x38] sm:$0xff pattern:$0x73625140]  ;;  %v4953_v53 = vsel %vm1768_vm0, %v12736_v13, 0.0  ;;  %v4955_v13 = vsel %vm1768_vm0, %v7573_v45, 0.0 }
 0x1b5   :  { %12731 = vst [vmem:[#allocation46_spill] sm:$0xff] %v8221_v9  ;;  %v1392_v32 = vrot.slane %v12739_v51, 2  ;;  %v1393_v23 = vrot.slane %v12740_v14, 6  ;;  %v12741_v55 = vperm.slane %v7648_v29, 6  ;;  %v4959_v45 = vsel %vm1768_vm0, %v7577_v43, 0.0 }
 0x1b6   :  { %12732 = vst [vmem:[#allocation76_spill] sm:$0xff] %v8224_v26  ;;  %v1966_v26 = vsel %vm1768_vm0, %v12735_v11, %v1387_v19  ;;  %v105_v11 = vld [vmem:[#allocation2 + $0x208] sm:$0xff] }
 0x1b7   :  { %3234 = vst [vmem:[#allocation1] ss:$4 sm:$0xff] %v2601_v20  ;;  %v4950_v20 = vadd.f32 %v4949_v46, %v4948_v2  ;;  %v12738_v46 = vperm.slane %v7648_v29, 2  ;;  %v1968_v31 = vsel %vm1772_vm2, %v1966_v26, %v1967_v58  ;;  %v1394_v18 = vrot.slane %v12741_v55, 4  ;;  %v8265_v58 = vld [vmem:[#allocation5 + $0x150] sm:$0xff] }
 0x1b8   :  { %3235 = vst [vmem:[#allocation1 + $0x20] ss:$4 sm:$0xff] %v2602_v16  ;;  %v104_v16 = vld [vmem:[#allocation2 + $0x200] sm:$0xff]  ;;  %v4957_v26 = vsel %vm1768_vm0, %v7575_v33, 0.0  ;;  %v2604_v51 = vmul.f32 %v1968_v31, %v105_v11  ;;  %v4961_v31 = vsel %vm1768_vm0, %v7579_v4, 0.0 }
 0x1b9   :  { %v4952_v19 = vadd.f32 %v4951_v12, %v4950_v20  ;;  %v1391_v2 = vrot.slane %v12738_v46, 4  ;;  %v12742_v20 = vperm.slane %v7648_v29, 7  ;;  %v2603_v9 = vmul.f32 %v1965_v1, %v104_v16 }
 0x1bb   :  { %v4954_v12 = vadd.f32 %v4953_v53, %v4952_v19  ;;  %v1395_v63 = vrot.slane %v12742_v20, 2  ;;  %v12749_v20 = vperm.slane %v7648_v29, 0 }
 0x1bd   :  { %v4956_v53 = vadd.f32 %v4955_v13, %v4954_v12  ;;  %v1969_v13 = vsel %vm1768_vm0, %v12749_v20, %v1390_v17  ;;  %v1970_v12 = vsel %vm1770_vm1, %v1391_v2, %v1392_v32  ;;  %v106_v2 = vld [vmem:[#allocation2 + $0x210] sm:$0xff]  ;;  %v12756_v17 = vperm.slane %v7741_v38, 5 }
 0x1be   :  { %v8267_v46 = vld.sshfl [vmem:[#allocation1] sm:$0xff pattern:$0x73625140]  ;;  %v8269_v14 = vld.sshfl [vmem:[#allocation1 + $0x8] sm:$0xff pattern:$0x73625140] }
 0x1bf   :  { %v8271_v21 = vld.sshfl [vmem:[#allocation1 + $0x10] sm:$0xff pattern:$0x73625140]  ;;  %v8273_v19 = vld.sshfl [vmem:[#allocation1 + $0x18] sm:$0xff pattern:$0x73625140]  ;;  %v4958_v1 = vadd.f32 %v4957_v26, %v4956_v53 }
 0x1c0   :  { %12743 = vst [vmem:[#allocation47_spill] sm:$0xff] %v8271_v21  ;;  %v8275_v55 = vld.sshfl [vmem:[#allocation1 + $0x20] sm:$0xff pattern:$0x73625140]  ;;  %v12750_v26 = vperm.slane %v7648_v29, 4 }
 0x1c1   :  { %12744 = vst [vmem:[#allocation48_spill] sm:$0xff] %v8273_v19  ;;  %v8277_v16 = vld.sshfl [vmem:[#allocation1 + $0x28] sm:$0xff pattern:$0x73625140] }
 0x1c2   :  { %12745 = vst [vmem:[#allocation77_spill] sm:$0xff] %v8275_v55  ;;  %v8279_v33 = vld.sshfl [vmem:[#allocation1 + $0x30] sm:$0xff pattern:$0x73625140]  ;;  %v4960_v55 = vadd.f32 %v4959_v45, %v4958_v1  ;;  %v1972_v53 = vsel %vm1768_vm0, %v12750_v26, %v1393_v23  ;;  %v1971_v23 = vsel %vm1772_vm2, %v1969_v13, %v1970_v12  ;;  %v12753_v1 = vld [vmem:[#allocation29_spill] sm:$0xff]  ;;  %v12755_v26 = vperm.slane %v7741_v38, 3 }
 0x1c3   :  { %12746 = vst [vmem:[#allocation78_spill] sm:$0xff] %v8277_v16  ;;  %v8281_v43 = vld.sshfl [vmem:[#allocation1 + $0x38] sm:$0xff pattern:$0x73625140]  ;;  %v1399_v45 = vrot.slane %v12756_v17, 6  ;;  %v12758_v13 = vperm.slane %v7741_v38, 7  ;;  %v2605_v19 = vmul.f32 %v1971_v23, %v106_v2 }
 0x1c4   :  { %12747 = vst [vmem:[#allocation79_spill] sm:$0xff] %v8279_v33  ;;  %v4962_v32 = vadd.f32 %v4961_v31, %v4960_v55  ;;  %v1398_v33 = vrot.slane %v12755_v26, 2  ;;  %v12760_v21 = vld [vmem:[#allocation50_spill] sm:$0xff] }
 0x1c5   :  { %12748 = vst [vmem:[#allocation80_spill] sm:$0xff] %v8281_v43  ;;  %v12751_v43 = vld [vmem:[#allocation19_spill] sm:$0xff]  ;;  %v1401_v12 = vrot.slane %v12758_v13, 2  ;;  %v4969_v26 = vsel %vm1768_vm0, %v12760_v21, 0.0 }
 0x1c6   :  { %3244 = vst [vmem:[#allocation1] ss:$4 sm:$0xff] %v2603_v9  ;;  %v1973_v9 = vsel %vm1770_vm1, %v1394_v18, %v1395_v63  ;;  %v4963_v4 = vsel %vm1768_vm0, %v12751_v43, 0.0  ;;  %v4965_v18 = vsel %vm1768_vm0, %v12753_v1, 0.0  ;;  %v107_v63 = vld [vmem:[#allocation2 + $0x218] sm:$0xff]  ;;  %v12754_v43 = vperm.slane %v7741_v38, 2 }
 0x1c7   :  { %3245 = vst [vmem:[#allocation1 + $0x20] ss:$4 sm:$0xff] %v2604_v51  ;;  %v12752_v51 = vperm.slane %v7741_v38, 1  ;;  %v1974_v55 = vsel %vm1772_vm2, %v1972_v53, %v1973_v9  ;;  %v4964_v31 = vadd.f32 %v4963_v4, %v4962_v32  ;;  %v12759_v1 = vld [vmem:[#allocation49_spill] sm:$0xff]  ;;  %v4971_v53 = vsel %vm1768_vm0, %v7631_v35, 0.0 }
 0x1c8   :  { %v1397_v20 = vrot.slane %v12754_v43, 4  ;;  %v4967_v16 = vsel %vm1768_vm0, %v12759_v1, 0.0  ;;  %v2606_v9 = vmul.f32 %v1974_v55, %v107_v63  ;;  %v12768_v35 = vperm.slane %v7741_v38, 4 }
 0x1c9   :  { %v1396_v29 = vrot.slane %v12752_v51, 6  ;;  %v12757_v51 = vperm.slane %v7741_v38, 6  ;;  %v4966_v43 = vadd.f32 %v4965_v18, %v4964_v31  ;;  %v12767_v31 = vperm.slane %v7741_v38, 0 }
 0x1cb   :  { %v1400_v11 = vrot.slane %v12757_v51, 4  ;;  %v8329_v51 = vld [vmem:[#allocation5 + $0x158] sm:$0xff]  ;;  %v4968_v2 = vadd.f32 %v4967_v16, %v4966_v43  ;;  %v4973_v16 = vsel %vm1768_vm0, %v7633_v3, 0.0 }
 0x1cc   :  { %v12771_v43 = vld [vmem:[#allocation22_spill] sm:$0xff] }
 0x1cd   :  { %v8323_v4 = vld.sshfl [vmem:[#allocation1] sm:$0xff pattern:$0x73625140]  ;;  %v8325_v17 = vld.sshfl [vmem:[#allocation1 + $0x8] sm:$0xff pattern:$0x73625140]  ;;  %v4970_v63 = vadd.f32 %v4969_v26, %v4968_v2 }
 0x1ce   :  { %v8327_v32 = vld.sshfl [vmem:[#allocation1 + $0x10] sm:$0xff pattern:$0x73625140]  ;;  %v8331_v13 = vld.sshfl [vmem:[#allocation1 + $0x18] sm:$0xff pattern:$0x73625140] }
 0x1cf   :  { %12761 = vst [vmem:[#allocation19_spill] sm:$0xff] %v8327_v32  ;;  %v8333_v1 = vld.sshfl [vmem:[#allocation1 + $0x20] sm:$0xff pattern:$0x73625140]  ;;  %v1975_v32 = vsel %vm1768_vm0, %v12767_v31, %v1396_v29  ;;  %v4972_v26 = vadd.f32 %v4971_v53, %v4970_v63  ;;  %v12770_v53 = vperm.slane %v7803_v25, 2  ;;  %v12772_v29 = vperm.slane %v7803_v25, 3 }
 0x1d0   :  { %12762 = vst [vmem:[#allocation29_spill] sm:$0xff] %v8331_v13  ;;  %v8335_v23 = vld.sshfl [vmem:[#allocation1 + $0x28] sm:$0xff pattern:$0x73625140]  ;;  %v1976_v13 = vsel %vm1770_vm1, %v1397_v20, %v1398_v33  ;;  %v4975_v33 = vsel %vm1768_vm0, %v7635_v8, 0.0  ;;  %v4977_v8 = vsel %vm1768_vm0, %v12771_v43, 0.0 }
 0x1d1   :  { %12763 = vst [vmem:[#allocation49_spill] sm:$0xff] %v8333_v1  ;;  %v8337_v21 = vld.sshfl [vmem:[#allocation1 + $0x30] sm:$0xff pattern:$0x73625140]  ;;  %v108_v20 = vld [vmem:[#allocation2 + $0x220] sm:$0xff]  ;;  %v1977_v38 = vsel %vm1772_vm2, %v1975_v32, %v1976_v13  ;;  %v1403_v63 = vrot.slane %v12770_v53, 4 }
 0x1d2   :  { %12764 = vst [vmem:[#allocation50_spill] sm:$0xff] %v8335_v23  ;;  %v8340_v18 = vld.sshfl [vmem:[#allocation1 + $0x38] sm:$0xff pattern:$0x73625140]  ;;  %v1404_v3 = vrot.slane %v12772_v29, 2  ;;  %v12774_v32 = vperm.slane %v7803_v25, 6  ;;  %v2607_v2 = vmul.f32 %v1977_v38, %v108_v20 }
 0x1d3   :  { %12765 = vst [vmem:[#allocation81_spill] sm:$0xff] %v8337_v21  ;;  %v12776_v53 = vld [vmem:[#allocation30_spill] sm:$0xff] }
 0x1d4   :  { %12766 = vst [vmem:[#allocation82_spill] sm:$0xff] %v8340_v18  ;;  %v1978_v18 = vsel %vm1768_vm0, %v12768_v35, %v1399_v45  ;;  %v4974_v45 = vadd.f32 %v4973_v16, %v4972_v26  ;;  %v109_v35 = vld [vmem:[#allocation2 + $0x228] sm:$0xff]  ;;  %v1406_v13 = vrot.slane %v12774_v32, 4  ;;  %v12775_v26 = vperm.slane %v7803_v25, 7  ;;  %v8387_v32 = vld [vmem:[#allocation5 + $0x160] sm:$0xff] }
 0x1d5   :  { %3254 = vst [vmem:[#allocation1] ss:$4 sm:$0xff] %v2605_v19  ;;  %v1979_v19 = vsel %vm1770_vm1, %v1400_v11, %v1401_v12  ;;  %v12769_v11 = vperm.slane %v7803_v25, 1 }
 0x1d6   :  { %3255 = vst [vmem:[#allocation1 + $0x20] ss:$4 sm:$0xff] %v2606_v9  ;;  %v1980_v31 = vsel %vm1772_vm2, %v1978_v18, %v1979_v19  ;;  %v12773_v9 = vperm.slane %v7803_v25, 5  ;;  %v4976_v16 = vadd.f32 %v4975_v33, %v4974_v45  ;;  %v4979_v18 = vsel %vm1768_vm0, %v12776_v53, 0.0  ;;  %v12777_v19 = vld [vmem:[#allocation51_spill] sm:$0xff] }
 0x1d7   :  { %v1402_v12 = vrot.slane %v12769_v11, 6  ;;  %v1407_v11 = vrot.slane %v12775_v26, 2  ;;  %v4981_v43 = vsel %vm1768_vm0, %v12777_v19, 0.0  ;;  %v2608_v21 = vmul.f32 %v1980_v31, %v109_v35  ;;  %v12784_v35 = vld [vmem:[#allocation52_spill] sm:$0xff] }
 0x1d8   :  { %v1405_v55 = vrot.slane %v12773_v9, 6  ;;  %v4978_v1 = vadd.f32 %v4977_v8, %v4976_v16  ;;  %v4983_v31 = vsel %vm1768_vm0, %v12784_v35, 0.0  ;;  %v12785_v8 = vperm.slane %v7803_v25, 0 }
 0x1d9   :  { %v12791_v19 = vperm.slane %v7867_v47, 5 }
 0x1da   :  { %v4980_v26 = vadd.f32 %v4979_v18, %v4978_v1  ;;  %v1981_v16 = vsel %vm1768_vm0, %v12785_v8, %v1402_v12  ;;  %v12786_v1 = vperm.slane %v7803_v25, 4  ;;  %v12790_v8 = vperm.slane %v7867_v47, 3 }
 0x1dc   :  { %v8381_v23 = vld.sshfl [vmem:[#allocation1] sm:$0xff pattern:$0x73625140]  ;;  %v8383_v29 = vld.sshfl [vmem:[#allocation1 + $0x8] sm:$0xff pattern:$0x73625140]  ;;  %v1984_v18 = vsel %vm1768_vm0, %v12786_v1, %v1405_v55 }
 0x1dd   :  { %v8385_v9 = vld.sshfl [vmem:[#allocation1 + $0x10] sm:$0xff pattern:$0x73625140]  ;;  %v8389_v33 = vld.sshfl [vmem:[#allocation1 + $0x18] sm:$0xff pattern:$0x73625140] }
 0x1de   :  { %12778 = vst [vmem:[#allocation22_spill] sm:$0xff] %v8385_v9  ;;  %v8391_v45 = vld.sshfl [vmem:[#allocation1 + $0x20] sm:$0xff pattern:$0x73625140]  ;;  %v1410_v1 = vrot.slane %v12790_v8, 2 }
 0x1df   :  { %12779 = vst [vmem:[#allocation30_spill] sm:$0xff] %v8389_v33  ;;  %v8393_v20 = vld.sshfl [vmem:[#allocation1 + $0x28] sm:$0xff pattern:$0x73625140]  ;;  %v1982_v33 = vsel %vm1770_vm1, %v1403_v63, %v1404_v3  ;;  %v1411_v63 = vrot.slane %v12791_v19, 6  ;;  %v12795_v9 = vld [vmem:[#allocation25_spill] sm:$0xff] }
 0x1e0   :  { %12780 = vst [vmem:[#allocation51_spill] sm:$0xff] %v8391_v45  ;;  %v8395_v38 = vld.sshfl [vmem:[#allocation1 + $0x30] sm:$0xff pattern:$0x73625140]  ;;  %v4982_v45 = vadd.f32 %v4981_v43, %v4980_v26  ;;  %v12788_v43 = vperm.slane %v7867_v47, 1  ;;  %v1983_v55 = vsel %vm1772_vm2, %v1981_v16, %v1982_v33  ;;  %v12789_v26 = vperm.slane %v7867_v47, 2 }
 0x1e1   :  { %12781 = vst [vmem:[#allocation83_spill] sm:$0xff] %v8393_v20  ;;  %v8397_v53 = vld.sshfl [vmem:[#allocation1 + $0x38] sm:$0xff pattern:$0x73625140]  ;;  %v12793_v33 = vperm.slane %v7867_v47, 7  ;;  %v12794_v20 = vld [vmem:[#allocation31_spill] sm:$0xff] }
 0x1e2   :  { %12782 = vst [vmem:[#allocation84_spill] sm:$0xff] %v8395_v38  ;;  %v4984_v3 = vadd.f32 %v4983_v31, %v4982_v45  ;;  %v1408_v25 = vrot.slane %v12788_v43, 6  ;;  %v12792_v43 = vperm.slane %v7867_v47, 6  ;;  %v4991_v8 = vsel %vm1768_vm0, %v12794_v20, 0.0 }
 0x1e3   :  { %12783 = vst [vmem:[#allocation85_spill] sm:$0xff] %v8397_v53  ;;  %v12787_v53 = vld [vmem:[#allocation53_spill] sm:$0xff]  ;;  %v1413_v16 = vrot.slane %v12793_v33, 2 }
 0x1e4   :  { %3264 = vst [vmem:[#allocation1] ss:$4 sm:$0xff] %v2607_v2  ;;  %v1985_v2 = vsel %vm1770_vm1, %v1406_v13, %v1407_v11  ;;  %v4985_v35 = vsel %vm1768_vm0, %v12787_v53, 0.0  ;;  %v4987_v13 = vsel %vm1768_vm0, %v7689_v57, 0.0  ;;  %v111_v11 = vld [vmem:[#allocation2 + $0x238] sm:$0xff]  ;;  %v1409_v53 = vrot.slane %v12789_v26, 4 }
 0x1e5   :  { %3265 = vst [vmem:[#allocation1 + $0x20] ss:$4 sm:$0xff] %v2608_v21  ;;  %v110_v21 = vld [vmem:[#allocation2 + $0x230] sm:$0xff]  ;;  %v1986_v45 = vsel %vm1772_vm2, %v1984_v18, %v1985_v2  ;;  %v4986_v31 = vadd.f32 %v4985_v35, %v4984_v3  ;;  %v1412_v12 = vrot.slane %v12792_v43, 4  ;;  %v4989_v57 = vsel %vm1768_vm0, %v7691_v37, 0.0  ;;  %v8445_v43 = vld [vmem:[#allocation5 + $0x168] sm:$0xff] }
 0x1e6   :  { %v2609_v38 = vmul.f32 %v1983_v55, %v110_v21  ;;  %v4993_v18 = vsel %vm1768_vm0, %v12795_v9, 0.0  ;;  %v2610_v2 = vmul.f32 %v1986_v45, %v111_v11  ;;  %v12805_v9 = vperm.slane %v7867_v47, 4 }
 0x1e7   :  { %v4988_v26 = vadd.f32 %v4987_v13, %v4986_v31  ;;  %v12803_v31 = vperm.slane %v7867_v47, 0 }
 0x1e9   :  { %v4990_v21 = vadd.f32 %v4989_v57, %v4988_v26  ;;  %v12804_v57 = vld [vmem:[#allocation54_spill] sm:$0xff] }
 0x1ea   :  { %v4995_v26 = vsel %vm1768_vm0, %v12804_v57, 0.0  ;;  %v12811_v57 = vperm.slane %v7925_v24, 5 }
 0x1eb   :  { %v8439_v35 = vld.sshfl [vmem:[#allocation1] sm:$0xff pattern:$0x73625140]  ;;  %v8441_v19 = vld.sshfl [vmem:[#allocation1 + $0x8] sm:$0xff pattern:$0x73625140]  ;;  %v4992_v11 = vadd.f32 %v4991_v8, %v4990_v21 }
 0x1ec   :  { %12796 = vst [vmem:[#allocation52_spill] sm:$0xff] %v8441_v19  ;;  %v8443_v3 = vld.sshfl [vmem:[#allocation1 + $0x10] sm:$0xff pattern:$0x73625140]  ;;  %v12810_v21 = vperm.slane %v7925_v24, 3 }
 0x1ed   :  { %12797 = vst [vmem:[#allocation53_spill] sm:$0xff] %v8443_v3  ;;  %v8447_v33 = vld.sshfl [vmem:[#allocation1 + $0x18] sm:$0xff pattern:$0x73625140]  ;;  %v1987_v3 = vsel %vm1768_vm0, %v12803_v31, %v1408_v25  ;;  %v4994_v8 = vadd.f32 %v4993_v18, %v4992_v11  ;;  %v12808_v18 = vperm.slane %v7925_v24, 2 }
 0x1ee   :  { %12798 = vst [vmem:[#allocation31_spill] sm:$0xff] %v8447_v33  ;;  %v8449_v37 = vld.sshfl [vmem:[#allocation1 + $0x20] sm:$0xff pattern:$0x73625140]  ;;  %v1988_v33 = vsel %vm1770_vm1, %v1409_v53, %v1410_v1  ;;  %v12806_v53 = vld [vmem:[#allocation55_spill] sm:$0xff]  ;;  %v12809_v25 = vld [vmem:[#allocation56_spill] sm:$0xff] }
 0x1ef   :  { %12799 = vst [vmem:[#allocation25_spill] sm:$0xff] %v8449_v37  ;;  %v8451_v55 = vld.sshfl [vmem:[#allocation1 + $0x28] sm:$0xff pattern:$0x73625140]  ;;  %v4997_v1 = vsel %vm1768_vm0, %v12806_v53, 0.0  ;;  %v1989_v47 = vsel %vm1772_vm2, %v1987_v3, %v1988_v33  ;;  %v1415_v11 = vrot.slane %v12808_v18, 4 }
 0x1f0   :  { %12800 = vst [vmem:[#allocation86_spill] sm:$0xff] %v8451_v55  ;;  %v8453_v20 = vld.sshfl [vmem:[#allocation1 + $0x30] sm:$0xff pattern:$0x73625140]  ;;  %v4999_v53 = vsel %vm1768_vm0, %v12809_v25, 0.0  ;;  %v1416_v31 = vrot.slane %v12810_v21, 2 }
 0x1f1   :  { %12801 = vst [vmem:[#allocation87_spill] sm:$0xff] %v8453_v20  ;;  %v8456_v13 = vld.sshfl [vmem:[#allocation1 + $0x38] sm:$0xff pattern:$0x73625140]  ;;  %v1417_v20 = vrot.slane %v12811_v57, 6  ;;  %v12812_v3 = vperm.slane %v7925_v24, 6 }
 0x1f2   :  { %12802 = vst [vmem:[#allocation88_spill] sm:$0xff] %v8456_v13  ;;  %v1990_v13 = vsel %vm1768_vm0, %v12805_v9, %v1411_v63  ;;  %v4996_v63 = vadd.f32 %v4995_v26, %v4994_v8  ;;  %v113_v9 = vld [vmem:[#allocation2 + $0x248] sm:$0xff]  ;;  %v12813_v8 = vperm.slane %v7925_v24, 7  ;;  %v12814_v18 = vld [vmem:[#allocation57_spill] sm:$0xff] }
 0x1f3   :  { %3274 = vst [vmem:[#allocation1] ss:$4 sm:$0xff] %v2609_v38  ;;  %v1991_v38 = vsel %vm1770_vm1, %v1412_v12, %v1413_v16  ;;  %v12807_v12 = vperm.slane %v7925_v24, 1  ;;  %v1418_v33 = vrot.slane %v12812_v3, 4 }
 0x1f4   :  { %3275 = vst [vmem:[#allocation1 + $0x20] ss:$4 sm:$0xff] %v2610_v2  ;;  %v112_v2 = vld [vmem:[#allocation2 + $0x240] sm:$0xff]  ;;  %v1992_v45 = vsel %vm1772_vm2, %v1990_v13, %v1991_v38  ;;  %v4998_v26 = vadd.f32 %v4997_v1, %v4996_v63  ;;  %v5001_v13 = vsel %vm1768_vm0, %v12814_v18, 0.0  ;;  %v5003_v38 = vsel %vm1768_vm0, %v7747_v5, 0.0 }
 0x1f5   :  { %v1414_v16 = vrot.slane %v12807_v12, 6  ;;  %v1419_v12 = vrot.slane %v12813_v8, 2  ;;  %v2611_v55 = vmul.f32 %v1989_v47, %v112_v2  ;;  %v2612_v25 = vmul.f32 %v1992_v45, %v113_v9  ;;  %v8515_v45 = vld [vmem:[#allocation5 + $0x170] sm:$0xff] }
 0x1f6   :  { %v5000_v19 = vadd.f32 %v4999_v53, %v4998_v26  ;;  %v5005_v5 = vsel %vm1768_vm0, %v7749_v6, 0.0  ;;  %v12821_v53 = vperm.slane %v7925_v24, 0  ;;  %v1994_v18 = vsel %vm1770_vm1, %v1415_v11, %v1416_v31  ;;  %v114_v11 = vld [vmem:[#allocation2 + $0x250] sm:$0xff] }
 0x1f7   :  { %v1997_v6 = vsel %vm1770_vm1, %v1418_v33, %v1419_v12  ;;  %v115_v12 = vld [vmem:[#allocation2 + $0x258] sm:$0xff] }
 0x1f8   :  { %v5002_v47 = vadd.f32 %v5001_v13, %v5000_v19  ;;  %v1993_v26 = vsel %vm1768_vm0, %v12821_v53, %v1414_v16  ;;  %v12822_v13 = vperm.slane %v7925_v24, 4  ;;  %v12827_v16 = vperm.slane %v7983_v52, 5 }
 0x1fa   :  { %v8497_v37 = vld.sshfl [vmem:[#allocation1] sm:$0xff pattern:$0x73625140]  ;;  %v8499_v21 = vld.sshfl [vmem:[#allocation1 + $0x8] sm:$0xff pattern:$0x73625140] }
 0x1fb   :  { %v8501_v57 = vld.sshfl [vmem:[#allocation1 + $0x10] sm:$0xff pattern:$0x73625140]  ;;  %v8503_v3 = vld.sshfl [vmem:[#allocation1 + $0x18] sm:$0xff pattern:$0x73625140] }
 0x1fc   :  { %12815 = vst [vmem:[#allocation54_spill] sm:$0xff] %v8501_v57  ;;  %v8505_v1 = vld.sshfl [vmem:[#allocation1 + $0x20] sm:$0xff pattern:$0x73625140] }
 0x1fd   :  { %12816 = vst [vmem:[#allocation55_spill] sm:$0xff] %v8503_v3  ;;  %v8507_v63 = vld.sshfl [vmem:[#allocation1 + $0x28] sm:$0xff pattern:$0x73625140]  ;;  %v12831_v3 = vld [vmem:[#allocation33_spill] sm:$0xff] }
 0x1fe   :  { %12817 = vst [vmem:[#allocation56_spill] sm:$0xff] %v8505_v1  ;;  %v8509_v2 = vld.sshfl [vmem:[#allocation1 + $0x30] sm:$0xff pattern:$0x73625140]  ;;  %v12832_v57 = vld [vmem:[#allocation34_spill] sm:$0xff] }
 0x1ff   :  { %12818 = vst [vmem:[#allocation57_spill] sm:$0xff] %v8507_v63  ;;  %v8511_v8 = vld.sshfl [vmem:[#allocation1 + $0x38] sm:$0xff pattern:$0x73625140]  ;;  %v5004_v63 = vadd.f32 %v5003_v38, %v5002_v47  ;;  %v1423_v38 = vrot.slane %v12827_v16, 6 }
 0x200   :  { %12819 = vst [vmem:[#allocation89_spill] sm:$0xff] %v8509_v2  ;;  %v12824_v47 = vld [vmem:[#allocation16_spill] sm:$0xff] }
 0x201   :  { %12820 = vst [vmem:[#allocation90_spill] sm:$0xff] %v8511_v8  ;;  %v5007_v8 = vsel %vm1768_vm0, %v7751_v42, 0.0  ;;  %v5006_v31 = vadd.f32 %v5005_v5, %v5004_v63  ;;  %v5009_v33 = vsel %vm1768_vm0, %v12824_v47, 0.0  ;;  %v12825_v42 = vperm.slane %v7983_v52, 2  ;;  %v12830_v47 = vld [vmem:[#allocation28_spill] sm:$0xff] }
 0x202   :  { %3284 = vst [vmem:[#allocation1] ss:$4 sm:$0xff] %v2611_v55  ;;  %v1996_v55 = vsel %vm1768_vm0, %v12822_v13, %v1417_v20  ;;  %v1995_v20 = vsel %vm1772_vm2, %v1993_v26, %v1994_v18  ;;  %v12826_v13 = vperm.slane %v7983_v52, 3  ;;  %v12829_v26 = vperm.slane %v7983_v52, 7 }
 0x203   :  { %3285 = vst [vmem:[#allocation1 + $0x20] ss:$4 sm:$0xff] %v2612_v25  ;;  %v12823_v25 = vperm.slane %v7983_v52, 1  ;;  %v1421_v53 = vrot.slane %v12825_v42, 4  ;;  %v1998_v63 = vsel %vm1772_vm2, %v1996_v55, %v1997_v6  ;;  %v5008_v5 = vadd.f32 %v5007_v8, %v5006_v31 }
 0x204   :  { %v1422_v2 = vrot.slane %v12826_v13, 2  ;;  %v1425_v18 = vrot.slane %v12829_v26, 2  ;;  %v5011_v19 = vsel %vm1768_vm0, %v12830_v47, 0.0  ;;  %v2613_v1 = vmul.f32 %v1995_v20, %v114_v11 }
 0x205   :  { %v1420_v24 = vrot.slane %v12823_v25, 6  ;;  %v12828_v25 = vperm.slane %v7983_v52, 6  ;;  %v5010_v42 = vadd.f32 %v5009_v33, %v5008_v5  ;;  %v5013_v13 = vsel %vm1768_vm0, %v12831_v3, 0.0 }
 0x206   :  { %v5015_v8 = vsel %vm1768_vm0, %v12832_v57, 0.0  ;;  %v2614_v55 = vmul.f32 %v1998_v63, %v115_v12  ;;  %v8572_v12 = vld [vmem:[#allocation5 + $0x178] sm:$0xff]  ;;  %v12838_v5 = vperm.slane %v7983_v52, 0  ;;  %v12843_v3 = vperm.slane %v8053_v30, 3 }
 0x207   :  { %v1424_v9 = vrot.slane %v12828_v25, 4  ;;  %v5012_v47 = vadd.f32 %v5011_v19, %v5010_v42  ;;  %v2000_v19 = vsel %vm1770_vm1, %v1421_v53, %v1422_v2  ;;  %v12839_v42 = vld [vmem:[#allocation58_spill] sm:$0xff]  ;;  %v5019_v2 = vsel %vm1768_vm0, %v7805_v50, 0.0 }
 0x208   :  { %v116_v53 = vld [vmem:[#allocation2 + $0x260] sm:$0xff]  ;;  %v5021_v50 = vsel %vm1768_vm0, %v7807_v28, 0.0  ;;  %v5025_v28 = vsel %vm1768_vm0, %v7811_v36, 0.0 }
 0x209   :  { %v8555_v6 = vld.sshfl [vmem:[#allocation1] sm:$0xff pattern:$0x73625140]  ;;  %v8557_v16 = vld.sshfl [vmem:[#allocation1 + $0x8] sm:$0xff pattern:$0x73625140]  ;;  %v5014_v57 = vadd.f32 %v5013_v13, %v5012_v47  ;;  %v2003_v13 = vsel %vm1770_vm1, %v1424_v9, %v1425_v18 }
 0x20a   :  { %v8559_v31 = vld.sshfl [vmem:[#allocation1 + $0x10] sm:$0xff pattern:$0x73625140]  ;;  %v8561_v25 = vld.sshfl [vmem:[#allocation1 + $0x18] sm:$0xff pattern:$0x73625140] }
 0x20b   :  { %12833 = vst [vmem:[#allocation16_spill] sm:$0xff] %v8561_v25  ;;  %v8563_v26 = vld.sshfl [vmem:[#allocation1 + $0x20] sm:$0xff pattern:$0x73625140]  ;;  %v1999_v25 = vsel %vm1768_vm0, %v12838_v5, %v1420_v24  ;;  %v5016_v47 = vadd.f32 %v5015_v8, %v5014_v57  ;;  %v12841_v9 = vperm.slane %v8053_v30, 1  ;;  %v12842_v8 = vperm.slane %v8053_v30, 2 }
 0x20c   :  { %12834 = vst [vmem:[#allocation28_spill] sm:$0xff] %v8563_v26  ;;  %v8565_v11 = vld.sshfl [vmem:[#allocation1 + $0x28] sm:$0xff pattern:$0x73625140]  ;;  %v12844_v5 = vperm.slane %v8053_v30, 5 }
 0x20d   :  { %12835 = vst [vmem:[#allocation33_spill] sm:$0xff] %v8565_v11  ;;  %v8567_v20 = vld.sshfl [vmem:[#allocation1 + $0x30] sm:$0xff pattern:$0x73625140]  ;;  %v1426_v18 = vrot.slane %v12841_v9, 6  ;;  %v1427_v57 = vrot.slane %v12842_v8, 4 }
 0x20e   :  { %12836 = vst [vmem:[#allocation34_spill] sm:$0xff] %v8567_v20  ;;  %v8570_v33 = vld.sshfl [vmem:[#allocation1 + $0x38] sm:$0xff pattern:$0x73625140]  ;;  %v5017_v20 = vsel %vm1768_vm0, %v12839_v42, 0.0  ;;  %v1429_v24 = vrot.slane %v12844_v5, 6 }
 0x20f   :  { %12837 = vst [vmem:[#allocation91_spill] sm:$0xff] %v8570_v33  ;;  %v12840_v33 = vperm.slane %v7983_v52, 4  ;;  %v2001_v52 = vsel %vm1772_vm2, %v1999_v25, %v2000_v19  ;;  %v12845_v25 = vperm.slane %v8053_v30, 6  ;;  %v12847_v8 = vld [vmem:[#allocation32_spill] sm:$0xff]  ;;  %v12854_v36 = vld [vmem:[#allocation11_spill] sm:$0xff] }
 0x210   :  { %3294 = vst [vmem:[#allocation1] ss:$4 sm:$0xff] %v2613_v1  ;;  %v2615_v11 = vmul.f32 %v2001_v52, %v116_v53 }
 0x211   :  { %3295 = vst [vmem:[#allocation1 + $0x20] ss:$4 sm:$0xff] %v2614_v55  ;;  %v2002_v1 = vsel %vm1768_vm0, %v12840_v33, %v1423_v38  ;;  %v5018_v38 = vadd.f32 %v5017_v20, %v5016_v47  ;;  %v117_v33 = vld [vmem:[#allocation2 + $0x268] sm:$0xff]  ;;  %v1428_v55 = vrot.slane %v12843_v3, 2  ;;  %v1430_v20 = vrot.slane %v12845_v25, 4 }
 0x212   :  { %v2004_v42 = vsel %vm1772_vm2, %v2002_v1, %v2003_v13  ;;  %v12846_v47 = vperm.slane %v8053_v30, 7  ;;  %v5023_v1 = vsel %vm1768_vm0, %v12847_v8, 0.0  ;;  %v12855_v8 = vperm.slane %v8053_v30, 0 }
 0x213   :  { %v5020_v19 = vadd.f32 %v5019_v2, %v5018_v38  ;;  %v2616_v13 = vmul.f32 %v2004_v42, %v117_v33  ;;  %v5027_v33 = vsel %vm1768_vm0, %v12854_v36, 0.0 }
 0x214   :  { %v1431_v9 = vrot.slane %v12846_v47, 2 }
 0x215   :  { %v5022_v26 = vadd.f32 %v5021_v50, %v5020_v19  ;;  %v2005_v50 = vsel %vm1768_vm0, %v12855_v8, %v1426_v18  ;;  %v2006_v19 = vsel %vm1770_vm1, %v1427_v57, %v1428_v55  ;;  %v118_v57 = vld [vmem:[#allocation2 + $0x270] sm:$0xff] }
 0x217   :  { %v8613_v63 = vld.sshfl [vmem:[#allocation1] sm:$0xff pattern:$0x73625140]  ;;  %v8615_v3 = vld.sshfl [vmem:[#allocation1 + $0x8] sm:$0xff pattern:$0x73625140]  ;;  %v5024_v52 = vadd.f32 %v5023_v1, %v5022_v26 }
 0x218   :  { %v8617_v5 = vld.sshfl [vmem:[#allocation1 + $0x10] sm:$0xff pattern:$0x73625140]  ;;  %v8619_v25 = vld.sshfl [vmem:[#allocation1 + $0x18] sm:$0xff pattern:$0x73625140] }
 0x219   :  { %12848 = vst [vmem:[#allocation58_spill] sm:$0xff] %v8617_v5  ;;  %v8621_v2 = vld.sshfl [vmem:[#allocation1 + $0x20] sm:$0xff pattern:$0x73625140]  ;;  %v12856_v26 = vperm.slane %v8053_v30, 4 }
 0x21a   :  { %12849 = vst [vmem:[#allocation32_spill] sm:$0xff] %v8619_v25  ;;  %v8623_v38 = vld.sshfl [vmem:[#allocation1 + $0x28] sm:$0xff pattern:$0x73625140] }
 0x21b   :  { %12850 = vst [vmem:[#allocation92_spill] sm:$0xff] %v8621_v2  ;;  %v8625_v53 = vld.sshfl [vmem:[#allocation1 + $0x30] sm:$0xff pattern:$0x73625140]  ;;  %v5026_v2 = vadd.f32 %v5025_v28, %v5024_v52  ;;  %v2008_v1 = vsel %vm1768_vm0, %v12856_v26, %v1429_v24  ;;  %v2007_v24 = vsel %vm1772_vm2, %v2005_v50, %v2006_v19  ;;  %v12861_v26 = vperm.slane %v8110_v41, 3  ;;  %v8665_v25 = vld [vmem:[#allocation5 + $0x180] sm:$0xff] }
 0x21c   :  { %12851 = vst [vmem:[#allocation93_spill] sm:$0xff] %v8623_v38  ;;  %v8627_v47 = vld.sshfl [vmem:[#allocation1 + $0x38] sm:$0xff pattern:$0x73625140]  ;;  %v12859_v52 = vld [vmem:[#allocation59_spill] sm:$0xff]  ;;  %v12862_v28 = vperm.slane %v8110_v41, 5 }
 0x21d   :  { %12852 = vst [vmem:[#allocation94_spill] sm:$0xff] %v8625_v53  ;;  %v5028_v55 = vadd.f32 %v5027_v33, %v5026_v2  ;;  %v1434_v42 = vrot.slane %v12861_v26, 2  ;;  %v12864_v50 = vperm.slane %v8110_v41, 7 }
 0x21e   :  { %12853 = vst [vmem:[#allocation95_spill] sm:$0xff] %v8627_v47  ;;  %v12857_v47 = vld [vmem:[#allocation18_spill] sm:$0xff]  ;;  %v1435_v18 = vrot.slane %v12862_v28, 6 }
 0x21f   :  { %3304 = vst [vmem:[#allocation1] ss:$4 sm:$0xff] %v2615_v11  ;;  %v2009_v11 = vsel %vm1770_vm1, %v1430_v20, %v1431_v9  ;;  %v5029_v36 = vsel %vm1768_vm0, %v12857_v47, 0.0  ;;  %v5031_v20 = vsel %vm1768_vm0, %v12859_v52, 0.0  ;;  %v119_v9 = vld [vmem:[#allocation2 + $0x278] sm:$0xff]  ;;  %v12860_v47 = vperm.slane %v8110_v41, 2 }
 0x220   :  { %3305 = vst [vmem:[#allocation1 + $0x20] ss:$4 sm:$0xff] %v2616_v13  ;;  %v12858_v13 = vperm.slane %v8110_v41, 1  ;;  %v2010_v2 = vsel %vm1772_vm2, %v2008_v1, %v2009_v11  ;;  %v5030_v33 = vadd.f32 %v5029_v36, %v5028_v55  ;;  %v1437_v19 = vrot.slane %v12864_v50, 2  ;;  %v12865_v52 = vld [vmem:[#allocation60_spill] sm:$0xff] }
 0x221   :  { %v1433_v8 = vrot.slane %v12860_v47, 4  ;;  %v5033_v38 = vsel %vm1768_vm0, %v12865_v52, 0.0  ;;  %v2617_v47 = vmul.f32 %v2007_v24, %v118_v57  ;;  %v5035_v1 = vsel %vm1768_vm0, %v7861_v60, 0.0 }
 0x222   :  { %v1432_v30 = vrot.slane %v12858_v13, 6  ;;  %v12863_v13 = vperm.slane %v8110_v41, 6  ;;  %v5032_v5 = vadd.f32 %v5031_v20, %v5030_v33  ;;  %v5037_v11 = vsel %vm1768_vm0, %v7863_v40, 0.0 }
 0x223   :  { %v2618_v36 = vmul.f32 %v2010_v2, %v119_v9  ;;  %v12873_v2 = vperm.slane %v8110_v41, 0  ;;  %v12875_v60 = vperm.slane %v8110_v41, 4 }
 0x224   :  { %v1436_v53 = vrot.slane %v12863_v13, 4  ;;  %v5034_v52 = vadd.f32 %v5033_v38, %v5032_v5  ;;  %v12874_v5 = vld [vmem:[#allocation36_spill] sm:$0xff] }
 0x225   :  { %v2011_v33 = vsel %vm1768_vm0, %v12873_v2, %v1432_v30  ;;  %v5039_v38 = vsel %vm1768_vm0, %v12874_v5, 0.0  ;;  %v12879_v30 = vld [vmem:[#allocation20_spill] sm:$0xff]  ;;  %v12881_v5 = vperm.slane %v8203_v22, 5 }
 0x226   :  { %v8671_v55 = vld.sshfl [vmem:[#allocation1] sm:$0xff pattern:$0x73625140]  ;;  %v8673_v28 = vld.sshfl [vmem:[#allocation1 + $0x8] sm:$0xff pattern:$0x73625140]  ;;  %v5036_v40 = vadd.f32 %v5035_v1, %v5034_v52 }
 0x227   :  { %12866 = vst [vmem:[#allocation11_spill] sm:$0xff] %v8673_v28  ;;  %v8675_v26 = vld.sshfl [vmem:[#allocation1 + $0x10] sm:$0xff pattern:$0x73625140]  ;;  %v12880_v52 = vperm.slane %v8203_v22, 3 }
 0x228   :  { %12867 = vst [vmem:[#allocation18_spill] sm:$0xff] %v8675_v26  ;;  %v8677_v13 = vld.sshfl [vmem:[#allocation1 + $0x18] sm:$0xff pattern:$0x73625140]  ;;  %v5038_v1 = vadd.f32 %v5037_v11, %v5036_v40  ;;  %v12878_v11 = vperm.slane %v8203_v22, 2 }
 0x229   :  { %12868 = vst [vmem:[#allocation59_spill] sm:$0xff] %v8677_v13  ;;  %v8679_v50 = vld.sshfl [vmem:[#allocation1 + $0x20] sm:$0xff pattern:$0x73625140]  ;;  %v2012_v13 = vsel %vm1770_vm1, %v1433_v8, %v1434_v42  ;;  %v12876_v42 = vld [vmem:[#allocation35_spill] sm:$0xff]  ;;  %v1440_v2 = vrot.slane %v12880_v52, 2 }
 0x22a   :  { %12869 = vst [vmem:[#allocation60_spill] sm:$0xff] %v8679_v50  ;;  %v8681_v57 = vld.sshfl [vmem:[#allocation1 + $0x28] sm:$0xff pattern:$0x73625140]  ;;  %v5041_v8 = vsel %vm1768_vm0, %v12876_v42, 0.0  ;;  %v2013_v41 = vsel %vm1772_vm2, %v2011_v33, %v2012_v13  ;;  %v1439_v40 = vrot.slane %v12878_v11, 4 }
 0x22b   :  { %12870 = vst [vmem:[#allocation96_spill] sm:$0xff] %v8681_v57  ;;  %v8683_v24 = vld.sshfl [vmem:[#allocation1 + $0x30] sm:$0xff pattern:$0x73625140]  ;;  %v5043_v42 = vsel %vm1768_vm0, %v12879_v30, 0.0  ;;  %v12882_v13 = vperm.slane %v8203_v22, 6 }
 0x22c   :  { %12871 = vst [vmem:[#allocation97_spill] sm:$0xff] %v8683_v24  ;;  %v8686_v20 = vld.sshfl [vmem:[#allocation1 + $0x38] sm:$0xff pattern:$0x73625140]  ;;  %v1441_v24 = vrot.slane %v12881_v5, 6  ;;  %v8727_v50 = vld [vmem:[#allocation5 + $0x188] sm:$0xff] }
 0x22d   :  { %12872 = vst [vmem:[#allocation98_spill] sm:$0xff] %v8686_v20  ;;  %v2014_v20 = vsel %vm1768_vm0, %v12875_v60, %v1435_v18  ;;  %v5040_v18 = vadd.f32 %v5039_v38, %v5038_v1  ;;  %v121_v60 = vld [vmem:[#allocation2 + $0x288] sm:$0xff]  ;;  %v1442_v33 = vrot.slane %v12882_v13, 4  ;;  %v12883_v1 = vperm.slane %v8203_v22, 7  ;;  %v12884_v11 = vld [vmem:[#allocation61_spill] sm:$0xff] }
 0x22e   :  { %3314 = vst [vmem:[#allocation1] ss:$4 sm:$0xff] %v2617_v47  ;;  %v2015_v47 = vsel %vm1770_vm1, %v1436_v53, %v1437_v19  ;;  %v12877_v53 = vperm.slane %v8203_v22, 1 }
 0x22f   :  { %3315 = vst [vmem:[#allocation1 + $0x20] ss:$4 sm:$0xff] %v2618_v36  ;;  %v120_v36 = vld [vmem:[#allocation2 + $0x280] sm:$0xff]  ;;  %v2016_v9 = vsel %vm1772_vm2, %v2014_v20, %v2015_v47  ;;  %v5042_v38 = vadd.f32 %v5041_v8, %v5040_v18  ;;  %v5045_v20 = vsel %vm1768_vm0, %v12884_v11, 0.0 }
 0x230   :  { %v1438_v19 = vrot.slane %v12877_v53, 6  ;;  %v1443_v53 = vrot.slane %v12883_v1, 2  ;;  %v2619_v57 = vmul.f32 %v2013_v41, %v120_v36  ;;  %v12885_v47 = vld [vmem:[#allocation62_spill] sm:$0xff]  ;;  %v2620_v52 = vmul.f32 %v2016_v9, %v121_v60  ;;  %v12893_v9 = vld [vmem:[#allocation63_spill] sm:$0xff] }
 0x231   :  { %v5047_v30 = vsel %vm1768_vm0, %v12885_v47, 0.0  ;;  %v5044_v8 = vadd.f32 %v5043_v42, %v5042_v38  ;;  %v5049_v60 = vsel %vm1768_vm0, %v12893_v9, 0.0  ;;  %v2018_v38 = vsel %vm1770_vm1, %v1439_v40, %v1440_v2 }
 0x232   :  { %v5051_v9 = vsel %vm1768_vm0, %v7919_v54, 0.0  ;;  %v12898_v54 = vperm.slane %v8265_v58, 2 }
 0x233   :  { %v5046_v1 = vadd.f32 %v5045_v20, %v5044_v8  ;;  %v12895_v20 = vperm.slane %v8203_v22, 4 }
 0x235   :  { %v8729_v26 = vld.sshfl [vmem:[#allocation1] sm:$0xff pattern:$0x73625140]  ;;  %v8731_v5 = vld.sshfl [vmem:[#allocation1 + $0x8] sm:$0xff pattern:$0x73625140]  ;;  %v2020_v8 = vsel %vm1768_vm0, %v12895_v20, %v1441_v24 }
 0x236   :  { %12886 = vst [vmem:[#allocation36_spill] sm:$0xff] %v8731_v5  ;;  %v8733_v28 = vld.sshfl [vmem:[#allocation1 + $0x10] sm:$0xff pattern:$0x73625140]  ;;  %v12899_v20 = vperm.slane %v8265_v58, 3 }
 0x237   :  { %12887 = vst [vmem:[#allocation35_spill] sm:$0xff] %v8733_v28  ;;  %v8735_v18 = vld.sshfl [vmem:[#allocation1 + $0x18] sm:$0xff pattern:$0x73625140]  ;;  %v12894_v28 = vperm.slane %v8203_v22, 0 }
 0x238   :  { %12888 = vst [vmem:[#allocation20_spill] sm:$0xff] %v8735_v18  ;;  %v8737_v13 = vld.sshfl [vmem:[#allocation1 + $0x20] sm:$0xff pattern:$0x73625140]  ;;  %v12905_v5 = vld [vmem:[#allocation64_spill] sm:$0xff] }
 0x239   :  { %12889 = vst [vmem:[#allocation61_spill] sm:$0xff] %v8737_v13  ;;  %v8739_v36 = vld.sshfl [vmem:[#allocation1 + $0x28] sm:$0xff pattern:$0x73625140]  ;;  %v2017_v42 = vsel %vm1768_vm0, %v12894_v28, %v1438_v19  ;;  %v5048_v13 = vadd.f32 %v5047_v30, %v5046_v1  ;;  %v122_v19 = vld [vmem:[#allocation2 + $0x290] sm:$0xff]  ;;  %v12896_v30 = vperm.slane %v8265_v58, 1 }
 0x23a   :  { %12890 = vst [vmem:[#allocation62_spill] sm:$0xff] %v8739_v36  ;;  %v8741_v41 = vld.sshfl [vmem:[#allocation1 + $0x30] sm:$0xff pattern:$0x73625140]  ;;  %v2019_v24 = vsel %vm1772_vm2, %v2017_v42, %v2018_v38  ;;  %v1445_v1 = vrot.slane %v12898_v54, 4  ;;  %v12900_v28 = vperm.slane %v8265_v58, 5 }
 0x23b   :  { %12891 = vst [vmem:[#allocation99_spill] sm:$0xff] %v8741_v41  ;;  %v8743_v11 = vld.sshfl [vmem:[#allocation1 + $0x38] sm:$0xff pattern:$0x73625140]  ;;  %v5050_v2 = vadd.f32 %v5049_v60, %v5048_v13  ;;  %v1444_v22 = vrot.slane %v12896_v30, 6  ;;  %v12901_v30 = vperm.slane %v8265_v58, 6  ;;  %v2621_v41 = vmul.f32 %v2019_v24, %v122_v19 }
 0x23c   :  { %12892 = vst [vmem:[#allocation100_spill] sm:$0xff] %v8743_v11  ;;  %v1446_v11 = vrot.slane %v12899_v20, 2  ;;  %v1447_v40 = vrot.slane %v12900_v28, 6  ;;  %v12902_v42 = vperm.slane %v8265_v58, 7  ;;  %v12904_v18 = vld [vmem:[#allocation38_spill] sm:$0xff] }
 0x23d   :  { %3324 = vst [vmem:[#allocation1] ss:$4 sm:$0xff] %v2619_v57  ;;  %v2021_v57 = vsel %vm1770_vm1, %v1442_v33, %v1443_v53  ;;  %v123_v53 = vld [vmem:[#allocation2 + $0x298] sm:$0xff]  ;;  %v5052_v60 = vadd.f32 %v5051_v9, %v5050_v2  ;;  %v1448_v47 = vrot.slane %v12901_v30, 4  ;;  %v5057_v20 = vsel %vm1768_vm0, %v12904_v18, 0.0  ;;  %v8791_v30 = vld [vmem:[#allocation5 + $0x190] sm:$0xff] }
 0x23e   :  { %3325 = vst [vmem:[#allocation1 + $0x20] ss:$4 sm:$0xff] %v2620_v52  ;;  %v12897_v52 = vld [vmem:[#allocation37_spill] sm:$0xff]  ;;  %v2022_v13 = vsel %vm1772_vm2, %v2020_v8, %v2021_v57  ;;  %v1449_v38 = vrot.slane %v12902_v42, 2  ;;  %v5059_v8 = vsel %vm1768_vm0, %v12905_v5, 0.0  ;;  %v12914_v5 = vperm.slane %v8265_v58, 4 }
 0x23f   :  { %v5053_v33 = vsel %vm1768_vm0, %v12897_v52, 0.0  ;;  %v12903_v52 = vld [vmem:[#allocation12_spill] sm:$0xff]  ;;  %v2622_v57 = vmul.f32 %v2022_v13, %v123_v53  ;;  %v12919_v13 = vperm.slane %v8329_v51, 3 }
 0x240   :  { %v5055_v36 = vsel %vm1768_vm0, %v12903_v52, 0.0  ;;  %v5054_v54 = vadd.f32 %v5053_v33, %v5052_v60  ;;  %v12912_v60 = vperm.slane %v8265_v58, 0 }
 0x242   :  { %v5056_v19 = vadd.f32 %v5055_v36, %v5054_v54  ;;  %v12913_v36 = vld [vmem:[#allocation65_spill] sm:$0xff] }
 0x243   :  { %v5061_v54 = vsel %vm1768_vm0, %v12913_v36, 0.0  ;;  %v12920_v36 = vperm.slane %v8329_v51, 5 }
 0x244   :  { %v8785_v9 = vld.sshfl [vmem:[#allocation1] sm:$0xff pattern:$0x73625140]  ;;  %v8787_v28 = vld.sshfl [vmem:[#allocation1 + $0x8] sm:$0xff pattern:$0x73625140]  ;;  %v5058_v53 = vadd.f32 %v5057_v20, %v5056_v19 }
 0x245   :  { %v8789_v2 = vld.sshfl [vmem:[#allocation1 + $0x10] sm:$0xff pattern:$0x73625140]  ;;  %v8793_v42 = vld.sshfl [vmem:[#allocation1 + $0x18] sm:$0xff pattern:$0x73625140] }
 0x246   :  { %12906 = vst [vmem:[#allocation63_spill] sm:$0xff] %v8789_v2  ;;  %v8795_v52 = vld.sshfl [vmem:[#allocation1 + $0x20] sm:$0xff pattern:$0x73625140]  ;;  %v2023_v2 = vsel %vm1768_vm0, %v12912_v60, %v1444_v22  ;;  %v5060_v20 = vadd.f32 %v5059_v8, %v5058_v53  ;;  %v12917_v8 = vperm.slane %v8329_v51, 2  ;;  %v12918_v22 = vld [vmem:[#allocation67_spill] sm:$0xff] }
 0x247   :  { %12907 = vst [vmem:[#allocation37_spill] sm:$0xff] %v8793_v42  ;;  %v8797_v24 = vld.sshfl [vmem:[#allocation1 + $0x28] sm:$0xff pattern:$0x73625140]  ;;  %v2024_v42 = vsel %vm1770_vm1, %v1445_v1, %v1446_v11  ;;  %v1452_v60 = vrot.slane %v12919_v13, 2  ;;  %v1453_v19 = vrot.slane %v12920_v36, 6 }
 0x248   :  { %12908 = vst [vmem:[#allocation12_spill] sm:$0xff] %v8795_v52  ;;  %v8799_v18 = vld.sshfl [vmem:[#allocation1 + $0x30] sm:$0xff pattern:$0x73625140]  ;;  %v12915_v11 = vld [vmem:[#allocation66_spill] sm:$0xff]  ;;  %v2025_v58 = vsel %vm1772_vm2, %v2023_v2, %v2024_v42  ;;  %v1451_v53 = vrot.slane %v12917_v8, 4 }
 0x249   :  { %12909 = vst [vmem:[#allocation38_spill] sm:$0xff] %v8797_v24  ;;  %v8802_v33 = vld.sshfl [vmem:[#allocation1 + $0x38] sm:$0xff pattern:$0x73625140]  ;;  %v5063_v1 = vsel %vm1768_vm0, %v12915_v11, 0.0  ;;  %v5065_v11 = vsel %vm1768_vm0, %v12918_v22, 0.0 }
 0x24a   :  { %12910 = vst [vmem:[#allocation64_spill] sm:$0xff] %v8799_v18  ;;  %v12921_v2 = vperm.slane %v8329_v51, 6 }
 0x24b   :  { %12911 = vst [vmem:[#allocation101_spill] sm:$0xff] %v8802_v33  ;;  %v2026_v33 = vsel %vm1768_vm0, %v12914_v5, %v1447_v40  ;;  %v5062_v40 = vadd.f32 %v5061_v54, %v5060_v20  ;;  %v125_v5 = vld [vmem:[#allocation2 + $0x2a8] sm:$0xff]  ;;  %v12922_v20 = vperm.slane %v8329_v51, 7 }
 0x24c   :  { %3334 = vst [vmem:[#allocation1] ss:$4 sm:$0xff] %v2621_v41  ;;  %v2027_v41 = vsel %vm1770_vm1, %v1448_v47, %v1449_v38  ;;  %v12916_v47 = vperm.slane %v8329_v51, 1  ;;  %v1454_v42 = vrot.slane %v12921_v2, 4  ;;  %v8849_v2 = vld [vmem:[#allocation5 + $0x198] sm:$0xff] }
 0x24d   :  { %3335 = vst [vmem:[#allocation1 + $0x20] ss:$4 sm:$0xff] %v2622_v57  ;;  %v124_v57 = vld [vmem:[#allocation2 + $0x2a0] sm:$0xff]  ;;  %v2028_v18 = vsel %vm1772_vm2, %v2026_v33, %v2027_v41  ;;  %v5064_v54 = vadd.f32 %v5063_v1, %v5062_v40  ;;  %v5067_v33 = vsel %vm1768_vm0, %v7977_v62, 0.0  ;;  %v5069_v41 = vsel %vm1768_vm0, %v7979_v27, 0.0 }
 0x24e   :  { %v1450_v38 = vrot.slane %v12916_v47, 6  ;;  %v1455_v47 = vrot.slane %v12922_v20, 2  ;;  %v2623_v24 = vmul.f32 %v2025_v58, %v124_v57  ;;  %v2624_v22 = vmul.f32 %v2028_v18, %v125_v5  ;;  %v12930_v18 = vld [vmem:[#allocation21_spill] sm:$0xff] }
 0x24f   :  { %v5066_v52 = vadd.f32 %v5065_v11, %v5064_v54  ;;  %v5071_v5 = vsel %vm1768_vm0, %v12930_v18, 0.0  ;;  %v12931_v11 = vperm.slane %v8329_v51, 0  ;;  %v12937_v20 = vperm.slane %v8387_v32, 5 }
 0x251   :  { %v5068_v58 = vadd.f32 %v5067_v33, %v5066_v52  ;;  %v2029_v54 = vsel %vm1768_vm0, %v12931_v11, %v1450_v38  ;;  %v12932_v52 = vperm.slane %v8329_v51, 4  ;;  %v12936_v11 = vperm.slane %v8387_v32, 3 }
 0x253   :  { %v8843_v8 = vld.sshfl [vmem:[#allocation1] sm:$0xff pattern:$0x73625140]  ;;  %v8845_v13 = vld.sshfl [vmem:[#allocation1 + $0x8] sm:$0xff pattern:$0x73625140]  ;;  %v2032_v33 = vsel %vm1768_vm0, %v12932_v52, %v1453_v19 }
 0x254   :  { %12923 = vst [vmem:[#allocation65_spill] sm:$0xff] %v8845_v13  ;;  %v8847_v36 = vld.sshfl [vmem:[#allocation1 + $0x10] sm:$0xff pattern:$0x73625140]  ;;  %v1458_v52 = vrot.slane %v12936_v11, 2  ;;  %v12942_v13 = vld [vmem:[#allocation41_spill] sm:$0xff] }
 0x255   :  { %12924 = vst [vmem:[#allocation66_spill] sm:$0xff] %v8847_v36  ;;  %v8851_v1 = vld.sshfl [vmem:[#allocation1 + $0x18] sm:$0xff pattern:$0x73625140] }
 0x256   :  { %12925 = vst [vmem:[#allocation67_spill] sm:$0xff] %v8851_v1  ;;  %v8853_v40 = vld.sshfl [vmem:[#allocation1 + $0x20] sm:$0xff pattern:$0x73625140]  ;;  %v2030_v1 = vsel %vm1770_vm1, %v1451_v53, %v1452_v60  ;;  %v126_v53 = vld [vmem:[#allocation2 + $0x2b0] sm:$0xff] }
 0x257   :  { %12926 = vst [vmem:[#allocation102_spill] sm:$0xff] %v8853_v40  ;;  %v8855_v57 = vld.sshfl [vmem:[#allocation1 + $0x28] sm:$0xff pattern:$0x73625140]  ;;  %v5070_v40 = vadd.f32 %v5069_v41, %v5068_v58  ;;  %v2031_v19 = vsel %vm1772_vm2, %v2029_v54, %v2030_v1  ;;  %v12935_v58 = vperm.slane %v8387_v32, 2  ;;  %v1459_v41 = vrot.slane %v12937_v20, 6 }
 0x258   :  { %12927 = vst [vmem:[#allocation103_spill] sm:$0xff] %v8855_v57  ;;  %v8857_v62 = vld.sshfl [vmem:[#allocation1 + $0x30] sm:$0xff pattern:$0x73625140]  ;;  %v12939_v1 = vperm.slane %v8387_v32, 7  ;;  %v2625_v57 = vmul.f32 %v2031_v19, %v126_v53 }
 0x259   :  { %12928 = vst [vmem:[#allocation104_spill] sm:$0xff] %v8857_v62  ;;  %v8859_v27 = vld.sshfl [vmem:[#allocation1 + $0x38] sm:$0xff pattern:$0x73625140]  ;;  %v5072_v60 = vadd.f32 %v5071_v5, %v5070_v40 }
 0x25a   :  { %12929 = vst [vmem:[#allocation105_spill] sm:$0xff] %v8859_v27  ;;  %v12933_v27 = vld [vmem:[#allocation13_spill] sm:$0xff]  ;;  %v1461_v54 = vrot.slane %v12939_v1, 2  ;;  %v12941_v36 = vld [vmem:[#allocation40_spill] sm:$0xff] }
 0x25b   :  { %3344 = vst [vmem:[#allocation1] ss:$4 sm:$0xff] %v2623_v24  ;;  %v2033_v24 = vsel %vm1770_vm1, %v1454_v42, %v1455_v47  ;;  %v5073_v18 = vsel %vm1768_vm0, %v12933_v27, 0.0  ;;  %v5075_v42 = vsel %vm1768_vm0, %v7987_v39, 0.0  ;;  %v127_v47 = vld [vmem:[#allocation2 + $0x2b8] sm:$0xff]  ;;  %v1457_v27 = vrot.slane %v12935_v58, 4 }
 0x25c   :  { %3345 = vst [vmem:[#allocation1 + $0x20] ss:$4 sm:$0xff] %v2624_v22  ;;  %v12934_v22 = vperm.slane %v8387_v32, 1  ;;  %v2034_v40 = vsel %vm1772_vm2, %v2032_v33, %v2033_v24  ;;  %v5074_v5 = vadd.f32 %v5073_v18, %v5072_v60  ;;  %v12940_v39 = vld [vmem:[#allocation39_spill] sm:$0xff]  ;;  %v5079_v11 = vsel %vm1768_vm0, %v12941_v36, 0.0 }
 0x25d   :  { %v5077_v62 = vsel %vm1768_vm0, %v12940_v39, 0.0  ;;  %v5081_v33 = vsel %vm1768_vm0, %v12942_v13, 0.0  ;;  %v2626_v24 = vmul.f32 %v2034_v40, %v127_v47  ;;  %v12949_v13 = vperm.slane %v8387_v32, 4 }
 0x25e   :  { %v1456_v51 = vrot.slane %v12934_v22, 6  ;;  %v12938_v22 = vperm.slane %v8387_v32, 6  ;;  %v5076_v58 = vadd.f32 %v5075_v42, %v5074_v5  ;;  %v12948_v5 = vperm.slane %v8387_v32, 0 }
 0x25f   :  { %v12952_v40 = vperm.slane %v8445_v43, 3 }
 0x260   :  { %v1460_v38 = vrot.slane %v12938_v22, 4  ;;  %v8907_v22 = vld [vmem:[#allocation5 + $0x1a0] sm:$0xff]  ;;  %v5078_v53 = vadd.f32 %v5077_v62, %v5076_v58  ;;  %v5083_v62 = vsel %vm1768_vm0, %v8035_v10, 0.0 }
 0x261   :  { %v1464_v10 = vrot.slane %v12952_v40, 2 }
 0x262   :  { %v8901_v18 = vld.sshfl [vmem:[#allocation1] sm:$0xff pattern:$0x73625140]  ;;  %v8903_v20 = vld.sshfl [vmem:[#allocation1 + $0x8] sm:$0xff pattern:$0x73625140]  ;;  %v5080_v47 = vadd.f32 %v5079_v11, %v5078_v53 }
 0x263   :  { %v8905_v60 = vld.sshfl [vmem:[#allocation1 + $0x10] sm:$0xff pattern:$0x73625140]  ;;  %v8909_v1 = vld.sshfl [vmem:[#allocation1 + $0x18] sm:$0xff pattern:$0x73625140] }
 0x264   :  { %12943 = vst [vmem:[#allocation21_spill] sm:$0xff] %v8905_v60  ;;  %v8911_v39 = vld.sshfl [vmem:[#allocation1 + $0x20] sm:$0xff pattern:$0x73625140]  ;;  %v2035_v60 = vsel %vm1768_vm0, %v12948_v5, %v1456_v51  ;;  %v5082_v11 = vadd.f32 %v5081_v33, %v5080_v47  ;;  %v12951_v33 = vperm.slane %v8445_v43, 2 }
 0x265   :  { %12944 = vst [vmem:[#allocation13_spill] sm:$0xff] %v8909_v1  ;;  %v8913_v19 = vld.sshfl [vmem:[#allocation1 + $0x28] sm:$0xff pattern:$0x73625140]  ;;  %v2036_v1 = vsel %vm1770_vm1, %v1457_v27, %v1458_v52  ;;  %v5085_v27 = vsel %vm1768_vm0, %v8037_v0, 0.0  ;;  %v5087_v0 = vsel %vm1768_vm0, %v8039_v61, 0.0 }
 0x266   :  { %12945 = vst [vmem:[#allocation39_spill] sm:$0xff] %v8913_v19  ;;  %v8915_v36 = vld.sshfl [vmem:[#allocation1 + $0x30] sm:$0xff pattern:$0x73625140]  ;;  %v128_v52 = vld [vmem:[#allocation2 + $0x2c0] sm:$0xff]  ;;  %v2037_v32 = vsel %vm1772_vm2, %v2035_v60, %v2036_v1  ;;  %v1463_v47 = vrot.slane %v12951_v33, 4 }
 0x267   :  { %12946 = vst [vmem:[#allocation40_spill] sm:$0xff] %v8915_v36  ;;  %v8918_v42 = vld.sshfl [vmem:[#allocation1 + $0x38] sm:$0xff pattern:$0x73625140]  ;;  %v12954_v60 = vperm.slane %v8445_v43, 6  ;;  %v2627_v53 = vmul.f32 %v2037_v32, %v128_v52  ;;  %v12956_v33 = vld [vmem:[#allocation23_spill] sm:$0xff] }
 0x268   :  { %12947 = vst [vmem:[#allocation41_spill] sm:$0xff] %v8918_v42  ;;  %v2038_v42 = vsel %vm1768_vm0, %v12949_v13, %v1459_v41  ;;  %v5084_v41 = vadd.f32 %v5083_v62, %v5082_v11  ;;  %v129_v13 = vld [vmem:[#allocation2 + $0x2c8] sm:$0xff]  ;;  %v12955_v11 = vperm.slane %v8445_v43, 7 }
 0x269   :  { %3354 = vst [vmem:[#allocation1] ss:$4 sm:$0xff] %v2625_v57  ;;  %v2039_v57 = vsel %vm1770_vm1, %v1460_v38, %v1461_v54  ;;  %v12950_v38 = vperm.slane %v8445_v43, 1  ;;  %v1466_v1 = vrot.slane %v12954_v60, 4 }
 0x26a   :  { %3355 = vst [vmem:[#allocation1 + $0x20] ss:$4 sm:$0xff] %v2626_v24  ;;  %v2040_v5 = vsel %vm1772_vm2, %v2038_v42, %v2039_v57  ;;  %v12953_v24 = vperm.slane %v8445_v43, 5  ;;  %v5086_v62 = vadd.f32 %v5085_v27, %v5084_v41  ;;  %v5089_v42 = vsel %vm1768_vm0, %v12956_v33, 0.0  ;;  %v12957_v57 = vld [vmem:[#allocation14_spill] sm:$0xff]  ;;  %v8977_v33 = vld [vmem:[#allocation5 + $0x1a8] sm:$0xff] }
 0x26b   :  { %v1462_v54 = vrot.slane %v12950_v38, 6  ;;  %v1467_v38 = vrot.slane %v12955_v11, 2  ;;  %v5091_v61 = vsel %vm1768_vm0, %v12957_v57, 0.0  ;;  %v2628_v58 = vmul.f32 %v2040_v5, %v129_v13  ;;  %v12965_v13 = vld [vmem:[#allocation68_spill] sm:$0xff] }
 0x26c   :  { %v1465_v51 = vrot.slane %v12953_v24, 6  ;;  %v5088_v19 = vadd.f32 %v5087_v0, %v5086_v62  ;;  %v5093_v5 = vsel %vm1768_vm0, %v12965_v13, 0.0  ;;  %v12966_v0 = vperm.slane %v8445_v43, 0 }
 0x26d   :  { %v2045_v13 = vsel %vm1770_vm1, %v1466_v1, %v1467_v38  ;;  %v131_v38 = vld [vmem:[#allocation2 + $0x2d8] sm:$0xff] }
 0x26e   :  { %v5090_v32 = vadd.f32 %v5089_v42, %v5088_v19  ;;  %v2041_v62 = vsel %vm1768_vm0, %v12966_v0, %v1462_v54  ;;  %v12967_v42 = vperm.slane %v8445_v43, 4  ;;  %v12973_v54 = vperm.slane %v8515_v45, 5 }
 0x270   :  { %v8959_v36 = vld.sshfl [vmem:[#allocation1] sm:$0xff pattern:$0x73625140]  ;;  %v8961_v40 = vld.sshfl [vmem:[#allocation1 + $0x8] sm:$0xff pattern:$0x73625140] }
 0x271   :  { %12958 = vst [vmem:[#allocation23_spill] sm:$0xff] %v8961_v40  ;;  %v8963_v24 = vld.sshfl [vmem:[#allocation1 + $0x10] sm:$0xff pattern:$0x73625140]  ;;  %v12977_v40 = vld [vmem:[#allocation42_spill] sm:$0xff] }
 0x272   :  { %12959 = vst [vmem:[#allocation14_spill] sm:$0xff] %v8963_v24  ;;  %v8965_v60 = vld.sshfl [vmem:[#allocation1 + $0x18] sm:$0xff pattern:$0x73625140] }
 0x273   :  { %12960 = vst [vmem:[#allocation106_spill] sm:$0xff] %v8965_v60  ;;  %v8967_v27 = vld.sshfl [vmem:[#allocation1 + $0x20] sm:$0xff pattern:$0x73625140]  ;;  %v12976_v24 = vld [vmem:[#allocation24_spill] sm:$0xff] }
 0x274   :  { %12961 = vst [vmem:[#allocation107_spill] sm:$0xff] %v8967_v27  ;;  %v8969_v41 = vld.sshfl [vmem:[#allocation1 + $0x28] sm:$0xff pattern:$0x73625140]  ;;  %v2042_v27 = vsel %vm1770_vm1, %v1463_v47, %v1464_v10  ;;  %v1471_v47 = vrot.slane %v12973_v54, 6 }
 0x275   :  { %12962 = vst [vmem:[#allocation108_spill] sm:$0xff] %v8969_v41  ;;  %v8971_v52 = vld.sshfl [vmem:[#allocation1 + $0x30] sm:$0xff pattern:$0x73625140]  ;;  %v5092_v41 = vadd.f32 %v5091_v61, %v5090_v32  ;;  %v12969_v61 = vperm.slane %v8515_v45, 1  ;;  %v12970_v32 = vld [vmem:[#allocation70_spill] sm:$0xff] }
 0x276   :  { %12963 = vst [vmem:[#allocation109_spill] sm:$0xff] %v8971_v52  ;;  %v8973_v11 = vld.sshfl [vmem:[#allocation1 + $0x38] sm:$0xff pattern:$0x73625140]  ;;  %v5097_v1 = vsel %vm1768_vm0, %v12970_v32, 0.0  ;;  %v5099_v32 = vsel %vm1768_vm0, %v8093_v48, 0.0 }
 0x277   :  { %12964 = vst [vmem:[#allocation110_spill] sm:$0xff] %v8973_v11  ;;  %v12968_v11 = vld [vmem:[#allocation69_spill] sm:$0xff]  ;;  %v5094_v10 = vadd.f32 %v5093_v5, %v5092_v41  ;;  %v1468_v43 = vrot.slane %v12969_v61, 6  ;;  %v12974_v61 = vperm.slane %v8515_v45, 6 }
 0x278   :  { %3364 = vst [vmem:[#allocation1] ss:$4 sm:$0xff] %v2627_v53  ;;  %v2044_v53 = vsel %vm1768_vm0, %v12967_v42, %v1465_v51  ;;  %v5095_v52 = vsel %vm1768_vm0, %v12968_v11, 0.0  ;;  %v2043_v51 = vsel %vm1772_vm2, %v2041_v62, %v2042_v27  ;;  %v12971_v11 = vperm.slane %v8515_v45, 2 }
 0x279   :  { %3365 = vst [vmem:[#allocation1 + $0x20] ss:$4 sm:$0xff] %v2628_v58  ;;  %v130_v58 = vld [vmem:[#allocation2 + $0x2d0] sm:$0xff]  ;;  %v12972_v42 = vperm.slane %v8515_v45, 3  ;;  %v2046_v41 = vsel %vm1772_vm2, %v2044_v53, %v2045_v13  ;;  %v5096_v5 = vadd.f32 %v5095_v52, %v5094_v10  ;;  %v1472_v57 = vrot.slane %v12974_v61, 4 }
 0x27a   :  { %v1469_v0 = vrot.slane %v12971_v11, 4  ;;  %v12975_v27 = vperm.slane %v8515_v45, 7  ;;  %v2629_v19 = vmul.f32 %v2043_v51, %v130_v58  ;;  %v5103_v52 = vsel %vm1768_vm0, %v12977_v40, 0.0 }
 0x27b   :  { %v1470_v60 = vrot.slane %v12972_v42, 2  ;;  %v5098_v11 = vadd.f32 %v5097_v1, %v5096_v5  ;;  %v5101_v42 = vsel %vm1768_vm0, %v12976_v24, 0.0  ;;  %v2630_v53 = vmul.f32 %v2046_v41, %v131_v38  ;;  %v9034_v38 = vld [vmem:[#allocation5 + $0x1b0] sm:$0xff] }
 0x27c   :  { %v1473_v62 = vrot.slane %v12975_v27, 2  ;;  %v12986_v5 = vperm.slane %v8515_v45, 0 }
 0x27d   :  { %v5100_v48 = vadd.f32 %v5099_v32, %v5098_v11  ;;  %v2048_v32 = vsel %vm1770_vm1, %v1469_v0, %v1470_v60  ;;  %v12987_v11 = vld [vmem:[#allocation43_spill] sm:$0xff] }
 0x27e   :  { %v12989_v60 = vld [vmem:[#allocation71_spill] sm:$0xff] }
 0x27f   :  { %v9017_v13 = vld.sshfl [vmem:[#allocation1] sm:$0xff pattern:$0x73625140]  ;;  %v9019_v54 = vld.sshfl [vmem:[#allocation1 + $0x8] sm:$0xff pattern:$0x73625140]  ;;  %v5102_v40 = vadd.f32 %v5101_v42, %v5100_v48  ;;  %v2051_v42 = vsel %vm1770_vm1, %v1472_v57, %v1473_v62 }
 0x280   :  { %12978 = vst [vmem:[#allocation68_spill] sm:$0xff] %v9017_v13  ;;  %v9021_v10 = vld.sshfl [vmem:[#allocation1 + $0x10] sm:$0xff pattern:$0x73625140]  ;;  %v5107_v0 = vsel %vm1768_vm0, %v12989_v60, 0.0  ;;  %v12990_v57 = vperm.slane %v8572_v12, 1 }
 0x281   :  { %12979 = vst [vmem:[#allocation69_spill] sm:$0xff] %v9019_v54  ;;  %v9023_v61 = vld.sshfl [vmem:[#allocation1 + $0x18] sm:$0xff pattern:$0x73625140]  ;;  %v5104_v48 = vadd.f32 %v5103_v52, %v5102_v40  ;;  %v12991_v52 = vperm.slane %v8572_v12, 2 }
 0x282   :  { %12980 = vst [vmem:[#allocation70_spill] sm:$0xff] %v9021_v10  ;;  %v9025_v27 = vld.sshfl [vmem:[#allocation1 + $0x20] sm:$0xff pattern:$0x73625140]  ;;  %v1474_v62 = vrot.slane %v12990_v57, 6 }
 0x283   :  { %12981 = vst [vmem:[#allocation24_spill] sm:$0xff] %v9023_v61  ;;  %v9027_v58 = vld.sshfl [vmem:[#allocation1 + $0x28] sm:$0xff pattern:$0x73625140]  ;;  %v2047_v61 = vsel %vm1768_vm0, %v12986_v5, %v1468_v43  ;;  %v1475_v40 = vrot.slane %v12991_v52, 4  ;;  %v12992_v43 = vld [vmem:[#allocation72_spill] sm:$0xff] }
 0x284   :  { %12982 = vst [vmem:[#allocation42_spill] sm:$0xff] %v9025_v27  ;;  %v9029_v51 = vld.sshfl [vmem:[#allocation1 + $0x30] sm:$0xff pattern:$0x73625140]  ;;  %v5109_v60 = vsel %vm1768_vm0, %v12992_v43, 0.0  ;;  %v12997_v52 = vld [vmem:[#allocation73_spill] sm:$0xff] }
 0x285   :  { %12983 = vst [vmem:[#allocation111_spill] sm:$0xff] %v9027_v58  ;;  %v9032_v1 = vld.sshfl [vmem:[#allocation1 + $0x38] sm:$0xff pattern:$0x73625140]  ;;  %v12993_v58 = vperm.slane %v8572_v12, 3 }
 0x286   :  { %12984 = vst [vmem:[#allocation112_spill] sm:$0xff] %v9029_v51  ;;  %v5105_v51 = vsel %vm1768_vm0, %v12987_v11, 0.0  ;;  %v12994_v11 = vperm.slane %v8572_v12, 5 }
 0x287   :  { %12985 = vst [vmem:[#allocation113_spill] sm:$0xff] %v9032_v1  ;;  %v12988_v1 = vperm.slane %v8515_v45, 4  ;;  %v2049_v45 = vsel %vm1772_vm2, %v2047_v61, %v2048_v32  ;;  %v1476_v5 = vrot.slane %v12993_v58, 2  ;;  %v12995_v61 = vperm.slane %v8572_v12, 6 }
 0x288   :  { %3374 = vst [vmem:[#allocation1] ss:$4 sm:$0xff] %v2629_v19  ;;  %v1477_v41 = vrot.slane %v12994_v11, 6 }
 0x289   :  { %3375 = vst [vmem:[#allocation1 + $0x20] ss:$4 sm:$0xff] %v2630_v53  ;;  %v2050_v19 = vsel %vm1768_vm0, %v12988_v1, %v1471_v47  ;;  %v132_v53 = vld [vmem:[#allocation2 + $0x2e0] sm:$0xff]  ;;  %v5106_v47 = vadd.f32 %v5105_v51, %v5104_v48  ;;  %v133_v1 = vld [vmem:[#allocation2 + $0x2e8] sm:$0xff]  ;;  %v1478_v51 = vrot.slane %v12995_v61, 4  ;;  %v12996_v48 = vperm.slane %v8572_v12, 7 }
 0x28a   :  { %v2052_v24 = vsel %vm1772_vm2, %v2050_v19, %v2051_v42  ;;  %v2631_v27 = vmul.f32 %v2049_v45, %v132_v53  ;;  %v5111_v19 = vsel %vm1768_vm0, %v12997_v52, 0.0  ;;  %v12998_v42 = vld [vmem:[#allocation74_spill] sm:$0xff]  ;;  %v13004_v52 = vperm.slane %v8572_v12, 0 }
 0x28b   :  { %v5108_v32 = vadd.f32 %v5107_v0, %v5106_v47  ;;  %v1479_v57 = vrot.slane %v12996_v48, 2  ;;  %v5113_v43 = vsel %vm1768_vm0, %v12998_v42, 0.0  ;;  %v2632_v10 = vmul.f32 %v2052_v24, %v133_v1 }
 0x28c   :  { %v5115_v24 = vsel %vm1768_vm0, %v8151_v49, 0.0  ;;  %v5117_v49 = vsel %vm1768_vm0, %v8153_v34, 0.0  ;;  %v13007_v34 = vperm.slane %v8665_v25, 2  ;;  %v13009_v1 = vperm.slane %v8665_v25, 5 }
 0x28d   :  { %v5110_v13 = vadd.f32 %v5109_v60, %v5108_v32  ;;  %v2053_v60 = vsel %vm1768_vm0, %v13004_v52, %v1474_v62  ;;  %v2054_v32 = vsel %vm1770_vm1, %v1475_v40, %v1476_v5  ;;  %v13008_v52 = vperm.slane %v8665_v25, 3 }
 0x28e   :  { %v1483_v40 = vrot.slane %v13009_v1, 6 }
 0x28f   :  { %v9075_v54 = vld.sshfl [vmem:[#allocation1] sm:$0xff pattern:$0x73625140]  ;;  %v9077_v58 = vld.sshfl [vmem:[#allocation1 + $0x8] sm:$0xff pattern:$0x73625140]  ;;  %v5112_v45 = vadd.f32 %v5111_v19, %v5110_v13 }
 0x290   :  { %v9079_v11 = vld.sshfl [vmem:[#allocation1 + $0x10] sm:$0xff pattern:$0x73625140]  ;;  %v9081_v61 = vld.sshfl [vmem:[#allocation1 + $0x18] sm:$0xff pattern:$0x73625140] }
 0x291   :  { %12999 = vst [vmem:[#allocation43_spill] sm:$0xff] %v9081_v61  ;;  %v9083_v0 = vld.sshfl [vmem:[#allocation1 + $0x20] sm:$0xff pattern:$0x73625140]  ;;  %v5114_v42 = vadd.f32 %v5113_v43, %v5112_v45  ;;  %v13005_v13 = vperm.slane %v8572_v12, 4  ;;  %v13006_v43 = vperm.slane %v8665_v25, 1 }
 0x292   :  { %13000 = vst [vmem:[#allocation71_spill] sm:$0xff] %v9083_v0  ;;  %v9085_v47 = vld.sshfl [vmem:[#allocation1 + $0x28] sm:$0xff pattern:$0x73625140]  ;;  %v1481_v45 = vrot.slane %v13007_v34, 4 }
 0x293   :  { %13001 = vst [vmem:[#allocation72_spill] sm:$0xff] %v9085_v47  ;;  %v9087_v53 = vld.sshfl [vmem:[#allocation1 + $0x30] sm:$0xff pattern:$0x73625140]  ;;  %v2056_v19 = vsel %vm1768_vm0, %v13005_v13, %v1477_v41  ;;  %v5116_v5 = vadd.f32 %v5115_v24, %v5114_v42  ;;  %v1480_v12 = vrot.slane %v13006_v43, 6  ;;  %v2055_v41 = vsel %vm1772_vm2, %v2053_v60, %v2054_v32  ;;  %v9127_v47 = vld [vmem:[#allocation5 + $0x1b8] sm:$0xff] }
 0x294   :  { %13002 = vst [vmem:[#allocation73_spill] sm:$0xff] %v9087_v53  ;;  %v9089_v48 = vld.sshfl [vmem:[#allocation1 + $0x38] sm:$0xff pattern:$0x73625140]  ;;  %v1482_v13 = vrot.slane %v13008_v52, 2  ;;  %v13010_v43 = vperm.slane %v8665_v25, 6 }
 0x295   :  { %13003 = vst [vmem:[#allocation74_spill] sm:$0xff] %v9089_v48  ;;  %v5118_v42 = vadd.f32 %v5117_v49, %v5116_v5  ;;  %v13011_v60 = vperm.slane %v8665_v25, 7  ;;  %v13013_v52 = vld [vmem:[#allocation26_spill] sm:$0xff] }
 0x296   :  { %3384 = vst [vmem:[#allocation1] ss:$4 sm:$0xff] %v2631_v27  ;;  %v2057_v27 = vsel %vm1770_vm1, %v1478_v51, %v1479_v57  ;;  %v5119_v51 = vsel %vm1768_vm0, %v8155_v56, 0.0  ;;  %v135_v57 = vld [vmem:[#allocation2 + $0x2f8] sm:$0xff]  ;;  %v1484_v62 = vrot.slane %v13010_v43, 4  ;;  %v13012_v56 = vld [vmem:[#allocation15_spill] sm:$0xff] }
 0x297   :  { %3385 = vst [vmem:[#allocation1 + $0x20] ss:$4 sm:$0xff] %v2632_v10  ;;  %v134_v10 = vld [vmem:[#allocation2 + $0x2f0] sm:$0xff]  ;;  %v2058_v24 = vsel %vm1772_vm2, %v2056_v19, %v2057_v27  ;;  %v1485_v32 = vrot.slane %v13011_v60, 2  ;;  %v5121_v48 = vsel %vm1768_vm0, %v13012_v56, 0.0  ;;  %v5120_v53 = vadd.f32 %v5119_v51, %v5118_v42 }
 0x298   :  { %v2633_v34 = vmul.f32 %v2055_v41, %v134_v10  ;;  %v5123_v19 = vsel %vm1768_vm0, %v13013_v52, 0.0  ;;  %v13014_v27 = vld [vmem:[#allocation44_spill] sm:$0xff]  ;;  %v2634_v1 = vmul.f32 %v2058_v24, %v135_v57  ;;  %v13019_v52 = vperm.slane %v8665_v25, 0 }
 0x299   :  { %v5125_v49 = vsel %vm1768_vm0, %v13014_v27, 0.0  ;;  %v5122_v61 = vadd.f32 %v5121_v48, %v5120_v53  ;;  %v13020_v53 = vld [vmem:[#allocation45_spill] sm:$0xff]  ;;  %v13021_v51 = vperm.slane %v8665_v25, 4 }
 0x29a   :  { %v2059_v27 = vsel %vm1768_vm0, %v13019_v52, %v1480_v12  ;;  %v5127_v48 = vsel %vm1768_vm0, %v13020_v53, 0.0  ;;  %v13025_v12 = vperm.slane %v8727_v50, 3  ;;  %v13026_v53 = vperm.slane %v8727_v50, 5 }
 0x29b   :  { %v5124_v57 = vadd.f32 %v5123_v19, %v5122_v61  ;;  %v2063_v61 = vsel %vm1770_vm1, %v1484_v62, %v1485_v32  ;;  %v13023_v62 = vperm.slane %v8727_v50, 1 }
 0x29c   :  { %v1488_v52 = vrot.slane %v13025_v12, 2  ;;  %v1489_v19 = vrot.slane %v13026_v53, 6 }
 0x29d   :  { %v9133_v5 = vld.sshfl [vmem:[#allocation1] sm:$0xff pattern:$0x73625140]  ;;  %v9135_v43 = vld.sshfl [vmem:[#allocation1 + $0x8] sm:$0xff pattern:$0x73625140] }
 0x29e   :  { %v9137_v0 = vld.sshfl [vmem:[#allocation1 + $0x10] sm:$0xff pattern:$0x73625140]  ;;  %v9139_v60 = vld.sshfl [vmem:[#allocation1 + $0x18] sm:$0xff pattern:$0x73625140] }
 0x29f   :  { %13015 = vst [vmem:[#allocation15_spill] sm:$0xff] %v9139_v60  ;;  %v9141_v56 = vld.sshfl [vmem:[#allocation1 + $0x20] sm:$0xff pattern:$0x73625140]  ;;  %v2060_v60 = vsel %vm1770_vm1, %v1481_v45, %v1482_v13  ;;  %v13022_v45 = vld [vmem:[#allocation75_spill] sm:$0xff]  ;;  %v1486_v32 = vrot.slane %v13023_v62, 6 }
 0x2a0   :  { %v9143_v10 = vld.sshfl [vmem:[#allocation1 + $0x28] sm:$0xff pattern:$0x73625140]  ;;  %v9145_v41 = vld.sshfl [vmem:[#allocation1 + $0x30] sm:$0xff pattern:$0x73625140]  ;;  %v2061_v25 = vsel %vm1772_vm2, %v2059_v27, %v2060_v60 }
 0x2a1   :  { %13016 = vst [vmem:[#allocation26_spill] sm:$0xff] %v9143_v10  ;;  %v9148_v42 = vld.sshfl [vmem:[#allocation1 + $0x38] sm:$0xff pattern:$0x73625140]  ;;  %v5129_v13 = vsel %vm1768_vm0, %v13022_v45, 0.0  ;;  %v5131_v45 = vsel %vm1768_vm0, %v8209_v59, 0.0 }
 0x2a2   :  { %13017 = vst [vmem:[#allocation44_spill] sm:$0xff] %v9145_v41  ;;  %v13027_v60 = vperm.slane %v8727_v50, 6  ;;  %v5135_v59 = vsel %vm1768_vm0, %v8213_v15, 0.0 }
 0x2a3   :  { %13018 = vst [vmem:[#allocation114_spill] sm:$0xff] %v9148_v42  ;;  %v2062_v42 = vsel %vm1768_vm0, %v13021_v51, %v1483_v40  ;;  %v137_v51 = vld [vmem:[#allocation2 + $0x308] sm:$0xff] }
 0x2a4   :  { %3394 = vst [vmem:[#allocation1] ss:$4 sm:$0xff] %v2633_v34  ;;  %v5126_v34 = vadd.f32 %v5125_v49, %v5124_v57  ;;  %v13024_v49 = vperm.slane %v8727_v50, 2  ;;  %v2064_v24 = vsel %vm1772_vm2, %v2062_v42, %v2063_v61  ;;  %v1490_v27 = vrot.slane %v13027_v60, 4  ;;  %v9189_v61 = vld [vmem:[#allocation5 + $0x1c0] sm:$0xff] }
 0x2a5   :  { %3395 = vst [vmem:[#allocation1 + $0x20] ss:$4 sm:$0xff] %v2634_v1  ;;  %v136_v1 = vld [vmem:[#allocation2 + $0x300] sm:$0xff]  ;;  %v5133_v42 = vsel %vm1768_vm0, %v8211_v44, 0.0  ;;  %v2636_v12 = vmul.f32 %v2064_v24, %v137_v51 }
 0x2a6   :  { %v5128_v40 = vadd.f32 %v5127_v48, %v5126_v34  ;;  %v1487_v57 = vrot.slane %v13024_v49, 4  ;;  %v13028_v34 = vperm.slane %v8727_v50, 7  ;;  %v2635_v41 = vmul.f32 %v2061_v25, %v136_v1  ;;  %v13035_v24 = vld [vmem:[#allocation27_spill] sm:$0xff] }
 0x2a7   :  { %v5137_v51 = vsel %vm1768_vm0, %v13035_v24, 0.0  ;;  %v5139_v24 = vsel %vm1768_vm0, %v8217_v7, 0.0  ;;  %v13040_v7 = vperm.slane %v8791_v30, 2 }
 0x2a8   :  { %v5130_v48 = vadd.f32 %v5129_v13, %v5128_v40  ;;  %v1491_v62 = vrot.slane %v13028_v34, 2 }
 0x2aa   :  { %v5132_v13 = vadd.f32 %v5131_v45, %v5130_v48  ;;  %v2066_v48 = vsel %vm1770_vm1, %v1487_v57, %v1488_v52 }
 0x2ab   :  { %v9191_v49 = vld.sshfl [vmem:[#allocation1] sm:$0xff pattern:$0x73625140]  ;;  %v9193_v53 = vld.sshfl [vmem:[#allocation1 + $0x8] sm:$0xff pattern:$0x73625140] }
 0x2ac   :  { %v9195_v10 = vld.sshfl [vmem:[#allocation1 + $0x10] sm:$0xff pattern:$0x73625140]  ;;  %v9197_v40 = vld.sshfl [vmem:[#allocation1 + $0x18] sm:$0xff pattern:$0x73625140]  ;;  %v5134_v25 = vadd.f32 %v5133_v42, %v5132_v13 }
 0x2ad   :  { %13029 = vst [vmem:[#allocation45_spill] sm:$0xff] %v9195_v10  ;;  %v9199_v60 = vld.sshfl [vmem:[#allocation1 + $0x20] sm:$0xff pattern:$0x73625140]  ;;  %v13036_v10 = vperm.slane %v8727_v50, 0  ;;  %v13037_v42 = vperm.slane %v8727_v50, 4 }
 0x2ae   :  { %13030 = vst [vmem:[#allocation75_spill] sm:$0xff] %v9197_v40  ;;  %v9201_v1 = vld.sshfl [vmem:[#allocation1 + $0x28] sm:$0xff pattern:$0x73625140]  ;;  %v13046_v40 = vld [vmem:[#allocation76_spill] sm:$0xff] }
 0x2af   :  { %13031 = vst [vmem:[#allocation115_spill] sm:$0xff] %v9199_v60  ;;  %v9203_v44 = vld.sshfl [vmem:[#allocation1 + $0x30] sm:$0xff pattern:$0x73625140]  ;;  %v2065_v45 = vsel %vm1768_vm0, %v13036_v10, %v1486_v32  ;;  %v5136_v60 = vadd.f32 %v5135_v59, %v5134_v25  ;;  %v2068_v13 = vsel %vm1768_vm0, %v13037_v42, %v1489_v19  ;;  %v138_v32 = vld [vmem:[#allocation2 + $0x310] sm:$0xff]  ;;  %v13038_v59 = vperm.slane %v8791_v30, 1 }
 0x2b0   :  { %13032 = vst [vmem:[#allocation116_spill] sm:$0xff] %v9201_v1  ;;  %v9205_v15 = vld.sshfl [vmem:[#allocation1 + $0x38] sm:$0xff pattern:$0x73625140]  ;;  %v2067_v19 = vsel %vm1772_vm2, %v2065_v45, %v2066_v48  ;;  %v1493_v25 = vrot.slane %v13040_v7, 4  ;;  %v13041_v42 = vperm.slane %v8791_v30, 3 }
 0x2b1   :  { %13033 = vst [vmem:[#allocation117_spill] sm:$0xff] %v9203_v44  ;;  %v5138_v52 = vadd.f32 %v5137_v51, %v5136_v60  ;;  %v1492_v50 = vrot.slane %v13038_v59, 6  ;;  %v13042_v10 = vperm.slane %v8791_v30, 5  ;;  %v13043_v59 = vperm.slane %v8791_v30, 6 }
 0x2b2   :  { %13034 = vst [vmem:[#allocation118_spill] sm:$0xff] %v9205_v15  ;;  %v1494_v15 = vrot.slane %v13041_v42, 2  ;;  %v13044_v45 = vperm.slane %v8791_v30, 7  ;;  %v2637_v44 = vmul.f32 %v2067_v19, %v138_v32  ;;  %v5145_v42 = vsel %vm1768_vm0, %v13046_v40, 0.0 }
 0x2b3   :  { %3404 = vst [vmem:[#allocation1] ss:$4 sm:$0xff] %v2635_v41  ;;  %v2069_v41 = vsel %vm1770_vm1, %v1490_v27, %v1491_v62  ;;  %v139_v62 = vld [vmem:[#allocation2 + $0x318] sm:$0xff]  ;;  %v5140_v51 = vadd.f32 %v5139_v24, %v5138_v52  ;;  %v1495_v57 = vrot.slane %v13042_v10, 6  ;;  %v1496_v34 = vrot.slane %v13043_v59, 4  ;;  %v9253_v59 = vld [vmem:[#allocation5 + $0x1c8] sm:$0xff] }
 0x2b4   :  { %3405 = vst [vmem:[#allocation1 + $0x20] ss:$4 sm:$0xff] %v2636_v12  ;;  %v13039_v12 = vld [vmem:[#allocation17_spill] sm:$0xff]  ;;  %v2070_v60 = vsel %vm1772_vm2, %v2068_v13, %v2069_v41  ;;  %v1497_v48 = vrot.slane %v13044_v45, 2  ;;  %v5147_v13 = vsel %vm1768_vm0, %v8267_v46, 0.0  ;;  %v13055_v46 = vperm.slane %v8791_v30, 4 }
 0x2b5   :  { %v5141_v27 = vsel %vm1768_vm0, %v13039_v12, 0.0  ;;  %v13045_v12 = vld [vmem:[#allocation46_spill] sm:$0xff]  ;;  %v2638_v41 = vmul.f32 %v2070_v60, %v139_v62  ;;  %v13060_v60 = vperm.slane %v8849_v2, 3 }
 0x2b6   :  { %v5143_v1 = vsel %vm1768_vm0, %v13045_v12, 0.0  ;;  %v5142_v7 = vadd.f32 %v5141_v27, %v5140_v51  ;;  %v13054_v51 = vperm.slane %v8791_v30, 0 }
 0x2b8   :  { %v5144_v32 = vadd.f32 %v5143_v1, %v5142_v7  ;;  %v5149_v1 = vsel %vm1768_vm0, %v8269_v14, 0.0  ;;  %v1500_v14 = vrot.slane %v13060_v60, 2 }
 0x2ba   :  { %v9247_v24 = vld.sshfl [vmem:[#allocation1] sm:$0xff pattern:$0x73625140]  ;;  %v9249_v10 = vld.sshfl [vmem:[#allocation1 + $0x8] sm:$0xff pattern:$0x73625140]  ;;  %v5146_v62 = vadd.f32 %v5145_v42, %v5144_v32 }
 0x2bb   :  { %13047 = vst [vmem:[#allocation27_spill] sm:$0xff] %v9249_v10  ;;  %v9251_v52 = vld.sshfl [vmem:[#allocation1 + $0x10] sm:$0xff pattern:$0x73625140] }
 0x2bc   :  { %13048 = vst [vmem:[#allocation17_spill] sm:$0xff] %v9251_v52  ;;  %v9255_v45 = vld.sshfl [vmem:[#allocation1 + $0x18] sm:$0xff pattern:$0x73625140]  ;;  %v2071_v52 = vsel %vm1768_vm0, %v13054_v51, %v1492_v50  ;;  %v5148_v42 = vadd.f32 %v5147_v13, %v5146_v62  ;;  %v13058_v13 = vperm.slane %v8849_v2, 2  ;;  %v13061_v51 = vperm.slane %v8849_v2, 5 }
 0x2bd   :  { %13049 = vst [vmem:[#allocation46_spill] sm:$0xff] %v9255_v45  ;;  %v9257_v12 = vld.sshfl [vmem:[#allocation1 + $0x20] sm:$0xff pattern:$0x73625140]  ;;  %v2072_v45 = vsel %vm1770_vm1, %v1493_v25, %v1494_v15  ;;  %v13056_v15 = vld [vmem:[#allocation47_spill] sm:$0xff]  ;;  %v13059_v50 = vld [vmem:[#allocation48_spill] sm:$0xff] }
 0x2be   :  { %13050 = vst [vmem:[#allocation76_spill] sm:$0xff] %v9257_v12  ;;  %v9259_v19 = vld.sshfl [vmem:[#allocation1 + $0x28] sm:$0xff pattern:$0x73625140]  ;;  %v5151_v25 = vsel %vm1768_vm0, %v13056_v15, 0.0  ;;  %v2073_v30 = vsel %vm1772_vm2, %v2071_v52, %v2072_v45  ;;  %v1499_v62 = vrot.slane %v13058_v13, 4 }
 0x2bf   :  { %13051 = vst [vmem:[#allocation119_spill] sm:$0xff] %v9259_v19  ;;  %v9261_v40 = vld.sshfl [vmem:[#allocation1 + $0x30] sm:$0xff pattern:$0x73625140]  ;;  %v5153_v15 = vsel %vm1768_vm0, %v13059_v50, 0.0  ;;  %v1501_v32 = vrot.slane %v13061_v51, 6 }
 0x2c0   :  { %13052 = vst [vmem:[#allocation120_spill] sm:$0xff] %v9261_v40  ;;  %v9264_v27 = vld.sshfl [vmem:[#allocation1 + $0x38] sm:$0xff pattern:$0x73625140]  ;;  %v13062_v52 = vperm.slane %v8849_v2, 6 }
 0x2c1   :  { %13053 = vst [vmem:[#allocation121_spill] sm:$0xff] %v9264_v27  ;;  %v2074_v27 = vsel %vm1768_vm0, %v13055_v46, %v1495_v57  ;;  %v5150_v57 = vadd.f32 %v5149_v1, %v5148_v42  ;;  %v141_v46 = vld [vmem:[#allocation2 + $0x328] sm:$0xff]  ;;  %v13063_v42 = vperm.slane %v8849_v2, 7  ;;  %v13064_v13 = vld [vmem:[#allocation77_spill] sm:$0xff] }
 0x2c2   :  { %3414 = vst [vmem:[#allocation1] ss:$4 sm:$0xff] %v2637_v44  ;;  %v2075_v44 = vsel %vm1770_vm1, %v1496_v34, %v1497_v48  ;;  %v13057_v34 = vperm.slane %v8849_v2, 1  ;;  %v1502_v45 = vrot.slane %v13062_v52, 4  ;;  %v9311_v52 = vld [vmem:[#allocation5 + $0x1d0] sm:$0xff] }
 0x2c3   :  { %3415 = vst [vmem:[#allocation1 + $0x20] ss:$4 sm:$0xff] %v2638_v41  ;;  %v140_v41 = vld [vmem:[#allocation2 + $0x320] sm:$0xff]  ;;  %v2076_v7 = vsel %vm1772_vm2, %v2074_v27, %v2075_v44  ;;  %v5152_v1 = vadd.f32 %v5151_v25, %v5150_v57  ;;  %v5155_v27 = vsel %vm1768_vm0, %v13064_v13, 0.0 }
 0x2c4   :  { %v1498_v48 = vrot.slane %v13057_v34, 6  ;;  %v1503_v34 = vrot.slane %v13063_v42, 2  ;;  %v2639_v40 = vmul.f32 %v2073_v30, %v140_v41  ;;  %v13065_v44 = vld [vmem:[#allocation78_spill] sm:$0xff]  ;;  %v2640_v19 = vmul.f32 %v2076_v7, %v141_v46  ;;  %v13072_v7 = vld [vmem:[#allocation79_spill] sm:$0xff] }
 0x2c5   :  { %v5157_v50 = vsel %vm1768_vm0, %v13065_v44, 0.0  ;;  %v5154_v10 = vadd.f32 %v5153_v15, %v5152_v1  ;;  %v5159_v46 = vsel %vm1768_vm0, %v13072_v7, 0.0  ;;  %v13073_v15 = vperm.slane %v8849_v2, 0 }
 0x2c6   :  { %v13079_v44 = vperm.slane %v8907_v22, 5 }
 0x2c7   :  { %v5156_v42 = vadd.f32 %v5155_v27, %v5154_v10  ;;  %v2077_v1 = vsel %vm1768_vm0, %v13073_v15, %v1498_v48  ;;  %v13074_v10 = vperm.slane %v8849_v2, 4  ;;  %v13078_v15 = vperm.slane %v8907_v22, 3 }
 0x2c9   :  { %v9305_v12 = vld.sshfl [vmem:[#allocation1] sm:$0xff pattern:$0x73625140]  ;;  %v9307_v60 = vld.sshfl [vmem:[#allocation1 + $0x8] sm:$0xff pattern:$0x73625140]  ;;  %v2080_v27 = vsel %vm1768_vm0, %v13074_v10, %v1501_v32 }
 0x2ca   :  { %v9309_v51 = vld.sshfl [vmem:[#allocation1 + $0x10] sm:$0xff pattern:$0x73625140]  ;;  %v9313_v25 = vld.sshfl [vmem:[#allocation1 + $0x18] sm:$0xff pattern:$0x73625140] }
 0x2cb   :  { %13066 = vst [vmem:[#allocation47_spill] sm:$0xff] %v9309_v51  ;;  %v9315_v57 = vld.sshfl [vmem:[#allocation1 + $0x20] sm:$0xff pattern:$0x73625140]  ;;  %v1506_v10 = vrot.slane %v13078_v15, 2 }
 0x2cc   :  { %13067 = vst [vmem:[#allocation48_spill] sm:$0xff] %v9313_v25  ;;  %v9317_v41 = vld.sshfl [vmem:[#allocation1 + $0x28] sm:$0xff pattern:$0x73625140]  ;;  %v2078_v25 = vsel %vm1770_vm1, %v1499_v62, %v1500_v14  ;;  %v1507_v62 = vrot.slane %v13079_v44, 6  ;;  %v13083_v51 = vld [vmem:[#allocation29_spill] sm:$0xff] }
 0x2cd   :  { %13068 = vst [vmem:[#allocation77_spill] sm:$0xff] %v9315_v57  ;;  %v9319_v30 = vld.sshfl [vmem:[#allocation1 + $0x30] sm:$0xff pattern:$0x73625140]  ;;  %v5158_v57 = vadd.f32 %v5157_v50, %v5156_v42  ;;  %v13076_v50 = vperm.slane %v8907_v22, 1  ;;  %v2079_v32 = vsel %vm1772_vm2, %v2077_v1, %v2078_v25  ;;  %v13077_v42 = vperm.slane %v8907_v22, 2 }
 0x2ce   :  { %13069 = vst [vmem:[#allocation78_spill] sm:$0xff] %v9317_v41  ;;  %v9321_v13 = vld.sshfl [vmem:[#allocation1 + $0x38] sm:$0xff pattern:$0x73625140]  ;;  %v13081_v25 = vperm.slane %v8907_v22, 7  ;;  %v13082_v41 = vld [vmem:[#allocation19_spill] sm:$0xff] }
 0x2cf   :  { %13070 = vst [vmem:[#allocation122_spill] sm:$0xff] %v9319_v30  ;;  %v5160_v14 = vadd.f32 %v5159_v46, %v5158_v57  ;;  %v1504_v2 = vrot.slane %v13076_v50, 6  ;;  %v13080_v50 = vperm.slane %v8907_v22, 6  ;;  %v5167_v15 = vsel %vm1768_vm0, %v13082_v41, 0.0 }
 0x2d0   :  { %13071 = vst [vmem:[#allocation123_spill] sm:$0xff] %v9321_v13  ;;  %v13075_v13 = vld [vmem:[#allocation80_spill] sm:$0xff]  ;;  %v1509_v1 = vrot.slane %v13081_v25, 2 }
 0x2d1   :  { %3424 = vst [vmem:[#allocation1] ss:$4 sm:$0xff] %v2639_v40  ;;  %v2081_v40 = vsel %vm1770_vm1, %v1502_v45, %v1503_v34  ;;  %v5161_v7 = vsel %vm1768_vm0, %v13075_v13, 0.0  ;;  %v5163_v45 = vsel %vm1768_vm0, %v8323_v4, 0.0  ;;  %v143_v34 = vld [vmem:[#allocation2 + $0x338] sm:$0xff]  ;;  %v1505_v13 = vrot.slane %v13077_v42, 4 }
 0x2d2   :  { %3425 = vst [vmem:[#allocation1 + $0x20] ss:$4 sm:$0xff] %v2640_v19  ;;  %v142_v19 = vld [vmem:[#allocation2 + $0x330] sm:$0xff]  ;;  %v2082_v57 = vsel %vm1772_vm2, %v2080_v27, %v2081_v40  ;;  %v5162_v46 = vadd.f32 %v5161_v7, %v5160_v14  ;;  %v1508_v48 = vrot.slane %v13080_v50, 4  ;;  %v5165_v4 = vsel %vm1768_vm0, %v8325_v17, 0.0  ;;  %v9369_v50 = vld [vmem:[#allocation5 + $0x1d8] sm:$0xff] }
 0x2d3   :  { %v2641_v30 = vmul.f32 %v2079_v32, %v142_v19  ;;  %v5169_v27 = vsel %vm1768_vm0, %v13083_v51, 0.0  ;;  %v2642_v40 = vmul.f32 %v2082_v57, %v143_v34  ;;  %v13093_v51 = vperm.slane %v8907_v22, 4 }
 0x2d4   :  { %v5164_v42 = vadd.f32 %v5163_v45, %v5162_v46  ;;  %v13091_v46 = vperm.slane %v8907_v22, 0 }
 0x2d6   :  { %v5166_v19 = vadd.f32 %v5165_v4, %v5164_v42  ;;  %v13092_v4 = vld [vmem:[#allocation49_spill] sm:$0xff] }
 0x2d7   :  { %v5171_v42 = vsel %vm1768_vm0, %v13092_v4, 0.0  ;;  %v13099_v4 = vperm.slane %v8977_v33, 5 }
 0x2d8   :  { %v9363_v7 = vld.sshfl [vmem:[#allocation1] sm:$0xff pattern:$0x73625140]  ;;  %v9365_v44 = vld.sshfl [vmem:[#allocation1 + $0x8] sm:$0xff pattern:$0x73625140]  ;;  %v5168_v34 = vadd.f32 %v5167_v15, %v5166_v19 }
 0x2d9   :  { %13084 = vst [vmem:[#allocation79_spill] sm:$0xff] %v9365_v44  ;;  %v9367_v14 = vld.sshfl [vmem:[#allocation1 + $0x10] sm:$0xff pattern:$0x73625140]  ;;  %v13098_v19 = vperm.slane %v8977_v33, 3 }
 0x2da   :  { %13085 = vst [vmem:[#allocation80_spill] sm:$0xff] %v9367_v14  ;;  %v9371_v25 = vld.sshfl [vmem:[#allocation1 + $0x18] sm:$0xff pattern:$0x73625140]  ;;  %v2083_v14 = vsel %vm1768_vm0, %v13091_v46, %v1504_v2  ;;  %v5170_v15 = vadd.f32 %v5169_v27, %v5168_v34  ;;  %v13096_v27 = vperm.slane %v8977_v33, 2 }
 0x2db   :  { %13086 = vst [vmem:[#allocation19_spill] sm:$0xff] %v9371_v25  ;;  %v9373_v17 = vld.sshfl [vmem:[#allocation1 + $0x20] sm:$0xff pattern:$0x73625140]  ;;  %v2084_v25 = vsel %vm1770_vm1, %v1505_v13, %v1506_v10  ;;  %v1512_v46 = vrot.slane %v13098_v19, 2 }
 0x2dc   :  { %13087 = vst [vmem:[#allocation29_spill] sm:$0xff] %v9373_v17  ;;  %v9375_v32 = vld.sshfl [vmem:[#allocation1 + $0x28] sm:$0xff pattern:$0x73625140]  ;;  %v2085_v22 = vsel %vm1772_vm2, %v2083_v14, %v2084_v25  ;;  %v1511_v34 = vrot.slane %v13096_v27, 4  ;;  %v13097_v2 = vld [vmem:[#allocation81_spill] sm:$0xff] }
 0x2dd   :  { %13088 = vst [vmem:[#allocation124_spill] sm:$0xff] %v9375_v32  ;;  %v9377_v41 = vld.sshfl [vmem:[#allocation1 + $0x30] sm:$0xff pattern:$0x73625140]  ;;  %v13094_v13 = vld [vmem:[#allocation50_spill] sm:$0xff]  ;;  %v13100_v14 = vperm.slane %v8977_v33, 6 }
 0x2de   :  { %13089 = vst [vmem:[#allocation125_spill] sm:$0xff] %v9377_v41  ;;  %v9380_v45 = vld.sshfl [vmem:[#allocation1 + $0x38] sm:$0xff pattern:$0x73625140]  ;;  %v5173_v10 = vsel %vm1768_vm0, %v13094_v13, 0.0  ;;  %v5175_v13 = vsel %vm1768_vm0, %v13097_v2, 0.0 }
 0x2df   :  { %13090 = vst [vmem:[#allocation126_spill] sm:$0xff] %v9380_v45  ;;  %v2086_v45 = vsel %vm1768_vm0, %v13093_v51, %v1507_v62  ;;  %v5172_v62 = vadd.f32 %v5171_v42, %v5170_v15  ;;  %v145_v51 = vld [vmem:[#allocation2 + $0x348] sm:$0xff]  ;;  %v1513_v41 = vrot.slane %v13099_v4, 6  ;;  %v1514_v25 = vrot.slane %v13100_v14, 4  ;;  %v13102_v27 = vld [vmem:[#allocation82_spill] sm:$0xff] }
 0x2e0   :  { %3434 = vst [vmem:[#allocation1] ss:$4 sm:$0xff] %v2641_v30  ;;  %v2087_v30 = vsel %vm1770_vm1, %v1508_v48, %v1509_v1  ;;  %v13095_v48 = vperm.slane %v8977_v33, 1  ;;  %v13101_v15 = vperm.slane %v8977_v33, 7 }
 0x2e1   :  { %3435 = vst [vmem:[#allocation1 + $0x20] ss:$4 sm:$0xff] %v2642_v40  ;;  %v144_v40 = vld [vmem:[#allocation2 + $0x340] sm:$0xff]  ;;  %v2088_v57 = vsel %vm1772_vm2, %v2086_v45, %v2087_v30  ;;  %v5174_v42 = vadd.f32 %v5173_v10, %v5172_v62  ;;  %v5177_v45 = vsel %vm1768_vm0, %v13102_v27, 0.0  ;;  %v5179_v30 = vsel %vm1768_vm0, %v8381_v23, 0.0 }
 0x2e2   :  { %v1510_v1 = vrot.slane %v13095_v48, 6  ;;  %v1515_v48 = vrot.slane %v13101_v15, 2  ;;  %v2643_v32 = vmul.f32 %v2085_v22, %v144_v40  ;;  %v2644_v2 = vmul.f32 %v2088_v57, %v145_v51  ;;  %v9439_v57 = vld [vmem:[#allocation5 + $0x1e0] sm:$0xff] }
 0x2e3   :  { %v5176_v44 = vadd.f32 %v5175_v13, %v5174_v42  ;;  %v5181_v23 = vsel %vm1768_vm0, %v8383_v29, 0.0  ;;  %v13110_v13 = vperm.slane %v8977_v33, 0  ;;  %v2090_v27 = vsel %vm1770_vm1, %v1511_v34, %v1512_v46  ;;  %v146_v34 = vld [vmem:[#allocation2 + $0x350] sm:$0xff] }
 0x2e4   :  { %v2093_v29 = vsel %vm1770_vm1, %v1514_v25, %v1515_v48  ;;  %v147_v48 = vld [vmem:[#allocation2 + $0x358] sm:$0xff] }
 0x2e5   :  { %v5178_v22 = vadd.f32 %v5177_v45, %v5176_v44  ;;  %v2089_v42 = vsel %vm1768_vm0, %v13110_v13, %v1510_v1  ;;  %v13111_v45 = vperm.slane %v8977_v33, 4  ;;  %v13117_v1 = vperm.slane %v9034_v38, 5 }
 0x2e7   :  { %v9421_v17 = vld.sshfl [vmem:[#allocation1] sm:$0xff pattern:$0x73625140]  ;;  %v9423_v19 = vld.sshfl [vmem:[#allocation1 + $0x8] sm:$0xff pattern:$0x73625140] }
 0x2e8   :  { %13103 = vst [vmem:[#allocation49_spill] sm:$0xff] %v9423_v19  ;;  %v9425_v4 = vld.sshfl [vmem:[#allocation1 + $0x10] sm:$0xff pattern:$0x73625140] }
 0x2e9   :  { %13104 = vst [vmem:[#allocation50_spill] sm:$0xff] %v9425_v4  ;;  %v9427_v14 = vld.sshfl [vmem:[#allocation1 + $0x18] sm:$0xff pattern:$0x73625140]  ;;  %v13121_v4 = vld [vmem:[#allocation83_spill] sm:$0xff] }
 0x2ea   :  { %13105 = vst [vmem:[#allocation81_spill] sm:$0xff] %v9427_v14  ;;  %v9429_v10 = vld.sshfl [vmem:[#allocation1 + $0x20] sm:$0xff pattern:$0x73625140]  ;;  %v13122_v19 = vld [vmem:[#allocation84_spill] sm:$0xff] }
 0x2eb   :  { %13106 = vst [vmem:[#allocation82_spill] sm:$0xff] %v9429_v10  ;;  %v9431_v62 = vld.sshfl [vmem:[#allocation1 + $0x28] sm:$0xff pattern:$0x73625140] }
 0x2ec   :  { %13107 = vst [vmem:[#allocation127_spill] sm:$0xff] %v9431_v62  ;;  %v9433_v40 = vld.sshfl [vmem:[#allocation1 + $0x30] sm:$0xff pattern:$0x73625140]  ;;  %v5180_v62 = vadd.f32 %v5179_v30, %v5178_v22  ;;  %v13114_v22 = vld [vmem:[#allocation30_spill] sm:$0xff]  ;;  %v1519_v30 = vrot.slane %v13117_v1, 6 }
 0x2ed   :  { %13108 = vst [vmem:[#allocation128_spill] sm:$0xff] %v9433_v40  ;;  %v9435_v15 = vld.sshfl [vmem:[#allocation1 + $0x38] sm:$0xff pattern:$0x73625140]  ;;  %v5185_v25 = vsel %vm1768_vm0, %v13114_v22, 0.0  ;;  %v13120_v22 = vld [vmem:[#allocation51_spill] sm:$0xff] }
 0x2ee   :  { %13109 = vst [vmem:[#allocation129_spill] sm:$0xff] %v9435_v15  ;;  %v13112_v15 = vld [vmem:[#allocation22_spill] sm:$0xff]  ;;  %v5182_v46 = vadd.f32 %v5181_v23, %v5180_v62  ;;  %v5187_v44 = vsel %vm1768_vm0, %v13120_v22, 0.0 }
 0x2ef   :  { %3444 = vst [vmem:[#allocation1] ss:$4 sm:$0xff] %v2643_v32  ;;  %v2092_v32 = vsel %vm1768_vm0, %v13111_v45, %v1513_v41  ;;  %v5183_v40 = vsel %vm1768_vm0, %v13112_v15, 0.0  ;;  %v2091_v41 = vsel %vm1772_vm2, %v2089_v42, %v2090_v27  ;;  %v13115_v15 = vperm.slane %v9034_v38, 2 }
 0x2f0   :  { %3445 = vst [vmem:[#allocation1 + $0x20] ss:$4 sm:$0xff] %v2644_v2  ;;  %v13113_v2 = vperm.slane %v9034_v38, 1  ;;  %v13116_v45 = vperm.slane %v9034_v38, 3  ;;  %v2094_v62 = vsel %vm1772_vm2, %v2092_v32, %v2093_v29  ;;  %v5184_v23 = vadd.f32 %v5183_v40, %v5182_v46 }
 0x2f1   :  { %v1517_v13 = vrot.slane %v13115_v15, 4  ;;  %v13119_v42 = vperm.slane %v9034_v38, 7  ;;  %v2645_v14 = vmul.f32 %v2091_v41, %v146_v34  ;;  %v5191_v40 = vsel %vm1768_vm0, %v13122_v19, 0.0 }
 0x2f2   :  { %v1516_v33 = vrot.slane %v13113_v2, 6  ;;  %v1518_v10 = vrot.slane %v13116_v45, 2  ;;  %v13118_v2 = vperm.slane %v9034_v38, 6  ;;  %v5186_v15 = vadd.f32 %v5185_v25, %v5184_v23 }
 0x2f3   :  { %v1521_v27 = vrot.slane %v13119_v42, 2  ;;  %v5189_v45 = vsel %vm1768_vm0, %v13121_v4, 0.0  ;;  %v2646_v32 = vmul.f32 %v2094_v62, %v147_v48  ;;  %v9496_v48 = vld [vmem:[#allocation5 + $0x1e8] sm:$0xff]  ;;  %v13130_v23 = vperm.slane %v9034_v38, 0 }
 0x2f4   :  { %v1520_v51 = vrot.slane %v13118_v2, 4  ;;  %v5188_v22 = vadd.f32 %v5187_v44, %v5186_v15  ;;  %v2096_v44 = vsel %vm1770_vm1, %v1517_v13, %v1518_v10  ;;  %v13131_v15 = vld [vmem:[#allocation85_spill] sm:$0xff]  ;;  %v5195_v10 = vsel %vm1768_vm0, %v8439_v35, 0.0  ;;  %v148_v13 = vld [vmem:[#allocation2 + $0x360] sm:$0xff]  ;;  %v13135_v4 = vld [vmem:[#allocation52_spill] sm:$0xff] }
 0x2f5   :  { %v5197_v35 = vsel %vm1768_vm0, %v13135_v4, 0.0 }
 0x2f6   :  { %v9479_v29 = vld.sshfl [vmem:[#allocation1] sm:$0xff pattern:$0x73625140]  ;;  %v9481_v1 = vld.sshfl [vmem:[#allocation1 + $0x8] sm:$0xff pattern:$0x73625140]  ;;  %v5190_v19 = vadd.f32 %v5189_v45, %v5188_v22  ;;  %v2099_v45 = vsel %vm1770_vm1, %v1520_v51, %v1521_v27 }
 0x2f7   :  { %13123 = vst [vmem:[#allocation22_spill] sm:$0xff] %v9481_v1  ;;  %v9483_v46 = vld.sshfl [vmem:[#allocation1 + $0x10] sm:$0xff pattern:$0x73625140]  ;;  %v13133_v51 = vperm.slane %v9127_v47, 1 }
 0x2f8   :  { %13124 = vst [vmem:[#allocation30_spill] sm:$0xff] %v9483_v46  ;;  %v9485_v2 = vld.sshfl [vmem:[#allocation1 + $0x18] sm:$0xff pattern:$0x73625140]  ;;  %v5192_v22 = vadd.f32 %v5191_v40, %v5190_v19  ;;  %v13134_v40 = vperm.slane %v9127_v47, 2 }
 0x2f9   :  { %13125 = vst [vmem:[#allocation51_spill] sm:$0xff] %v9485_v2  ;;  %v9487_v42 = vld.sshfl [vmem:[#allocation1 + $0x20] sm:$0xff pattern:$0x73625140]  ;;  %v2095_v2 = vsel %vm1768_vm0, %v13130_v23, %v1516_v33  ;;  %v1522_v27 = vrot.slane %v13133_v51, 6  ;;  %v13136_v33 = vperm.slane %v9127_v47, 3 }
 0x2fa   :  { %13126 = vst [vmem:[#allocation83_spill] sm:$0xff] %v9487_v42  ;;  %v9489_v34 = vld.sshfl [vmem:[#allocation1 + $0x28] sm:$0xff pattern:$0x73625140]  ;;  %v1523_v19 = vrot.slane %v13134_v40, 4  ;;  %v13137_v23 = vperm.slane %v9127_v47, 5 }
 0x2fb   :  { %13127 = vst [vmem:[#allocation84_spill] sm:$0xff] %v9489_v34  ;;  %v9491_v41 = vld.sshfl [vmem:[#allocation1 + $0x30] sm:$0xff pattern:$0x73625140]  ;;  %v13140_v40 = vld [vmem:[#allocation53_spill] sm:$0xff] }
 0x2fc   :  { %13128 = vst [vmem:[#allocation130_spill] sm:$0xff] %v9491_v41  ;;  %v9494_v25 = vld.sshfl [vmem:[#allocation1 + $0x38] sm:$0xff pattern:$0x73625140]  ;;  %v5193_v41 = vsel %vm1768_vm0, %v13131_v15, 0.0  ;;  %v1525_v34 = vrot.slane %v13137_v23, 6 }
 0x2fd   :  { %13129 = vst [vmem:[#allocation131_spill] sm:$0xff] %v9494_v25  ;;  %v13132_v25 = vperm.slane %v9034_v38, 4  ;;  %v2097_v38 = vsel %vm1772_vm2, %v2095_v2, %v2096_v44  ;;  %v13138_v2 = vperm.slane %v9127_v47, 6 }
 0x2fe   :  { %3454 = vst [vmem:[#allocation1] ss:$4 sm:$0xff] %v2645_v14  ;;  %v2647_v62 = vmul.f32 %v2097_v38, %v148_v13 }
 0x2ff   :  { %3455 = vst [vmem:[#allocation1 + $0x20] ss:$4 sm:$0xff] %v2646_v32  ;;  %v2098_v14 = vsel %vm1768_vm0, %v13132_v25, %v1519_v30  ;;  %v5194_v30 = vadd.f32 %v5193_v41, %v5192_v22  ;;  %v149_v25 = vld [vmem:[#allocation2 + $0x368] sm:$0xff]  ;;  %v1524_v32 = vrot.slane %v13136_v33, 2  ;;  %v1526_v41 = vrot.slane %v13138_v2, 4 }
 0x300   :  { %v2100_v15 = vsel %vm1772_vm2, %v2098_v14, %v2099_v45  ;;  %v13139_v22 = vperm.slane %v9127_v47, 7  ;;  %v5199_v14 = vsel %vm1768_vm0, %v13140_v40, 0.0  ;;  %v13141_v45 = vld [vmem:[#allocation31_spill] sm:$0xff] }
 0x301   :  { %v5196_v44 = vadd.f32 %v5195_v10, %v5194_v30  ;;  %v5201_v4 = vsel %vm1768_vm0, %v13141_v45, 0.0  ;;  %v2648_v42 = vmul.f32 %v2100_v15, %v149_v25  ;;  %v13148_v25 = vld [vmem:[#allocation25_spill] sm:$0xff]  ;;  %v13149_v45 = vperm.slane %v9127_v47, 0 }
 0x302   :  { %v1527_v51 = vrot.slane %v13139_v22, 2  ;;  %v5203_v15 = vsel %vm1768_vm0, %v13148_v25, 0.0 }
 0x303   :  { %v5198_v1 = vadd.f32 %v5197_v35, %v5196_v44  ;;  %v2101_v35 = vsel %vm1768_vm0, %v13149_v45, %v1522_v27  ;;  %v2102_v44 = vsel %vm1770_vm1, %v1523_v19, %v1524_v32  ;;  %v13156_v19 = vperm.slane %v9189_v61, 5 }
 0x305   :  { %v9537_v46 = vld.sshfl [vmem:[#allocation1] sm:$0xff pattern:$0x73625140]  ;;  %v9539_v33 = vld.sshfl [vmem:[#allocation1 + $0x8] sm:$0xff pattern:$0x73625140]  ;;  %v5200_v38 = vadd.f32 %v5199_v14, %v5198_v1 }
 0x306   :  { %v9541_v23 = vld.sshfl [vmem:[#allocation1 + $0x10] sm:$0xff pattern:$0x73625140]  ;;  %v9543_v2 = vld.sshfl [vmem:[#allocation1 + $0x18] sm:$0xff pattern:$0x73625140] }
 0x307   :  { %13142 = vst [vmem:[#allocation85_spill] sm:$0xff] %v9541_v23  ;;  %v9545_v10 = vld.sshfl [vmem:[#allocation1 + $0x20] sm:$0xff pattern:$0x73625140]  ;;  %v13150_v1 = vperm.slane %v9127_v47, 4  ;;  %v1531_v27 = vrot.slane %v13156_v19, 6 }
 0x308   :  { %13143 = vst [vmem:[#allocation52_spill] sm:$0xff] %v9543_v2  ;;  %v9547_v30 = vld.sshfl [vmem:[#allocation1 + $0x28] sm:$0xff pattern:$0x73625140]  ;;  %v9589_v2 = vld [vmem:[#allocation5 + $0x1f0] sm:$0xff] }
 0x309   :  { %13144 = vst [vmem:[#allocation53_spill] sm:$0xff] %v9545_v10  ;;  %v9549_v13 = vld.sshfl [vmem:[#allocation1 + $0x30] sm:$0xff pattern:$0x73625140]  ;;  %v5202_v10 = vadd.f32 %v5201_v4, %v5200_v38  ;;  %v2104_v14 = vsel %vm1768_vm0, %v13150_v1, %v1525_v34  ;;  %v13152_v4 = vperm.slane %v9189_v61, 1  ;;  %v2103_v34 = vsel %vm1772_vm2, %v2101_v35, %v2102_v44 }
 0x30a   :  { %13145 = vst [vmem:[#allocation31_spill] sm:$0xff] %v9547_v30  ;;  %v9551_v22 = vld.sshfl [vmem:[#allocation1 + $0x38] sm:$0xff pattern:$0x73625140]  ;;  %v13153_v38 = vld [vmem:[#allocation87_spill] sm:$0xff]  ;;  %v13155_v1 = vperm.slane %v9189_v61, 3 }
 0x30b   :  { %13146 = vst [vmem:[#allocation132_spill] sm:$0xff] %v9549_v13  ;;  %v5204_v32 = vadd.f32 %v5203_v15, %v5202_v10  ;;  %v1528_v47 = vrot.slane %v13152_v4, 6  ;;  %v13157_v4 = vperm.slane %v9189_v61, 6  ;;  %v13158_v35 = vperm.slane %v9189_v61, 7 }
 0x30c   :  { %13147 = vst [vmem:[#allocation133_spill] sm:$0xff] %v9551_v22  ;;  %v13151_v22 = vld [vmem:[#allocation86_spill] sm:$0xff]  ;;  %v1530_v40 = vrot.slane %v13155_v1, 2 }
 0x30d   :  { %3464 = vst [vmem:[#allocation1] ss:$4 sm:$0xff] %v2647_v62  ;;  %v2105_v62 = vsel %vm1770_vm1, %v1526_v41, %v1527_v51  ;;  %v5205_v25 = vsel %vm1768_vm0, %v13151_v22, 0.0  ;;  %v5207_v41 = vsel %vm1768_vm0, %v13153_v38, 0.0  ;;  %v151_v51 = vld [vmem:[#allocation2 + $0x378] sm:$0xff]  ;;  %v13154_v22 = vperm.slane %v9189_v61, 2 }
 0x30e   :  { %3465 = vst [vmem:[#allocation1 + $0x20] ss:$4 sm:$0xff] %v2648_v42  ;;  %v150_v42 = vld [vmem:[#allocation2 + $0x370] sm:$0xff]  ;;  %v2106_v10 = vsel %vm1772_vm2, %v2104_v14, %v2105_v62  ;;  %v5206_v15 = vadd.f32 %v5205_v25, %v5204_v32  ;;  %v1532_v13 = vrot.slane %v13157_v4, 4  ;;  %v1533_v44 = vrot.slane %v13158_v35, 2 }
 0x30f   :  { %v1529_v45 = vrot.slane %v13154_v22, 4  ;;  %v13159_v38 = vld [vmem:[#allocation88_spill] sm:$0xff]  ;;  %v2649_v22 = vmul.f32 %v2103_v34, %v150_v42  ;;  %v5211_v14 = vsel %vm1768_vm0, %v8497_v37, 0.0  ;;  %v5213_v62 = vsel %vm1768_vm0, %v8499_v21, 0.0 }
 0x310   :  { %v5209_v30 = vsel %vm1768_vm0, %v13159_v38, 0.0  ;;  %v5208_v23 = vadd.f32 %v5207_v41, %v5206_v15  ;;  %v2650_v25 = vmul.f32 %v2106_v10, %v151_v51  ;;  %v13167_v10 = vperm.slane %v9189_v61, 0 }
 0x311   :  { %v13169_v37 = vperm.slane %v9189_v61, 4 }
 0x312   :  { %v5210_v38 = vadd.f32 %v5209_v30, %v5208_v23  ;;  %v2107_v15 = vsel %vm1768_vm0, %v13167_v10, %v1528_v47  ;;  %v13168_v23 = vld [vmem:[#allocation54_spill] sm:$0xff]  ;;  %v13173_v47 = vld [vmem:[#allocation56_spill] sm:$0xff] }
 0x313   :  { %v5215_v30 = vsel %vm1768_vm0, %v13168_v23, 0.0  ;;  %v13175_v23 = vperm.slane %v9253_v59, 5 }
 0x314   :  { %v9595_v32 = vld.sshfl [vmem:[#allocation1] sm:$0xff pattern:$0x73625140]  ;;  %v9597_v19 = vld.sshfl [vmem:[#allocation1 + $0x8] sm:$0xff pattern:$0x73625140]  ;;  %v5212_v21 = vadd.f32 %v5211_v14, %v5210_v38 }
 0x315   :  { %13160 = vst [vmem:[#allocation25_spill] sm:$0xff] %v9597_v19  ;;  %v9599_v1 = vld.sshfl [vmem:[#allocation1 + $0x10] sm:$0xff pattern:$0x73625140]  ;;  %v13174_v38 = vperm.slane %v9253_v59, 3 }
 0x316   :  { %13161 = vst [vmem:[#allocation86_spill] sm:$0xff] %v9599_v1  ;;  %v9601_v4 = vld.sshfl [vmem:[#allocation1 + $0x18] sm:$0xff pattern:$0x73625140]  ;;  %v5214_v14 = vadd.f32 %v5213_v62, %v5212_v21  ;;  %v13172_v62 = vperm.slane %v9253_v59, 2 }
 0x317   :  { %13162 = vst [vmem:[#allocation87_spill] sm:$0xff] %v9601_v4  ;;  %v9603_v35 = vld.sshfl [vmem:[#allocation1 + $0x20] sm:$0xff pattern:$0x73625140]  ;;  %v2108_v4 = vsel %vm1770_vm1, %v1529_v45, %v1530_v40  ;;  %v13170_v40 = vld [vmem:[#allocation55_spill] sm:$0xff]  ;;  %v1536_v10 = vrot.slane %v13174_v38, 2 }
 0x318   :  { %13163 = vst [vmem:[#allocation88_spill] sm:$0xff] %v9603_v35  ;;  %v9605_v42 = vld.sshfl [vmem:[#allocation1 + $0x28] sm:$0xff pattern:$0x73625140]  ;;  %v5217_v45 = vsel %vm1768_vm0, %v13170_v40, 0.0  ;;  %v2109_v61 = vsel %vm1772_vm2, %v2107_v15, %v2108_v4  ;;  %v1535_v21 = vrot.slane %v13172_v62, 4 }
 0x319   :  { %13164 = vst [vmem:[#allocation134_spill] sm:$0xff] %v9605_v42  ;;  %v9607_v34 = vld.sshfl [vmem:[#allocation1 + $0x30] sm:$0xff pattern:$0x73625140]  ;;  %v5219_v40 = vsel %vm1768_vm0, %v13173_v47, 0.0  ;;  %v13176_v4 = vperm.slane %v9253_v59, 6 }
 0x31a   :  { %13165 = vst [vmem:[#allocation135_spill] sm:$0xff] %v9607_v34  ;;  %v9610_v41 = vld.sshfl [vmem:[#allocation1 + $0x38] sm:$0xff pattern:$0x73625140]  ;;  %v1537_v34 = vrot.slane %v13175_v23, 6  ;;  %v9651_v35 = vld [vmem:[#allocation5 + $0x1f8] sm:$0xff] }
 0x31b   :  { %13166 = vst [vmem:[#allocation136_spill] sm:$0xff] %v9610_v41  ;;  %v2110_v41 = vsel %vm1768_vm0, %v13169_v37, %v1531_v27  ;;  %v5216_v27 = vadd.f32 %v5215_v30, %v5214_v14  ;;  %v153_v37 = vld [vmem:[#allocation2 + $0x388] sm:$0xff]  ;;  %v1538_v15 = vrot.slane %v13176_v4, 4  ;;  %v13177_v14 = vperm.slane %v9253_v59, 7  ;;  %v13178_v62 = vld [vmem:[#allocation57_spill] sm:$0xff] }
 0x31c   :  { %3474 = vst [vmem:[#allocation1] ss:$4 sm:$0xff] %v2649_v22  ;;  %v2111_v22 = vsel %vm1770_vm1, %v1532_v13, %v1533_v44  ;;  %v13171_v13 = vperm.slane %v9253_v59, 1 }
 0x31d   :  { %3475 = vst [vmem:[#allocation1 + $0x20] ss:$4 sm:$0xff] %v2650_v25  ;;  %v152_v25 = vld [vmem:[#allocation2 + $0x380] sm:$0xff]  ;;  %v2112_v51 = vsel %vm1772_vm2, %v2110_v41, %v2111_v22  ;;  %v5218_v30 = vadd.f32 %v5217_v45, %v5216_v27  ;;  %v5221_v41 = vsel %vm1768_vm0, %v13178_v62, 0.0  ;;  %v13179_v22 = vld [vmem:[#allocation89_spill] sm:$0xff] }
 0x31e   :  { %v1534_v44 = vrot.slane %v13171_v13, 6  ;;  %v1539_v13 = vrot.slane %v13177_v14, 2  ;;  %v2651_v42 = vmul.f32 %v2109_v61, %v152_v25  ;;  %v5223_v47 = vsel %vm1768_vm0, %v13179_v22, 0.0 }
 0x31f   :  { %v2652_v38 = vmul.f32 %v2112_v51, %v153_v37  ;;  %v5220_v45 = vadd.f32 %v5219_v40, %v5218_v30  ;;  %v13185_v51 = vld [vmem:[#allocation90_spill] sm:$0xff]  ;;  %v2114_v30 = vsel %vm1770_vm1, %v1535_v21, %v1536_v10 }
 0x320   :  { %v5225_v37 = vsel %vm1768_vm0, %v13185_v51, 0.0  ;;  %v5227_v51 = vsel %vm1768_vm0, %v8555_v6, 0.0  ;;  %v13189_v6 = vperm.slane %v9311_v52, 2 }
 0x321   :  { %v5222_v14 = vadd.f32 %v5221_v41, %v5220_v45  ;;  %v13187_v41 = vperm.slane %v9253_v59, 4 }
 0x323   :  { %v9653_v1 = vld.sshfl [vmem:[#allocation1] sm:$0xff pattern:$0x73625140]  ;;  %v9655_v23 = vld.sshfl [vmem:[#allocation1 + $0x8] sm:$0xff pattern:$0x73625140]  ;;  %v2116_v45 = vsel %vm1768_vm0, %v13187_v41, %v1537_v34 }
 0x324   :  { %v9657_v19 = vld.sshfl [vmem:[#allocation1 + $0x10] sm:$0xff pattern:$0x73625140]  ;;  %v9659_v27 = vld.sshfl [vmem:[#allocation1 + $0x18] sm:$0xff pattern:$0x73625140] }
 0x325   :  { %13180 = vst [vmem:[#allocation54_spill] sm:$0xff] %v9657_v19  ;;  %v9661_v4 = vld.sshfl [vmem:[#allocation1 + $0x20] sm:$0xff pattern:$0x73625140]  ;;  %v13186_v19 = vperm.slane %v9253_v59, 0 }
 0x326   :  { %13181 = vst [vmem:[#allocation55_spill] sm:$0xff] %v9661_v4  ;;  %v9663_v25 = vld.sshfl [vmem:[#allocation1 + $0x28] sm:$0xff pattern:$0x73625140]  ;;  %v5224_v4 = vadd.f32 %v5223_v47, %v5222_v14  ;;  %v13188_v47 = vperm.slane %v9311_v52, 1  ;;  %v13190_v14 = vperm.slane %v9311_v52, 3 }
 0x327   :  { %13182 = vst [vmem:[#allocation56_spill] sm:$0xff] %v9663_v25  ;;  %v9665_v61 = vld.sshfl [vmem:[#allocation1 + $0x30] sm:$0xff pattern:$0x73625140]  ;;  %v2113_v40 = vsel %vm1768_vm0, %v13186_v19, %v1534_v44  ;;  %v154_v44 = vld [vmem:[#allocation2 + $0x390] sm:$0xff]  ;;  %v13191_v19 = vperm.slane %v9311_v52, 5 }
 0x328   :  { %13183 = vst [vmem:[#allocation57_spill] sm:$0xff] %v9665_v61  ;;  %v9667_v62 = vld.sshfl [vmem:[#allocation1 + $0x38] sm:$0xff pattern:$0x73625140]  ;;  %v5226_v10 = vadd.f32 %v5225_v37, %v5224_v4  ;;  %v1540_v59 = vrot.slane %v13188_v47, 6  ;;  %v2115_v34 = vsel %vm1772_vm2, %v2113_v40, %v2114_v30  ;;  %v1542_v41 = vrot.slane %v13190_v14, 2 }
 0x329   :  { %13184 = vst [vmem:[#allocation89_spill] sm:$0xff] %v9667_v62  ;;  %v1543_v21 = vrot.slane %v13191_v19, 6  ;;  %v13192_v47 = vperm.slane %v9311_v52, 6  ;;  %v13193_v40 = vperm.slane %v9311_v52, 7  ;;  %v2653_v22 = vmul.f32 %v2115_v34, %v154_v44  ;;  %v13194_v25 = vld [vmem:[#allocation16_spill] sm:$0xff] }
 0x32a   :  { %3484 = vst [vmem:[#allocation1] ss:$4 sm:$0xff] %v2651_v42  ;;  %v2117_v42 = vsel %vm1770_vm1, %v1538_v15, %v1539_v13  ;;  %v5229_v15 = vsel %vm1768_vm0, %v8557_v16, 0.0  ;;  %v155_v13 = vld [vmem:[#allocation2 + $0x398] sm:$0xff]  ;;  %v5228_v37 = vadd.f32 %v5227_v51, %v5226_v10  ;;  %v5231_v16 = vsel %vm1768_vm0, %v8559_v31, 0.0  ;;  %v13195_v61 = vld [vmem:[#allocation28_spill] sm:$0xff] }
 0x32b   :  { %3485 = vst [vmem:[#allocation1 + $0x20] ss:$4 sm:$0xff] %v2652_v38  ;;  %v1541_v38 = vrot.slane %v13189_v6, 4  ;;  %v2118_v4 = vsel %vm1772_vm2, %v2116_v45, %v2117_v42  ;;  %v1544_v62 = vrot.slane %v13192_v47, 4  ;;  %v1545_v30 = vrot.slane %v13193_v40, 2  ;;  %v9715_v47 = vld [vmem:[#allocation5 + $0x200] sm:$0xff] }
 0x32c   :  { %v5230_v6 = vadd.f32 %v5229_v15, %v5228_v37  ;;  %v5233_v14 = vsel %vm1768_vm0, %v13194_v25, 0.0  ;;  %v5235_v45 = vsel %vm1768_vm0, %v13195_v61, 0.0  ;;  %v2654_v42 = vmul.f32 %v2118_v4, %v155_v13 }
 0x32d   :  { %v13202_v37 = vperm.slane %v9311_v52, 0  ;;  %v13204_v61 = vperm.slane %v9311_v52, 4  ;;  %v13209_v4 = vperm.slane %v9369_v50, 3 }
 0x32e   :  { %v5232_v44 = vadd.f32 %v5231_v16, %v5230_v6  ;;  %v13203_v16 = vld [vmem:[#allocation33_spill] sm:$0xff] }
 0x32f   :  { %v5237_v6 = vsel %vm1768_vm0, %v13203_v16, 0.0  ;;  %v13210_v16 = vperm.slane %v9369_v50, 5 }
 0x330   :  { %v5234_v13 = vadd.f32 %v5233_v14, %v5232_v44 }
 0x331   :  { %v9709_v51 = vld.sshfl [vmem:[#allocation1] sm:$0xff pattern:$0x73625140]  ;;  %v9711_v19 = vld.sshfl [vmem:[#allocation1 + $0x8] sm:$0xff pattern:$0x73625140] }
 0x332   :  { %v9713_v10 = vld.sshfl [vmem:[#allocation1 + $0x10] sm:$0xff pattern:$0x73625140]  ;;  %v9717_v40 = vld.sshfl [vmem:[#allocation1 + $0x18] sm:$0xff pattern:$0x73625140]  ;;  %v5236_v14 = vadd.f32 %v5235_v45, %v5234_v13 }
 0x333   :  { %13196 = vst [vmem:[#allocation90_spill] sm:$0xff] %v9713_v10  ;;  %v9719_v31 = vld.sshfl [vmem:[#allocation1 + $0x20] sm:$0xff pattern:$0x73625140]  ;;  %v2119_v10 = vsel %vm1768_vm0, %v13202_v37, %v1540_v59  ;;  %v13207_v45 = vperm.slane %v9369_v50, 2  ;;  %v13208_v59 = vld [vmem:[#allocation91_spill] sm:$0xff] }
 0x334   :  { %13197 = vst [vmem:[#allocation16_spill] sm:$0xff] %v9717_v40  ;;  %v9721_v34 = vld.sshfl [vmem:[#allocation1 + $0x28] sm:$0xff pattern:$0x73625140]  ;;  %v2120_v40 = vsel %vm1770_vm1, %v1541_v38, %v1542_v41  ;;  %v1548_v37 = vrot.slane %v13209_v4, 2  ;;  %v1549_v44 = vrot.slane %v13210_v16, 6 }
 0x335   :  { %13198 = vst [vmem:[#allocation28_spill] sm:$0xff] %v9719_v31  ;;  %v9723_v25 = vld.sshfl [vmem:[#allocation1 + $0x30] sm:$0xff pattern:$0x73625140]  ;;  %v13205_v38 = vld [vmem:[#allocation34_spill] sm:$0xff]  ;;  %v2121_v52 = vsel %vm1772_vm2, %v2119_v10, %v2120_v40  ;;  %v1547_v13 = vrot.slane %v13207_v45, 4 }
 0x336   :  { %13199 = vst [vmem:[#allocation137_spill] sm:$0xff] %v9721_v34  ;;  %v9726_v15 = vld.sshfl [vmem:[#allocation1 + $0x38] sm:$0xff pattern:$0x73625140]  ;;  %v5239_v41 = vsel %vm1768_vm0, %v13205_v38, 0.0  ;;  %v5241_v38 = vsel %vm1768_vm0, %v13208_v59, 0.0 }
 0x337   :  { %13200 = vst [vmem:[#allocation138_spill] sm:$0xff] %v9723_v25  ;;  %v13211_v10 = vperm.slane %v9369_v50, 6 }
 0x338   :  { %13201 = vst [vmem:[#allocation139_spill] sm:$0xff] %v9726_v15  ;;  %v2122_v15 = vsel %vm1768_vm0, %v13204_v61, %v1543_v21  ;;  %v5238_v21 = vadd.f32 %v5237_v6, %v5236_v14  ;;  %v157_v61 = vld [vmem:[#allocation2 + $0x3a8] sm:$0xff]  ;;  %v13212_v14 = vperm.slane %v9369_v50, 7 }
 0x339   :  { %3494 = vst [vmem:[#allocation1] ss:$4 sm:$0xff] %v2653_v22  ;;  %v2123_v22 = vsel %vm1770_vm1, %v1544_v62, %v1545_v30  ;;  %v13206_v62 = vperm.slane %v9369_v50, 1  ;;  %v1550_v40 = vrot.slane %v13211_v10, 4  ;;  %v9773_v10 = vld [vmem:[#allocation5 + $0x208] sm:$0xff] }
 0x33a   :  { %3495 = vst [vmem:[#allocation1 + $0x20] ss:$4 sm:$0xff] %v2654_v42  ;;  %v156_v42 = vld [vmem:[#allocation2 + $0x3a0] sm:$0xff]  ;;  %v2124_v25 = vsel %vm1772_vm2, %v2122_v15, %v2123_v22  ;;  %v5240_v6 = vadd.f32 %v5239_v41, %v5238_v21  ;;  %v5243_v15 = vsel %vm1768_vm0, %v8613_v63, 0.0  ;;  %v5245_v22 = vsel %vm1768_vm0, %v8615_v3, 0.0 }
 0x33b   :  { %v1546_v30 = vrot.slane %v13206_v62, 6  ;;  %v1551_v62 = vrot.slane %v13212_v14, 2  ;;  %v2655_v34 = vmul.f32 %v2121_v52, %v156_v42  ;;  %v2656_v59 = vmul.f32 %v2124_v25, %v157_v61  ;;  %v13221_v25 = vld [vmem:[#allocation58_spill] sm:$0xff] }
 0x33c   :  { %v5242_v31 = vadd.f32 %v5241_v38, %v5240_v6  ;;  %v5247_v61 = vsel %vm1768_vm0, %v13221_v25, 0.0  ;;  %v13222_v38 = vperm.slane %v9369_v50, 0 }
 0x33e   :  { %v5244_v52 = vadd.f32 %v5243_v15, %v5242_v31  ;;  %v2125_v6 = vsel %vm1768_vm0, %v13222_v38, %v1546_v30  ;;  %v13223_v31 = vperm.slane %v9369_v50, 4 }
 0x340   :  { %v9767_v45 = vld.sshfl [vmem:[#allocation1] sm:$0xff pattern:$0x73625140]  ;;  %v9769_v4 = vld.sshfl [vmem:[#allocation1 + $0x8] sm:$0xff pattern:$0x73625140]  ;;  %v2128_v15 = vsel %vm1768_vm0, %v13223_v31, %v1549_v44 }
 0x341   :  { %13213 = vst [vmem:[#allocation33_spill] sm:$0xff] %v9767_v45  ;;  %v9771_v16 = vld.sshfl [vmem:[#allocation1 + $0x10] sm:$0xff pattern:$0x73625140]  ;;  %v13228_v31 = vperm.slane %v9439_v57, 3 }
 0x342   :  { %13214 = vst [vmem:[#allocation34_spill] sm:$0xff] %v9769_v4  ;;  %v9775_v41 = vld.sshfl [vmem:[#allocation1 + $0x18] sm:$0xff pattern:$0x73625140]  ;;  %v13233_v4 = vld [vmem:[#allocation94_spill] sm:$0xff]  ;;  %v13234_v45 = vld [vmem:[#allocation95_spill] sm:$0xff] }
 0x343   :  { %13215 = vst [vmem:[#allocation91_spill] sm:$0xff] %v9771_v16  ;;  %v9777_v21 = vld.sshfl [vmem:[#allocation1 + $0x20] sm:$0xff pattern:$0x73625140]  ;;  %v1554_v14 = vrot.slane %v13228_v31, 2  ;;  %v5255_v31 = vsel %vm1768_vm0, %v13233_v4, 0.0 }
 0x344   :  { %13216 = vst [vmem:[#allocation140_spill] sm:$0xff] %v9775_v41  ;;  %v9779_v42 = vld.sshfl [vmem:[#allocation1 + $0x28] sm:$0xff pattern:$0x73625140]  ;;  %v2126_v41 = vsel %vm1770_vm1, %v1547_v13, %v1548_v37  ;;  %v158_v13 = vld [vmem:[#allocation2 + $0x3b0] sm:$0xff] }
 0x345   :  { %13217 = vst [vmem:[#allocation141_spill] sm:$0xff] %v9777_v21  ;;  %v9781_v63 = vld.sshfl [vmem:[#allocation1 + $0x30] sm:$0xff pattern:$0x73625140]  ;;  %v5246_v21 = vadd.f32 %v5245_v22, %v5244_v52  ;;  %v2127_v44 = vsel %vm1772_vm2, %v2125_v6, %v2126_v41  ;;  %v13229_v22 = vperm.slane %v9439_v57, 5  ;;  %v13231_v41 = vperm.slane %v9439_v57, 7 }
 0x346   :  { %13218 = vst [vmem:[#allocation142_spill] sm:$0xff] %v9779_v42  ;;  %v9783_v3 = vld.sshfl [vmem:[#allocation1 + $0x38] sm:$0xff pattern:$0x73625140]  ;;  %v2657_v16 = vmul.f32 %v2127_v44, %v158_v13 }
 0x347   :  { %13219 = vst [vmem:[#allocation143_spill] sm:$0xff] %v9781_v63  ;;  %v5248_v37 = vadd.f32 %v5247_v61, %v5246_v21  ;;  %v13226_v52 = vld [vmem:[#allocation92_spill] sm:$0xff]  ;;  %v1555_v30 = vrot.slane %v13229_v22, 6  ;;  %v1557_v6 = vrot.slane %v13231_v41, 2 }
 0x348   :  { %13220 = vst [vmem:[#allocation144_spill] sm:$0xff] %v9783_v3  ;;  %v13224_v3 = vld [vmem:[#allocation32_spill] sm:$0xff] }
 0x349   :  { %3504 = vst [vmem:[#allocation1] ss:$4 sm:$0xff] %v2655_v34  ;;  %v2129_v34 = vsel %vm1770_vm1, %v1550_v40, %v1551_v62  ;;  %v5249_v25 = vsel %vm1768_vm0, %v13224_v3, 0.0  ;;  %v5251_v40 = vsel %vm1768_vm0, %v13226_v52, 0.0  ;;  %v159_v62 = vld [vmem:[#allocation2 + $0x3b8] sm:$0xff]  ;;  %v13227_v3 = vperm.slane %v9439_v57, 2 }
 0x34a   :  { %3505 = vst [vmem:[#allocation1 + $0x20] ss:$4 sm:$0xff] %v2656_v59  ;;  %v13225_v59 = vperm.slane %v9439_v57, 1  ;;  %v2130_v21 = vsel %vm1772_vm2, %v2128_v15, %v2129_v34  ;;  %v5250_v61 = vadd.f32 %v5249_v25, %v5248_v37  ;;  %v13232_v52 = vld [vmem:[#allocation93_spill] sm:$0xff]  ;;  %v5257_v15 = vsel %vm1768_vm0, %v13234_v45, 0.0 }
 0x34b   :  { %v1553_v38 = vrot.slane %v13227_v3, 4  ;;  %v5253_v42 = vsel %vm1768_vm0, %v13232_v52, 0.0  ;;  %v2658_v34 = vmul.f32 %v2130_v21, %v159_v62  ;;  %v13243_v45 = vperm.slane %v9439_v57, 4 }
 0x34c   :  { %v1552_v50 = vrot.slane %v13225_v59, 6  ;;  %v13230_v59 = vperm.slane %v9439_v57, 6  ;;  %v5252_v3 = vadd.f32 %v5251_v40, %v5250_v61  ;;  %v13242_v61 = vperm.slane %v9439_v57, 0 }
 0x34e   :  { %v1556_v63 = vrot.slane %v13230_v59, 4  ;;  %v9831_v59 = vld [vmem:[#allocation5 + $0x210] sm:$0xff]  ;;  %v5254_v13 = vadd.f32 %v5253_v42, %v5252_v3  ;;  %v5259_v42 = vsel %vm1768_vm0, %v8671_v55, 0.0 }
 0x350   :  { %v9825_v25 = vld.sshfl [vmem:[#allocation1] sm:$0xff pattern:$0x73625140]  ;;  %v9827_v37 = vld.sshfl [vmem:[#allocation1 + $0x8] sm:$0xff pattern:$0x73625140]  ;;  %v5256_v62 = vadd.f32 %v5255_v31, %v5254_v13 }
 0x351   :  { %13235 = vst [vmem:[#allocation58_spill] sm:$0xff] %v9827_v37  ;;  %v9829_v22 = vld.sshfl [vmem:[#allocation1 + $0x10] sm:$0xff pattern:$0x73625140]  ;;  %v13248_v13 = vperm.slane %v9496_v48, 3 }
 0x352   :  { %13236 = vst [vmem:[#allocation32_spill] sm:$0xff] %v9829_v22  ;;  %v9833_v41 = vld.sshfl [vmem:[#allocation1 + $0x18] sm:$0xff pattern:$0x73625140]  ;;  %v2131_v22 = vsel %vm1768_vm0, %v13242_v61, %v1552_v50  ;;  %v5258_v31 = vadd.f32 %v5257_v15, %v5256_v62  ;;  %v13246_v15 = vperm.slane %v9496_v48, 2  ;;  %v13247_v50 = vld [vmem:[#allocation18_spill] sm:$0xff] }
 0x353   :  { %13237 = vst [vmem:[#allocation92_spill] sm:$0xff] %v9833_v41  ;;  %v9835_v52 = vld.sshfl [vmem:[#allocation1 + $0x20] sm:$0xff pattern:$0x73625140]  ;;  %v2132_v41 = vsel %vm1770_vm1, %v1553_v38, %v1554_v14  ;;  %v13244_v14 = vld [vmem:[#allocation11_spill] sm:$0xff]  ;;  %v1560_v55 = vrot.slane %v13248_v13, 2 }
 0x354   :  { %13238 = vst [vmem:[#allocation93_spill] sm:$0xff] %v9835_v52  ;;  %v9837_v44 = vld.sshfl [vmem:[#allocation1 + $0x28] sm:$0xff pattern:$0x73625140]  ;;  %v5261_v38 = vsel %vm1768_vm0, %v13244_v14, 0.0  ;;  %v2133_v57 = vsel %vm1772_vm2, %v2131_v22, %v2132_v41  ;;  %v1559_v62 = vrot.slane %v13246_v15, 4 }
 0x355   :  { %13239 = vst [vmem:[#allocation94_spill] sm:$0xff] %v9837_v44  ;;  %v9839_v4 = vld.sshfl [vmem:[#allocation1 + $0x30] sm:$0xff pattern:$0x73625140]  ;;  %v5263_v14 = vsel %vm1768_vm0, %v13247_v50, 0.0  ;;  %v13249_v61 = vperm.slane %v9496_v48, 5 }
 0x356   :  { %13240 = vst [vmem:[#allocation95_spill] sm:$0xff] %v9839_v4  ;;  %v9842_v40 = vld.sshfl [vmem:[#allocation1 + $0x38] sm:$0xff pattern:$0x73625140]  ;;  %v13250_v22 = vperm.slane %v9496_v48, 6  ;;  %v13252_v15 = vld [vmem:[#allocation59_spill] sm:$0xff] }
 0x357   :  { %13241 = vst [vmem:[#allocation145_spill] sm:$0xff] %v9842_v40  ;;  %v2134_v40 = vsel %vm1768_vm0, %v13243_v45, %v1555_v30  ;;  %v5260_v30 = vadd.f32 %v5259_v42, %v5258_v31  ;;  %v161_v45 = vld [vmem:[#allocation2 + $0x3c8] sm:$0xff]  ;;  %v1561_v3 = vrot.slane %v13249_v61, 6  ;;  %v13251_v31 = vperm.slane %v9496_v48, 7 }
 0x358   :  { %3514 = vst [vmem:[#allocation1] ss:$4 sm:$0xff] %v2657_v16  ;;  %v2135_v16 = vsel %vm1770_vm1, %v1556_v63, %v1557_v6  ;;  %v13245_v63 = vperm.slane %v9496_v48, 1  ;;  %v1562_v41 = vrot.slane %v13250_v22, 4 }
 0x359   :  { %3515 = vst [vmem:[#allocation1 + $0x20] ss:$4 sm:$0xff] %v2658_v34  ;;  %v160_v34 = vld [vmem:[#allocation2 + $0x3c0] sm:$0xff]  ;;  %v2136_v21 = vsel %vm1772_vm2, %v2134_v40, %v2135_v16  ;;  %v5262_v42 = vadd.f32 %v5261_v38, %v5260_v30  ;;  %v5265_v40 = vsel %vm1768_vm0, %v13252_v15, 0.0  ;;  %v13253_v16 = vld [vmem:[#allocation60_spill] sm:$0xff]  ;;  %v9901_v15 = vld [vmem:[#allocation5 + $0x218] sm:$0xff] }
 0x35a   :  { %v1558_v6 = vrot.slane %v13245_v63, 6  ;;  %v1563_v63 = vrot.slane %v13251_v31, 2  ;;  %v2659_v4 = vmul.f32 %v2133_v57, %v160_v34  ;;  %v5267_v50 = vsel %vm1768_vm0, %v13253_v16, 0.0 }
 0x35b   :  { %v2660_v44 = vmul.f32 %v2136_v21, %v161_v45  ;;  %v5264_v37 = vadd.f32 %v5263_v14, %v5262_v42  ;;  %v13261_v21 = vld [vmem:[#allocation96_spill] sm:$0xff]  ;;  %v13262_v14 = vperm.slane %v9496_v48, 0 }
 0x35c   :  { %v5269_v45 = vsel %vm1768_vm0, %v13261_v21, 0.0  ;;  %v2141_v21 = vsel %vm1770_vm1, %v1562_v41, %v1563_v63  ;;  %v163_v63 = vld [vmem:[#allocation2 + $0x3d8] sm:$0xff] }
 0x35d   :  { %v5266_v57 = vadd.f32 %v5265_v40, %v5264_v37  ;;  %v2137_v42 = vsel %vm1768_vm0, %v13262_v14, %v1558_v6  ;;  %v13263_v40 = vperm.slane %v9496_v48, 4  ;;  %v13269_v6 = vperm.slane %v9589_v2, 5 }
 0x35f   :  { %v9883_v52 = vld.sshfl [vmem:[#allocation1] sm:$0xff pattern:$0x73625140]  ;;  %v9885_v13 = vld.sshfl [vmem:[#allocation1 + $0x8] sm:$0xff pattern:$0x73625140] }
 0x360   :  { %13254 = vst [vmem:[#allocation11_spill] sm:$0xff] %v9885_v13  ;;  %v9887_v61 = vld.sshfl [vmem:[#allocation1 + $0x10] sm:$0xff pattern:$0x73625140] }
 0x361   :  { %13255 = vst [vmem:[#allocation18_spill] sm:$0xff] %v9887_v61  ;;  %v9889_v22 = vld.sshfl [vmem:[#allocation1 + $0x18] sm:$0xff pattern:$0x73625140]  ;;  %v13273_v13 = vld [vmem:[#allocation35_spill] sm:$0xff] }
 0x362   :  { %13256 = vst [vmem:[#allocation59_spill] sm:$0xff] %v9889_v22  ;;  %v9891_v38 = vld.sshfl [vmem:[#allocation1 + $0x20] sm:$0xff pattern:$0x73625140]  ;;  %v13272_v61 = vld [vmem:[#allocation36_spill] sm:$0xff] }
 0x363   :  { %13257 = vst [vmem:[#allocation60_spill] sm:$0xff] %v9891_v38  ;;  %v9893_v30 = vld.sshfl [vmem:[#allocation1 + $0x28] sm:$0xff pattern:$0x73625140]  ;;  %v2138_v38 = vsel %vm1770_vm1, %v1559_v62, %v1560_v55  ;;  %v1567_v62 = vrot.slane %v13269_v6, 6 }
 0x364   :  { %13258 = vst [vmem:[#allocation146_spill] sm:$0xff] %v9893_v30  ;;  %v9895_v34 = vld.sshfl [vmem:[#allocation1 + $0x30] sm:$0xff pattern:$0x73625140]  ;;  %v5268_v30 = vadd.f32 %v5267_v50, %v5266_v57  ;;  %v13265_v50 = vperm.slane %v9589_v2, 1  ;;  %v13266_v57 = vld [vmem:[#allocation98_spill] sm:$0xff] }
 0x365   :  { %13259 = vst [vmem:[#allocation147_spill] sm:$0xff] %v9895_v34  ;;  %v9897_v31 = vld.sshfl [vmem:[#allocation1 + $0x38] sm:$0xff pattern:$0x73625140]  ;;  %v5273_v41 = vsel %vm1768_vm0, %v13266_v57, 0.0  ;;  %v5275_v57 = vsel %vm1768_vm0, %v8729_v26, 0.0 }
 0x366   :  { %13260 = vst [vmem:[#allocation148_spill] sm:$0xff] %v9897_v31  ;;  %v13264_v31 = vld [vmem:[#allocation97_spill] sm:$0xff]  ;;  %v5270_v55 = vadd.f32 %v5269_v45, %v5268_v30  ;;  %v1564_v48 = vrot.slane %v13265_v50, 6  ;;  %v13270_v50 = vperm.slane %v9589_v2, 6 }
 0x367   :  { %3524 = vst [vmem:[#allocation1] ss:$4 sm:$0xff] %v2659_v4  ;;  %v2140_v4 = vsel %vm1768_vm0, %v13263_v40, %v1561_v3  ;;  %v5271_v34 = vsel %vm1768_vm0, %v13264_v31, 0.0  ;;  %v2139_v3 = vsel %vm1772_vm2, %v2137_v42, %v2138_v38  ;;  %v13267_v31 = vperm.slane %v9589_v2, 2 }
 0x368   :  { %3525 = vst [vmem:[#allocation1 + $0x20] ss:$4 sm:$0xff] %v2660_v44  ;;  %v162_v44 = vld [vmem:[#allocation2 + $0x3d0] sm:$0xff]  ;;  %v13268_v40 = vperm.slane %v9589_v2, 3  ;;  %v2142_v30 = vsel %vm1772_vm2, %v2140_v4, %v2141_v21  ;;  %v5272_v45 = vadd.f32 %v5271_v34, %v5270_v55  ;;  %v1568_v16 = vrot.slane %v13270_v50, 4 }
 0x369   :  { %v1565_v14 = vrot.slane %v13267_v31, 4  ;;  %v13271_v38 = vperm.slane %v9589_v2, 7  ;;  %v2661_v37 = vmul.f32 %v2139_v3, %v162_v44  ;;  %v5279_v34 = vsel %vm1768_vm0, %v13273_v13, 0.0 }
 0x36a   :  { %v1566_v22 = vrot.slane %v13268_v40, 2  ;;  %v5274_v31 = vadd.f32 %v5273_v41, %v5272_v45  ;;  %v5277_v40 = vsel %vm1768_vm0, %v13272_v61, 0.0  ;;  %v2662_v4 = vmul.f32 %v2142_v30, %v163_v63  ;;  %v9958_v63 = vld [vmem:[#allocation5 + $0x220] sm:$0xff] }
 0x36b   :  { %v1569_v42 = vrot.slane %v13271_v38, 2  ;;  %v13282_v45 = vperm.slane %v9589_v2, 0 }
 0x36c   :  { %v5276_v26 = vadd.f32 %v5275_v57, %v5274_v31  ;;  %v2144_v57 = vsel %vm1770_vm1, %v1565_v14, %v1566_v22  ;;  %v13283_v31 = vld [vmem:[#allocation20_spill] sm:$0xff]  ;;  %v13285_v22 = vld [vmem:[#allocation61_spill] sm:$0xff] }
 0x36d   :  { %v5283_v14 = vsel %vm1768_vm0, %v13285_v22, 0.0 }
 0x36e   :  { %v9941_v21 = vld.sshfl [vmem:[#allocation1] sm:$0xff pattern:$0x73625140]  ;;  %v9943_v6 = vld.sshfl [vmem:[#allocation1 + $0x8] sm:$0xff pattern:$0x73625140]  ;;  %v5278_v13 = vadd.f32 %v5277_v40, %v5276_v26  ;;  %v2147_v40 = vsel %vm1770_vm1, %v1568_v16, %v1569_v42 }
 0x36f   :  { %13274 = vst [vmem:[#allocation96_spill] sm:$0xff] %v9941_v21  ;;  %v9945_v55 = vld.sshfl [vmem:[#allocation1 + $0x10] sm:$0xff pattern:$0x73625140]  ;;  %v13286_v16 = vperm.slane %v9651_v35, 1 }
 0x370   :  { %13275 = vst [vmem:[#allocation97_spill] sm:$0xff] %v9943_v6  ;;  %v9947_v50 = vld.sshfl [vmem:[#allocation1 + $0x18] sm:$0xff pattern:$0x73625140]  ;;  %v5280_v26 = vadd.f32 %v5279_v34, %v5278_v13  ;;  %v13287_v34 = vperm.slane %v9651_v35, 2 }
 0x371   :  { %13276 = vst [vmem:[#allocation98_spill] sm:$0xff] %v9945_v55  ;;  %v9949_v38 = vld.sshfl [vmem:[#allocation1 + $0x20] sm:$0xff pattern:$0x73625140]  ;;  %v1570_v42 = vrot.slane %v13286_v16, 6 }
 0x372   :  { %13277 = vst [vmem:[#allocation36_spill] sm:$0xff] %v9947_v50  ;;  %v9951_v44 = vld.sshfl [vmem:[#allocation1 + $0x28] sm:$0xff pattern:$0x73625140]  ;;  %v2143_v50 = vsel %vm1768_vm0, %v13282_v45, %v1564_v48  ;;  %v1571_v13 = vrot.slane %v13287_v34, 4 }
 0x373   :  { %13278 = vst [vmem:[#allocation35_spill] sm:$0xff] %v9949_v38  ;;  %v9953_v3 = vld.sshfl [vmem:[#allocation1 + $0x30] sm:$0xff pattern:$0x73625140]  ;;  %v13288_v48 = vld [vmem:[#allocation62_spill] sm:$0xff] }
 0x374   :  { %13279 = vst [vmem:[#allocation149_spill] sm:$0xff] %v9951_v44  ;;  %v9956_v41 = vld.sshfl [vmem:[#allocation1 + $0x38] sm:$0xff pattern:$0x73625140]  ;;  %v5285_v22 = vsel %vm1768_vm0, %v13288_v48, 0.0  ;;  %v13289_v44 = vperm.slane %v9651_v35, 3 }
 0x375   :  { %13280 = vst [vmem:[#allocation150_spill] sm:$0xff] %v9953_v3  ;;  %v5281_v3 = vsel %vm1768_vm0, %v13283_v31, 0.0  ;;  %v13290_v31 = vperm.slane %v9651_v35, 5  ;;  %v13293_v34 = vld [vmem:[#allocation99_spill] sm:$0xff] }
 0x376   :  { %13281 = vst [vmem:[#allocation151_spill] sm:$0xff] %v9956_v41  ;;  %v13284_v41 = vperm.slane %v9589_v2, 4  ;;  %v2145_v2 = vsel %vm1772_vm2, %v2143_v50, %v2144_v57  ;;  %v1572_v45 = vrot.slane %v13289_v44, 2  ;;  %v13291_v50 = vperm.slane %v9651_v35, 6 }
 0x377   :  { %3534 = vst [vmem:[#allocation1] ss:$4 sm:$0xff] %v2661_v37  ;;  %v1573_v30 = vrot.slane %v13290_v31, 6 }
 0x378   :  { %3535 = vst [vmem:[#allocation1 + $0x20] ss:$4 sm:$0xff] %v2662_v4  ;;  %v2146_v37 = vsel %vm1768_vm0, %v13284_v41, %v1567_v62  ;;  %v164_v4 = vld [vmem:[#allocation2 + $0x3e0] sm:$0xff]  ;;  %v5282_v62 = vadd.f32 %v5281_v3, %v5280_v26  ;;  %v165_v41 = vld [vmem:[#allocation2 + $0x3e8] sm:$0xff]  ;;  %v1574_v3 = vrot.slane %v13291_v50, 4  ;;  %v13292_v26 = vperm.slane %v9651_v35, 7 }
 0x379   :  { %v2148_v61 = vsel %vm1772_vm2, %v2146_v37, %v2147_v40  ;;  %v2663_v38 = vmul.f32 %v2145_v2, %v164_v4  ;;  %v5287_v37 = vsel %vm1768_vm0, %v13293_v34, 0.0  ;;  %v13294_v40 = vld [vmem:[#allocation100_spill] sm:$0xff]  ;;  %v13301_v34 = vperm.slane %v9651_v35, 0 }
 0x37a   :  { %v5284_v57 = vadd.f32 %v5283_v14, %v5282_v62  ;;  %v1575_v16 = vrot.slane %v13292_v26, 2  ;;  %v5289_v48 = vsel %vm1768_vm0, %v13294_v40, 0.0  ;;  %v2664_v55 = vmul.f32 %v2148_v61, %v165_v41 }
 0x37b   :  { %v5291_v61 = vsel %vm1768_vm0, %v8785_v9, 0.0  ;;  %v5293_v9 = vsel %vm1768_vm0, %v8787_v28, 0.0  ;;  %v13305_v28 = vperm.slane %v9715_v47, 2 }
 0x37c   :  { %v5286_v21 = vadd.f32 %v5285_v22, %v5284_v57  ;;  %v2149_v22 = vsel %vm1768_vm0, %v13301_v34, %v1570_v42  ;;  %v2150_v57 = vsel %vm1770_vm1, %v1571_v13, %v1572_v45  ;;  %v13307_v13 = vperm.slane %v9715_v47, 5 }
 0x37d   :  { %v1577_v34 = vrot.slane %v13305_v28, 4 }
 0x37e   :  { %v9999_v6 = vld.sshfl [vmem:[#allocation1] sm:$0xff pattern:$0x73625140]  ;;  %v10001_v44 = vld.sshfl [vmem:[#allocation1 + $0x8] sm:$0xff pattern:$0x73625140]  ;;  %v5288_v2 = vadd.f32 %v5287_v37, %v5286_v21 }
 0x37f   :  { %v10003_v31 = vld.sshfl [vmem:[#allocation1 + $0x10] sm:$0xff pattern:$0x73625140]  ;;  %v10005_v50 = vld.sshfl [vmem:[#allocation1 + $0x18] sm:$0xff pattern:$0x73625140] }
 0x380   :  { %13295 = vst [vmem:[#allocation20_spill] sm:$0xff] %v10003_v31  ;;  %v10007_v14 = vld.sshfl [vmem:[#allocation1 + $0x20] sm:$0xff pattern:$0x73625140]  ;;  %v5290_v40 = vadd.f32 %v5289_v48, %v5288_v2  ;;  %v13302_v21 = vperm.slane %v9651_v35, 4  ;;  %v13303_v48 = vperm.slane %v9715_v47, 1 }
 0x381   :  { %13296 = vst [vmem:[#allocation61_spill] sm:$0xff] %v10005_v50  ;;  %v10009_v62 = vld.sshfl [vmem:[#allocation1 + $0x28] sm:$0xff pattern:$0x73625140]  ;;  %v1579_v42 = vrot.slane %v13307_v13, 6 }
 0x382   :  { %13297 = vst [vmem:[#allocation62_spill] sm:$0xff] %v10007_v14  ;;  %v10011_v4 = vld.sshfl [vmem:[#allocation1 + $0x30] sm:$0xff pattern:$0x73625140]  ;;  %v2152_v37 = vsel %vm1768_vm0, %v13302_v21, %v1573_v30  ;;  %v5292_v45 = vadd.f32 %v5291_v61, %v5290_v40  ;;  %v1576_v35 = vrot.slane %v13303_v48, 6  ;;  %v2151_v30 = vsel %vm1772_vm2, %v2149_v22, %v2150_v57 }
 0x383   :  { %13298 = vst [vmem:[#allocation99_spill] sm:$0xff] %v10009_v62  ;;  %v10013_v26 = vld.sshfl [vmem:[#allocation1 + $0x38] sm:$0xff pattern:$0x73625140]  ;;  %v13304_v2 = vld [vmem:[#allocation63_spill] sm:$0xff]  ;;  %v13306_v21 = vperm.slane %v9715_v47, 3 }
 0x384   :  { %13299 = vst [vmem:[#allocation100_spill] sm:$0xff] %v10011_v4  ;;  %v5294_v40 = vadd.f32 %v5293_v9, %v5292_v45  ;;  %v13308_v48 = vperm.slane %v9715_v47, 6  ;;  %v13309_v22 = vperm.slane %v9715_v47, 7  ;;  %v10051_v4 = vld [vmem:[#allocation5 + $0x228] sm:$0xff] }
 0x385   :  { %13300 = vst [vmem:[#allocation152_spill] sm:$0xff] %v10013_v26  ;;  %v1578_v41 = vrot.slane %v13306_v21, 2  ;;  %v13311_v21 = vld [vmem:[#allocation12_spill] sm:$0xff] }
 0x386   :  { %3544 = vst [vmem:[#allocation1] ss:$4 sm:$0xff] %v2663_v38  ;;  %v2153_v38 = vsel %vm1770_vm1, %v1574_v3, %v1575_v16  ;;  %v5295_v3 = vsel %vm1768_vm0, %v13304_v2, 0.0  ;;  %v167_v16 = vld [vmem:[#allocation2 + $0x3f8] sm:$0xff]  ;;  %v1580_v26 = vrot.slane %v13308_v48, 4  ;;  %v1581_v57 = vrot.slane %v13309_v22, 2 }
 0x387   :  { %3545 = vst [vmem:[#allocation1 + $0x20] ss:$4 sm:$0xff] %v2664_v55  ;;  %v166_v55 = vld [vmem:[#allocation2 + $0x3f0] sm:$0xff]  ;;  %v2154_v61 = vsel %vm1772_vm2, %v2152_v37, %v2153_v38  ;;  %v5296_v14 = vadd.f32 %v5295_v3, %v5294_v40  ;;  %v5299_v37 = vsel %vm1768_vm0, %v13311_v21, 0.0  ;;  %v13312_v38 = vld [vmem:[#allocation38_spill] sm:$0xff]  ;;  %v13319_v21 = vperm.slane %v9715_v47, 0 }
 0x388   :  { %v13310_v2 = vld [vmem:[#allocation37_spill] sm:$0xff]  ;;  %v2665_v28 = vmul.f32 %v2151_v30, %v166_v55  ;;  %v5301_v9 = vsel %vm1768_vm0, %v13312_v38, 0.0  ;;  %v2666_v45 = vmul.f32 %v2154_v61, %v167_v16  ;;  %v13321_v3 = vperm.slane %v9715_v47, 4 }
 0x389   :  { %v5297_v62 = vsel %vm1768_vm0, %v13310_v2, 0.0  ;;  %v2155_v38 = vsel %vm1768_vm0, %v13319_v21, %v1576_v35  ;;  %v13325_v35 = vperm.slane %v9773_v10, 3 }
 0x38a   :  { %v5298_v31 = vadd.f32 %v5297_v62, %v5296_v14  ;;  %v13320_v14 = vld [vmem:[#allocation64_spill] sm:$0xff] }
 0x38b   :  { %v5303_v62 = vsel %vm1768_vm0, %v13320_v14, 0.0  ;;  %v1584_v21 = vrot.slane %v13325_v35, 2  ;;  %v13326_v14 = vperm.slane %v9773_v10, 5 }
 0x38c   :  { %v5300_v16 = vadd.f32 %v5299_v37, %v5298_v31  ;;  %v2159_v31 = vsel %vm1770_vm1, %v1580_v26, %v1581_v57  ;;  %v13323_v26 = vperm.slane %v9773_v10, 1 }
 0x38d   :  { %v10057_v13 = vld.sshfl [vmem:[#allocation1] sm:$0xff pattern:$0x73625140]  ;;  %v10059_v48 = vld.sshfl [vmem:[#allocation1 + $0x8] sm:$0xff pattern:$0x73625140] }
 0x38e   :  { %v10061_v50 = vld.sshfl [vmem:[#allocation1 + $0x10] sm:$0xff pattern:$0x73625140]  ;;  %v10063_v22 = vld.sshfl [vmem:[#allocation1 + $0x18] sm:$0xff pattern:$0x73625140] }
 0x38f   :  { %13313 = vst [vmem:[#allocation63_spill] sm:$0xff] %v10061_v50  ;;  %v10065_v2 = vld.sshfl [vmem:[#allocation1 + $0x20] sm:$0xff pattern:$0x73625140]  ;;  %v1582_v57 = vrot.slane %v13323_v26, 6  ;;  %v1585_v37 = vrot.slane %v13326_v14, 6 }
 0x390   :  { %13314 = vst [vmem:[#allocation37_spill] sm:$0xff] %v10063_v22  ;;  %v10067_v55 = vld.sshfl [vmem:[#allocation1 + $0x28] sm:$0xff pattern:$0x73625140]  ;;  %v2156_v22 = vsel %vm1770_vm1, %v1577_v34, %v1578_v41  ;;  %v13322_v41 = vld [vmem:[#allocation101_spill] sm:$0xff] }
 0x391   :  { %13315 = vst [vmem:[#allocation12_spill] sm:$0xff] %v10065_v2  ;;  %v10069_v30 = vld.sshfl [vmem:[#allocation1 + $0x30] sm:$0xff pattern:$0x73625140]  ;;  %v5305_v34 = vsel %vm1768_vm0, %v13322_v41, 0.0  ;;  %v2157_v47 = vsel %vm1772_vm2, %v2155_v38, %v2156_v22  ;;  %v5307_v41 = vsel %vm1768_vm0, %v8843_v8, 0.0 }
 0x392   :  { %13316 = vst [vmem:[#allocation38_spill] sm:$0xff] %v10067_v55  ;;  %v10072_v40 = vld.sshfl [vmem:[#allocation1 + $0x38] sm:$0xff pattern:$0x73625140]  ;;  %v13327_v22 = vperm.slane %v9773_v10, 6 }
 0x393   :  { %13317 = vst [vmem:[#allocation153_spill] sm:$0xff] %v10069_v30  ;;  %v10113_v55 = vld [vmem:[#allocation5 + $0x230] sm:$0xff] }
 0x394   :  { %13318 = vst [vmem:[#allocation154_spill] sm:$0xff] %v10072_v40  ;;  %v2158_v40 = vsel %vm1768_vm0, %v13321_v3, %v1579_v42  ;;  %v169_v3 = vld [vmem:[#allocation2 + $0x408] sm:$0xff]  ;;  %v1586_v38 = vrot.slane %v13327_v22, 4 }
 0x395   :  { %3554 = vst [vmem:[#allocation1] ss:$4 sm:$0xff] %v2665_v28  ;;  %v5302_v28 = vadd.f32 %v5301_v9, %v5300_v16  ;;  %v13324_v9 = vperm.slane %v9773_v10, 2  ;;  %v2160_v61 = vsel %vm1772_vm2, %v2158_v40, %v2159_v31  ;;  %v13330_v31 = vld [vmem:[#allocation66_spill] sm:$0xff] }
 0x396   :  { %3555 = vst [vmem:[#allocation1 + $0x20] ss:$4 sm:$0xff] %v2666_v45  ;;  %v168_v45 = vld [vmem:[#allocation2 + $0x400] sm:$0xff]  ;;  %v5311_v8 = vsel %vm1768_vm0, %v13330_v31, 0.0  ;;  %v2668_v35 = vmul.f32 %v2160_v61, %v169_v3 }
 0x397   :  { %v5304_v42 = vadd.f32 %v5303_v62, %v5302_v28  ;;  %v1583_v16 = vrot.slane %v13324_v9, 4  ;;  %v13328_v28 = vperm.slane %v9773_v10, 7  ;;  %v2667_v30 = vmul.f32 %v2157_v47, %v168_v45  ;;  %v13329_v9 = vld [vmem:[#allocation65_spill] sm:$0xff]  ;;  %v13338_v61 = vld [vmem:[#allocation67_spill] sm:$0xff] }
 0x398   :  { %v5309_v40 = vsel %vm1768_vm0, %v13329_v9, 0.0  ;;  %v5313_v3 = vsel %vm1768_vm0, %v13338_v61, 0.0 }
 0x399   :  { %v5306_v62 = vadd.f32 %v5305_v34, %v5304_v42  ;;  %v1587_v26 = vrot.slane %v13328_v28, 2 }
 0x39b   :  { %v5308_v34 = vadd.f32 %v5307_v41, %v5306_v62  ;;  %v2162_v62 = vsel %vm1770_vm1, %v1583_v16, %v1584_v21 }
 0x39c   :  { %v10115_v2 = vld.sshfl [vmem:[#allocation1] sm:$0xff pattern:$0x73625140]  ;;  %v10117_v14 = vld.sshfl [vmem:[#allocation1 + $0x8] sm:$0xff pattern:$0x73625140] }
 0x39d   :  { %13331 = vst [vmem:[#allocation64_spill] sm:$0xff] %v10117_v14  ;;  %v10119_v50 = vld.sshfl [vmem:[#allocation1 + $0x10] sm:$0xff pattern:$0x73625140]  ;;  %v5310_v28 = vadd.f32 %v5309_v40, %v5308_v34  ;;  %v13340_v40 = vperm.slane %v9773_v10, 4  ;;  %v13350_v14 = vld [vmem:[#allocation105_spill] sm:$0xff] }
 0x39e   :  { %13332 = vst [vmem:[#allocation101_spill] sm:$0xff] %v10119_v50  ;;  %v10121_v42 = vld.sshfl [vmem:[#allocation1 + $0x18] sm:$0xff pattern:$0x73625140]  ;;  %v13339_v50 = vperm.slane %v9773_v10, 0 }
 0x39f   :  { %13333 = vst [vmem:[#allocation65_spill] sm:$0xff] %v10121_v42  ;;  %v10123_v22 = vld.sshfl [vmem:[#allocation1 + $0x20] sm:$0xff pattern:$0x73625140]  ;;  %v2164_v34 = vsel %vm1768_vm0, %v13340_v40, %v1585_v37  ;;  %v13345_v40 = vperm.slane %v9831_v59, 3 }
 0x3a0   :  { %13334 = vst [vmem:[#allocation66_spill] sm:$0xff] %v10123_v22  ;;  %v10125_v45 = vld.sshfl [vmem:[#allocation1 + $0x28] sm:$0xff pattern:$0x73625140]  ;;  %v2161_v41 = vsel %vm1768_vm0, %v13339_v50, %v1582_v57  ;;  %v5312_v22 = vadd.f32 %v5311_v8, %v5310_v28  ;;  %v170_v57 = vld [vmem:[#allocation2 + $0x410] sm:$0xff]  ;;  %v13342_v8 = vperm.slane %v9831_v59, 1 }
 0x3a1   :  { %13335 = vst [vmem:[#allocation155_spill] sm:$0xff] %v10125_v45  ;;  %v10127_v47 = vld.sshfl [vmem:[#allocation1 + $0x30] sm:$0xff pattern:$0x73625140]  ;;  %v2163_v37 = vsel %vm1772_vm2, %v2161_v41, %v2162_v62  ;;  %v13344_v28 = vperm.slane %v9831_v59, 2  ;;  %v13346_v50 = vperm.slane %v9831_v59, 5 }
 0x3a2   :  { %13336 = vst [vmem:[#allocation156_spill] sm:$0xff] %v10127_v47  ;;  %v10129_v9 = vld.sshfl [vmem:[#allocation1 + $0x38] sm:$0xff pattern:$0x73625140]  ;;  %v5314_v21 = vadd.f32 %v5313_v3, %v5312_v22  ;;  %v1588_v10 = vrot.slane %v13342_v8, 6  ;;  %v1590_v47 = vrot.slane %v13345_v40, 2  ;;  %v2669_v42 = vmul.f32 %v2163_v37, %v170_v57 }
 0x3a3   :  { %13337 = vst [vmem:[#allocation157_spill] sm:$0xff] %v10129_v9  ;;  %v13341_v9 = vld [vmem:[#allocation102_spill] sm:$0xff]  ;;  %v1591_v16 = vrot.slane %v13346_v50, 6  ;;  %v13347_v8 = vperm.slane %v9831_v59, 6  ;;  %v13348_v41 = vperm.slane %v9831_v59, 7  ;;  %v5321_v40 = vsel %vm1768_vm0, %v13350_v14, 0.0 }
 0x3a4   :  { %3564 = vst [vmem:[#allocation1] ss:$4 sm:$0xff] %v2667_v30  ;;  %v2165_v30 = vsel %vm1770_vm1, %v1586_v38, %v1587_v26  ;;  %v5315_v61 = vsel %vm1768_vm0, %v13341_v9, 0.0  ;;  %v171_v26 = vld [vmem:[#allocation2 + $0x418] sm:$0xff]  ;;  %v1589_v9 = vrot.slane %v13344_v28, 4 }
 0x3a5   :  { %3565 = vst [vmem:[#allocation1 + $0x20] ss:$4 sm:$0xff] %v2668_v35  ;;  %v13343_v35 = vld [vmem:[#allocation103_spill] sm:$0xff]  ;;  %v2166_v22 = vsel %vm1772_vm2, %v2164_v34, %v2165_v30  ;;  %v5316_v3 = vadd.f32 %v5315_v61, %v5314_v21  ;;  %v1592_v31 = vrot.slane %v13347_v8, 4  ;;  %v1593_v62 = vrot.slane %v13348_v41, 2  ;;  %v10177_v8 = vld [vmem:[#allocation5 + $0x238] sm:$0xff] }
 0x3a6   :  { %v5317_v38 = vsel %vm1768_vm0, %v13343_v35, 0.0  ;;  %v13349_v35 = vld [vmem:[#allocation104_spill] sm:$0xff]  ;;  %v5323_v34 = vsel %vm1768_vm0, %v8901_v18, 0.0  ;;  %v2670_v30 = vmul.f32 %v2166_v22, %v171_v26  ;;  %v13358_v18 = vperm.slane %v9831_v59, 4 }
 0x3a7   :  { %v5319_v45 = vsel %vm1768_vm0, %v13349_v35, 0.0  ;;  %v5318_v28 = vadd.f32 %v5317_v38, %v5316_v3  ;;  %v13357_v3 = vperm.slane %v9831_v59, 0  ;;  %v13363_v22 = vperm.slane %v9901_v15, 3 }
 0x3a9   :  { %v5320_v57 = vadd.f32 %v5319_v45, %v5318_v28  ;;  %v5325_v45 = vsel %vm1768_vm0, %v8903_v20, 0.0  ;;  %v1596_v20 = vrot.slane %v13363_v22, 2 }
 0x3ab   :  { %v10171_v61 = vld.sshfl [vmem:[#allocation1] sm:$0xff pattern:$0x73625140]  ;;  %v10173_v50 = vld.sshfl [vmem:[#allocation1 + $0x8] sm:$0xff pattern:$0x73625140]  ;;  %v5322_v26 = vadd.f32 %v5321_v40, %v5320_v57 }
 0x3ac   :  { %v10175_v21 = vld.sshfl [vmem:[#allocation1 + $0x10] sm:$0xff pattern:$0x73625140]  ;;  %v10179_v41 = vld.sshfl [vmem:[#allocation1 + $0x18] sm:$0xff pattern:$0x73625140] }
 0x3ad   :  { %13351 = vst [vmem:[#allocation67_spill] sm:$0xff] %v10175_v21  ;;  %v10181_v35 = vld.sshfl [vmem:[#allocation1 + $0x20] sm:$0xff pattern:$0x73625140]  ;;  %v2167_v21 = vsel %vm1768_vm0, %v13357_v3, %v1588_v10  ;;  %v5324_v40 = vadd.f32 %v5323_v34, %v5322_v26  ;;  %v13361_v34 = vperm.slane %v9901_v15, 2  ;;  %v13364_v3 = vperm.slane %v9901_v15, 5 }
 0x3ae   :  { %13352 = vst [vmem:[#allocation102_spill] sm:$0xff] %v10179_v41  ;;  %v10183_v37 = vld.sshfl [vmem:[#allocation1 + $0x28] sm:$0xff pattern:$0x73625140]  ;;  %v2168_v41 = vsel %vm1770_vm1, %v1589_v9, %v1590_v47  ;;  %v13359_v47 = vld [vmem:[#allocation21_spill] sm:$0xff] }
 0x3af   :  { %13353 = vst [vmem:[#allocation103_spill] sm:$0xff] %v10181_v35  ;;  %v10185_v14 = vld.sshfl [vmem:[#allocation1 + $0x30] sm:$0xff pattern:$0x73625140]  ;;  %v5327_v9 = vsel %vm1768_vm0, %v13359_v47, 0.0  ;;  %v2169_v59 = vsel %vm1772_vm2, %v2167_v21, %v2168_v41  ;;  %v1595_v26 = vrot.slane %v13361_v34, 4 }
 0x3b0   :  { %13354 = vst [vmem:[#allocation104_spill] sm:$0xff] %v10183_v37  ;;  %v10188_v38 = vld.sshfl [vmem:[#allocation1 + $0x38] sm:$0xff pattern:$0x73625140]  ;;  %v1597_v57 = vrot.slane %v13364_v3, 6  ;;  %v13365_v21 = vperm.slane %v9901_v15, 6 }
 0x3b1   :  { %13355 = vst [vmem:[#allocation105_spill] sm:$0xff] %v10185_v14  ;;  %v13362_v10 = vld [vmem:[#allocation13_spill] sm:$0xff] }
 0x3b2   :  { %13356 = vst [vmem:[#allocation158_spill] sm:$0xff] %v10188_v38  ;;  %v2170_v38 = vsel %vm1768_vm0, %v13358_v18, %v1591_v16  ;;  %v5326_v16 = vadd.f32 %v5325_v45, %v5324_v40  ;;  %v173_v18 = vld [vmem:[#allocation2 + $0x428] sm:$0xff]  ;;  %v5329_v47 = vsel %vm1768_vm0, %v13362_v10, 0.0  ;;  %v1598_v41 = vrot.slane %v13365_v21, 4  ;;  %v10235_v21 = vld [vmem:[#allocation5 + $0x240] sm:$0xff] }
 0x3b3   :  { %3574 = vst [vmem:[#allocation1] ss:$4 sm:$0xff] %v2669_v42  ;;  %v2171_v42 = vsel %vm1770_vm1, %v1592_v31, %v1593_v62  ;;  %v13360_v31 = vperm.slane %v9901_v15, 1  ;;  %v13366_v40 = vperm.slane %v9901_v15, 7 }
 0x3b4   :  { %3575 = vst [vmem:[#allocation1 + $0x20] ss:$4 sm:$0xff] %v2670_v30  ;;  %v172_v30 = vld [vmem:[#allocation2 + $0x420] sm:$0xff]  ;;  %v2172_v28 = vsel %vm1772_vm2, %v2170_v38, %v2171_v42  ;;  %v5328_v45 = vadd.f32 %v5327_v9, %v5326_v16  ;;  %v5331_v38 = vsel %vm1768_vm0, %v8911_v39, 0.0 }
 0x3b5   :  { %v1594_v62 = vrot.slane %v13360_v31, 6  ;;  %v1599_v31 = vrot.slane %v13366_v40, 2  ;;  %v2671_v14 = vmul.f32 %v2169_v59, %v172_v30  ;;  %v13367_v42 = vld [vmem:[#allocation39_spill] sm:$0xff]  ;;  %v2672_v34 = vmul.f32 %v2172_v28, %v173_v18  ;;  %v13375_v28 = vld [vmem:[#allocation40_spill] sm:$0xff] }
 0x3b6   :  { %v5333_v10 = vsel %vm1768_vm0, %v13367_v42, 0.0  ;;  %v5330_v35 = vadd.f32 %v5329_v47, %v5328_v45  ;;  %v5335_v18 = vsel %vm1768_vm0, %v13375_v28, 0.0  ;;  %v13376_v47 = vperm.slane %v9901_v15, 0 }
 0x3b7   :  { %v13382_v42 = vperm.slane %v9958_v63, 5 }
 0x3b8   :  { %v5332_v59 = vadd.f32 %v5331_v38, %v5330_v35  ;;  %v2173_v45 = vsel %vm1768_vm0, %v13376_v47, %v1594_v62  ;;  %v13377_v35 = vperm.slane %v9901_v15, 4  ;;  %v13381_v47 = vperm.slane %v9958_v63, 3 }
 0x3ba   :  { %v10229_v37 = vld.sshfl [vmem:[#allocation1] sm:$0xff pattern:$0x73625140]  ;;  %v10231_v22 = vld.sshfl [vmem:[#allocation1 + $0x8] sm:$0xff pattern:$0x73625140]  ;;  %v2176_v38 = vsel %vm1768_vm0, %v13377_v35, %v1597_v57 }
 0x3bb   :  { %13368 = vst [vmem:[#allocation21_spill] sm:$0xff] %v10231_v22  ;;  %v10233_v3 = vld.sshfl [vmem:[#allocation1 + $0x10] sm:$0xff pattern:$0x73625140]  ;;  %v1602_v35 = vrot.slane %v13381_v47, 2  ;;  %v13387_v22 = vld [vmem:[#allocation106_spill] sm:$0xff] }
 0x3bc   :  { %13369 = vst [vmem:[#allocation13_spill] sm:$0xff] %v10233_v3  ;;  %v10237_v9 = vld.sshfl [vmem:[#allocation1 + $0x18] sm:$0xff pattern:$0x73625140]  ;;  %v13386_v3 = vld [vmem:[#allocation14_spill] sm:$0xff] }
 0x3bd   :  { %13370 = vst [vmem:[#allocation39_spill] sm:$0xff] %v10237_v9  ;;  %v10239_v16 = vld.sshfl [vmem:[#allocation1 + $0x20] sm:$0xff pattern:$0x73625140]  ;;  %v2174_v9 = vsel %vm1770_vm1, %v1595_v26, %v1596_v20  ;;  %v174_v26 = vld [vmem:[#allocation2 + $0x430] sm:$0xff]  ;;  %v5343_v47 = vsel %vm1768_vm0, %v13386_v3, 0.0 }
 0x3be   :  { %13371 = vst [vmem:[#allocation159_spill] sm:$0xff] %v10239_v16  ;;  %v10241_v30 = vld.sshfl [vmem:[#allocation1 + $0x28] sm:$0xff pattern:$0x73625140]  ;;  %v5334_v16 = vadd.f32 %v5333_v10, %v5332_v59  ;;  %v2175_v57 = vsel %vm1772_vm2, %v2173_v45, %v2174_v9  ;;  %v13380_v59 = vperm.slane %v9958_v63, 2  ;;  %v1603_v10 = vrot.slane %v13382_v42, 6 }
 0x3bf   :  { %13372 = vst [vmem:[#allocation160_spill] sm:$0xff] %v10241_v30  ;;  %v10243_v39 = vld.sshfl [vmem:[#allocation1 + $0x30] sm:$0xff pattern:$0x73625140]  ;;  %v13384_v9 = vperm.slane %v9958_v63, 7  ;;  %v2673_v30 = vmul.f32 %v2175_v57, %v174_v26 }
 0x3c0   :  { %13373 = vst [vmem:[#allocation161_spill] sm:$0xff] %v10243_v39  ;;  %v10245_v40 = vld.sshfl [vmem:[#allocation1 + $0x38] sm:$0xff pattern:$0x73625140]  ;;  %v5336_v20 = vadd.f32 %v5335_v18, %v5334_v16 }
 0x3c1   :  { %13374 = vst [vmem:[#allocation162_spill] sm:$0xff] %v10245_v40  ;;  %v13378_v40 = vld [vmem:[#allocation41_spill] sm:$0xff]  ;;  %v1605_v45 = vrot.slane %v13384_v9, 2 }
 0x3c2   :  { %3584 = vst [vmem:[#allocation1] ss:$4 sm:$0xff] %v2671_v14  ;;  %v2177_v14 = vsel %vm1770_vm1, %v1598_v41, %v1599_v31  ;;  %v5337_v28 = vsel %vm1768_vm0, %v13378_v40, 0.0  ;;  %v5339_v41 = vsel %vm1768_vm0, %v8959_v36, 0.0  ;;  %v175_v31 = vld [vmem:[#allocation2 + $0x438] sm:$0xff]  ;;  %v1601_v40 = vrot.slane %v13380_v59, 4 }
 0x3c3   :  { %3585 = vst [vmem:[#allocation1 + $0x20] ss:$4 sm:$0xff] %v2672_v34  ;;  %v13379_v34 = vperm.slane %v9958_v63, 1  ;;  %v2178_v16 = vsel %vm1772_vm2, %v2176_v38, %v2177_v14  ;;  %v5338_v18 = vadd.f32 %v5337_v28, %v5336_v20  ;;  %v13385_v36 = vld [vmem:[#allocation23_spill] sm:$0xff]  ;;  %v5345_v38 = vsel %vm1768_vm0, %v13387_v22, 0.0 }
 0x3c4   :  { %v5341_v39 = vsel %vm1768_vm0, %v13385_v36, 0.0  ;;  %v2674_v14 = vmul.f32 %v2178_v16, %v175_v31  ;;  %v13398_v22 = vperm.slane %v9958_v63, 4 }
 0x3c5   :  { %v1600_v15 = vrot.slane %v13379_v34, 6  ;;  %v13383_v34 = vperm.slane %v9958_v63, 6  ;;  %v5340_v59 = vadd.f32 %v5339_v41, %v5338_v18  ;;  %v13396_v18 = vperm.slane %v9958_v63, 0 }
 0x3c7   :  { %v1604_v62 = vrot.slane %v13383_v34, 4  ;;  %v10293_v34 = vld [vmem:[#allocation5 + $0x248] sm:$0xff]  ;;  %v5342_v26 = vadd.f32 %v5341_v39, %v5340_v59 }
 0x3c8   :  { %v13397_v39 = vld [vmem:[#allocation107_spill] sm:$0xff] }
 0x3c9   :  { %v10287_v28 = vld.sshfl [vmem:[#allocation1] sm:$0xff pattern:$0x73625140]  ;;  %v10289_v42 = vld.sshfl [vmem:[#allocation1 + $0x8] sm:$0xff pattern:$0x73625140]  ;;  %v5344_v31 = vadd.f32 %v5343_v47, %v5342_v26 }
 0x3ca   :  { %13388 = vst [vmem:[#allocation40_spill] sm:$0xff] %v10287_v28  ;;  %v10291_v20 = vld.sshfl [vmem:[#allocation1 + $0x10] sm:$0xff pattern:$0x73625140]  ;;  %v5347_v59 = vsel %vm1768_vm0, %v13397_v39, 0.0  ;;  %v13403_v26 = vperm.slane %v10051_v4, 3 }
 0x3cb   :  { %13389 = vst [vmem:[#allocation41_spill] sm:$0xff] %v10289_v42  ;;  %v10295_v9 = vld.sshfl [vmem:[#allocation1 + $0x18] sm:$0xff pattern:$0x73625140]  ;;  %v5346_v47 = vadd.f32 %v5345_v38, %v5344_v31  ;;  %v13401_v38 = vperm.slane %v10051_v4, 2  ;;  %v13404_v39 = vperm.slane %v10051_v4, 5 }
 0x3cc   :  { %13390 = vst [vmem:[#allocation23_spill] sm:$0xff] %v10291_v20  ;;  %v10297_v36 = vld.sshfl [vmem:[#allocation1 + $0x20] sm:$0xff pattern:$0x73625140]  ;;  %v2179_v20 = vsel %vm1768_vm0, %v13396_v18, %v1600_v15  ;;  %v1608_v18 = vrot.slane %v13403_v26, 2 }
 0x3cd   :  { %13391 = vst [vmem:[#allocation14_spill] sm:$0xff] %v10295_v9  ;;  %v10299_v57 = vld.sshfl [vmem:[#allocation1 + $0x28] sm:$0xff pattern:$0x73625140]  ;;  %v2180_v9 = vsel %vm1770_vm1, %v1601_v40, %v1602_v35  ;;  %v13399_v40 = vld [vmem:[#allocation108_spill] sm:$0xff]  ;;  %v1607_v31 = vrot.slane %v13401_v38, 4 }
 0x3ce   :  { %13392 = vst [vmem:[#allocation106_spill] sm:$0xff] %v10297_v36  ;;  %v10301_v3 = vld.sshfl [vmem:[#allocation1 + $0x30] sm:$0xff pattern:$0x73625140]  ;;  %v5349_v35 = vsel %vm1768_vm0, %v13399_v40, 0.0  ;;  %v2181_v63 = vsel %vm1772_vm2, %v2179_v20, %v2180_v9  ;;  %v13402_v15 = vld [vmem:[#allocation109_spill] sm:$0xff] }
 0x3cf   :  { %13393 = vst [vmem:[#allocation163_spill] sm:$0xff] %v10299_v57  ;;  %v10304_v41 = vld.sshfl [vmem:[#allocation1 + $0x38] sm:$0xff pattern:$0x73625140]  ;;  %v5351_v40 = vsel %vm1768_vm0, %v13402_v15, 0.0  ;;  %v13405_v20 = vperm.slane %v10051_v4, 6 }
 0x3d0   :  { %13394 = vst [vmem:[#allocation164_spill] sm:$0xff] %v10301_v3  ;;  %v1609_v3 = vrot.slane %v13404_v39, 6  ;;  %v13407_v38 = vld [vmem:[#allocation110_spill] sm:$0xff] }
 0x3d1   :  { %13395 = vst [vmem:[#allocation165_spill] sm:$0xff] %v10304_v41  ;;  %v2182_v41 = vsel %vm1768_vm0, %v13398_v22, %v1603_v10  ;;  %v5348_v10 = vadd.f32 %v5347_v59, %v5346_v47  ;;  %v177_v22 = vld [vmem:[#allocation2 + $0x448] sm:$0xff]  ;;  %v1610_v9 = vrot.slane %v13405_v20, 4  ;;  %v13406_v47 = vperm.slane %v10051_v4, 7 }
 0x3d2   :  { %3594 = vst [vmem:[#allocation1] ss:$4 sm:$0xff] %v2673_v30  ;;  %v2183_v30 = vsel %vm1770_vm1, %v1604_v62, %v1605_v45  ;;  %v13400_v62 = vperm.slane %v10051_v4, 1 }
 0x3d3   :  { %3595 = vst [vmem:[#allocation1 + $0x20] ss:$4 sm:$0xff] %v2674_v14  ;;  %v176_v14 = vld [vmem:[#allocation2 + $0x440] sm:$0xff]  ;;  %v2184_v16 = vsel %vm1772_vm2, %v2182_v41, %v2183_v30  ;;  %v5350_v59 = vadd.f32 %v5349_v35, %v5348_v10  ;;  %v5353_v41 = vsel %vm1768_vm0, %v13407_v38, 0.0  ;;  %v13408_v30 = vld [vmem:[#allocation68_spill] sm:$0xff] }
 0x3d4   :  { %v1606_v45 = vrot.slane %v13400_v62, 6  ;;  %v1611_v62 = vrot.slane %v13406_v47, 2  ;;  %v2675_v57 = vmul.f32 %v2181_v63, %v176_v14  ;;  %v5355_v15 = vsel %vm1768_vm0, %v13408_v30, 0.0  ;;  %v10363_v38 = vld [vmem:[#allocation5 + $0x250] sm:$0xff] }
 0x3d5   :  { %v2676_v36 = vmul.f32 %v2184_v16, %v177_v22  ;;  %v5352_v28 = vadd.f32 %v5351_v40, %v5350_v59  ;;  %v13417_v16 = vld [vmem:[#allocation69_spill] sm:$0xff]  ;;  %v13418_v40 = vperm.slane %v10051_v4, 0 }
 0x3d6   :  { %v5357_v22 = vsel %vm1768_vm0, %v13417_v16, 0.0  ;;  %v2189_v16 = vsel %vm1770_vm1, %v1610_v9, %v1611_v62  ;;  %v179_v62 = vld [vmem:[#allocation2 + $0x458] sm:$0xff] }
 0x3d7   :  { %v5354_v63 = vadd.f32 %v5353_v41, %v5352_v28  ;;  %v2185_v59 = vsel %vm1768_vm0, %v13418_v40, %v1606_v45  ;;  %v13419_v41 = vperm.slane %v10051_v4, 4  ;;  %v13425_v45 = vperm.slane %v10113_v55, 5 }
 0x3d9   :  { %v10345_v42 = vld.sshfl [vmem:[#allocation1] sm:$0xff pattern:$0x73625140]  ;;  %v10347_v26 = vld.sshfl [vmem:[#allocation1 + $0x8] sm:$0xff pattern:$0x73625140] }
 0x3da   :  { %13409 = vst [vmem:[#allocation107_spill] sm:$0xff] %v10345_v42  ;;  %v10349_v39 = vld.sshfl [vmem:[#allocation1 + $0x10] sm:$0xff pattern:$0x73625140] }
 0x3db   :  { %13410 = vst [vmem:[#allocation108_spill] sm:$0xff] %v10347_v26  ;;  %v10351_v20 = vld.sshfl [vmem:[#allocation1 + $0x18] sm:$0xff pattern:$0x73625140]  ;;  %v13429_v26 = vld [vmem:[#allocation111_spill] sm:$0xff] }
 0x3dc   :  { %13411 = vst [vmem:[#allocation109_spill] sm:$0xff] %v10349_v39  ;;  %v10353_v35 = vld.sshfl [vmem:[#allocation1 + $0x20] sm:$0xff pattern:$0x73625140]  ;;  %v13430_v42 = vld [vmem:[#allocation112_spill] sm:$0xff] }
 0x3dd   :  { %13412 = vst [vmem:[#allocation110_spill] sm:$0xff] %v10351_v20  ;;  %v10355_v10 = vld.sshfl [vmem:[#allocation1 + $0x28] sm:$0xff pattern:$0x73625140] }
 0x3de   :  { %13413 = vst [vmem:[#allocation68_spill] sm:$0xff] %v10353_v35  ;;  %v10357_v14 = vld.sshfl [vmem:[#allocation1 + $0x30] sm:$0xff pattern:$0x73625140]  ;;  %v2186_v35 = vsel %vm1770_vm1, %v1607_v31, %v1608_v18  ;;  %v1615_v31 = vrot.slane %v13425_v45, 6 }
 0x3df   :  { %13414 = vst [vmem:[#allocation166_spill] sm:$0xff] %v10355_v10  ;;  %v10359_v47 = vld.sshfl [vmem:[#allocation1 + $0x38] sm:$0xff pattern:$0x73625140]  ;;  %v5356_v10 = vadd.f32 %v5355_v15, %v5354_v63  ;;  %v13421_v15 = vperm.slane %v10113_v55, 1 }
 0x3e0   :  { %13415 = vst [vmem:[#allocation167_spill] sm:$0xff] %v10357_v14  ;;  %v13422_v63 = vld [vmem:[#allocation24_spill] sm:$0xff] }
 0x3e1   :  { %13416 = vst [vmem:[#allocation168_spill] sm:$0xff] %v10359_v47  ;;  %v13420_v47 = vld [vmem:[#allocation70_spill] sm:$0xff]  ;;  %v5358_v18 = vadd.f32 %v5357_v22, %v5356_v10  ;;  %v1612_v4 = vrot.slane %v13421_v15, 6  ;;  %v5361_v9 = vsel %vm1768_vm0, %v13422_v63, 0.0  ;;  %v13426_v15 = vperm.slane %v10113_v55, 6 }
 0x3e2   :  { %3604 = vst [vmem:[#allocation1] ss:$4 sm:$0xff] %v2675_v57  ;;  %v2188_v57 = vsel %vm1768_vm0, %v13419_v41, %v1609_v3  ;;  %v5359_v14 = vsel %vm1768_vm0, %v13420_v47, 0.0  ;;  %v2187_v3 = vsel %vm1772_vm2, %v2185_v59, %v2186_v35  ;;  %v13423_v47 = vperm.slane %v10113_v55, 2  ;;  %v13428_v63 = vld [vmem:[#allocation42_spill] sm:$0xff] }
 0x3e3   :  { %3605 = vst [vmem:[#allocation1 + $0x20] ss:$4 sm:$0xff] %v2676_v36  ;;  %v178_v36 = vld [vmem:[#allocation2 + $0x450] sm:$0xff]  ;;  %v13424_v41 = vperm.slane %v10113_v55, 3  ;;  %v2190_v10 = vsel %vm1772_vm2, %v2188_v57, %v2189_v16  ;;  %v5360_v22 = vadd.f32 %v5359_v14, %v5358_v18  ;;  %v1616_v30 = vrot.slane %v13426_v15, 4 }
 0x3e4   :  { %v1613_v40 = vrot.slane %v13423_v47, 4  ;;  %v13427_v35 = vperm.slane %v10113_v55, 7  ;;  %v5363_v28 = vsel %vm1768_vm0, %v13428_v63, 0.0  ;;  %v2677_v39 = vmul.f32 %v2187_v3, %v178_v36 }
 0x3e5   :  { %v1614_v20 = vrot.slane %v13424_v41, 2  ;;  %v5362_v47 = vadd.f32 %v5361_v9, %v5360_v22  ;;  %v5365_v41 = vsel %vm1768_vm0, %v13429_v26, 0.0  ;;  %v5367_v14 = vsel %vm1768_vm0, %v13430_v42, 0.0 }
 0x3e6   :  { %v1617_v59 = vrot.slane %v13427_v35, 2  ;;  %v2678_v57 = vmul.f32 %v2190_v10, %v179_v62  ;;  %v10420_v62 = vld [vmem:[#allocation5 + $0x258] sm:$0xff]  ;;  %v13436_v22 = vperm.slane %v10113_v55, 0  ;;  %v13441_v26 = vperm.slane %v10177_v8, 3 }
 0x3e7   :  { %v5364_v63 = vadd.f32 %v5363_v28, %v5362_v47  ;;  %v2192_v28 = vsel %vm1770_vm1, %v1613_v40, %v1614_v20  ;;  %v13437_v47 = vld [vmem:[#allocation113_spill] sm:$0xff]  ;;  %v5371_v20 = vsel %vm1768_vm0, %v9075_v54, 0.0  ;;  %v180_v40 = vld [vmem:[#allocation2 + $0x460] sm:$0xff]  ;;  %v5373_v54 = vsel %vm1768_vm0, %v9077_v58, 0.0 }
 0x3e9   :  { %v10403_v16 = vld.sshfl [vmem:[#allocation1] sm:$0xff pattern:$0x73625140]  ;;  %v10405_v45 = vld.sshfl [vmem:[#allocation1 + $0x8] sm:$0xff pattern:$0x73625140]  ;;  %v5366_v42 = vadd.f32 %v5365_v41, %v5364_v63  ;;  %v2195_v41 = vsel %vm1770_vm1, %v1616_v30, %v1617_v59 }
 0x3ea   :  { %v10407_v18 = vld.sshfl [vmem:[#allocation1 + $0x10] sm:$0xff pattern:$0x73625140]  ;;  %v10409_v15 = vld.sshfl [vmem:[#allocation1 + $0x18] sm:$0xff pattern:$0x73625140] }
 0x3eb   :  { %13431 = vst [vmem:[#allocation69_spill] sm:$0xff] %v10409_v15  ;;  %v10411_v35 = vld.sshfl [vmem:[#allocation1 + $0x20] sm:$0xff pattern:$0x73625140]  ;;  %v2191_v15 = vsel %vm1768_vm0, %v13436_v22, %v1612_v4  ;;  %v5368_v63 = vadd.f32 %v5367_v14, %v5366_v42  ;;  %v13439_v30 = vperm.slane %v10177_v8, 1  ;;  %v13440_v14 = vperm.slane %v10177_v8, 2 }
 0x3ec   :  { %13432 = vst [vmem:[#allocation70_spill] sm:$0xff] %v10411_v35  ;;  %v10413_v36 = vld.sshfl [vmem:[#allocation1 + $0x28] sm:$0xff pattern:$0x73625140]  ;;  %v13442_v22 = vperm.slane %v10177_v8, 5 }
 0x3ed   :  { %13433 = vst [vmem:[#allocation24_spill] sm:$0xff] %v10413_v36  ;;  %v10415_v3 = vld.sshfl [vmem:[#allocation1 + $0x30] sm:$0xff pattern:$0x73625140]  ;;  %v1618_v59 = vrot.slane %v13439_v30, 6  ;;  %v1619_v42 = vrot.slane %v13440_v14, 4 }
 0x3ee   :  { %13434 = vst [vmem:[#allocation42_spill] sm:$0xff] %v10415_v3  ;;  %v10418_v9 = vld.sshfl [vmem:[#allocation1 + $0x38] sm:$0xff pattern:$0x73625140]  ;;  %v5369_v3 = vsel %vm1768_vm0, %v13437_v47, 0.0  ;;  %v1621_v4 = vrot.slane %v13442_v22, 6 }
 0x3ef   :  { %13435 = vst [vmem:[#allocation111_spill] sm:$0xff] %v10418_v9  ;;  %v13438_v9 = vperm.slane %v10113_v55, 4  ;;  %v2193_v55 = vsel %vm1772_vm2, %v2191_v15, %v2192_v28  ;;  %v13443_v15 = vperm.slane %v10177_v8, 6 }
 0x3f0   :  { %3614 = vst [vmem:[#allocation1] ss:$4 sm:$0xff] %v2677_v39  ;;  %v2679_v36 = vmul.f32 %v2193_v55, %v180_v40 }
 0x3f1   :  { %3615 = vst [vmem:[#allocation1 + $0x20] ss:$4 sm:$0xff] %v2678_v57  ;;  %v2194_v39 = vsel %vm1768_vm0, %v13438_v9, %v1615_v31  ;;  %v5370_v31 = vadd.f32 %v5369_v3, %v5368_v63  ;;  %v181_v9 = vld [vmem:[#allocation2 + $0x468] sm:$0xff]  ;;  %v1620_v57 = vrot.slane %v13441_v26, 2  ;;  %v1622_v3 = vrot.slane %v13443_v15, 4 }
 0x3f2   :  { %v2196_v47 = vsel %vm1772_vm2, %v2194_v39, %v2195_v41  ;;  %v13444_v63 = vperm.slane %v10177_v8, 7  ;;  %v5375_v39 = vsel %vm1768_vm0, %v9079_v11, 0.0  ;;  %v13445_v41 = vld [vmem:[#allocation43_spill] sm:$0xff] }
 0x3f3   :  { %v5372_v28 = vadd.f32 %v5371_v20, %v5370_v31  ;;  %v5377_v58 = vsel %vm1768_vm0, %v13445_v41, 0.0  ;;  %v2680_v14 = vmul.f32 %v2196_v47, %v181_v9  ;;  %v13452_v9 = vld [vmem:[#allocation71_spill] sm:$0xff]  ;;  %v13453_v41 = vperm.slane %v10177_v8, 0 }
 0x3f4   :  { %v1623_v30 = vrot.slane %v13444_v63, 2  ;;  %v5379_v47 = vsel %vm1768_vm0, %v13452_v9, 0.0 }
 0x3f5   :  { %v5374_v35 = vadd.f32 %v5373_v54, %v5372_v28  ;;  %v2197_v54 = vsel %vm1768_vm0, %v13453_v41, %v1618_v59  ;;  %v2198_v28 = vsel %vm1770_vm1, %v1619_v42, %v1620_v57  ;;  %v182_v42 = vld [vmem:[#allocation2 + $0x470] sm:$0xff] }
 0x3f7   :  { %v10461_v10 = vld.sshfl [vmem:[#allocation1] sm:$0xff pattern:$0x73625140]  ;;  %v10463_v26 = vld.sshfl [vmem:[#allocation1 + $0x8] sm:$0xff pattern:$0x73625140]  ;;  %v5376_v11 = vadd.f32 %v5375_v39, %v5374_v35 }
 0x3f8   :  { %v10465_v22 = vld.sshfl [vmem:[#allocation1 + $0x10] sm:$0xff pattern:$0x73625140]  ;;  %v10467_v15 = vld.sshfl [vmem:[#allocation1 + $0x18] sm:$0xff pattern:$0x73625140] }
 0x3f9   :  { %13446 = vst [vmem:[#allocation112_spill] sm:$0xff] %v10465_v22  ;;  %v10469_v20 = vld.sshfl [vmem:[#allocation1 + $0x20] sm:$0xff pattern:$0x73625140]  ;;  %v13454_v35 = vperm.slane %v10177_v8, 4 }
 0x3fa   :  { %13447 = vst [vmem:[#allocation113_spill] sm:$0xff] %v10467_v15  ;;  %v10471_v31 = vld.sshfl [vmem:[#allocation1 + $0x28] sm:$0xff pattern:$0x73625140] }
 0x3fb   :  { %13448 = vst [vmem:[#allocation43_spill] sm:$0xff] %v10469_v20  ;;  %v10473_v40 = vld.sshfl [vmem:[#allocation1 + $0x30] sm:$0xff pattern:$0x73625140]  ;;  %v5378_v20 = vadd.f32 %v5377_v58, %v5376_v11  ;;  %v2200_v39 = vsel %vm1768_vm0, %v13454_v35, %v1621_v4  ;;  %v2199_v4 = vsel %vm1772_vm2, %v2197_v54, %v2198_v28  ;;  %v13457_v11 = vld [vmem:[#allocation73_spill] sm:$0xff]  ;;  %v13459_v35 = vperm.slane %v10235_v21, 3 }
 0x3fc   :  { %13449 = vst [vmem:[#allocation169_spill] sm:$0xff] %v10471_v31  ;;  %v10475_v55 = vld.sshfl [vmem:[#allocation1 + $0x38] sm:$0xff pattern:$0x73625140]  ;;  %v13460_v58 = vperm.slane %v10235_v21, 5  ;;  %v13462_v54 = vperm.slane %v10235_v21, 7 }
 0x3fd   :  { %13450 = vst [vmem:[#allocation170_spill] sm:$0xff] %v10473_v40  ;;  %v5380_v57 = vadd.f32 %v5379_v47, %v5378_v20  ;;  %v1626_v63 = vrot.slane %v13459_v35, 2  ;;  %v10513_v15 = vld [vmem:[#allocation5 + $0x260] sm:$0xff] }
 0x3fe   :  { %13451 = vst [vmem:[#allocation171_spill] sm:$0xff] %v10475_v55  ;;  %v13455_v55 = vld [vmem:[#allocation72_spill] sm:$0xff]  ;;  %v1627_v59 = vrot.slane %v13460_v58, 6  ;;  %v1629_v28 = vrot.slane %v13462_v54, 2 }
 0x3ff   :  { %3624 = vst [vmem:[#allocation1] ss:$4 sm:$0xff] %v2679_v36  ;;  %v2201_v36 = vsel %vm1770_vm1, %v1622_v3, %v1623_v30  ;;  %v5381_v9 = vsel %vm1768_vm0, %v13455_v55, 0.0  ;;  %v5383_v3 = vsel %vm1768_vm0, %v13457_v11, 0.0  ;;  %v183_v30 = vld [vmem:[#allocation2 + $0x478] sm:$0xff]  ;;  %v13458_v55 = vperm.slane %v10235_v21, 2 }
 0x400   :  { %3625 = vst [vmem:[#allocation1 + $0x20] ss:$4 sm:$0xff] %v2680_v14  ;;  %v13456_v14 = vperm.slane %v10235_v21, 1  ;;  %v2202_v20 = vsel %vm1772_vm2, %v2200_v39, %v2201_v36  ;;  %v5382_v47 = vadd.f32 %v5381_v9, %v5380_v57  ;;  %v13463_v11 = vld [vmem:[#allocation74_spill] sm:$0xff]  ;;  %v5387_v39 = vsel %vm1768_vm0, %v9133_v5, 0.0 }
 0x401   :  { %v1625_v41 = vrot.slane %v13458_v55, 4  ;;  %v5385_v31 = vsel %vm1768_vm0, %v13463_v11, 0.0  ;;  %v2681_v55 = vmul.f32 %v2199_v4, %v182_v42  ;;  %v5389_v36 = vsel %vm1768_vm0, %v9135_v43, 0.0 }
 0x402   :  { %v1624_v8 = vrot.slane %v13456_v14, 6  ;;  %v13461_v14 = vperm.slane %v10235_v21, 6  ;;  %v5384_v22 = vadd.f32 %v5383_v3, %v5382_v47  ;;  %v2682_v9 = vmul.f32 %v2202_v20, %v183_v30 }
 0x403   :  { %v13469_v20 = vperm.slane %v10235_v21, 0  ;;  %v13470_v5 = vperm.slane %v10235_v21, 4 }
 0x404   :  { %v1628_v40 = vrot.slane %v13461_v14, 4  ;;  %v5386_v11 = vadd.f32 %v5385_v31, %v5384_v22  ;;  %v5391_v22 = vsel %vm1768_vm0, %v9137_v0, 0.0 }
 0x405   :  { %v2203_v47 = vsel %vm1768_vm0, %v13469_v20, %v1624_v8  ;;  %v13474_v8 = vperm.slane %v10293_v34, 3  ;;  %v13475_v20 = vperm.slane %v10293_v34, 5 }
 0x406   :  { %v10519_v57 = vld.sshfl [vmem:[#allocation1] sm:$0xff pattern:$0x73625140]  ;;  %v10521_v58 = vld.sshfl [vmem:[#allocation1 + $0x8] sm:$0xff pattern:$0x73625140]  ;;  %v5388_v43 = vadd.f32 %v5387_v39, %v5386_v11 }
 0x407   :  { %v10523_v35 = vld.sshfl [vmem:[#allocation1 + $0x10] sm:$0xff pattern:$0x73625140]  ;;  %v10525_v14 = vld.sshfl [vmem:[#allocation1 + $0x18] sm:$0xff pattern:$0x73625140] }
 0x408   :  { %13464 = vst [vmem:[#allocation71_spill] sm:$0xff] %v10525_v14  ;;  %v10527_v54 = vld.sshfl [vmem:[#allocation1 + $0x20] sm:$0xff pattern:$0x73625140]  ;;  %v2204_v14 = vsel %vm1770_vm1, %v1625_v41, %v1626_v63  ;;  %v5390_v39 = vadd.f32 %v5389_v36, %v5388_v43  ;;  %v13471_v63 = vld [vmem:[#allocation15_spill] sm:$0xff]  ;;  %v13473_v36 = vperm.slane %v10293_v34, 2 }
 0x409   :  { %13465 = vst [vmem:[#allocation72_spill] sm:$0xff] %v10527_v54  ;;  %v10529_v42 = vld.sshfl [vmem:[#allocation1 + $0x28] sm:$0xff pattern:$0x73625140]  ;;  %v5393_v41 = vsel %vm1768_vm0, %v13471_v63, 0.0  ;;  %v2205_v21 = vsel %vm1772_vm2, %v2203_v47, %v2204_v14  ;;  %v5395_v63 = vsel %vm1768_vm0, %v9141_v56, 0.0 }
 0x40a   :  { %13466 = vst [vmem:[#allocation73_spill] sm:$0xff] %v10529_v42  ;;  %v10531_v4 = vld.sshfl [vmem:[#allocation1 + $0x30] sm:$0xff pattern:$0x73625140]  ;;  %v1631_v43 = vrot.slane %v13473_v36, 4  ;;  %v1632_v0 = vrot.slane %v13474_v8, 2 }
 0x40b   :  { %13467 = vst [vmem:[#allocation74_spill] sm:$0xff] %v10531_v4  ;;  %v10534_v3 = vld.sshfl [vmem:[#allocation1 + $0x38] sm:$0xff pattern:$0x73625140]  ;;  %v1633_v11 = vrot.slane %v13475_v20, 6  ;;  %v13476_v14 = vperm.slane %v10293_v34, 6 }
 0x40c   :  { %13468 = vst [vmem:[#allocation172_spill] sm:$0xff] %v10534_v3  ;;  %v2206_v3 = vsel %vm1768_vm0, %v13470_v5, %v1627_v59  ;;  %v5392_v59 = vadd.f32 %v5391_v22, %v5390_v39  ;;  %v185_v5 = vld [vmem:[#allocation2 + $0x488] sm:$0xff]  ;;  %v13477_v39 = vperm.slane %v10293_v34, 7  ;;  %v13478_v36 = vld [vmem:[#allocation26_spill] sm:$0xff] }
 0x40d   :  { %3634 = vst [vmem:[#allocation1] ss:$4 sm:$0xff] %v2681_v55  ;;  %v2207_v55 = vsel %vm1770_vm1, %v1628_v40, %v1629_v28  ;;  %v13472_v40 = vperm.slane %v10293_v34, 1  ;;  %v1634_v47 = vrot.slane %v13476_v14, 4  ;;  %v10575_v4 = vld [vmem:[#allocation5 + $0x268] sm:$0xff] }
 0x40e   :  { %3635 = vst [vmem:[#allocation1 + $0x20] ss:$4 sm:$0xff] %v2682_v9  ;;  %v184_v9 = vld [vmem:[#allocation2 + $0x480] sm:$0xff]  ;;  %v2208_v30 = vsel %vm1772_vm2, %v2206_v3, %v2207_v55  ;;  %v5394_v22 = vadd.f32 %v5393_v41, %v5392_v59  ;;  %v5397_v3 = vsel %vm1768_vm0, %v13478_v36, 0.0  ;;  %v13479_v55 = vld [vmem:[#allocation44_spill] sm:$0xff] }
 0x40f   :  { %v1630_v28 = vrot.slane %v13472_v40, 6  ;;  %v1635_v40 = vrot.slane %v13477_v39, 2  ;;  %v2683_v31 = vmul.f32 %v2205_v21, %v184_v9  ;;  %v5399_v56 = vsel %vm1768_vm0, %v13479_v55, 0.0 }
 0x410   :  { %v2684_v8 = vmul.f32 %v2208_v30, %v185_v5  ;;  %v5396_v41 = vadd.f32 %v5395_v63, %v5394_v22  ;;  %v13486_v30 = vld [vmem:[#allocation114_spill] sm:$0xff]  ;;  %v2210_v22 = vsel %vm1770_vm1, %v1631_v43, %v1632_v0 }
 0x411   :  { %v5401_v5 = vsel %vm1768_vm0, %v13486_v30, 0.0  ;;  %v5403_v30 = vsel %vm1768_vm0, %v9191_v49, 0.0  ;;  %v13490_v49 = vperm.slane %v10363_v38, 2 }
 0x412   :  { %v5398_v39 = vadd.f32 %v5397_v3, %v5396_v41  ;;  %v13488_v3 = vperm.slane %v10293_v34, 4 }
 0x414   :  { %v10577_v42 = vld.sshfl [vmem:[#allocation1] sm:$0xff pattern:$0x73625140]  ;;  %v10579_v20 = vld.sshfl [vmem:[#allocation1 + $0x8] sm:$0xff pattern:$0x73625140]  ;;  %v2212_v41 = vsel %vm1768_vm0, %v13488_v3, %v1633_v11 }
 0x415   :  { %v10581_v54 = vld.sshfl [vmem:[#allocation1 + $0x10] sm:$0xff pattern:$0x73625140]  ;;  %v10583_v59 = vld.sshfl [vmem:[#allocation1 + $0x18] sm:$0xff pattern:$0x73625140] }
 0x416   :  { %13480 = vst [vmem:[#allocation15_spill] sm:$0xff] %v10581_v54  ;;  %v10585_v14 = vld.sshfl [vmem:[#allocation1 + $0x20] sm:$0xff pattern:$0x73625140]  ;;  %v13487_v54 = vperm.slane %v10293_v34, 0 }
 0x417   :  { %13481 = vst [vmem:[#allocation26_spill] sm:$0xff] %v10583_v59  ;;  %v10587_v9 = vld.sshfl [vmem:[#allocation1 + $0x28] sm:$0xff pattern:$0x73625140] }
 0x418   :  { %13482 = vst [vmem:[#allocation44_spill] sm:$0xff] %v10585_v14  ;;  %v10589_v21 = vld.sshfl [vmem:[#allocation1 + $0x30] sm:$0xff pattern:$0x73625140]  ;;  %v2209_v63 = vsel %vm1768_vm0, %v13487_v54, %v1630_v28  ;;  %v5400_v14 = vadd.f32 %v5399_v56, %v5398_v39  ;;  %v186_v28 = vld [vmem:[#allocation2 + $0x490] sm:$0xff]  ;;  %v13489_v56 = vperm.slane %v10363_v38, 1 }
 0x419   :  { %13483 = vst [vmem:[#allocation173_spill] sm:$0xff] %v10587_v9  ;;  %v10591_v36 = vld.sshfl [vmem:[#allocation1 + $0x38] sm:$0xff pattern:$0x73625140]  ;;  %v2211_v11 = vsel %vm1772_vm2, %v2209_v63, %v2210_v22  ;;  %v13491_v39 = vperm.slane %v10363_v38, 3  ;;  %v13492_v54 = vperm.slane %v10363_v38, 5 }
 0x41a   :  { %13484 = vst [vmem:[#allocation174_spill] sm:$0xff] %v10589_v21  ;;  %v5402_v0 = vadd.f32 %v5401_v5, %v5400_v14  ;;  %v1636_v34 = vrot.slane %v13489_v56, 6  ;;  %v13493_v56 = vperm.slane %v10363_v38, 6  ;;  %v13494_v63 = vperm.slane %v10363_v38, 7  ;;  %v13496_v21 = vld [vmem:[#allocation75_spill] sm:$0xff] }
 0x41b   :  { %13485 = vst [vmem:[#allocation175_spill] sm:$0xff] %v10591_v36  ;;  %v1638_v3 = vrot.slane %v13491_v39, 2  ;;  %v1639_v43 = vrot.slane %v13492_v54, 6  ;;  %v2685_v9 = vmul.f32 %v2211_v11, %v186_v28  ;;  %v5409_v39 = vsel %vm1768_vm0, %v13496_v21, 0.0  ;;  %v13497_v59 = vld [vmem:[#allocation115_spill] sm:$0xff] }
 0x41c   :  { %3644 = vst [vmem:[#allocation1] ss:$4 sm:$0xff] %v2683_v31  ;;  %v2213_v31 = vsel %vm1770_vm1, %v1634_v47, %v1635_v40  ;;  %v5405_v47 = vsel %vm1768_vm0, %v9193_v53, 0.0  ;;  %v187_v40 = vld [vmem:[#allocation2 + $0x498] sm:$0xff]  ;;  %v5404_v5 = vadd.f32 %v5403_v30, %v5402_v0  ;;  %v1640_v36 = vrot.slane %v13493_v56, 4  ;;  %v10639_v56 = vld [vmem:[#allocation5 + $0x270] sm:$0xff] }
 0x41d   :  { %3645 = vst [vmem:[#allocation1 + $0x20] ss:$4 sm:$0xff] %v2684_v8  ;;  %v1637_v8 = vrot.slane %v13490_v49, 4  ;;  %v2214_v14 = vsel %vm1772_vm2, %v2212_v41, %v2213_v31  ;;  %v1641_v22 = vrot.slane %v13494_v63, 2  ;;  %v13495_v53 = vld [vmem:[#allocation45_spill] sm:$0xff]  ;;  %v5411_v41 = vsel %vm1768_vm0, %v13497_v59, 0.0 }
 0x41e   :  { %v5407_v55 = vsel %vm1768_vm0, %v13495_v53, 0.0  ;;  %v5406_v49 = vadd.f32 %v5405_v47, %v5404_v5  ;;  %v2686_v31 = vmul.f32 %v2214_v14, %v187_v40  ;;  %v13505_v5 = vperm.slane %v10363_v38, 0 }
 0x41f   :  { %v13507_v59 = vperm.slane %v10363_v38, 4  ;;  %v13512_v14 = vperm.slane %v10420_v62, 3 }
 0x420   :  { %v5408_v28 = vadd.f32 %v5407_v55, %v5406_v49  ;;  %v13506_v55 = vld [vmem:[#allocation116_spill] sm:$0xff] }
 0x421   :  { %v5413_v49 = vsel %vm1768_vm0, %v13506_v55, 0.0  ;;  %v13513_v55 = vperm.slane %v10420_v62, 5 }
 0x422   :  { %v5410_v40 = vadd.f32 %v5409_v39, %v5408_v28 }
 0x423   :  { %v10633_v30 = vld.sshfl [vmem:[#allocation1] sm:$0xff pattern:$0x73625140]  ;;  %v10635_v54 = vld.sshfl [vmem:[#allocation1 + $0x8] sm:$0xff pattern:$0x73625140] }
 0x424   :  { %13498 = vst [vmem:[#allocation114_spill] sm:$0xff] %v10635_v54  ;;  %v10637_v0 = vld.sshfl [vmem:[#allocation1 + $0x10] sm:$0xff pattern:$0x73625140]  ;;  %v5412_v39 = vadd.f32 %v5411_v41, %v5410_v40  ;;  %v13510_v41 = vperm.slane %v10420_v62, 2  ;;  %v1645_v28 = vrot.slane %v13513_v55, 6 }
 0x425   :  { %13499 = vst [vmem:[#allocation45_spill] sm:$0xff] %v10637_v0  ;;  %v10641_v63 = vld.sshfl [vmem:[#allocation1 + $0x18] sm:$0xff pattern:$0x73625140]  ;;  %v2215_v0 = vsel %vm1768_vm0, %v13505_v5, %v1636_v34  ;;  %v13511_v34 = vld [vmem:[#allocation118_spill] sm:$0xff]  ;;  %v1644_v5 = vrot.slane %v13512_v14, 2 }
 0x426   :  { %13500 = vst [vmem:[#allocation75_spill] sm:$0xff] %v10641_v63  ;;  %v10643_v53 = vld.sshfl [vmem:[#allocation1 + $0x20] sm:$0xff pattern:$0x73625140]  ;;  %v2216_v63 = vsel %vm1770_vm1, %v1637_v8, %v1638_v3  ;;  %v1643_v40 = vrot.slane %v13510_v41, 4 }
 0x427   :  { %13501 = vst [vmem:[#allocation115_spill] sm:$0xff] %v10643_v53  ;;  %v10645_v11 = vld.sshfl [vmem:[#allocation1 + $0x28] sm:$0xff pattern:$0x73625140]  ;;  %v13508_v8 = vld [vmem:[#allocation117_spill] sm:$0xff]  ;;  %v2217_v38 = vsel %vm1772_vm2, %v2215_v0, %v2216_v63  ;;  %v13514_v0 = vperm.slane %v10420_v62, 6 }
 0x428   :  { %13502 = vst [vmem:[#allocation176_spill] sm:$0xff] %v10645_v11  ;;  %v10647_v21 = vld.sshfl [vmem:[#allocation1 + $0x30] sm:$0xff pattern:$0x73625140]  ;;  %v5415_v3 = vsel %vm1768_vm0, %v13508_v8, 0.0  ;;  %v5417_v8 = vsel %vm1768_vm0, %v13511_v34, 0.0 }
 0x429   :  { %13503 = vst [vmem:[#allocation177_spill] sm:$0xff] %v10647_v21  ;;  %v10650_v47 = vld.sshfl [vmem:[#allocation1 + $0x38] sm:$0xff pattern:$0x73625140]  ;;  %v1646_v63 = vrot.slane %v13514_v0, 4  ;;  %v10697_v0 = vld [vmem:[#allocation5 + $0x278] sm:$0xff] }
 0x42a   :  { %13504 = vst [vmem:[#allocation178_spill] sm:$0xff] %v10650_v47  ;;  %v2218_v47 = vsel %vm1768_vm0, %v13507_v59, %v1639_v43  ;;  %v5414_v43 = vadd.f32 %v5413_v49, %v5412_v39  ;;  %v189_v59 = vld [vmem:[#allocation2 + $0x4a8] sm:$0xff]  ;;  %v13515_v39 = vperm.slane %v10420_v62, 7 }
 0x42b   :  { %3654 = vst [vmem:[#allocation1] ss:$4 sm:$0xff] %v2685_v9  ;;  %v2219_v9 = vsel %vm1770_vm1, %v1640_v36, %v1641_v22  ;;  %v13509_v36 = vperm.slane %v10420_v62, 1 }
 0x42c   :  { %3655 = vst [vmem:[#allocation1 + $0x20] ss:$4 sm:$0xff] %v2686_v31  ;;  %v188_v31 = vld [vmem:[#allocation2 + $0x4a0] sm:$0xff]  ;;  %v2220_v21 = vsel %vm1772_vm2, %v2218_v47, %v2219_v9  ;;  %v5416_v49 = vadd.f32 %v5415_v3, %v5414_v43  ;;  %v5419_v47 = vsel %vm1768_vm0, %v9247_v24, 0.0 }
 0x42d   :  { %v1642_v22 = vrot.slane %v13509_v36, 6  ;;  %v1647_v36 = vrot.slane %v13515_v39, 2  ;;  %v2687_v11 = vmul.f32 %v2217_v38, %v188_v31  ;;  %v13516_v9 = vld [vmem:[#allocation27_spill] sm:$0xff]  ;;  %v2688_v41 = vmul.f32 %v2220_v21, %v189_v59  ;;  %v13525_v21 = vld [vmem:[#allocation17_spill] sm:$0xff] }
 0x42e   :  { %v5421_v34 = vsel %vm1768_vm0, %v13516_v9, 0.0  ;;  %v5418_v54 = vadd.f32 %v5417_v8, %v5416_v49  ;;  %v5423_v59 = vsel %vm1768_vm0, %v13525_v21, 0.0  ;;  %v13526_v8 = vperm.slane %v10420_v62, 0 }
 0x430   :  { %v5420_v38 = vadd.f32 %v5419_v47, %v5418_v54  ;;  %v2221_v49 = vsel %vm1768_vm0, %v13526_v8, %v1642_v22  ;;  %v13527_v54 = vperm.slane %v10420_v62, 4 }
 0x432   :  { %v10691_v53 = vld.sshfl [vmem:[#allocation1] sm:$0xff pattern:$0x73625140]  ;;  %v10693_v14 = vld.sshfl [vmem:[#allocation1 + $0x8] sm:$0xff pattern:$0x73625140]  ;;  %v2224_v47 = vsel %vm1768_vm0, %v13527_v54, %v1645_v28 }
 0x433   :  { %13517 = vst [vmem:[#allocation116_spill] sm:$0xff] %v10691_v53  ;;  %v10695_v55 = vld.sshfl [vmem:[#allocation1 + $0x10] sm:$0xff pattern:$0x73625140]  ;;  %v13532_v54 = vperm.slane %v10513_v15, 3  ;;  %v13538_v53 = vld [vmem:[#allocation121_spill] sm:$0xff] }
 0x434   :  { %13518 = vst [vmem:[#allocation117_spill] sm:$0xff] %v10693_v14  ;;  %v10699_v3 = vld.sshfl [vmem:[#allocation1 + $0x18] sm:$0xff pattern:$0x73625140] }
 0x435   :  { %13519 = vst [vmem:[#allocation118_spill] sm:$0xff] %v10695_v55  ;;  %v10701_v43 = vld.sshfl [vmem:[#allocation1 + $0x20] sm:$0xff pattern:$0x73625140]  ;;  %v1650_v9 = vrot.slane %v13532_v54, 2  ;;  %v13537_v14 = vld [vmem:[#allocation120_spill] sm:$0xff] }
 0x436   :  { %13520 = vst [vmem:[#allocation27_spill] sm:$0xff] %v10699_v3  ;;  %v10703_v31 = vld.sshfl [vmem:[#allocation1 + $0x28] sm:$0xff pattern:$0x73625140]  ;;  %v2222_v3 = vsel %vm1770_vm1, %v1643_v40, %v1644_v5  ;;  %v190_v40 = vld [vmem:[#allocation2 + $0x4b0] sm:$0xff]  ;;  %v5431_v54 = vsel %vm1768_vm0, %v13537_v14, 0.0 }
 0x437   :  { %13521 = vst [vmem:[#allocation179_spill] sm:$0xff] %v10701_v43  ;;  %v10705_v24 = vld.sshfl [vmem:[#allocation1 + $0x30] sm:$0xff pattern:$0x73625140]  ;;  %v5422_v43 = vadd.f32 %v5421_v34, %v5420_v38  ;;  %v2223_v28 = vsel %vm1772_vm2, %v2221_v49, %v2222_v3  ;;  %v13533_v34 = vperm.slane %v10513_v15, 5  ;;  %v13535_v3 = vperm.slane %v10513_v15, 7 }
 0x438   :  { %13522 = vst [vmem:[#allocation180_spill] sm:$0xff] %v10703_v31  ;;  %v10707_v39 = vld.sshfl [vmem:[#allocation1 + $0x38] sm:$0xff pattern:$0x73625140]  ;;  %v2689_v55 = vmul.f32 %v2223_v28, %v190_v40 }
 0x439   :  { %13523 = vst [vmem:[#allocation181_spill] sm:$0xff] %v10705_v24  ;;  %v5424_v5 = vadd.f32 %v5423_v59, %v5422_v43  ;;  %v13530_v38 = vld [vmem:[#allocation76_spill] sm:$0xff]  ;;  %v1651_v22 = vrot.slane %v13533_v34, 6  ;;  %v1653_v49 = vrot.slane %v13535_v3, 2 }
 0x43a   :  { %13524 = vst [vmem:[#allocation182_spill] sm:$0xff] %v10707_v39  ;;  %v13528_v39 = vld [vmem:[#allocation46_spill] sm:$0xff] }
 0x43b   :  { %3664 = vst [vmem:[#allocation1] ss:$4 sm:$0xff] %v2687_v11  ;;  %v2225_v11 = vsel %vm1770_vm1, %v1646_v63, %v1647_v36  ;;  %v5425_v21 = vsel %vm1768_vm0, %v13528_v39, 0.0  ;;  %v5427_v63 = vsel %vm1768_vm0, %v13530_v38, 0.0  ;;  %v191_v36 = vld [vmem:[#allocation2 + $0x4b8] sm:$0xff]  ;;  %v13531_v39 = vperm.slane %v10513_v15, 2 }
 0x43c   :  { %3665 = vst [vmem:[#allocation1 + $0x20] ss:$4 sm:$0xff] %v2688_v41  ;;  %v13529_v41 = vperm.slane %v10513_v15, 1  ;;  %v2226_v43 = vsel %vm1772_vm2, %v2224_v47, %v2225_v11  ;;  %v5426_v59 = vadd.f32 %v5425_v21, %v5424_v5  ;;  %v13536_v38 = vld [vmem:[#allocation119_spill] sm:$0xff]  ;;  %v5433_v47 = vsel %vm1768_vm0, %v13538_v53, 0.0 }
 0x43d   :  { %v1649_v8 = vrot.slane %v13531_v39, 4  ;;  %v5429_v31 = vsel %vm1768_vm0, %v13536_v38, 0.0  ;;  %v2690_v11 = vmul.f32 %v2226_v43, %v191_v36  ;;  %v13546_v53 = vperm.slane %v10513_v15, 4  ;;  %v13549_v43 = vld [vmem:[#allocation47_spill] sm:$0xff] }
 0x43e   :  { %v1648_v62 = vrot.slane %v13529_v41, 6  ;;  %v13534_v41 = vperm.slane %v10513_v15, 6  ;;  %v5428_v39 = vadd.f32 %v5427_v63, %v5426_v59  ;;  %v13545_v59 = vperm.slane %v10513_v15, 0 }
 0x440   :  { %v1652_v24 = vrot.slane %v13534_v41, 4  ;;  %v10755_v41 = vld [vmem:[#allocation5 + $0x280] sm:$0xff]  ;;  %v5430_v40 = vadd.f32 %v5429_v31, %v5428_v39  ;;  %v5435_v31 = vsel %vm1768_vm0, %v9305_v12, 0.0 }
 0x442   :  { %v10749_v21 = vld.sshfl [vmem:[#allocation1] sm:$0xff pattern:$0x73625140]  ;;  %v10751_v5 = vld.sshfl [vmem:[#allocation1 + $0x8] sm:$0xff pattern:$0x73625140]  ;;  %v5432_v36 = vadd.f32 %v5431_v54, %v5430_v40 }
 0x443   :  { %v10753_v34 = vld.sshfl [vmem:[#allocation1 + $0x10] sm:$0xff pattern:$0x73625140]  ;;  %v10757_v3 = vld.sshfl [vmem:[#allocation1 + $0x18] sm:$0xff pattern:$0x73625140] }
 0x444   :  { %13539 = vst [vmem:[#allocation17_spill] sm:$0xff] %v10753_v34  ;;  %v10759_v38 = vld.sshfl [vmem:[#allocation1 + $0x20] sm:$0xff pattern:$0x73625140]  ;;  %v2227_v34 = vsel %vm1768_vm0, %v13545_v59, %v1648_v62  ;;  %v5434_v54 = vadd.f32 %v5433_v47, %v5432_v36  ;;  %v13548_v47 = vperm.slane %v10575_v4, 2  ;;  %v13550_v62 = vperm.slane %v10575_v4, 3 }
 0x445   :  { %13540 = vst [vmem:[#allocation46_spill] sm:$0xff] %v10757_v3  ;;  %v10761_v28 = vld.sshfl [vmem:[#allocation1 + $0x28] sm:$0xff pattern:$0x73625140]  ;;  %v2228_v3 = vsel %vm1770_vm1, %v1649_v8, %v1650_v9  ;;  %v5437_v9 = vsel %vm1768_vm0, %v9307_v60, 0.0  ;;  %v5439_v60 = vsel %vm1768_vm0, %v13549_v43, 0.0 }
 0x446   :  { %13541 = vst [vmem:[#allocation76_spill] sm:$0xff] %v10759_v38  ;;  %v10763_v14 = vld.sshfl [vmem:[#allocation1 + $0x30] sm:$0xff pattern:$0x73625140]  ;;  %v192_v8 = vld [vmem:[#allocation2 + $0x4c0] sm:$0xff]  ;;  %v2229_v15 = vsel %vm1772_vm2, %v2227_v34, %v2228_v3  ;;  %v1655_v36 = vrot.slane %v13548_v47, 4 }
 0x447   :  { %13542 = vst [vmem:[#allocation119_spill] sm:$0xff] %v10761_v28  ;;  %v10766_v63 = vld.sshfl [vmem:[#allocation1 + $0x38] sm:$0xff pattern:$0x73625140]  ;;  %v1656_v12 = vrot.slane %v13550_v62, 2  ;;  %v13552_v34 = vperm.slane %v10575_v4, 6  ;;  %v2691_v39 = vmul.f32 %v2229_v15, %v192_v8 }
 0x448   :  { %13543 = vst [vmem:[#allocation120_spill] sm:$0xff] %v10763_v14  ;;  %v13554_v47 = vld [vmem:[#allocation48_spill] sm:$0xff] }
 0x449   :  { %13544 = vst [vmem:[#allocation121_spill] sm:$0xff] %v10766_v63  ;;  %v2230_v63 = vsel %vm1768_vm0, %v13546_v53, %v1651_v22  ;;  %v5436_v22 = vadd.f32 %v5435_v31, %v5434_v54  ;;  %v193_v53 = vld [vmem:[#allocation2 + $0x4c8] sm:$0xff]  ;;  %v1658_v3 = vrot.slane %v13552_v34, 4  ;;  %v13553_v54 = vperm.slane %v10575_v4, 7 }
 0x44a   :  { %3674 = vst [vmem:[#allocation1] ss:$4 sm:$0xff] %v2689_v55  ;;  %v2231_v55 = vsel %vm1770_vm1, %v1652_v24, %v1653_v49  ;;  %v13547_v24 = vperm.slane %v10575_v4, 1 }
 0x44b   :  { %3675 = vst [vmem:[#allocation1 + $0x20] ss:$4 sm:$0xff] %v2690_v11  ;;  %v2232_v59 = vsel %vm1772_vm2, %v2230_v63, %v2231_v55  ;;  %v13551_v11 = vperm.slane %v10575_v4, 5  ;;  %v5438_v31 = vadd.f32 %v5437_v9, %v5436_v22  ;;  %v5441_v63 = vsel %vm1768_vm0, %v13554_v47, 0.0  ;;  %v13555_v55 = vld [vmem:[#allocation77_spill] sm:$0xff]  ;;  %v10825_v47 = vld [vmem:[#allocation5 + $0x288] sm:$0xff] }
 0x44c   :  { %v1654_v49 = vrot.slane %v13547_v24, 6  ;;  %v1659_v24 = vrot.slane %v13553_v54, 2  ;;  %v5443_v43 = vsel %vm1768_vm0, %v13555_v55, 0.0  ;;  %v2692_v14 = vmul.f32 %v2232_v59, %v193_v53  ;;  %v13563_v53 = vld [vmem:[#allocation78_spill] sm:$0xff] }
 0x44d   :  { %v1657_v40 = vrot.slane %v13551_v11, 6  ;;  %v5440_v38 = vadd.f32 %v5439_v60, %v5438_v31  ;;  %v5445_v59 = vsel %vm1768_vm0, %v13563_v53, 0.0  ;;  %v13564_v60 = vperm.slane %v10575_v4, 0 }
 0x44e   :  { %v2237_v53 = vsel %vm1770_vm1, %v1658_v3, %v1659_v24  ;;  %v195_v24 = vld [vmem:[#allocation2 + $0x4d8] sm:$0xff] }
 0x44f   :  { %v5442_v15 = vadd.f32 %v5441_v63, %v5440_v38  ;;  %v2233_v31 = vsel %vm1768_vm0, %v13564_v60, %v1654_v49  ;;  %v13565_v63 = vperm.slane %v10575_v4, 4  ;;  %v13571_v49 = vperm.slane %v10639_v56, 5 }
 0x451   :  { %v10807_v28 = vld.sshfl [vmem:[#allocation1] sm:$0xff pattern:$0x73625140]  ;;  %v10809_v62 = vld.sshfl [vmem:[#allocation1 + $0x8] sm:$0xff pattern:$0x73625140] }
 0x452   :  { %13556 = vst [vmem:[#allocation47_spill] sm:$0xff] %v10809_v62  ;;  %v10811_v11 = vld.sshfl [vmem:[#allocation1 + $0x10] sm:$0xff pattern:$0x73625140] }
 0x453   :  { %13557 = vst [vmem:[#allocation48_spill] sm:$0xff] %v10811_v11  ;;  %v10813_v34 = vld.sshfl [vmem:[#allocation1 + $0x18] sm:$0xff pattern:$0x73625140]  ;;  %v13574_v11 = vld [vmem:[#allocation79_spill] sm:$0xff] }
 0x454   :  { %13558 = vst [vmem:[#allocation77_spill] sm:$0xff] %v10813_v34  ;;  %v10815_v9 = vld.sshfl [vmem:[#allocation1 + $0x20] sm:$0xff pattern:$0x73625140]  ;;  %v13575_v62 = vld [vmem:[#allocation80_spill] sm:$0xff] }
 0x455   :  { %13559 = vst [vmem:[#allocation183_spill] sm:$0xff] %v10815_v9  ;;  %v10817_v22 = vld.sshfl [vmem:[#allocation1 + $0x28] sm:$0xff pattern:$0x73625140]  ;;  %v2234_v9 = vsel %vm1770_vm1, %v1655_v36, %v1656_v12  ;;  %v1663_v36 = vrot.slane %v13571_v49, 6 }
 0x456   :  { %13560 = vst [vmem:[#allocation184_spill] sm:$0xff] %v10817_v22  ;;  %v10819_v8 = vld.sshfl [vmem:[#allocation1 + $0x30] sm:$0xff pattern:$0x73625140]  ;;  %v5444_v22 = vadd.f32 %v5443_v43, %v5442_v15  ;;  %v13567_v43 = vperm.slane %v10639_v56, 1 }
 0x457   :  { %13561 = vst [vmem:[#allocation185_spill] sm:$0xff] %v10819_v8  ;;  %v10821_v54 = vld.sshfl [vmem:[#allocation1 + $0x38] sm:$0xff pattern:$0x73625140]  ;;  %v13568_v15 = vld [vmem:[#allocation123_spill] sm:$0xff] }
 0x458   :  { %13562 = vst [vmem:[#allocation186_spill] sm:$0xff] %v10821_v54  ;;  %v13566_v54 = vld [vmem:[#allocation122_spill] sm:$0xff]  ;;  %v5446_v12 = vadd.f32 %v5445_v59, %v5444_v22  ;;  %v1660_v4 = vrot.slane %v13567_v43, 6  ;;  %v5449_v3 = vsel %vm1768_vm0, %v13568_v15, 0.0  ;;  %v13572_v43 = vperm.slane %v10639_v56, 6 }
 0x459   :  { %3684 = vst [vmem:[#allocation1] ss:$4 sm:$0xff] %v2691_v39  ;;  %v2236_v39 = vsel %vm1768_vm0, %v13565_v63, %v1657_v40  ;;  %v5447_v8 = vsel %vm1768_vm0, %v13566_v54, 0.0  ;;  %v2235_v40 = vsel %vm1772_vm2, %v2233_v31, %v2234_v9  ;;  %v13569_v54 = vperm.slane %v10639_v56, 2 }
 0x45a   :  { %3685 = vst [vmem:[#allocation1 + $0x20] ss:$4 sm:$0xff] %v2692_v14  ;;  %v194_v14 = vld [vmem:[#allocation2 + $0x4d0] sm:$0xff]  ;;  %v13570_v63 = vperm.slane %v10639_v56, 3  ;;  %v2238_v22 = vsel %vm1772_vm2, %v2236_v39, %v2237_v53  ;;  %v5448_v59 = vadd.f32 %v5447_v8, %v5446_v12  ;;  %v1664_v55 = vrot.slane %v13572_v43, 4 }
 0x45b   :  { %v1661_v60 = vrot.slane %v13569_v54, 4  ;;  %v13573_v9 = vperm.slane %v10639_v56, 7  ;;  %v5451_v15 = vsel %vm1768_vm0, %v9363_v7, 0.0  ;;  %v2693_v38 = vmul.f32 %v2235_v40, %v194_v14 }
 0x45c   :  { %v1662_v34 = vrot.slane %v13570_v63, 2  ;;  %v5450_v54 = vadd.f32 %v5449_v3, %v5448_v59  ;;  %v5453_v63 = vsel %vm1768_vm0, %v13574_v11, 0.0  ;;  %v5455_v8 = vsel %vm1768_vm0, %v13575_v62, 0.0 }
 0x45d   :  { %v1665_v31 = vrot.slane %v13573_v9, 2  ;;  %v2694_v39 = vmul.f32 %v2238_v22, %v195_v24  ;;  %v10882_v24 = vld [vmem:[#allocation5 + $0x290] sm:$0xff]  ;;  %v13584_v59 = vperm.slane %v10639_v56, 0 }
 0x45e   :  { %v5452_v7 = vadd.f32 %v5451_v15, %v5450_v54  ;;  %v2240_v15 = vsel %vm1770_vm1, %v1661_v60, %v1662_v34  ;;  %v13585_v54 = vld [vmem:[#allocation19_spill] sm:$0xff]  ;;  %v13587_v34 = vld [vmem:[#allocation29_spill] sm:$0xff] }
 0x45f   :  { %v5459_v60 = vsel %vm1768_vm0, %v13587_v34, 0.0 }
 0x460   :  { %v10865_v53 = vld.sshfl [vmem:[#allocation1] sm:$0xff pattern:$0x73625140]  ;;  %v10867_v49 = vld.sshfl [vmem:[#allocation1 + $0x8] sm:$0xff pattern:$0x73625140]  ;;  %v5454_v62 = vadd.f32 %v5453_v63, %v5452_v7  ;;  %v2243_v63 = vsel %vm1770_vm1, %v1664_v55, %v1665_v31 }
 0x461   :  { %13576 = vst [vmem:[#allocation78_spill] sm:$0xff] %v10865_v53  ;;  %v10869_v12 = vld.sshfl [vmem:[#allocation1 + $0x10] sm:$0xff pattern:$0x73625140]  ;;  %v13588_v55 = vperm.slane %v10697_v0, 1 }
 0x462   :  { %13577 = vst [vmem:[#allocation122_spill] sm:$0xff] %v10867_v49  ;;  %v10871_v43 = vld.sshfl [vmem:[#allocation1 + $0x18] sm:$0xff pattern:$0x73625140]  ;;  %v5456_v7 = vadd.f32 %v5455_v8, %v5454_v62  ;;  %v13589_v8 = vperm.slane %v10697_v0, 2 }
 0x463   :  { %13578 = vst [vmem:[#allocation123_spill] sm:$0xff] %v10869_v12  ;;  %v10873_v9 = vld.sshfl [vmem:[#allocation1 + $0x20] sm:$0xff pattern:$0x73625140]  ;;  %v1666_v31 = vrot.slane %v13588_v55, 6 }
 0x464   :  { %13579 = vst [vmem:[#allocation79_spill] sm:$0xff] %v10871_v43  ;;  %v10875_v14 = vld.sshfl [vmem:[#allocation1 + $0x28] sm:$0xff pattern:$0x73625140]  ;;  %v2239_v43 = vsel %vm1768_vm0, %v13584_v59, %v1660_v4  ;;  %v1667_v62 = vrot.slane %v13589_v8, 4  ;;  %v13590_v4 = vld [vmem:[#allocation124_spill] sm:$0xff] }
 0x465   :  { %13580 = vst [vmem:[#allocation80_spill] sm:$0xff] %v10873_v9  ;;  %v10877_v40 = vld.sshfl [vmem:[#allocation1 + $0x30] sm:$0xff pattern:$0x73625140]  ;;  %v5461_v34 = vsel %vm1768_vm0, %v13590_v4, 0.0  ;;  %v13595_v8 = vld [vmem:[#allocation125_spill] sm:$0xff] }
 0x466   :  { %13581 = vst [vmem:[#allocation187_spill] sm:$0xff] %v10875_v14  ;;  %v10880_v3 = vld.sshfl [vmem:[#allocation1 + $0x38] sm:$0xff pattern:$0x73625140]  ;;  %v13591_v14 = vperm.slane %v10697_v0, 3 }
 0x467   :  { %13582 = vst [vmem:[#allocation188_spill] sm:$0xff] %v10877_v40  ;;  %v5457_v40 = vsel %vm1768_vm0, %v13585_v54, 0.0  ;;  %v13592_v54 = vperm.slane %v10697_v0, 5 }
 0x468   :  { %13583 = vst [vmem:[#allocation189_spill] sm:$0xff] %v10880_v3  ;;  %v13586_v3 = vperm.slane %v10639_v56, 4  ;;  %v2241_v56 = vsel %vm1772_vm2, %v2239_v43, %v2240_v15  ;;  %v1668_v59 = vrot.slane %v13591_v14, 2  ;;  %v13593_v43 = vperm.slane %v10697_v0, 6 }
 0x469   :  { %3694 = vst [vmem:[#allocation1] ss:$4 sm:$0xff] %v2693_v38  ;;  %v1669_v22 = vrot.slane %v13592_v54, 6 }
 0x46a   :  { %3695 = vst [vmem:[#allocation1 + $0x20] ss:$4 sm:$0xff] %v2694_v39  ;;  %v2242_v38 = vsel %vm1768_vm0, %v13586_v3, %v1663_v36  ;;  %v196_v39 = vld [vmem:[#allocation2 + $0x4e0] sm:$0xff]  ;;  %v5458_v36 = vadd.f32 %v5457_v40, %v5456_v7  ;;  %v197_v3 = vld [vmem:[#allocation2 + $0x4e8] sm:$0xff]  ;;  %v1670_v40 = vrot.slane %v13593_v43, 4  ;;  %v13594_v7 = vperm.slane %v10697_v0, 7 }
 0x46b   :  { %v2244_v11 = vsel %vm1772_vm2, %v2242_v38, %v2243_v63  ;;  %v2695_v9 = vmul.f32 %v2241_v56, %v196_v39  ;;  %v5463_v38 = vsel %vm1768_vm0, %v13595_v8, 0.0  ;;  %v13596_v63 = vld [vmem:[#allocation126_spill] sm:$0xff]  ;;  %v13604_v8 = vperm.slane %v10697_v0, 0 }
 0x46c   :  { %v5460_v15 = vadd.f32 %v5459_v60, %v5458_v36  ;;  %v1671_v55 = vrot.slane %v13594_v7, 2  ;;  %v5465_v4 = vsel %vm1768_vm0, %v13596_v63, 0.0  ;;  %v2696_v12 = vmul.f32 %v2244_v11, %v197_v3 }
 0x46d   :  { %v5467_v11 = vsel %vm1768_vm0, %v9421_v17, 0.0 }
 0x46e   :  { %v5462_v53 = vadd.f32 %v5461_v34, %v5460_v15  ;;  %v2245_v34 = vsel %vm1768_vm0, %v13604_v8, %v1666_v31  ;;  %v2246_v15 = vsel %vm1770_vm1, %v1667_v62, %v1668_v59  ;;  %v13611_v62 = vperm.slane %v10755_v41, 5 }
 0x470   :  { %v10923_v49 = vld.sshfl [vmem:[#allocation1] sm:$0xff pattern:$0x73625140]  ;;  %v10925_v14 = vld.sshfl [vmem:[#allocation1 + $0x8] sm:$0xff pattern:$0x73625140]  ;;  %v5464_v56 = vadd.f32 %v5463_v38, %v5462_v53 }
 0x471   :  { %13597 = vst [vmem:[#allocation19_spill] sm:$0xff] %v10925_v14  ;;  %v10927_v54 = vld.sshfl [vmem:[#allocation1 + $0x10] sm:$0xff pattern:$0x73625140]  ;;  %v13605_v53 = vperm.slane %v10697_v0, 4  ;;  %v1675_v31 = vrot.slane %v13611_v62, 6 }
 0x472   :  { %13598 = vst [vmem:[#allocation29_spill] sm:$0xff] %v10927_v54  ;;  %v10929_v43 = vld.sshfl [vmem:[#allocation1 + $0x18] sm:$0xff pattern:$0x73625140]  ;;  %v5466_v63 = vadd.f32 %v5465_v4, %v5464_v56  ;;  %v13607_v4 = vperm.slane %v10755_v41, 1  ;;  %v13608_v56 = vld [vmem:[#allocation50_spill] sm:$0xff] }
 0x473   :  { %13599 = vst [vmem:[#allocation124_spill] sm:$0xff] %v10929_v43  ;;  %v10931_v60 = vld.sshfl [vmem:[#allocation1 + $0x20] sm:$0xff pattern:$0x73625140]  ;;  %v2248_v38 = vsel %vm1768_vm0, %v13605_v53, %v1669_v22  ;;  %v2247_v22 = vsel %vm1772_vm2, %v2245_v34, %v2246_v15  ;;  %v13610_v53 = vperm.slane %v10755_v41, 3  ;;  %v13613_v34 = vperm.slane %v10755_v41, 7 }
 0x474   :  { %13600 = vst [vmem:[#allocation125_spill] sm:$0xff] %v10931_v60  ;;  %v10933_v36 = vld.sshfl [vmem:[#allocation1 + $0x28] sm:$0xff pattern:$0x73625140]  ;;  %v5468_v59 = vadd.f32 %v5467_v11, %v5466_v63  ;;  %v1672_v0 = vrot.slane %v13607_v4, 6  ;;  %v13612_v4 = vperm.slane %v10755_v41, 6 }
 0x475   :  { %13601 = vst [vmem:[#allocation126_spill] sm:$0xff] %v10933_v36  ;;  %v10935_v39 = vld.sshfl [vmem:[#allocation1 + $0x30] sm:$0xff pattern:$0x73625140]  ;;  %v1674_v3 = vrot.slane %v13610_v53, 2  ;;  %v1677_v15 = vrot.slane %v13613_v34, 2 }
 0x476   :  { %13602 = vst [vmem:[#allocation190_spill] sm:$0xff] %v10935_v39  ;;  %v10937_v7 = vld.sshfl [vmem:[#allocation1 + $0x38] sm:$0xff pattern:$0x73625140]  ;;  %v1676_v39 = vrot.slane %v13612_v4, 4  ;;  %v10975_v60 = vld [vmem:[#allocation5 + $0x298] sm:$0xff] }
 0x477   :  { %13603 = vst [vmem:[#allocation191_spill] sm:$0xff] %v10937_v7  ;;  %v13606_v7 = vld [vmem:[#allocation49_spill] sm:$0xff]  ;;  %v13615_v53 = vld [vmem:[#allocation82_spill] sm:$0xff] }
 0x478   :  { %3704 = vst [vmem:[#allocation1] ss:$4 sm:$0xff] %v2695_v9  ;;  %v2249_v9 = vsel %vm1770_vm1, %v1670_v40, %v1671_v55  ;;  %v5469_v17 = vsel %vm1768_vm0, %v13606_v7, 0.0  ;;  %v5471_v40 = vsel %vm1768_vm0, %v13608_v56, 0.0  ;;  %v199_v55 = vld [vmem:[#allocation2 + $0x4f8] sm:$0xff]  ;;  %v13609_v7 = vperm.slane %v10755_v41, 2 }
 0x479   :  { %3705 = vst [vmem:[#allocation1 + $0x20] ss:$4 sm:$0xff] %v2696_v12  ;;  %v198_v12 = vld [vmem:[#allocation2 + $0x4f0] sm:$0xff]  ;;  %v2250_v11 = vsel %vm1772_vm2, %v2248_v38, %v2249_v9  ;;  %v5470_v63 = vadd.f32 %v5469_v17, %v5468_v59  ;;  %v5475_v38 = vsel %vm1768_vm0, %v13615_v53, 0.0  ;;  %v13616_v9 = vld [vmem:[#allocation127_spill] sm:$0xff]  ;;  %v13623_v53 = vperm.slane %v10755_v41, 0 }
 0x47a   :  { %v1673_v8 = vrot.slane %v13609_v7, 4  ;;  %v13614_v56 = vld [vmem:[#allocation81_spill] sm:$0xff]  ;;  %v2697_v7 = vmul.f32 %v2247_v22, %v198_v12  ;;  %v5477_v17 = vsel %vm1768_vm0, %v13616_v9, 0.0  ;;  %v2698_v59 = vmul.f32 %v2250_v11, %v199_v55 }
 0x47b   :  { %v5473_v36 = vsel %vm1768_vm0, %v13614_v56, 0.0  ;;  %v5472_v43 = vadd.f32 %v5471_v40, %v5470_v63  ;;  %v2251_v9 = vsel %vm1768_vm0, %v13623_v53, %v1672_v0  ;;  %v13625_v40 = vperm.slane %v10755_v41, 4 }
 0x47c   :  { %v13629_v0 = vperm.slane %v10825_v47, 3 }
 0x47d   :  { %v5474_v14 = vadd.f32 %v5473_v36, %v5472_v43  ;;  %v13624_v43 = vld [vmem:[#allocation128_spill] sm:$0xff] }
 0x47e   :  { %v5479_v36 = vsel %vm1768_vm0, %v13624_v43, 0.0  ;;  %v1680_v53 = vrot.slane %v13629_v0, 2  ;;  %v13630_v43 = vperm.slane %v10825_v47, 5 }
 0x47f   :  { %v10981_v62 = vld.sshfl [vmem:[#allocation1] sm:$0xff pattern:$0x73625140]  ;;  %v10983_v4 = vld.sshfl [vmem:[#allocation1 + $0x8] sm:$0xff pattern:$0x73625140]  ;;  %v5476_v55 = vadd.f32 %v5475_v38, %v5474_v14  ;;  %v2255_v14 = vsel %vm1770_vm1, %v1676_v39, %v1677_v15 }
 0x480   :  { %v10985_v54 = vld.sshfl [vmem:[#allocation1 + $0x10] sm:$0xff pattern:$0x73625140]  ;;  %v10987_v34 = vld.sshfl [vmem:[#allocation1 + $0x18] sm:$0xff pattern:$0x73625140] }
 0x481   :  { %13617 = vst [vmem:[#allocation49_spill] sm:$0xff] %v10985_v54  ;;  %v10989_v56 = vld.sshfl [vmem:[#allocation1 + $0x20] sm:$0xff pattern:$0x73625140]  ;;  %v13627_v39 = vperm.slane %v10825_v47, 1  ;;  %v1681_v38 = vrot.slane %v13630_v43, 6 }
 0x482   :  { %13618 = vst [vmem:[#allocation50_spill] sm:$0xff] %v10987_v34  ;;  %v10991_v12 = vld.sshfl [vmem:[#allocation1 + $0x28] sm:$0xff pattern:$0x73625140]  ;;  %v2252_v34 = vsel %vm1770_vm1, %v1673_v8, %v1674_v3  ;;  %v13626_v3 = vld [vmem:[#allocation129_spill] sm:$0xff] }
 0x483   :  { %13619 = vst [vmem:[#allocation81_spill] sm:$0xff] %v10989_v56  ;;  %v10993_v22 = vld.sshfl [vmem:[#allocation1 + $0x30] sm:$0xff pattern:$0x73625140]  ;;  %v5481_v8 = vsel %vm1768_vm0, %v13626_v3, 0.0  ;;  %v2253_v41 = vsel %vm1772_vm2, %v2251_v9, %v2252_v34  ;;  %v1678_v15 = vrot.slane %v13627_v39, 6 }
 0x484   :  { %13620 = vst [vmem:[#allocation82_spill] sm:$0xff] %v10991_v12  ;;  %v10996_v63 = vld.sshfl [vmem:[#allocation1 + $0x38] sm:$0xff pattern:$0x73625140]  ;;  %v5483_v3 = vsel %vm1768_vm0, %v9479_v29, 0.0  ;;  %v13631_v34 = vperm.slane %v10825_v47, 6 }
 0x485   :  { %13621 = vst [vmem:[#allocation127_spill] sm:$0xff] %v10993_v22  ;;  %v11037_v12 = vld [vmem:[#allocation5 + $0x2a0] sm:$0xff] }
 0x486   :  { %13622 = vst [vmem:[#allocation192_spill] sm:$0xff] %v10996_v63  ;;  %v2254_v63 = vsel %vm1768_vm0, %v13625_v40, %v1675_v31  ;;  %v201_v40 = vld [vmem:[#allocation2 + $0x508] sm:$0xff]  ;;  %v1682_v9 = vrot.slane %v13631_v34, 4 }
 0x487   :  { %3714 = vst [vmem:[#allocation1] ss:$4 sm:$0xff] %v2697_v7  ;;  %v5478_v7 = vadd.f32 %v5477_v17, %v5476_v55  ;;  %v13628_v17 = vperm.slane %v10825_v47, 2  ;;  %v2256_v11 = vsel %vm1772_vm2, %v2254_v63, %v2255_v14  ;;  %v13634_v14 = vld [vmem:[#allocation30_spill] sm:$0xff] }
 0x488   :  { %3715 = vst [vmem:[#allocation1 + $0x20] ss:$4 sm:$0xff] %v2698_v59  ;;  %v200_v59 = vld [vmem:[#allocation2 + $0x500] sm:$0xff]  ;;  %v5487_v29 = vsel %vm1768_vm0, %v13634_v14, 0.0  ;;  %v2700_v0 = vmul.f32 %v2256_v11, %v201_v40 }
 0x489   :  { %v5480_v31 = vadd.f32 %v5479_v36, %v5478_v7  ;;  %v1679_v55 = vrot.slane %v13628_v17, 4  ;;  %v13632_v7 = vperm.slane %v10825_v47, 7  ;;  %v2699_v22 = vmul.f32 %v2253_v41, %v200_v59  ;;  %v13633_v17 = vld [vmem:[#allocation22_spill] sm:$0xff]  ;;  %v13642_v11 = vld [vmem:[#allocation51_spill] sm:$0xff] }
 0x48a   :  { %v5485_v63 = vsel %vm1768_vm0, %v13633_v17, 0.0  ;;  %v5489_v40 = vsel %vm1768_vm0, %v13642_v11, 0.0 }
 0x48b   :  { %v5482_v36 = vadd.f32 %v5481_v8, %v5480_v31  ;;  %v1683_v39 = vrot.slane %v13632_v7, 2 }
 0x48d   :  { %v5484_v8 = vadd.f32 %v5483_v3, %v5482_v36  ;;  %v2258_v36 = vsel %vm1770_vm1, %v1679_v55, %v1680_v53 }
 0x48e   :  { %v11039_v56 = vld.sshfl [vmem:[#allocation1] sm:$0xff pattern:$0x73625140]  ;;  %v11041_v43 = vld.sshfl [vmem:[#allocation1 + $0x8] sm:$0xff pattern:$0x73625140] }
 0x48f   :  { %13635 = vst [vmem:[#allocation128_spill] sm:$0xff] %v11041_v43  ;;  %v11043_v54 = vld.sshfl [vmem:[#allocation1 + $0x10] sm:$0xff pattern:$0x73625140]  ;;  %v5486_v7 = vadd.f32 %v5485_v63, %v5484_v8  ;;  %v13644_v63 = vperm.slane %v10825_v47, 4 }
 0x490   :  { %13636 = vst [vmem:[#allocation129_spill] sm:$0xff] %v11043_v54  ;;  %v11045_v31 = vld.sshfl [vmem:[#allocation1 + $0x18] sm:$0xff pattern:$0x73625140]  ;;  %v13643_v54 = vperm.slane %v10825_v47, 0  ;;  %v13654_v43 = vld [vmem:[#allocation131_spill] sm:$0xff] }
 0x491   :  { %13637 = vst [vmem:[#allocation22_spill] sm:$0xff] %v11045_v31  ;;  %v11047_v34 = vld.sshfl [vmem:[#allocation1 + $0x20] sm:$0xff pattern:$0x73625140]  ;;  %v2260_v8 = vsel %vm1768_vm0, %v13644_v63, %v1681_v38  ;;  %v13649_v63 = vperm.slane %v10882_v24, 3 }
 0x492   :  { %13638 = vst [vmem:[#allocation30_spill] sm:$0xff] %v11047_v34  ;;  %v11049_v59 = vld.sshfl [vmem:[#allocation1 + $0x28] sm:$0xff pattern:$0x73625140]  ;;  %v2257_v3 = vsel %vm1768_vm0, %v13643_v54, %v1678_v15  ;;  %v5488_v34 = vadd.f32 %v5487_v29, %v5486_v7  ;;  %v202_v15 = vld [vmem:[#allocation2 + $0x510] sm:$0xff]  ;;  %v13646_v29 = vperm.slane %v10882_v24, 1 }
 0x493   :  { %13639 = vst [vmem:[#allocation193_spill] sm:$0xff] %v11049_v59  ;;  %v11051_v41 = vld.sshfl [vmem:[#allocation1 + $0x30] sm:$0xff pattern:$0x73625140]  ;;  %v2259_v38 = vsel %vm1772_vm2, %v2257_v3, %v2258_v36  ;;  %v13648_v7 = vperm.slane %v10882_v24, 2  ;;  %v13650_v54 = vperm.slane %v10882_v24, 5 }
 0x494   :  { %13640 = vst [vmem:[#allocation194_spill] sm:$0xff] %v11051_v41  ;;  %v11053_v17 = vld.sshfl [vmem:[#allocation1 + $0x38] sm:$0xff pattern:$0x73625140]  ;;  %v5490_v53 = vadd.f32 %v5489_v40, %v5488_v34  ;;  %v1684_v47 = vrot.slane %v13646_v29, 6  ;;  %v1686_v41 = vrot.slane %v13649_v63, 2  ;;  %v2701_v31 = vmul.f32 %v2259_v38, %v202_v15 }
 0x495   :  { %13641 = vst [vmem:[#allocation195_spill] sm:$0xff] %v11053_v17  ;;  %v13645_v17 = vld [vmem:[#allocation83_spill] sm:$0xff]  ;;  %v1687_v55 = vrot.slane %v13650_v54, 6  ;;  %v13651_v29 = vperm.slane %v10882_v24, 6  ;;  %v13652_v3 = vperm.slane %v10882_v24, 7  ;;  %v5497_v63 = vsel %vm1768_vm0, %v13654_v43, 0.0 }
 0x496   :  { %3724 = vst [vmem:[#allocation1] ss:$4 sm:$0xff] %v2699_v22  ;;  %v2261_v22 = vsel %vm1770_vm1, %v1682_v9, %v1683_v39  ;;  %v5491_v11 = vsel %vm1768_vm0, %v13645_v17, 0.0  ;;  %v203_v39 = vld [vmem:[#allocation2 + $0x518] sm:$0xff]  ;;  %v1685_v17 = vrot.slane %v13648_v7, 4 }
 0x497   :  { %3725 = vst [vmem:[#allocation1 + $0x20] ss:$4 sm:$0xff] %v2700_v0  ;;  %v13647_v0 = vld [vmem:[#allocation84_spill] sm:$0xff]  ;;  %v2262_v34 = vsel %vm1772_vm2, %v2260_v8, %v2261_v22  ;;  %v5492_v40 = vadd.f32 %v5491_v11, %v5490_v53  ;;  %v1688_v14 = vrot.slane %v13651_v29, 4  ;;  %v1689_v36 = vrot.slane %v13652_v3, 2 }
 0x498   :  { %v5493_v9 = vsel %vm1768_vm0, %v13647_v0, 0.0  ;;  %v13653_v0 = vld [vmem:[#allocation130_spill] sm:$0xff]  ;;  %v5499_v8 = vsel %vm1768_vm0, %v9537_v46, 0.0  ;;  %v2702_v22 = vmul.f32 %v2262_v34, %v203_v39  ;;  %v11101_v29 = vld [vmem:[#allocation5 + $0x2a8] sm:$0xff]  ;;  %v13664_v46 = vperm.slane %v10882_v24, 4 }
 0x499   :  { %v5495_v59 = vsel %vm1768_vm0, %v13653_v0, 0.0  ;;  %v5494_v7 = vadd.f32 %v5493_v9, %v5492_v40  ;;  %v13663_v40 = vperm.slane %v10882_v24, 0  ;;  %v13669_v34 = vperm.slane %v10975_v60, 3 }
 0x49b   :  { %v5496_v15 = vadd.f32 %v5495_v59, %v5494_v7  ;;  %v5501_v59 = vsel %vm1768_vm0, %v9539_v33, 0.0  ;;  %v1692_v33 = vrot.slane %v13669_v34, 2 }
 0x49d   :  { %v11095_v11 = vld.sshfl [vmem:[#allocation1] sm:$0xff pattern:$0x73625140]  ;;  %v11097_v54 = vld.sshfl [vmem:[#allocation1 + $0x8] sm:$0xff pattern:$0x73625140]  ;;  %v5498_v39 = vadd.f32 %v5497_v63, %v5496_v15 }
 0x49e   :  { %13655 = vst [vmem:[#allocation51_spill] sm:$0xff] %v11095_v11  ;;  %v11099_v53 = vld.sshfl [vmem:[#allocation1 + $0x10] sm:$0xff pattern:$0x73625140] }
 0x49f   :  { %13656 = vst [vmem:[#allocation83_spill] sm:$0xff] %v11097_v54  ;;  %v11103_v3 = vld.sshfl [vmem:[#allocation1 + $0x18] sm:$0xff pattern:$0x73625140]  ;;  %v5500_v63 = vadd.f32 %v5499_v8, %v5498_v39  ;;  %v13667_v8 = vperm.slane %v10975_v60, 2 }
 0x4a0   :  { %13657 = vst [vmem:[#allocation84_spill] sm:$0xff] %v11099_v53  ;;  %v11105_v0 = vld.sshfl [vmem:[#allocation1 + $0x20] sm:$0xff pattern:$0x73625140]  ;;  %v2263_v53 = vsel %vm1768_vm0, %v13663_v40, %v1684_v47  ;;  %v13668_v47 = vld [vmem:[#allocation52_spill] sm:$0xff]  ;;  %v13670_v40 = vperm.slane %v10975_v60, 5 }
 0x4a1   :  { %13658 = vst [vmem:[#allocation130_spill] sm:$0xff] %v11103_v3  ;;  %v11107_v38 = vld.sshfl [vmem:[#allocation1 + $0x28] sm:$0xff pattern:$0x73625140]  ;;  %v2264_v3 = vsel %vm1770_vm1, %v1685_v17, %v1686_v41  ;;  %v13665_v41 = vld [vmem:[#allocation85_spill] sm:$0xff]  ;;  %v1691_v39 = vrot.slane %v13667_v8, 4 }
 0x4a2   :  { %13659 = vst [vmem:[#allocation131_spill] sm:$0xff] %v11105_v0  ;;  %v11109_v43 = vld.sshfl [vmem:[#allocation1 + $0x30] sm:$0xff pattern:$0x73625140]  ;;  %v5503_v17 = vsel %vm1768_vm0, %v13665_v41, 0.0  ;;  %v2265_v24 = vsel %vm1772_vm2, %v2263_v53, %v2264_v3  ;;  %v5505_v41 = vsel %vm1768_vm0, %v13668_v47, 0.0 }
 0x4a3   :  { %13660 = vst [vmem:[#allocation196_spill] sm:$0xff] %v11107_v38  ;;  %v11112_v9 = vld.sshfl [vmem:[#allocation1 + $0x38] sm:$0xff pattern:$0x73625140]  ;;  %v1693_v15 = vrot.slane %v13670_v40, 6  ;;  %v13671_v53 = vperm.slane %v10975_v60, 6 }
 0x4a4   :  { %13661 = vst [vmem:[#allocation197_spill] sm:$0xff] %v11109_v43  ;;  %v13673_v8 = vld [vmem:[#allocation53_spill] sm:$0xff] }
 0x4a5   :  { %13662 = vst [vmem:[#allocation198_spill] sm:$0xff] %v11112_v9  ;;  %v2266_v9 = vsel %vm1768_vm0, %v13664_v46, %v1687_v55  ;;  %v5502_v55 = vadd.f32 %v5501_v59, %v5500_v63  ;;  %v205_v46 = vld [vmem:[#allocation2 + $0x528] sm:$0xff]  ;;  %v1694_v3 = vrot.slane %v13671_v53, 4  ;;  %v13672_v63 = vperm.slane %v10975_v60, 7  ;;  %v11159_v53 = vld [vmem:[#allocation5 + $0x2b0] sm:$0xff] }
 0x4a6   :  { %3734 = vst [vmem:[#allocation1] ss:$4 sm:$0xff] %v2701_v31  ;;  %v2267_v31 = vsel %vm1770_vm1, %v1688_v14, %v1689_v36  ;;  %v13666_v14 = vperm.slane %v10975_v60, 1 }
 0x4a7   :  { %3735 = vst [vmem:[#allocation1 + $0x20] ss:$4 sm:$0xff] %v2702_v22  ;;  %v204_v22 = vld [vmem:[#allocation2 + $0x520] sm:$0xff]  ;;  %v2268_v7 = vsel %vm1772_vm2, %v2266_v9, %v2267_v31  ;;  %v5504_v59 = vadd.f32 %v5503_v17, %v5502_v55  ;;  %v5507_v9 = vsel %vm1768_vm0, %v13673_v8, 0.0 }
 0x4a8   :  { %v1690_v36 = vrot.slane %v13666_v14, 6  ;;  %v1695_v14 = vrot.slane %v13672_v63, 2  ;;  %v2703_v43 = vmul.f32 %v2265_v24, %v204_v22  ;;  %v13674_v31 = vld [vmem:[#allocation31_spill] sm:$0xff]  ;;  %v2704_v38 = vmul.f32 %v2268_v7, %v205_v46  ;;  %v13683_v7 = vld [vmem:[#allocation132_spill] sm:$0xff] }
 0x4a9   :  { %v5509_v47 = vsel %vm1768_vm0, %v13674_v31, 0.0  ;;  %v5506_v54 = vadd.f32 %v5505_v41, %v5504_v59  ;;  %v5511_v46 = vsel %vm1768_vm0, %v13683_v7, 0.0  ;;  %v13684_v41 = vperm.slane %v10975_v60, 0 }
 0x4aa   :  { %v13690_v31 = vperm.slane %v11037_v12, 5 }
 0x4ab   :  { %v5508_v63 = vadd.f32 %v5507_v9, %v5506_v54  ;;  %v2269_v59 = vsel %vm1768_vm0, %v13684_v41, %v1690_v36  ;;  %v13685_v54 = vperm.slane %v10975_v60, 4  ;;  %v13689_v41 = vperm.slane %v11037_v12, 3 }
 0x4ad   :  { %v11153_v0 = vld.sshfl [vmem:[#allocation1] sm:$0xff pattern:$0x73625140]  ;;  %v11155_v34 = vld.sshfl [vmem:[#allocation1 + $0x8] sm:$0xff pattern:$0x73625140]  ;;  %v2272_v9 = vsel %vm1768_vm0, %v13685_v54, %v1693_v15 }
 0x4ae   :  { %13675 = vst [vmem:[#allocation85_spill] sm:$0xff] %v11153_v0  ;;  %v11157_v40 = vld.sshfl [vmem:[#allocation1 + $0x10] sm:$0xff pattern:$0x73625140]  ;;  %v1698_v54 = vrot.slane %v13689_v41, 2 }
 0x4af   :  { %13676 = vst [vmem:[#allocation52_spill] sm:$0xff] %v11155_v34  ;;  %v11161_v17 = vld.sshfl [vmem:[#allocation1 + $0x18] sm:$0xff pattern:$0x73625140]  ;;  %v13695_v34 = vld [vmem:[#allocation87_spill] sm:$0xff] }
 0x4b0   :  { %13677 = vst [vmem:[#allocation53_spill] sm:$0xff] %v11157_v40  ;;  %v11163_v55 = vld.sshfl [vmem:[#allocation1 + $0x20] sm:$0xff pattern:$0x73625140] }
 0x4b1   :  { %13678 = vst [vmem:[#allocation31_spill] sm:$0xff] %v11161_v17  ;;  %v11165_v22 = vld.sshfl [vmem:[#allocation1 + $0x28] sm:$0xff pattern:$0x73625140]  ;;  %v2270_v17 = vsel %vm1770_vm1, %v1691_v39, %v1692_v33  ;;  %v1699_v39 = vrot.slane %v13690_v31, 6 }
 0x4b2   :  { %13679 = vst [vmem:[#allocation199_spill] sm:$0xff] %v11163_v55  ;;  %v11167_v24 = vld.sshfl [vmem:[#allocation1 + $0x30] sm:$0xff pattern:$0x73625140]  ;;  %v5510_v55 = vadd.f32 %v5509_v47, %v5508_v63  ;;  %v13687_v47 = vperm.slane %v11037_v12, 1  ;;  %v2271_v15 = vsel %vm1772_vm2, %v2269_v59, %v2270_v17  ;;  %v13688_v63 = vperm.slane %v11037_v12, 2 }
 0x4b3   :  { %13680 = vst [vmem:[#allocation200_spill] sm:$0xff] %v11165_v22  ;;  %v11169_v8 = vld.sshfl [vmem:[#allocation1 + $0x38] sm:$0xff pattern:$0x73625140]  ;;  %v13692_v17 = vperm.slane %v11037_v12, 7  ;;  %v13694_v40 = vld [vmem:[#allocation86_spill] sm:$0xff] }
 0x4b4   :  { %13681 = vst [vmem:[#allocation201_spill] sm:$0xff] %v11167_v24  ;;  %v5512_v33 = vadd.f32 %v5511_v46, %v5510_v55  ;;  %v1696_v60 = vrot.slane %v13687_v47, 6  ;;  %v13691_v47 = vperm.slane %v11037_v12, 6  ;;  %v5519_v41 = vsel %vm1768_vm0, %v13694_v40, 0.0 }
 0x4b5   :  { %13682 = vst [vmem:[#allocation202_spill] sm:$0xff] %v11169_v8  ;;  %v13686_v8 = vld [vmem:[#allocation133_spill] sm:$0xff]  ;;  %v1701_v59 = vrot.slane %v13692_v17, 2 }
 0x4b6   :  { %3744 = vst [vmem:[#allocation1] ss:$4 sm:$0xff] %v2703_v43  ;;  %v2273_v43 = vsel %vm1770_vm1, %v1694_v3, %v1695_v14  ;;  %v5513_v7 = vsel %vm1768_vm0, %v13686_v8, 0.0  ;;  %v5515_v3 = vsel %vm1768_vm0, %v9595_v32, 0.0  ;;  %v207_v14 = vld [vmem:[#allocation2 + $0x538] sm:$0xff]  ;;  %v1697_v8 = vrot.slane %v13688_v63, 4 }
 0x4b7   :  { %3745 = vst [vmem:[#allocation1 + $0x20] ss:$4 sm:$0xff] %v2704_v38  ;;  %v206_v38 = vld [vmem:[#allocation2 + $0x530] sm:$0xff]  ;;  %v2274_v55 = vsel %vm1772_vm2, %v2272_v9, %v2273_v43  ;;  %v5514_v46 = vadd.f32 %v5513_v7, %v5512_v33  ;;  %v1700_v36 = vrot.slane %v13691_v47, 4  ;;  %v5521_v9 = vsel %vm1768_vm0, %v13695_v34, 0.0  ;;  %v11217_v47 = vld [vmem:[#allocation5 + $0x2b8] sm:$0xff] }
 0x4b8   :  { %v13693_v32 = vld [vmem:[#allocation25_spill] sm:$0xff]  ;;  %v2705_v22 = vmul.f32 %v2271_v15, %v206_v38  ;;  %v2706_v43 = vmul.f32 %v2274_v55, %v207_v14  ;;  %v13706_v34 = vperm.slane %v11037_v12, 4 }
 0x4b9   :  { %v5517_v24 = vsel %vm1768_vm0, %v13693_v32, 0.0  ;;  %v5516_v63 = vadd.f32 %v5515_v3, %v5514_v46  ;;  %v13704_v46 = vperm.slane %v11037_v12, 0 }
 0x4bb   :  { %v5518_v38 = vadd.f32 %v5517_v24, %v5516_v63  ;;  %v13705_v24 = vld [vmem:[#allocation88_spill] sm:$0xff] }
 0x4bc   :  { %v5523_v63 = vsel %vm1768_vm0, %v13705_v24, 0.0  ;;  %v13712_v24 = vperm.slane %v11101_v29, 5 }
 0x4bd   :  { %v11211_v7 = vld.sshfl [vmem:[#allocation1] sm:$0xff pattern:$0x73625140]  ;;  %v11213_v31 = vld.sshfl [vmem:[#allocation1 + $0x8] sm:$0xff pattern:$0x73625140]  ;;  %v5520_v14 = vadd.f32 %v5519_v41, %v5518_v38 }
 0x4be   :  { %13696 = vst [vmem:[#allocation132_spill] sm:$0xff] %v11211_v7  ;;  %v11215_v33 = vld.sshfl [vmem:[#allocation1 + $0x10] sm:$0xff pattern:$0x73625140]  ;;  %v1119_v38 = vperm.slane %v11159_v53, 7 }
 0x4bf   :  { %13697 = vst [vmem:[#allocation133_spill] sm:$0xff] %v11213_v31  ;;  %v11219_v17 = vld.sshfl [vmem:[#allocation1 + $0x18] sm:$0xff pattern:$0x73625140]  ;;  %v5522_v41 = vadd.f32 %v5521_v9, %v5520_v14  ;;  %v13709_v9 = vperm.slane %v11101_v29, 2 }
 0x4c0   :  { %13698 = vst [vmem:[#allocation25_spill] sm:$0xff] %v11215_v33  ;;  %v11221_v32 = vld.sshfl [vmem:[#allocation1 + $0x20] sm:$0xff pattern:$0x73625140]  ;;  %v2275_v33 = vsel %vm1768_vm0, %v13704_v46, %v1696_v60  ;;  %v13710_v60 = vld [vmem:[#allocation135_spill] sm:$0xff] }
 0x4c1   :  { %13699 = vst [vmem:[#allocation86_spill] sm:$0xff] %v11219_v17  ;;  %v11223_v15 = vld.sshfl [vmem:[#allocation1 + $0x28] sm:$0xff pattern:$0x73625140]  ;;  %v2276_v17 = vsel %vm1770_vm1, %v1697_v8, %v1698_v54  ;;  %v1703_v14 = vrot.slane %v13709_v9, 4  ;;  %v13715_v9 = vld [vmem:[#allocation136_spill] sm:$0xff] }
 0x4c2   :  { %13700 = vst [vmem:[#allocation87_spill] sm:$0xff] %v11221_v32  ;;  %v11225_v40 = vld.sshfl [vmem:[#allocation1 + $0x30] sm:$0xff pattern:$0x73625140]  ;;  %v13707_v8 = vld [vmem:[#allocation134_spill] sm:$0xff]  ;;  %v2277_v12 = vsel %vm1772_vm2, %v2275_v33, %v2276_v17  ;;  %v13713_v33 = vperm.slane %v11101_v29, 6 }
 0x4c3   :  { %13701 = vst [vmem:[#allocation203_spill] sm:$0xff] %v11223_v15  ;;  %v11228_v3 = vld.sshfl [vmem:[#allocation1 + $0x38] sm:$0xff pattern:$0x73625140]  ;;  %v5525_v54 = vsel %vm1768_vm0, %v13707_v8, 0.0  ;;  %v5527_v8 = vsel %vm1768_vm0, %v13710_v60, 0.0 }
 0x4c4   :  { %13702 = vst [vmem:[#allocation204_spill] sm:$0xff] %v11225_v40  ;;  %v13711_v40 = vperm.slane %v11101_v29, 3  ;;  %v1705_v15 = vrot.slane %v13712_v24, 6  ;;  %v1706_v17 = vrot.slane %v13713_v33, 4 }
 0x4c5   :  { %13703 = vst [vmem:[#allocation205_spill] sm:$0xff] %v11228_v3  ;;  %v2278_v3 = vsel %vm1768_vm0, %v13706_v34, %v1699_v39  ;;  %v5524_v39 = vadd.f32 %v5523_v63, %v5522_v41  ;;  %v209_v34 = vld [vmem:[#allocation2 + $0x548] sm:$0xff]  ;;  %v13714_v41 = vperm.slane %v11101_v29, 7 }
 0x4c6   :  { %3754 = vst [vmem:[#allocation1] ss:$4 sm:$0xff] %v2705_v22  ;;  %v2279_v22 = vsel %vm1770_vm1, %v1700_v36, %v1701_v59  ;;  %v13708_v36 = vperm.slane %v11101_v29, 1  ;;  %v1704_v46 = vrot.slane %v13711_v40, 2 }
 0x4c7   :  { %3755 = vst [vmem:[#allocation1 + $0x20] ss:$4 sm:$0xff] %v2706_v43  ;;  %v208_v43 = vld [vmem:[#allocation2 + $0x540] sm:$0xff]  ;;  %v2280_v55 = vsel %vm1772_vm2, %v2278_v3, %v2279_v22  ;;  %v5526_v63 = vadd.f32 %v5525_v54, %v5524_v39  ;;  %v5529_v3 = vsel %vm1768_vm0, %v13715_v9, 0.0  ;;  %v5531_v22 = vsel %vm1768_vm0, %v9653_v1, 0.0 }
 0x4c8   :  { %v1702_v59 = vrot.slane %v13708_v36, 6  ;;  %v1707_v36 = vrot.slane %v13714_v41, 2  ;;  %v2707_v32 = vmul.f32 %v2277_v12, %v208_v43  ;;  %v2708_v60 = vmul.f32 %v2280_v55, %v209_v34  ;;  %v11287_v55 = vld [vmem:[#allocation5 + $0x2c0] sm:$0xff] }
 0x4c9   :  { %v5528_v7 = vadd.f32 %v5527_v8, %v5526_v63  ;;  %v5533_v1 = vsel %vm1768_vm0, %v9655_v23, 0.0  ;;  %v13724_v8 = vperm.slane %v11101_v29, 0  ;;  %v2282_v9 = vsel %vm1770_vm1, %v1703_v14, %v1704_v46  ;;  %v210_v14 = vld [vmem:[#allocation2 + $0x550] sm:$0xff] }
 0x4ca   :  { %v2285_v23 = vsel %vm1770_vm1, %v1706_v17, %v1707_v36  ;;  %v1126_v34 = vperm.slane %v11217_v47, 6  ;;  %v5537_v17 = vsel %vm1768_vm0, %v9659_v27, 0.0  ;;  %v211_v36 = vld [vmem:[#allocation2 + $0x558] sm:$0xff] }
 0x4cb   :  { %v5530_v12 = vadd.f32 %v5529_v3, %v5528_v7  ;;  %v2281_v63 = vsel %vm1768_vm0, %v13724_v8, %v1702_v59  ;;  %v13725_v3 = vperm.slane %v11101_v29, 4  ;;  %v13729_v8 = vperm.slane %v11159_v53, 3 }
 0x4cc   :  { %v13730_v59 = vperm.slane %v11159_v53, 5 }
 0x4cd   :  { %v11269_v31 = vld.sshfl [vmem:[#allocation1] sm:$0xff pattern:$0x73625140]  ;;  %v11271_v40 = vld.sshfl [vmem:[#allocation1 + $0x8] sm:$0xff pattern:$0x73625140] }
 0x4ce   :  { %13716 = vst [vmem:[#allocation88_spill] sm:$0xff] %v11269_v31  ;;  %v11273_v24 = vld.sshfl [vmem:[#allocation1 + $0x10] sm:$0xff pattern:$0x73625140]  ;;  %v13734_v31 = vld [vmem:[#allocation57_spill] sm:$0xff] }
 0x4cf   :  { %13717 = vst [vmem:[#allocation134_spill] sm:$0xff] %v11271_v40  ;;  %v11275_v33 = vld.sshfl [vmem:[#allocation1 + $0x18] sm:$0xff pattern:$0x73625140] }
 0x4d0   :  { %13718 = vst [vmem:[#allocation135_spill] sm:$0xff] %v11273_v24  ;;  %v11277_v54 = vld.sshfl [vmem:[#allocation1 + $0x20] sm:$0xff pattern:$0x73625140]  ;;  %v13733_v40 = vld [vmem:[#allocation56_spill] sm:$0xff] }
 0x4d1   :  { %13719 = vst [vmem:[#allocation136_spill] sm:$0xff] %v11275_v33  ;;  %v11279_v39 = vld.sshfl [vmem:[#allocation1 + $0x28] sm:$0xff pattern:$0x73625140] }
 0x4d2   :  { %13720 = vst [vmem:[#allocation206_spill] sm:$0xff] %v11277_v54  ;;  %v11281_v43 = vld.sshfl [vmem:[#allocation1 + $0x30] sm:$0xff pattern:$0x73625140]  ;;  %v1127_v54 = vperm.slane %v11217_v47, 7 }
 0x4d3   :  { %13721 = vst [vmem:[#allocation207_spill] sm:$0xff] %v11279_v39  ;;  %v11283_v41 = vld.sshfl [vmem:[#allocation1 + $0x38] sm:$0xff pattern:$0x73625140]  ;;  %v5532_v39 = vadd.f32 %v5531_v22, %v5530_v12  ;;  %v13728_v12 = vperm.slane %v11159_v53, 2  ;;  %v1711_v22 = vrot.slane %v13730_v59, 6 }
 0x4d4   :  { %13722 = vst [vmem:[#allocation208_spill] sm:$0xff] %v11281_v43 }
 0x4d5   :  { %13723 = vst [vmem:[#allocation209_spill] sm:$0xff] %v11283_v41  ;;  %v13726_v41 = vld [vmem:[#allocation54_spill] sm:$0xff]  ;;  %v5534_v46 = vadd.f32 %v5533_v1, %v5532_v39 }
 0x4d6   :  { %3764 = vst [vmem:[#allocation1] ss:$4 sm:$0xff] %v2707_v32  ;;  %v2284_v32 = vsel %vm1768_vm0, %v13725_v3, %v1705_v15  ;;  %v5535_v43 = vsel %vm1768_vm0, %v13726_v41, 0.0  ;;  %v2283_v15 = vsel %vm1772_vm2, %v2281_v63, %v2282_v9  ;;  %v1709_v41 = vrot.slane %v13728_v12, 4  ;;  %v13732_v9 = vld [vmem:[#allocation55_spill] sm:$0xff] }
 0x4d7   :  { %3765 = vst [vmem:[#allocation1 + $0x20] ss:$4 sm:$0xff] %v2708_v60  ;;  %v13727_v60 = vperm.slane %v11159_v53, 1  ;;  %v1710_v3 = vrot.slane %v13729_v8, 2  ;;  %v2286_v39 = vsel %vm1772_vm2, %v2284_v32, %v2285_v23  ;;  %v5536_v1 = vadd.f32 %v5535_v43, %v5534_v46 }
 0x4d8   :  { %v1713_v63 = vrot.slane %v1119_v38, 2  ;;  %v5539_v27 = vsel %vm1768_vm0, %v13732_v9, 0.0  ;;  %v2709_v33 = vmul.f32 %v2283_v15, %v210_v14  ;;  %v5541_v12 = vsel %vm1768_vm0, %v13733_v40, 0.0 }
 0x4d9   :  { %v1708_v29 = vrot.slane %v13727_v60, 6  ;;  %v13731_v60 = vperm.slane %v11159_v53, 6  ;;  %v5538_v24 = vadd.f32 %v5537_v17, %v5536_v1  ;;  %v5543_v8 = vsel %vm1768_vm0, %v13734_v31, 0.0 }
 0x4da   :  { %v2710_v32 = vmul.f32 %v2286_v39, %v211_v36  ;;  %v11342_v36 = vld [vmem:[#allocation5 + $0x2c8] sm:$0xff]  ;;  %v13743_v1 = vperm.slane %v11159_v53, 0  ;;  %v1133_v39 = vperm.slane %v11287_v55, 5  ;;  %v13748_v40 = vperm.slane %v11217_v47, 3 }
 0x4db   :  { %v1712_v7 = vrot.slane %v13731_v60, 4  ;;  %v5540_v60 = vadd.f32 %v5539_v27, %v5538_v24  ;;  %v2288_v24 = vsel %vm1770_vm1, %v1709_v41, %v1710_v3  ;;  %v13744_v27 = vld [vmem:[#allocation89_spill] sm:$0xff]  ;;  %v5547_v41 = vsel %vm1768_vm0, %v9709_v51, 0.0  ;;  %v212_v3 = vld [vmem:[#allocation2 + $0x560] sm:$0xff] }
 0x4dc   :  { %v2287_v9 = vsel %vm1768_vm0, %v13743_v1, %v1708_v29  ;;  %v1135_v29 = vperm.slane %v11287_v55, 7  ;;  %v5549_v51 = vsel %vm1768_vm0, %v9711_v19, 0.0  ;;  %v13749_v1 = vperm.slane %v11217_v47, 5 }
 0x4dd   :  { %v11325_v43 = vld.sshfl [vmem:[#allocation1] sm:$0xff pattern:$0x73625140]  ;;  %v11327_v23 = vld.sshfl [vmem:[#allocation1 + $0x8] sm:$0xff pattern:$0x73625140]  ;;  %v5542_v31 = vadd.f32 %v5541_v12, %v5540_v60  ;;  %v2291_v12 = vsel %vm1770_vm1, %v1712_v7, %v1713_v63 }
 0x4de   :  { %13735 = vst [vmem:[#allocation54_spill] sm:$0xff] %v11325_v43  ;;  %v11329_v59 = vld.sshfl [vmem:[#allocation1 + $0x10] sm:$0xff pattern:$0x73625140]  ;;  %v13746_v7 = vperm.slane %v11217_v47, 1 }
 0x4df   :  { %13736 = vst [vmem:[#allocation55_spill] sm:$0xff] %v11327_v23  ;;  %v11331_v46 = vld.sshfl [vmem:[#allocation1 + $0x18] sm:$0xff pattern:$0x73625140]  ;;  %v5544_v60 = vadd.f32 %v5543_v8, %v5542_v31  ;;  %v13747_v8 = vperm.slane %v11217_v47, 2 }
 0x4e0   :  { %13737 = vst [vmem:[#allocation56_spill] sm:$0xff] %v11329_v59  ;;  %v11333_v38 = vld.sshfl [vmem:[#allocation1 + $0x20] sm:$0xff pattern:$0x73625140]  ;;  %v1714_v63 = vrot.slane %v13746_v7, 6  ;;  %v13751_v59 = vld [vmem:[#allocation16_spill] sm:$0xff] }
 0x4e1   :  { %13738 = vst [vmem:[#allocation57_spill] sm:$0xff] %v11331_v46  ;;  %v11335_v14 = vld.sshfl [vmem:[#allocation1 + $0x28] sm:$0xff pattern:$0x73625140]  ;;  %v1715_v31 = vrot.slane %v13747_v8, 4  ;;  %v5553_v8 = vsel %vm1768_vm0, %v13751_v59, 0.0 }
 0x4e2   :  { %13739 = vst [vmem:[#allocation210_spill] sm:$0xff] %v11333_v38  ;;  %v11337_v15 = vld.sshfl [vmem:[#allocation1 + $0x30] sm:$0xff pattern:$0x73625140]  ;;  %v1717_v38 = vrot.slane %v13749_v1, 6  ;;  %v13750_v46 = vld [vmem:[#allocation90_spill] sm:$0xff] }
 0x4e3   :  { %13740 = vst [vmem:[#allocation211_spill] sm:$0xff] %v11335_v14  ;;  %v11340_v17 = vld.sshfl [vmem:[#allocation1 + $0x38] sm:$0xff pattern:$0x73625140]  ;;  %v1134_v14 = vperm.slane %v11287_v55, 6  ;;  %v5551_v7 = vsel %vm1768_vm0, %v13750_v46, 0.0 }
 0x4e4   :  { %13741 = vst [vmem:[#allocation212_spill] sm:$0xff] %v11337_v15  ;;  %v5545_v15 = vsel %vm1768_vm0, %v13744_v27, 0.0  ;;  %v13760_v59 = vld [vmem:[#allocation28_spill] sm:$0xff] }
 0x4e5   :  { %13742 = vst [vmem:[#allocation213_spill] sm:$0xff] %v11340_v17  ;;  %v13745_v17 = vperm.slane %v11159_v53, 4  ;;  %v2289_v53 = vsel %vm1772_vm2, %v2287_v9, %v2288_v24  ;;  %v1718_v9 = vrot.slane %v1126_v34, 4  ;;  %v1719_v24 = vrot.slane %v1127_v54, 2 }
 0x4e6   :  { %3774 = vst [vmem:[#allocation1] ss:$4 sm:$0xff] %v2709_v33  ;;  %v5555_v1 = vsel %vm1768_vm0, %v13760_v59, 0.0 }
 0x4e7   :  { %3775 = vst [vmem:[#allocation1 + $0x20] ss:$4 sm:$0xff] %v2710_v32  ;;  %v2290_v33 = vsel %vm1768_vm0, %v13745_v17, %v1711_v22  ;;  %v5546_v22 = vadd.f32 %v5545_v15, %v5544_v60  ;;  %v213_v17 = vld [vmem:[#allocation2 + $0x568] sm:$0xff]  ;;  %v1716_v32 = vrot.slane %v13748_v40, 2  ;;  %v2711_v60 = vmul.f32 %v2289_v53, %v212_v3 }
 0x4e8   :  { %v2292_v27 = vsel %vm1772_vm2, %v2290_v33, %v2291_v12 }
 0x4e9   :  { %v5548_v15 = vadd.f32 %v5547_v41, %v5546_v22  ;;  %v2712_v33 = vmul.f32 %v2292_v27, %v213_v17  ;;  %v13761_v22 = vperm.slane %v11217_v47, 0  ;;  %v2294_v27 = vsel %vm1770_vm1, %v1715_v31, %v1716_v32  ;;  %v214_v31 = vld [vmem:[#allocation2 + $0x570] sm:$0xff] }
 0x4eb   :  { %v5550_v40 = vadd.f32 %v5549_v51, %v5548_v15  ;;  %v2293_v17 = vsel %vm1768_vm0, %v13761_v22, %v1714_v63  ;;  %v1142_v63 = vperm.slane %v11342_v36, 6  ;;  %v1723_v15 = vrot.slane %v1133_v39, 6 }
 0x4ed   :  { %v11379_v12 = vld.sshfl [vmem:[#allocation1] sm:$0xff pattern:$0x73625140]  ;;  %v11381_v19 = vld.sshfl [vmem:[#allocation1 + $0x8] sm:$0xff pattern:$0x73625140]  ;;  %v5552_v46 = vadd.f32 %v5551_v7, %v5550_v40 }
 0x4ee   :  { %13752 = vst [vmem:[#allocation89_spill] sm:$0xff] %v11379_v12  ;;  %v11383_v23 = vld.sshfl [vmem:[#allocation1 + $0x10] sm:$0xff pattern:$0x73625140]  ;;  %v13762_v7 = vperm.slane %v11217_v47, 4 }
 0x4ef   :  { %13753 = vst [vmem:[#allocation90_spill] sm:$0xff] %v11381_v19  ;;  %v11385_v43 = vld.sshfl [vmem:[#allocation1 + $0x18] sm:$0xff pattern:$0x73625140]  ;;  %v5554_v51 = vadd.f32 %v5553_v8, %v5552_v46  ;;  %v1143_v8 = vperm.slane %v11342_v36, 7  ;;  %v13765_v46 = vld [vmem:[#allocation138_spill] sm:$0xff] }
 0x4f0   :  { %13754 = vst [vmem:[#allocation16_spill] sm:$0xff] %v11383_v23  ;;  %v11387_v34 = vld.sshfl [vmem:[#allocation1 + $0x20] sm:$0xff pattern:$0x73625140]  ;;  %v2296_v40 = vsel %vm1768_vm0, %v13762_v7, %v1717_v38  ;;  %v2295_v38 = vsel %vm1772_vm2, %v2293_v17, %v2294_v27  ;;  %v13767_v7 = vperm.slane %v11287_v55, 3  ;;  %v11425_v17 = vld [vmem:[#allocation5 + $0x2d0] sm:$0xff] }
 0x4f1   :  { %13755 = vst [vmem:[#allocation214_spill] sm:$0xff] %v11385_v43  ;;  %v11389_v54 = vld.sshfl [vmem:[#allocation1 + $0x28] sm:$0xff pattern:$0x73625140]  ;;  %v5556_v32 = vadd.f32 %v5555_v1, %v5554_v51  ;;  %v2713_v27 = vmul.f32 %v2295_v38, %v214_v31  ;;  %v13769_v23 = vld [vmem:[#allocation33_spill] sm:$0xff]  ;;  %v1145_v38 = vperm.slane %v11425_v17, 1 }
 0x4f2   :  { %13756 = vst [vmem:[#allocation215_spill] sm:$0xff] %v11387_v34  ;;  %v11391_v41 = vld.sshfl [vmem:[#allocation1 + $0x30] sm:$0xff pattern:$0x73625140]  ;;  %v1722_v53 = vrot.slane %v13767_v7, 2  ;;  %v1725_v34 = vrot.slane %v1135_v29, 2 }
 0x4f3   :  { %13757 = vst [vmem:[#allocation216_spill] sm:$0xff] %v11389_v54  ;;  %v11393_v3 = vld.sshfl [vmem:[#allocation1 + $0x38] sm:$0xff pattern:$0x73625140]  ;;  %v1724_v54 = vrot.slane %v1134_v14, 4  ;;  %v13768_v43 = vld [vmem:[#allocation139_spill] sm:$0xff] }
 0x4f4   :  { %13758 = vst [vmem:[#allocation217_spill] sm:$0xff] %v11391_v41  ;;  %v1141_v41 = vperm.slane %v11342_v36, 5  ;;  %v5563_v19 = vsel %vm1768_vm0, %v13769_v23, 0.0 }
 0x4f5   :  { %13759 = vst [vmem:[#allocation218_spill] sm:$0xff] %v11393_v3  ;;  %v13763_v3 = vld [vmem:[#allocation137_spill] sm:$0xff] }
 0x4f6   :  { %3784 = vst [vmem:[#allocation1] ss:$4 sm:$0xff] %v2711_v60  ;;  %v2297_v60 = vsel %vm1770_vm1, %v1718_v9, %v1719_v24  ;;  %v5557_v59 = vsel %vm1768_vm0, %v13763_v3, 0.0  ;;  %v5559_v9 = vsel %vm1768_vm0, %v13765_v46, 0.0  ;;  %v215_v24 = vld [vmem:[#allocation2 + $0x578] sm:$0xff]  ;;  %v13766_v3 = vperm.slane %v11287_v55, 2 }
 0x4f7   :  { %3785 = vst [vmem:[#allocation1 + $0x20] ss:$4 sm:$0xff] %v2712_v33  ;;  %v13764_v33 = vperm.slane %v11287_v55, 1  ;;  %v2298_v1 = vsel %vm1772_vm2, %v2296_v40, %v2297_v60  ;;  %v5558_v51 = vadd.f32 %v5557_v59, %v5556_v32 }
 0x4f8   :  { %v1721_v22 = vrot.slane %v13766_v3, 4  ;;  %v13770_v3 = vld [vmem:[#allocation34_spill] sm:$0xff]  ;;  %v2714_v7 = vmul.f32 %v2298_v1, %v215_v24 }
 0x4f9   :  { %v1720_v47 = vrot.slane %v13764_v33, 6  ;;  %v5561_v33 = vsel %vm1768_vm0, %v13768_v43, 0.0  ;;  %v5560_v46 = vadd.f32 %v5559_v9, %v5558_v51  ;;  %v5565_v12 = vsel %vm1768_vm0, %v13770_v3, 0.0  ;;  %v13780_v51 = vld [vmem:[#allocation91_spill] sm:$0xff] }
 0x4fa   :  { %v13779_v9 = vperm.slane %v11287_v55, 0  ;;  %v2300_v1 = vsel %vm1770_vm1, %v1721_v22, %v1722_v53  ;;  %v13781_v3 = vperm.slane %v11287_v55, 4  ;;  %v13782_v53 = vld [vmem:[#allocation140_spill] sm:$0xff] }
 0x4fb   :  { %v5562_v29 = vadd.f32 %v5561_v33, %v5560_v46  ;;  %v5567_v33 = vsel %vm1768_vm0, %v13780_v51, 0.0  ;;  %v1146_v46 = vperm.slane %v11425_v17, 2  ;;  %v5569_v22 = vsel %vm1768_vm0, %v13782_v53, 0.0 }
 0x4fc   :  { %v2299_v24 = vsel %vm1768_vm0, %v13779_v9, %v1720_v47  ;;  %v2302_v23 = vsel %vm1768_vm0, %v13781_v3, %v1723_v15  ;;  %v1149_v47 = vperm.slane %v11425_v17, 5  ;;  %v1150_v9 = vperm.slane %v11425_v17, 6  ;;  %v217_v3 = vld [vmem:[#allocation2 + $0x588] sm:$0xff] }
 0x4fd   :  { %v11431_v0 = vld.sshfl [vmem:[#allocation1] sm:$0xff pattern:$0x73625140]  ;;  %v11433_v40 = vld.sshfl [vmem:[#allocation1 + $0x8] sm:$0xff pattern:$0x73625140]  ;;  %v5564_v31 = vadd.f32 %v5563_v19, %v5562_v29  ;;  %v2303_v19 = vsel %vm1770_vm1, %v1724_v54, %v1725_v34  ;;  %v2301_v55 = vsel %vm1772_vm2, %v2299_v24, %v2300_v1 }
 0x4fe   :  { %13771 = vst [vmem:[#allocation28_spill] sm:$0xff] %v11431_v0  ;;  %v11435_v14 = vld.sshfl [vmem:[#allocation1 + $0x10] sm:$0xff pattern:$0x73625140]  ;;  %v1147_v29 = vperm.slane %v11425_v17, 3  ;;  %v1151_v51 = vperm.slane %v11425_v17, 7 }
 0x4ff   :  { %13772 = vst [vmem:[#allocation137_spill] sm:$0xff] %v11433_v40  ;;  %v11437_v39 = vld.sshfl [vmem:[#allocation1 + $0x18] sm:$0xff pattern:$0x73625140]  ;;  %v13784_v54 = vperm.slane %v11342_v36, 2  ;;  %v1731_v24 = vrot.slane %v1143_v8, 2 }
 0x500   :  { %13773 = vst [vmem:[#allocation138_spill] sm:$0xff] %v11435_v14  ;;  %v11439_v43 = vld.sshfl [vmem:[#allocation1 + $0x20] sm:$0xff pattern:$0x73625140]  ;;  %v1730_v14 = vrot.slane %v1142_v63, 4 }
 0x501   :  { %13774 = vst [vmem:[#allocation139_spill] sm:$0xff] %v11437_v39  ;;  %v11441_v60 = vld.sshfl [vmem:[#allocation1 + $0x28] sm:$0xff pattern:$0x73625140]  ;;  %v1729_v39 = vrot.slane %v1141_v41, 6 }
 0x502   :  { %13775 = vst [vmem:[#allocation33_spill] sm:$0xff] %v11439_v43  ;;  %v11443_v59 = vld.sshfl [vmem:[#allocation1 + $0x30] sm:$0xff pattern:$0x73625140] }
 0x503   :  { %13776 = vst [vmem:[#allocation34_spill] sm:$0xff] %v11441_v60  ;;  %v11446_v32 = vld.sshfl [vmem:[#allocation1 + $0x38] sm:$0xff pattern:$0x73625140]  ;;  %v13786_v60 = vperm.slane %v11342_v36, 3 }
 0x504   :  { %13777 = vst [vmem:[#allocation219_spill] sm:$0xff] %v11443_v59  ;;  %v13785_v59 = vld [vmem:[#allocation141_spill] sm:$0xff] }
 0x505   :  { %13778 = vst [vmem:[#allocation220_spill] sm:$0xff] %v11446_v32  ;;  %v2304_v32 = vsel %vm1772_vm2, %v2302_v23, %v2303_v19  ;;  %v5571_v53 = vsel %vm1768_vm0, %v13785_v59, 0.0  ;;  %v1728_v43 = vrot.slane %v13786_v60, 2 }
 0x506   :  { %3794 = vst [vmem:[#allocation1] ss:$4 sm:$0xff] %v2713_v27  ;;  %v5566_v27 = vadd.f32 %v5565_v12, %v5564_v31  ;;  %v13783_v12 = vperm.slane %v11342_v36, 1  ;;  %v1727_v31 = vrot.slane %v13784_v54, 4  ;;  %v11481_v54 = vld [vmem:[#allocation5 + $0x2d8] sm:$0xff]  ;;  %v2716_v23 = vmul.f32 %v2304_v32, %v217_v3  ;;  %v13797_v32 = vld [vmem:[#allocation144_spill] sm:$0xff] }
 0x507   :  { %3795 = vst [vmem:[#allocation1 + $0x20] ss:$4 sm:$0xff] %v2714_v7  ;;  %v216_v7 = vld [vmem:[#allocation2 + $0x580] sm:$0xff]  ;;  %v1154_v3 = vperm.slane %v11481_v54, 2 }
 0x508   :  { %v5568_v15 = vadd.f32 %v5567_v33, %v5566_v27  ;;  %v1726_v34 = vrot.slane %v13783_v12, 6  ;;  %v2715_v1 = vmul.f32 %v2301_v55, %v216_v7  ;;  %v13787_v33 = vld [vmem:[#allocation142_spill] sm:$0xff]  ;;  %v13788_v12 = vld [vmem:[#allocation143_spill] sm:$0xff] }
 0x509   :  { %v5573_v27 = vsel %vm1768_vm0, %v13787_v33, 0.0  ;;  %v5575_v0 = vsel %vm1768_vm0, %v13788_v12, 0.0  ;;  %v13798_v33 = vperm.slane %v11342_v36, 0 }
 0x50a   :  { %v5570_v40 = vadd.f32 %v5569_v22, %v5568_v15  ;;  %v5577_v15 = vsel %vm1768_vm0, %v13797_v32, 0.0  ;;  %v5579_v32 = vsel %vm1768_vm0, %v9825_v25, 0.0 }
 0x50c   :  { %v5572_v41 = vadd.f32 %v5571_v53, %v5570_v40  ;;  %v2305_v40 = vsel %vm1768_vm0, %v13798_v33, %v1726_v34  ;;  %v2306_v53 = vsel %vm1770_vm1, %v1727_v31, %v1728_v43  ;;  %v218_v31 = vld [vmem:[#allocation2 + $0x590] sm:$0xff]  ;;  %v1734_v33 = vrot.slane %v1147_v29, 2 }
 0x50d   :  { %v11483_v19 = vld.sshfl [vmem:[#allocation1] sm:$0xff pattern:$0x73625140]  ;;  %v11485_v59 = vld.sshfl [vmem:[#allocation1 + $0x8] sm:$0xff pattern:$0x73625140] }
 0x50e   :  { %13789 = vst [vmem:[#allocation91_spill] sm:$0xff] %v11483_v19  ;;  %v11487_v11 = vld.sshfl [vmem:[#allocation1 + $0x10] sm:$0xff pattern:$0x73625140]  ;;  %v5574_v7 = vadd.f32 %v5573_v27, %v5572_v41  ;;  %v13799_v27 = vperm.slane %v11342_v36, 4  ;;  %v2307_v36 = vsel %vm1772_vm2, %v2305_v40, %v2306_v53  ;;  %v13803_v53 = vld [vmem:[#allocation93_spill] sm:$0xff] }
 0x50f   :  { %13790 = vst [vmem:[#allocation140_spill] sm:$0xff] %v11485_v59  ;;  %v11489_v63 = vld.sshfl [vmem:[#allocation1 + $0x18] sm:$0xff pattern:$0x73625140]  ;;  %v13848_v19 = vld [vmem:[#allocation35_spill] sm:$0xff] }
 0x510   :  { %13791 = vst [vmem:[#allocation141_spill] sm:$0xff] %v11487_v11  ;;  %v11491_v8 = vld.sshfl [vmem:[#allocation1 + $0x20] sm:$0xff pattern:$0x73625140]  ;;  %v5576_v12 = vadd.f32 %v5575_v0, %v5574_v7  ;;  %v2308_v41 = vsel %vm1768_vm0, %v13799_v27, %v1729_v39  ;;  %v1157_v0 = vperm.slane %v11481_v54, 5  ;;  %v13801_v34 = vld [vmem:[#allocation32_spill] sm:$0xff] }
 0x511   :  { %13792 = vst [vmem:[#allocation142_spill] sm:$0xff] %v11489_v63  ;;  %v11493_v60 = vld.sshfl [vmem:[#allocation1 + $0x28] sm:$0xff pattern:$0x73625140]  ;;  %v1737_v63 = vrot.slane %v1151_v51, 2 }
 0x512   :  { %13793 = vst [vmem:[#allocation143_spill] sm:$0xff] %v11491_v8  ;;  %v11495_v22 = vld.sshfl [vmem:[#allocation1 + $0x30] sm:$0xff pattern:$0x73625140]  ;;  %v5578_v43 = vadd.f32 %v5577_v15, %v5576_v12  ;;  %v13800_v7 = vld [vmem:[#allocation58_spill] sm:$0xff]  ;;  %v1736_v8 = vrot.slane %v1150_v9, 4  ;;  %v2717_v12 = vmul.f32 %v2307_v36, %v218_v31 }
 0x513   :  { %13794 = vst [vmem:[#allocation221_spill] sm:$0xff] %v11493_v60  ;;  %v11497_v55 = vld.sshfl [vmem:[#allocation1 + $0x38] sm:$0xff pattern:$0x73625140]  ;;  %v1153_v60 = vperm.slane %v11481_v54, 1  ;;  %v5581_v39 = vsel %vm1768_vm0, %v13800_v7, 0.0 }
 0x514   :  { %13795 = vst [vmem:[#allocation222_spill] sm:$0xff] %v11495_v22  ;;  %v5580_v27 = vadd.f32 %v5579_v32, %v5578_v43  ;;  %v1735_v22 = vrot.slane %v1149_v47, 6  ;;  %v5583_v15 = vsel %vm1768_vm0, %v13801_v34, 0.0  ;;  %v5587_v7 = vsel %vm1768_vm0, %v13803_v53, 0.0  ;;  %v11533_v47 = vld [vmem:[#allocation5 + $0x2e0] sm:$0xff] }
 0x515   :  { %13796 = vst [vmem:[#allocation223_spill] sm:$0xff] %v11497_v55  ;;  %v1155_v55 = vperm.slane %v11481_v54, 3  ;;  %v1158_v43 = vperm.slane %v11481_v54, 6  ;;  %v13814_v53 = vperm.slane %v11425_v17, 4 }
 0x516   :  { %3804 = vst [vmem:[#allocation1] ss:$4 sm:$0xff] %v2715_v1  ;;  %v2309_v1 = vsel %vm1770_vm1, %v1730_v14, %v1731_v24  ;;  %v219_v14 = vld [vmem:[#allocation2 + $0x598] sm:$0xff]  ;;  %v1733_v24 = vrot.slane %v1146_v46, 4  ;;  %v5582_v11 = vadd.f32 %v5581_v39, %v5580_v27  ;;  %v1159_v39 = vperm.slane %v11481_v54, 7 }
 0x517   :  { %3805 = vst [vmem:[#allocation1 + $0x20] ss:$4 sm:$0xff] %v2716_v23  ;;  %v1732_v23 = vrot.slane %v1145_v38, 6  ;;  %v2310_v25 = vsel %vm1772_vm2, %v2308_v41, %v2309_v1  ;;  %v13802_v38 = vld [vmem:[#allocation92_spill] sm:$0xff] }
 0x518   :  { %v5585_v40 = vsel %vm1768_vm0, %v13802_v38, 0.0  ;;  %v2718_v59 = vmul.f32 %v2310_v25, %v219_v14  ;;  %v5584_v1 = vadd.f32 %v5583_v15, %v5582_v11  ;;  %v13812_v14 = vperm.slane %v11425_v17, 0  ;;  %v13813_v11 = vld [vmem:[#allocation94_spill] sm:$0xff] }
 0x519   :  { %v2312_v27 = vsel %vm1770_vm1, %v1733_v24, %v1734_v33  ;;  %v5589_v15 = vsel %vm1768_vm0, %v13813_v11, 0.0  ;;  %v13815_v24 = vld [vmem:[#allocation95_spill] sm:$0xff]  ;;  %v1165_v11 = vperm.slane %v11533_v47, 5 }
 0x51a   :  { %v5586_v36 = vadd.f32 %v5585_v40, %v5584_v1  ;;  %v2311_v25 = vsel %vm1768_vm0, %v13812_v14, %v1732_v23  ;;  %v1161_v1 = vperm.slane %v11533_v47, 1  ;;  %v1163_v23 = vperm.slane %v11533_v47, 3  ;;  %v220_v33 = vld [vmem:[#allocation2 + $0x5a0] sm:$0xff] }
 0x51b   :  { %v2313_v17 = vsel %vm1772_vm2, %v2311_v25, %v2312_v27  ;;  %v5595_v14 = vsel %vm1768_vm0, %v9883_v52, 0.0 }
 0x51c   :  { %v5588_v40 = vadd.f32 %v5587_v7, %v5586_v36  ;;  %v13816_v36 = vld [vmem:[#allocation145_spill] sm:$0xff] }
 0x51d   :  { %v11527_v46 = vld.sshfl [vmem:[#allocation1] sm:$0xff pattern:$0x73625140]  ;;  %v11529_v29 = vld.sshfl [vmem:[#allocation1 + $0x8] sm:$0xff pattern:$0x73625140] }
 0x51e   :  { %13804 = vst [vmem:[#allocation144_spill] sm:$0xff] %v11527_v46  ;;  %v11531_v41 = vld.sshfl [vmem:[#allocation1 + $0x10] sm:$0xff pattern:$0x73625140]  ;;  %v5593_v38 = vsel %vm1768_vm0, %v13816_v36, 0.0 }
 0x51f   :  { %13805 = vst [vmem:[#allocation58_spill] sm:$0xff] %v11529_v29  ;;  %v11535_v9 = vld.sshfl [vmem:[#allocation1 + $0x18] sm:$0xff pattern:$0x73625140]  ;;  %v2719_v29 = vmul.f32 %v2313_v17, %v220_v33  ;;  %v13817_v46 = vld [vmem:[#allocation11_spill] sm:$0xff]  ;;  %v1166_v33 = vperm.slane %v11533_v47, 6 }
 0x520   :  { %13806 = vst [vmem:[#allocation32_spill] sm:$0xff] %v11531_v41  ;;  %v11537_v51 = vld.sshfl [vmem:[#allocation1 + $0x20] sm:$0xff pattern:$0x73625140]  ;;  %v1743_v41 = vrot.slane %v1159_v39, 2  ;;  %v5597_v25 = vsel %vm1768_vm0, %v13817_v46, 0.0 }
 0x521   :  { %13807 = vst [vmem:[#allocation92_spill] sm:$0xff] %v11535_v9  ;;  %v11539_v32 = vld.sshfl [vmem:[#allocation1 + $0x28] sm:$0xff pattern:$0x73625140]  ;;  %v1742_v9 = vrot.slane %v1158_v43, 4 }
 0x522   :  { %13808 = vst [vmem:[#allocation93_spill] sm:$0xff] %v11537_v51  ;;  %v11541_v34 = vld.sshfl [vmem:[#allocation1 + $0x30] sm:$0xff pattern:$0x73625140]  ;;  %v1741_v51 = vrot.slane %v1157_v0, 6 }
 0x523   :  { %13809 = vst [vmem:[#allocation224_spill] sm:$0xff] %v11539_v32  ;;  %v11544_v31 = vld.sshfl [vmem:[#allocation1 + $0x38] sm:$0xff pattern:$0x73625140]  ;;  %v1740_v32 = vrot.slane %v1155_v55, 2  ;;  %v11579_v55 = vld [vmem:[#allocation5 + $0x2e8] sm:$0xff] }
 0x524   :  { %13810 = vst [vmem:[#allocation225_spill] sm:$0xff] %v11541_v34  ;;  %v1162_v34 = vperm.slane %v11533_v47, 2 }
 0x525   :  { %13811 = vst [vmem:[#allocation226_spill] sm:$0xff] %v11544_v31  ;;  %v2314_v31 = vsel %vm1768_vm0, %v13814_v53, %v1735_v22  ;;  %v5590_v22 = vadd.f32 %v5589_v15, %v5588_v40  ;;  %v221_v53 = vld [vmem:[#allocation2 + $0x5a8] sm:$0xff]  ;;  %v13826_v40 = vld [vmem:[#allocation18_spill] sm:$0xff] }
 0x526   :  { %3814 = vst [vmem:[#allocation1] ss:$4 sm:$0xff] %v2717_v12  ;;  %v2315_v12 = vsel %vm1770_vm1, %v1736_v8, %v1737_v63  ;;  %v1738_v63 = vrot.slane %v1153_v60, 6  ;;  %v1739_v8 = vrot.slane %v1154_v3, 4 }
 0x527   :  { %3815 = vst [vmem:[#allocation1 + $0x20] ss:$4 sm:$0xff] %v2718_v59  ;;  %v5591_v59 = vsel %vm1768_vm0, %v13815_v24, 0.0  ;;  %v2316_v7 = vsel %vm1772_vm2, %v2314_v31, %v2315_v12 }
 0x528   :  { %v5592_v24 = vadd.f32 %v5591_v59, %v5590_v22  ;;  %v2720_v27 = vmul.f32 %v2316_v7, %v221_v53  ;;  %v5599_v59 = vsel %vm1768_vm0, %v13826_v40, 0.0  ;;  %v2318_v22 = vsel %vm1770_vm1, %v1739_v8, %v1740_v32  ;;  %v222_v8 = vld [vmem:[#allocation2 + $0x5b0] sm:$0xff] }
 0x529   :  { %v1167_v7 = vperm.slane %v11533_v47, 7  ;;  %v1747_v40 = vrot.slane %v1165_v11, 6  ;;  %v11625_v11 = vld [vmem:[#allocation5 + $0x2f0] sm:$0xff] }
 0x52a   :  { %v5594_v15 = vadd.f32 %v5593_v38, %v5592_v24  ;;  %v13827_v38 = vperm.slane %v11481_v54, 0  ;;  %v13829_v24 = vld [vmem:[#allocation59_spill] sm:$0xff] }
 0x52c   :  { %v5596_v12 = vadd.f32 %v5595_v14, %v5594_v15  ;;  %v2317_v17 = vsel %vm1768_vm0, %v13827_v38, %v1738_v63  ;;  %v13828_v14 = vperm.slane %v11481_v54, 4  ;;  %v5601_v15 = vsel %vm1768_vm0, %v13829_v24, 0.0 }
 0x52d   :  { %v11573_v60 = vld.sshfl [vmem:[#allocation1] sm:$0xff pattern:$0x73625140]  ;;  %v11575_v3 = vld.sshfl [vmem:[#allocation1 + $0x8] sm:$0xff pattern:$0x73625140]  ;;  %v2319_v54 = vsel %vm1772_vm2, %v2317_v17, %v2318_v22 }
 0x52e   :  { %13818 = vst [vmem:[#allocation94_spill] sm:$0xff] %v11573_v60  ;;  %v11577_v31 = vld.sshfl [vmem:[#allocation1 + $0x10] sm:$0xff pattern:$0x73625140]  ;;  %v5598_v53 = vadd.f32 %v5597_v25, %v5596_v12  ;;  %v2320_v36 = vsel %vm1768_vm0, %v13828_v14, %v1741_v51  ;;  %v1170_v63 = vperm.slane %v11579_v55, 2  ;;  %v1171_v25 = vperm.slane %v11579_v55, 3 }
 0x52f   :  { %13819 = vst [vmem:[#allocation95_spill] sm:$0xff] %v11575_v3  ;;  %v11581_v0 = vld.sshfl [vmem:[#allocation1 + $0x18] sm:$0xff pattern:$0x73625140]  ;;  %v1746_v38 = vrot.slane %v1163_v23, 2 }
 0x530   :  { %13820 = vst [vmem:[#allocation145_spill] sm:$0xff] %v11577_v31  ;;  %v11583_v43 = vld.sshfl [vmem:[#allocation1 + $0x20] sm:$0xff pattern:$0x73625140]  ;;  %v5600_v32 = vadd.f32 %v5599_v59, %v5598_v53  ;;  %v13830_v12 = vld [vmem:[#allocation60_spill] sm:$0xff]  ;;  %v2721_v53 = vmul.f32 %v2319_v54, %v222_v8 }
 0x531   :  { %13821 = vst [vmem:[#allocation11_spill] sm:$0xff] %v11581_v0  ;;  %v11585_v39 = vld.sshfl [vmem:[#allocation1 + $0x28] sm:$0xff pattern:$0x73625140]  ;;  %v5603_v51 = vsel %vm1768_vm0, %v13830_v12, 0.0  ;;  %v13833_v22 = vld [vmem:[#allocation148_spill] sm:$0xff] }
 0x532   :  { %13822 = vst [vmem:[#allocation227_spill] sm:$0xff] %v11583_v43  ;;  %v11587_v52 = vld.sshfl [vmem:[#allocation1 + $0x30] sm:$0xff pattern:$0x73625140]  ;;  %v5602_v24 = vadd.f32 %v5601_v15, %v5600_v32  ;;  %v13831_v43 = vld [vmem:[#allocation146_spill] sm:$0xff]  ;;  %v5609_v12 = vsel %vm1768_vm0, %v13833_v22, 0.0 }
 0x533   :  { %13823 = vst [vmem:[#allocation228_spill] sm:$0xff] %v11585_v39  ;;  %v11589_v46 = vld.sshfl [vmem:[#allocation1 + $0x38] sm:$0xff pattern:$0x73625140]  ;;  %v1749_v39 = vrot.slane %v1167_v7, 2  ;;  %v5605_v59 = vsel %vm1768_vm0, %v13831_v43, 0.0 }
 0x534   :  { %13824 = vst [vmem:[#allocation229_spill] sm:$0xff] %v11587_v52  ;;  %v1748_v52 = vrot.slane %v1166_v33, 4  ;;  %v5604_v0 = vadd.f32 %v5603_v51, %v5602_v24  ;;  %v1172_v32 = vperm.slane %v11579_v55, 4  ;;  %v1173_v51 = vperm.slane %v11579_v55, 5  ;;  %v13847_v3 = vld [vmem:[#allocation36_spill] sm:$0xff] }
 0x535   :  { %13825 = vst [vmem:[#allocation230_spill] sm:$0xff] %v11589_v46  ;;  %v1169_v46 = vperm.slane %v11579_v55, 1  ;;  %v13844_v22 = vperm.slane %v11533_v47, 4  ;;  %v5617_v60 = vsel %vm1768_vm0, %v13847_v3, 0.0 }
 0x536   :  { %3824 = vst [vmem:[#allocation1] ss:$4 sm:$0xff] %v2719_v29  ;;  %v2321_v29 = vsel %vm1770_vm1, %v1742_v9, %v1743_v41  ;;  %v223_v41 = vld [vmem:[#allocation2 + $0x5b8] sm:$0xff]  ;;  %v1745_v9 = vrot.slane %v1162_v34, 4  ;;  %v5606_v7 = vadd.f32 %v5605_v59, %v5604_v0  ;;  %v13843_v0 = vld [vmem:[#allocation96_spill] sm:$0xff] }
 0x537   :  { %3825 = vst [vmem:[#allocation1 + $0x20] ss:$4 sm:$0xff] %v2720_v27  ;;  %v1744_v27 = vrot.slane %v1161_v1, 6  ;;  %v2322_v14 = vsel %vm1772_vm2, %v2320_v36, %v2321_v29  ;;  %v13832_v1 = vld [vmem:[#allocation147_spill] sm:$0xff]  ;;  %v5611_v59 = vsel %vm1768_vm0, %v13843_v0, 0.0  ;;  %v1181_v0 = vperm.slane %v11625_v11, 5 }
 0x538   :  { %v5607_v17 = vsel %vm1768_vm0, %v13832_v1, 0.0  ;;  %v2722_v31 = vmul.f32 %v2322_v14, %v223_v41  ;;  %v13842_v41 = vperm.slane %v11533_v47, 0  ;;  %v2324_v24 = vsel %vm1770_vm1, %v1745_v9, %v1746_v38  ;;  %v13845_v9 = vld [vmem:[#allocation97_spill] sm:$0xff]  ;;  %v224_v38 = vld [vmem:[#allocation2 + $0x5c0] sm:$0xff] }
 0x539   :  { %v5608_v54 = vadd.f32 %v5607_v17, %v5606_v7  ;;  %v1174_v1 = vperm.slane %v11579_v55, 6  ;;  %v1175_v7 = vperm.slane %v11579_v55, 7 }
 0x53a   :  { %v2323_v14 = vsel %vm1768_vm0, %v13842_v41, %v1744_v27  ;;  %v1178_v27 = vperm.slane %v11625_v11, 2  ;;  %v1179_v41 = vperm.slane %v11625_v11, 3 }
 0x53b   :  { %v5610_v17 = vadd.f32 %v5609_v12, %v5608_v54  ;;  %v2325_v47 = vsel %vm1772_vm2, %v2323_v14, %v2324_v24  ;;  %v13846_v54 = vld [vmem:[#allocation98_spill] sm:$0xff]  ;;  %v5619_v14 = vsel %vm1768_vm0, %v13848_v19, 0.0 }
 0x53d   :  { %v11619_v34 = vld.sshfl [vmem:[#allocation1] sm:$0xff pattern:$0x73625140]  ;;  %v11621_v23 = vld.sshfl [vmem:[#allocation1 + $0x8] sm:$0xff pattern:$0x73625140] }
 0x53e   :  { %13834 = vst [vmem:[#allocation18_spill] sm:$0xff] %v11619_v34  ;;  %v11623_v36 = vld.sshfl [vmem:[#allocation1 + $0x10] sm:$0xff pattern:$0x73625140]  ;;  %v2723_v34 = vmul.f32 %v2325_v47, %v224_v38  ;;  %v1182_v38 = vperm.slane %v11625_v11, 6 }
 0x53f   :  { %13835 = vst [vmem:[#allocation59_spill] sm:$0xff] %v11621_v23  ;;  %v11627_v33 = vld.sshfl [vmem:[#allocation1 + $0x18] sm:$0xff pattern:$0x73625140]  ;;  %v1755_v23 = vrot.slane %v1175_v7, 2 }
 0x540   :  { %13836 = vst [vmem:[#allocation60_spill] sm:$0xff] %v11623_v36  ;;  %v11629_v43 = vld.sshfl [vmem:[#allocation1 + $0x20] sm:$0xff pattern:$0x73625140]  ;;  %v1754_v36 = vrot.slane %v1174_v1, 4 }
 0x541   :  { %13837 = vst [vmem:[#allocation146_spill] sm:$0xff] %v11627_v33  ;;  %v11631_v29 = vld.sshfl [vmem:[#allocation1 + $0x28] sm:$0xff pattern:$0x73625140]  ;;  %v1753_v33 = vrot.slane %v1173_v51, 6  ;;  %v13852_v7 = vld [vmem:[#allocation149_spill] sm:$0xff] }
 0x542   :  { %13838 = vst [vmem:[#allocation147_spill] sm:$0xff] %v11629_v43  ;;  %v11633_v15 = vld.sshfl [vmem:[#allocation1 + $0x30] sm:$0xff pattern:$0x73625140]  ;;  %v1752_v43 = vrot.slane %v1171_v25, 2  ;;  %v11671_v25 = vld [vmem:[#allocation5 + $0x2f8] sm:$0xff] }
 0x543   :  { %13839 = vst [vmem:[#allocation148_spill] sm:$0xff] %v11631_v29  ;;  %v11636_v8 = vld.sshfl [vmem:[#allocation1 + $0x38] sm:$0xff pattern:$0x73625140]  ;;  %v5615_v29 = vsel %vm1768_vm0, %v13846_v54, 0.0  ;;  %v2333_v54 = vsel %vm1770_vm1, %v1754_v36, %v1755_v23  ;;  %v227_v23 = vld [vmem:[#allocation2 + $0x5d8] sm:$0xff] }
 0x544   :  { %13840 = vst [vmem:[#allocation231_spill] sm:$0xff] %v11633_v15  ;;  %v1177_v15 = vperm.slane %v11625_v11, 1  ;;  %v1757_v36 = vrot.slane %v1178_v27, 4 }
 0x545   :  { %13841 = vst [vmem:[#allocation232_spill] sm:$0xff] %v11636_v8  ;;  %v2326_v8 = vsel %vm1768_vm0, %v13844_v22, %v1747_v40  ;;  %v5612_v40 = vadd.f32 %v5611_v59, %v5610_v17  ;;  %v225_v22 = vld [vmem:[#allocation2 + $0x5c8] sm:$0xff] }
 0x546   :  { %3834 = vst [vmem:[#allocation1] ss:$4 sm:$0xff] %v2721_v53  ;;  %v2327_v53 = vsel %vm1770_vm1, %v1748_v52, %v1749_v39  ;;  %v1750_v39 = vrot.slane %v1169_v46, 6  ;;  %v1751_v52 = vrot.slane %v1170_v63, 4 }
 0x547   :  { %3835 = vst [vmem:[#allocation1 + $0x20] ss:$4 sm:$0xff] %v2722_v31  ;;  %v5613_v31 = vsel %vm1768_vm0, %v13845_v9, 0.0  ;;  %v2328_v12 = vsel %vm1772_vm2, %v2326_v8, %v2327_v53 }
 0x548   :  { %v5614_v9 = vadd.f32 %v5613_v31, %v5612_v40  ;;  %v2724_v24 = vmul.f32 %v2328_v12, %v225_v22  ;;  %v5621_v31 = vsel %vm1768_vm0, %v13852_v7, 0.0  ;;  %v2330_v40 = vsel %vm1770_vm1, %v1751_v52, %v1752_v43 }
 0x549   :  { %v1183_v12 = vperm.slane %v11625_v11, 7  ;;  %v1180_v7 = vperm.slane %v11625_v11, 4  ;;  %v1186_v43 = vperm.slane %v11671_v25, 2  ;;  %v1756_v52 = vrot.slane %v1177_v15, 6 }
 0x54a   :  { %v5616_v59 = vadd.f32 %v5615_v29, %v5614_v9  ;;  %v13853_v29 = vperm.slane %v11579_v55, 0  ;;  %v1185_v55 = vperm.slane %v11671_v25, 1  ;;  %v5629_v15 = vsel %vm1768_vm0, %v10001_v44, 0.0 }
 0x54b   :  { %v1187_v44 = vperm.slane %v11671_v25, 3 }
 0x54c   :  { %v5618_v17 = vadd.f32 %v5617_v60, %v5616_v59  ;;  %v2329_v47 = vsel %vm1768_vm0, %v13853_v29, %v1750_v39  ;;  %v2332_v60 = vsel %vm1768_vm0, %v1172_v32, %v1753_v33  ;;  %v1176_v59 = vperm.slane %v11625_v11, 0  ;;  %v226_v29 = vld [vmem:[#allocation2 + $0x5d0] sm:$0xff] }
 0x54d   :  { %v11665_v46 = vld.sshfl [vmem:[#allocation1] sm:$0xff pattern:$0x73625140]  ;;  %v11667_v63 = vld.sshfl [vmem:[#allocation1 + $0x8] sm:$0xff pattern:$0x73625140] }
 0x54e   :  { %v11669_v8 = vld.sshfl [vmem:[#allocation1 + $0x10] sm:$0xff pattern:$0x73625140]  ;;  %v11673_v51 = vld.sshfl [vmem:[#allocation1 + $0x18] sm:$0xff pattern:$0x73625140]  ;;  %v5620_v22 = vadd.f32 %v5619_v14, %v5618_v17  ;;  %v2331_v14 = vsel %vm1772_vm2, %v2329_v47, %v2330_v40  ;;  %v2334_v17 = vsel %vm1772_vm2, %v2332_v60, %v2333_v54 }
 0x54f   :  { %v11675_v1 = vld.sshfl [vmem:[#allocation1 + $0x20] sm:$0xff pattern:$0x73625140]  ;;  %v11677_v53 = vld.sshfl [vmem:[#allocation1 + $0x28] sm:$0xff pattern:$0x73625140] }
 0x550   :  { %13849 = vst [vmem:[#allocation96_spill] sm:$0xff] %v11677_v53  ;;  %v11679_v3 = vld.sshfl [vmem:[#allocation1 + $0x30] sm:$0xff pattern:$0x73625140]  ;;  %v5622_v39 = vadd.f32 %v5621_v31, %v5620_v22  ;;  %v1758_v32 = vrot.slane %v1179_v41, 2  ;;  %v1760_v11 = vrot.slane %v1182_v38, 4  ;;  %v2725_v22 = vmul.f32 %v2331_v14, %v226_v29 }
 0x551   :  { %13850 = vst [vmem:[#allocation97_spill] sm:$0xff] %v11679_v3  ;;  %v11681_v19 = vld.sshfl [vmem:[#allocation1 + $0x38] sm:$0xff pattern:$0x73625140]  ;;  %v1761_v3 = vrot.slane %v1183_v12, 2  ;;  %v5627_v31 = vsel %vm1768_vm0, %v9999_v6, 0.0  ;;  %v2335_v14 = vsel %vm1768_vm0, %v1176_v59, %v1756_v52 }
 0x552   :  { %13851 = vst [vmem:[#allocation98_spill] sm:$0xff] %v11681_v19  ;;  %v1759_v19 = vrot.slane %v1181_v0, 6  ;;  %v13856_v47 = vld [vmem:[#allocation20_spill] sm:$0xff]  ;;  %v1189_v29 = vperm.slane %v11671_v25, 5  ;;  %v1184_v59 = vperm.slane %v11671_v25, 0  ;;  %v1188_v52 = vperm.slane %v11671_v25, 4 }
 0x553   :  { %3844 = vst [vmem:[#allocation1] ss:$4 sm:$0xff] %v2723_v34  ;;  %v13854_v34 = vld [vmem:[#allocation150_spill] sm:$0xff]  ;;  %v5631_v40 = vsel %vm1768_vm0, %v13856_v47, 0.0 }
 0x554   :  { %3845 = vst [vmem:[#allocation1 + $0x20] ss:$4 sm:$0xff] %v2724_v24  ;;  %v5623_v9 = vsel %vm1768_vm0, %v13854_v34, 0.0  ;;  %v13855_v24 = vld [vmem:[#allocation151_spill] sm:$0xff] }
 0x555   :  { %v5625_v33 = vsel %vm1768_vm0, %v13855_v24, 0.0  ;;  %v5624_v34 = vadd.f32 %v5623_v9, %v5622_v39  ;;  %v2726_v24 = vmul.f32 %v2334_v17, %v227_v23  ;;  %v13863_v23 = vld [vmem:[#allocation61_spill] sm:$0xff]  ;;  %v1190_v17 = vperm.slane %v11671_v25, 6 }
 0x557   :  { %v5626_v53 = vadd.f32 %v5625_v33, %v5624_v34  ;;  %v2336_v33 = vsel %vm1770_vm1, %v1757_v36, %v1758_v32  ;;  %v2338_v34 = vsel %vm1768_vm0, %v1180_v7, %v1759_v19 }
 0x558   :  { %v2337_v36 = vsel %vm1772_vm2, %v2335_v14, %v2336_v33 }
 0x559   :  { %v5628_v6 = vadd.f32 %v5627_v31, %v5626_v53  ;;  %v5633_v53 = vsel %vm1768_vm0, %v13863_v23, 0.0  ;;  %v2339_v31 = vsel %vm1770_vm1, %v1760_v11, %v1761_v3  ;;  %v1762_v23 = vrot.slane %v1185_v55, 6  ;;  %v13865_v3 = vld [vmem:[#allocation99_spill] sm:$0xff] }
 0x55a   :  { %v11709_v27 = vld.sshfl [vmem:[#allocation1] sm:$0xff pattern:$0x73625140]  ;;  %v11711_v41 = vld.sshfl [vmem:[#allocation1 + $0x8] sm:$0xff pattern:$0x73625140]  ;;  %v2340_v19 = vsel %vm1772_vm2, %v2338_v34, %v2339_v31 }
 0x55b   :  { %v11713_v60 = vld.sshfl [vmem:[#allocation1 + $0x10] sm:$0xff pattern:$0x73625140]  ;;  %v11715_v0 = vld.sshfl [vmem:[#allocation1 + $0x18] sm:$0xff pattern:$0x73625140]  ;;  %v5630_v39 = vadd.f32 %v5629_v15, %v5628_v6 }
 0x55c   :  { %13857 = vst [vmem:[#allocation36_spill] sm:$0xff] %v11713_v60  ;;  %v11717_v38 = vld.sshfl [vmem:[#allocation1 + $0x20] sm:$0xff pattern:$0x73625140]  ;;  %v5637_v7 = vsel %vm1768_vm0, %v13865_v3, 0.0  ;;  %v1764_v11 = vrot.slane %v1187_v44, 2 }
 0x55d   :  { %13858 = vst [vmem:[#allocation35_spill] sm:$0xff] %v11715_v0  ;;  %v11719_v12 = vld.sshfl [vmem:[#allocation1 + $0x28] sm:$0xff pattern:$0x73625140]  ;;  %v5632_v47 = vadd.f32 %v5631_v40, %v5630_v39  ;;  %v1765_v40 = vrot.slane %v1189_v29, 6  ;;  %v1766_v39 = vrot.slane %v1190_v17, 4 }
 0x55e   :  { %13859 = vst [vmem:[#allocation149_spill] sm:$0xff] %v11717_v38  ;;  %v11721_v54 = vld.sshfl [vmem:[#allocation1 + $0x30] sm:$0xff pattern:$0x73625140]  ;;  %v13864_v15 = vld [vmem:[#allocation62_spill] sm:$0xff]  ;;  %v230_v3 = vld [vmem:[#allocation2 + $0x5f0] sm:$0xff] }
 0x55f   :  { %13860 = vst [vmem:[#allocation150_spill] sm:$0xff] %v11719_v12  ;;  %v11724_v9 = vld.sshfl [vmem:[#allocation1 + $0x38] sm:$0xff pattern:$0x73625140]  ;;  %v5635_v6 = vsel %vm1768_vm0, %v13864_v15, 0.0  ;;  %v5634_v32 = vadd.f32 %v5633_v53, %v5632_v47  ;;  %v2341_v47 = vsel %vm1768_vm0, %v1184_v59, %v1762_v23 }
 0x560   :  { %13861 = vst [vmem:[#allocation151_spill] sm:$0xff] %v11721_v54  ;;  %v1763_v54 = vrot.slane %v1186_v43, 4  ;;  %v13866_v0 = vld [vmem:[#allocation100_spill] sm:$0xff]  ;;  %v13869_v23 = vld [vmem:[#allocation37_spill] sm:$0xff] }
 0x561   :  { %13862 = vst [vmem:[#allocation20_spill] sm:$0xff] %v11724_v9  ;;  %v228_v9 = vld [vmem:[#allocation2 + $0x5e0] sm:$0xff]  ;;  %v5636_v15 = vadd.f32 %v5635_v6, %v5634_v32  ;;  %v13867_v60 = vld [vmem:[#allocation152_spill] sm:$0xff] }
 0x562   :  { %3854 = vst [vmem:[#allocation1] ss:$4 sm:$0xff] %v2725_v22  ;;  %v1191_v22 = vperm.slane %v11671_v25, 7  ;;  %v2727_v38 = vmul.f32 %v2337_v36, %v228_v9  ;;  %v5639_v25 = vsel %vm1768_vm0, %v13866_v0, 0.0  ;;  %v5641_v14 = vsel %vm1768_vm0, %v13867_v60, 0.0 }
 0x563   :  { %3855 = vst [vmem:[#allocation1 + $0x20] ss:$4 sm:$0xff] %v2726_v24  ;;  %v229_v24 = vld [vmem:[#allocation2 + $0x5e8] sm:$0xff]  ;;  %v5638_v34 = vadd.f32 %v5637_v7, %v5636_v15  ;;  %v5643_v60 = vsel %vm1768_vm0, %v10057_v13, 0.0  ;;  %v2344_v36 = vsel %vm1768_vm0, %v1188_v52, %v1765_v40  ;;  %v231_v15 = vld [vmem:[#allocation2 + $0x5f8] sm:$0xff] }
 0x564   :  { %v1767_v12 = vrot.slane %v1191_v22, 2  ;;  %v2728_v33 = vmul.f32 %v2340_v19, %v229_v24  ;;  %v2342_v22 = vsel %vm1770_vm1, %v1763_v54, %v1764_v11  ;;  %v5645_v24 = vsel %vm1768_vm0, %v10059_v48, 0.0  ;;  %v13868_v7 = vld [vmem:[#allocation63_spill] sm:$0xff]  ;;  %v13871_v48 = vld [vmem:[#allocation38_spill] sm:$0xff] }
 0x565   :  { %v5640_v0 = vadd.f32 %v5639_v25, %v5638_v34  ;;  %v5647_v13 = vsel %vm1768_vm0, %v13868_v7, 0.0  ;;  %v5649_v11 = vsel %vm1768_vm0, %v13869_v23, 0.0  ;;  %v5653_v25 = vsel %vm1768_vm0, %v13871_v48, 0.0  ;;  %v13873_v7 = vld [vmem:[#allocation154_spill] sm:$0xff]  ;;  %v13874_v23 = vld [vmem:[#allocation64_spill] sm:$0xff]  ;;  %v13876_v48 = vld [vmem:[#allocation65_spill] sm:$0xff] }
 0x566   :  { %v2345_v32 = vsel %vm1770_vm1, %v1766_v39, %v1767_v12  ;;  %v13870_v12 = vld [vmem:[#allocation12_spill] sm:$0xff] }
 0x567   :  { %v5642_v6 = vadd.f32 %v5641_v14, %v5640_v0  ;;  %v2346_v59 = vsel %vm1772_vm2, %v2344_v36, %v2345_v32  ;;  %v5651_v39 = vsel %vm1768_vm0, %v13870_v12, 0.0  ;;  %v13875_v12 = vld [vmem:[#allocation101_spill] sm:$0xff] }
 0x568   :  { %v2730_v14 = vmul.f32 %v2346_v59, %v231_v15  ;;  %v5659_v59 = vsel %vm1768_vm0, %v10115_v2, 0.0 }
 0x569   :  { %v11747_v55 = vld.sshfl [vmem:[#allocation1] sm:$0xff pattern:$0x73625140]  ;;  %v11749_v43 = vld.sshfl [vmem:[#allocation1 + $0x8] sm:$0xff pattern:$0x73625140]  ;;  %v5644_v19 = vadd.f32 %v5643_v60, %v5642_v6 }
 0x56a   :  { %v11751_v53 = vld.sshfl [vmem:[#allocation1 + $0x10] sm:$0xff pattern:$0x73625140]  ;;  %v11753_v44 = vld.sshfl [vmem:[#allocation1 + $0x18] sm:$0xff pattern:$0x73625140] }
 0x56b   :  { %v11755_v29 = vld.sshfl [vmem:[#allocation1 + $0x20] sm:$0xff pattern:$0x73625140]  ;;  %v11757_v17 = vld.sshfl [vmem:[#allocation1 + $0x28] sm:$0xff pattern:$0x73625140]  ;;  %v5646_v54 = vadd.f32 %v5645_v24, %v5644_v19 }
 0x56c   :  { %v11759_v9 = vld.sshfl [vmem:[#allocation1 + $0x30] sm:$0xff pattern:$0x73625140]  ;;  %v11761_v31 = vld.sshfl [vmem:[#allocation1 + $0x38] sm:$0xff pattern:$0x73625140] }
 0x56d   :  { %3864 = vst [vmem:[#allocation1] ss:$4 sm:$0xff] %v2727_v38  ;;  %v2343_v38 = vsel %vm1772_vm2, %v2341_v47, %v2342_v22  ;;  %v5648_v40 = vadd.f32 %v5647_v13, %v5646_v54  ;;  %v13872_v19 = vld [vmem:[#allocation153_spill] sm:$0xff]  ;;  %v5657_v13 = vsel %vm1768_vm0, %v13873_v7, 0.0  ;;  %v13879_v7 = vld [vmem:[#allocation156_spill] sm:$0xff] }
 0x56e   :  { %3865 = vst [vmem:[#allocation1 + $0x20] ss:$4 sm:$0xff] %v2728_v33  ;;  %v2729_v52 = vmul.f32 %v2343_v38, %v230_v3  ;;  %v5655_v3 = vsel %vm1768_vm0, %v13872_v19, 0.0 }
 0x56f   :  { %v5650_v22 = vadd.f32 %v5649_v11, %v5648_v40  ;;  %v5661_v11 = vsel %vm1768_vm0, %v13874_v23, 0.0 }
 0x571   :  { %v5652_v24 = vadd.f32 %v5651_v39, %v5650_v22  ;;  %v13877_v22 = vld [vmem:[#allocation66_spill] sm:$0xff] }
 0x573   :  { %v5654_v38 = vadd.f32 %v5653_v25, %v5652_v24  ;;  %v5667_v24 = vsel %vm1768_vm0, %v13877_v22, 0.0 }
 0x574   :  { %v11781_v33 = vld.sshfl [vmem:[#allocation1] sm:$0xff pattern:$0x73625140]  ;;  %v11783_v34 = vld.sshfl [vmem:[#allocation1 + $0x8] sm:$0xff pattern:$0x73625140] }
 0x575   :  { %v11785_v0 = vld.sshfl [vmem:[#allocation1 + $0x10] sm:$0xff pattern:$0x73625140]  ;;  %v11787_v60 = vld.sshfl [vmem:[#allocation1 + $0x18] sm:$0xff pattern:$0x73625140]  ;;  %v5656_v15 = vadd.f32 %v5655_v3, %v5654_v38 }
 0x576   :  { %v11789_v47 = vld.sshfl [vmem:[#allocation1 + $0x20] sm:$0xff pattern:$0x73625140]  ;;  %v11791_v6 = vld.sshfl [vmem:[#allocation1 + $0x28] sm:$0xff pattern:$0x73625140] }
 0x577   :  { %v11793_v36 = vld.sshfl [vmem:[#allocation1 + $0x30] sm:$0xff pattern:$0x73625140]  ;;  %v11795_v32 = vld.sshfl [vmem:[#allocation1 + $0x38] sm:$0xff pattern:$0x73625140]  ;;  %v5658_v54 = vadd.f32 %v5657_v13, %v5656_v15 }
 0x578   :  { %3874 = vst [vmem:[#allocation1] ss:$4 sm:$0xff] %v2729_v52  ;;  %v5663_v52 = vsel %vm1768_vm0, %v13875_v12, 0.0  ;;  %v13878_v3 = vld [vmem:[#allocation155_spill] sm:$0xff]  ;;  %v5671_v13 = vsel %vm1768_vm0, %v13879_v7, 0.0  ;;  %v5677_v12 = vsel %vm1768_vm0, %v10173_v50, 0.0 }
 0x579   :  { %3875 = vst [vmem:[#allocation1 + $0x20] ss:$4 sm:$0xff] %v2730_v14  ;;  %v5660_v40 = vadd.f32 %v5659_v59, %v5658_v54  ;;  %v5665_v14 = vsel %vm1768_vm0, %v13876_v48, 0.0  ;;  %v5669_v2 = vsel %vm1768_vm0, %v13878_v3, 0.0  ;;  %v13880_v59 = vld [vmem:[#allocation157_spill] sm:$0xff] }
 0x57a   :  { %v5673_v54 = vsel %vm1768_vm0, %v13880_v59, 0.0  ;;  %v13886_v59 = vld [vmem:[#allocation158_spill] sm:$0xff] }
 0x57b   :  { %v5662_v39 = vadd.f32 %v5661_v11, %v5660_v40  ;;  %v5675_v11 = vsel %vm1768_vm0, %v10171_v61, 0.0 }
 0x57d   :  { %v5664_v25 = vadd.f32 %v5663_v52, %v5662_v39  ;;  %v13881_v39 = vld [vmem:[#allocation67_spill] sm:$0xff] }
 0x57e   :  { %v5679_v48 = vsel %vm1768_vm0, %v13881_v39, 0.0 }
 0x57f   :  { %v5666_v19 = vadd.f32 %v5665_v14, %v5664_v25  ;;  %v13882_v25 = vld [vmem:[#allocation102_spill] sm:$0xff] }
 0x580   :  { %v5681_v22 = vsel %vm1768_vm0, %v13882_v25, 0.0 }
 0x581   :  { %v5668_v38 = vadd.f32 %v5667_v24, %v5666_v19  ;;  %v13883_v19 = vld [vmem:[#allocation103_spill] sm:$0xff] }
 0x582   :  { %v5683_v3 = vsel %vm1768_vm0, %v13883_v19, 0.0 }
 0x583   :  { %v5670_v15 = vadd.f32 %v5669_v2, %v5668_v38  ;;  %v13884_v38 = vld [vmem:[#allocation104_spill] sm:$0xff] }
 0x584   :  { %v5685_v61 = vsel %vm1768_vm0, %v13884_v38, 0.0 }
 0x585   :  { %v5672_v23 = vadd.f32 %v5671_v13, %v5670_v15  ;;  %v13885_v13 = vld [vmem:[#allocation105_spill] sm:$0xff] }
 0x586   :  { %v5687_v50 = vsel %vm1768_vm0, %v13885_v13, 0.0  ;;  %v13892_v13 = vld [vmem:[#allocation161_spill] sm:$0xff] }
 0x587   :  { %v5674_v40 = vadd.f32 %v5673_v54, %v5672_v23  ;;  %v5689_v54 = vsel %vm1768_vm0, %v13886_v59, 0.0  ;;  %v13893_v59 = vld [vmem:[#allocation162_spill] sm:$0xff] }
 0x589   :  { %v5676_v52 = vadd.f32 %v5675_v11, %v5674_v40  ;;  %v5691_v11 = vsel %vm1768_vm0, %v10229_v37, 0.0 }
 0x58b   :  { %v5678_v14 = vadd.f32 %v5677_v12, %v5676_v52  ;;  %v13887_v12 = vld [vmem:[#allocation21_spill] sm:$0xff] }
 0x58c   :  { %v5693_v52 = vsel %vm1768_vm0, %v13887_v12, 0.0 }
 0x58d   :  { %v5680_v24 = vadd.f32 %v5679_v48, %v5678_v14  ;;  %v13888_v48 = vld [vmem:[#allocation13_spill] sm:$0xff] }
 0x58e   :  { %v5695_v14 = vsel %vm1768_vm0, %v13888_v48, 0.0 }
 0x58f   :  { %v5682_v2 = vadd.f32 %v5681_v22, %v5680_v24  ;;  %v13889_v22 = vld [vmem:[#allocation39_spill] sm:$0xff] }
 0x590   :  { %v5697_v24 = vsel %vm1768_vm0, %v13889_v22, 0.0 }
 0x591   :  { %v5684_v7 = vadd.f32 %v5683_v3, %v5682_v2  ;;  %v13890_v3 = vld [vmem:[#allocation159_spill] sm:$0xff] }
 0x592   :  { %v5699_v2 = vsel %vm1768_vm0, %v13890_v3, 0.0 }
 0x593   :  { %v5686_v15 = vadd.f32 %v5685_v61, %v5684_v7  ;;  %v13891_v61 = vld [vmem:[#allocation160_spill] sm:$0xff] }
 0x594   :  { %v5701_v37 = vsel %vm1768_vm0, %v13891_v61, 0.0 }
 0x595   :  { %v5688_v23 = vadd.f32 %v5687_v50, %v5686_v15  ;;  %v5703_v50 = vsel %vm1768_vm0, %v13892_v13, 0.0 }
 0x597   :  { %v5690_v40 = vadd.f32 %v5689_v54, %v5688_v23  ;;  %v5705_v54 = vsel %vm1768_vm0, %v13893_v59, 0.0 }
 0x599   :  { %v5692_v39 = vadd.f32 %v5691_v11, %v5690_v40  ;;  %v13894_v11 = vld [vmem:[#allocation40_spill] sm:$0xff] }
 0x59a   :  { %v5707_v40 = vsel %vm1768_vm0, %v13894_v11, 0.0 }
 0x59b   :  { %v5694_v25 = vadd.f32 %v5693_v52, %v5692_v39  ;;  %v13895_v52 = vld [vmem:[#allocation41_spill] sm:$0xff] }
 0x59c   :  { %v5709_v39 = vsel %vm1768_vm0, %v13895_v52, 0.0 }
 0x59d   :  { %v5696_v19 = vadd.f32 %v5695_v14, %v5694_v25  ;;  %v13896_v14 = vld [vmem:[#allocation23_spill] sm:$0xff] }
 0x59e   :  { %v5711_v25 = vsel %vm1768_vm0, %v13896_v14, 0.0 }
 0x59f   :  { %v5698_v38 = vadd.f32 %v5697_v24, %v5696_v19  ;;  %v13897_v24 = vld [vmem:[#allocation14_spill] sm:$0xff] }
 0x5a0   :  { %v5713_v19 = vsel %vm1768_vm0, %v13897_v24, 0.0 }
 0x5a1   :  { %v5700_v7 = vadd.f32 %v5699_v2, %v5698_v38  ;;  %v13898_v2 = vld [vmem:[#allocation106_spill] sm:$0xff] }
 0x5a2   :  { %v5715_v38 = vsel %vm1768_vm0, %v13898_v2, 0.0 }
 0x5a3   :  { %v5702_v15 = vadd.f32 %v5701_v37, %v5700_v7  ;;  %v13899_v37 = vld [vmem:[#allocation163_spill] sm:$0xff] }
 0x5a4   :  { %v5717_v7 = vsel %vm1768_vm0, %v13899_v37, 0.0 }
 0x5a5   :  { %v5704_v23 = vadd.f32 %v5703_v50, %v5702_v15  ;;  %v13900_v50 = vld [vmem:[#allocation164_spill] sm:$0xff] }
 0x5a6   :  { %v5719_v15 = vsel %vm1768_vm0, %v13900_v50, 0.0 }
 0x5a7   :  { %v5706_v12 = vadd.f32 %v5705_v54, %v5704_v23  ;;  %v13901_v54 = vld [vmem:[#allocation165_spill] sm:$0xff] }
 0x5a8   :  { %v5721_v23 = vsel %vm1768_vm0, %v13901_v54, 0.0 }
 0x5a9   :  { %v5708_v48 = vadd.f32 %v5707_v40, %v5706_v12  ;;  %v13902_v40 = vld [vmem:[#allocation107_spill] sm:$0xff] }
 0x5aa   :  { %v5723_v12 = vsel %vm1768_vm0, %v13902_v40, 0.0 }
 0x5ab   :  { %v5710_v22 = vadd.f32 %v5709_v39, %v5708_v48  ;;  %v13903_v39 = vld [vmem:[#allocation108_spill] sm:$0xff] }
 0x5ac   :  { %v5725_v48 = vsel %vm1768_vm0, %v13903_v39, 0.0  ;;  %v5741_v39 = vsel %vm1768_vm0, %v10405_v45, 0.0 }
 0x5ad   :  { %v5712_v3 = vadd.f32 %v5711_v25, %v5710_v22  ;;  %v13904_v25 = vld [vmem:[#allocation109_spill] sm:$0xff] }
 0x5ae   :  { %v5727_v22 = vsel %vm1768_vm0, %v13904_v25, 0.0 }
 0x5af   :  { %v5714_v61 = vadd.f32 %v5713_v19, %v5712_v3  ;;  %v13905_v19 = vld [vmem:[#allocation110_spill] sm:$0xff] }
 0x5b0   :  { %v5729_v3 = vsel %vm1768_vm0, %v13905_v19, 0.0 }
 0x5b1   :  { %v5716_v13 = vadd.f32 %v5715_v38, %v5714_v61  ;;  %v13906_v38 = vld [vmem:[#allocation68_spill] sm:$0xff] }
 0x5b2   :  { %v5731_v61 = vsel %vm1768_vm0, %v13906_v38, 0.0 }
 0x5b3   :  { %v5718_v59 = vadd.f32 %v5717_v7, %v5716_v13  ;;  %v13907_v7 = vld [vmem:[#allocation166_spill] sm:$0xff] }
 0x5b4   :  { %v5733_v13 = vsel %vm1768_vm0, %v13907_v7, 0.0  ;;  %v13913_v7 = vld [vmem:[#allocation42_spill] sm:$0xff] }
 0x5b5   :  { %v5720_v11 = vadd.f32 %v5719_v15, %v5718_v59  ;;  %v13908_v15 = vld [vmem:[#allocation167_spill] sm:$0xff]  ;;  %v5751_v45 = vsel %vm1768_vm0, %v13913_v7, 0.0  ;;  %v5771_v7 = vsel %vm1768_vm0, %v10519_v57, 0.0 }
 0x5b6   :  { %v5735_v59 = vsel %vm1768_vm0, %v13908_v15, 0.0 }
 0x5b7   :  { %v5722_v52 = vadd.f32 %v5721_v23, %v5720_v11  ;;  %v13909_v23 = vld [vmem:[#allocation168_spill] sm:$0xff] }
 0x5b8   :  { %v5737_v11 = vsel %vm1768_vm0, %v13909_v23, 0.0  ;;  %v5757_v23 = vsel %vm1768_vm0, %v10463_v26, 0.0 }
 0x5b9   :  { %v5724_v14 = vadd.f32 %v5723_v12, %v5722_v52  ;;  %v5739_v12 = vsel %vm1768_vm0, %v10403_v16, 0.0 }
 0x5bb   :  { %v5726_v24 = vadd.f32 %v5725_v48, %v5724_v14  ;;  %v5743_v14 = vsel %vm1768_vm0, %v10407_v18, 0.0 }
 0x5bd   :  { %v5728_v2 = vadd.f32 %v5727_v22, %v5726_v24  ;;  %v13910_v22 = vld [vmem:[#allocation69_spill] sm:$0xff] }
 0x5be   :  { %v5745_v24 = vsel %vm1768_vm0, %v13910_v22, 0.0 }
 0x5bf   :  { %v5730_v37 = vadd.f32 %v5729_v3, %v5728_v2  ;;  %v13911_v3 = vld [vmem:[#allocation70_spill] sm:$0xff] }
 0x5c0   :  { %v5747_v2 = vsel %vm1768_vm0, %v13911_v3, 0.0 }
 0x5c1   :  { %v5732_v50 = vadd.f32 %v5731_v61, %v5730_v37  ;;  %v13912_v61 = vld [vmem:[#allocation24_spill] sm:$0xff] }
 0x5c2   :  { %v5749_v16 = vsel %vm1768_vm0, %v13912_v61, 0.0  ;;  %v13920_v61 = vld [vmem:[#allocation171_spill] sm:$0xff] }
 0x5c3   :  { %v5734_v54 = vadd.f32 %v5733_v13, %v5732_v50  ;;  %v13914_v50 = vld [vmem:[#allocation111_spill] sm:$0xff] }
 0x5c4   :  { %v5753_v18 = vsel %vm1768_vm0, %v13914_v50, 0.0 }
 0x5c5   :  { %v5736_v40 = vadd.f32 %v5735_v59, %v5734_v54  ;;  %v5755_v59 = vsel %vm1768_vm0, %v10461_v10, 0.0 }
 0x5c7   :  { %v5738_v52 = vadd.f32 %v5737_v11, %v5736_v40  ;;  %v13915_v40 = vld [vmem:[#allocation112_spill] sm:$0xff] }
 0x5c9   :  { %v5740_v48 = vadd.f32 %v5739_v12, %v5738_v52  ;;  %v5759_v12 = vsel %vm1768_vm0, %v13915_v40, 0.0 }
 0x5cb   :  { %v5742_v25 = vadd.f32 %v5741_v39, %v5740_v48  ;;  %v13916_v39 = vld [vmem:[#allocation113_spill] sm:$0xff] }
 0x5cc   :  { %v5761_v48 = vsel %vm1768_vm0, %v13916_v39, 0.0 }
 0x5cd   :  { %v5744_v19 = vadd.f32 %v5743_v14, %v5742_v25  ;;  %v13917_v25 = vld [vmem:[#allocation43_spill] sm:$0xff] }
 0x5ce   :  { %v5763_v22 = vsel %vm1768_vm0, %v13917_v25, 0.0  ;;  %v13925_v25 = vld [vmem:[#allocation172_spill] sm:$0xff] }
 0x5cf   :  { %v5746_v38 = vadd.f32 %v5745_v24, %v5744_v19  ;;  %v13918_v19 = vld [vmem:[#allocation169_spill] sm:$0xff] }
 0x5d0   :  { %v5765_v10 = vsel %vm1768_vm0, %v13918_v19, 0.0 }
 0x5d1   :  { %v5748_v37 = vadd.f32 %v5747_v2, %v5746_v38  ;;  %v13919_v2 = vld [vmem:[#allocation170_spill] sm:$0xff] }
 0x5d2   :  { %v5767_v26 = vsel %vm1768_vm0, %v13919_v2, 0.0  ;;  %v13926_v2 = vld [vmem:[#allocation15_spill] sm:$0xff] }
 0x5d3   :  { %v5750_v13 = vadd.f32 %v5749_v16, %v5748_v37  ;;  %v5769_v16 = vsel %vm1768_vm0, %v13920_v61, 0.0  ;;  %v13927_v61 = vld [vmem:[#allocation26_spill] sm:$0xff] }
 0x5d5   :  { %v5752_v15 = vadd.f32 %v5751_v45, %v5750_v13  ;;  %v5773_v13 = vsel %vm1768_vm0, %v10521_v58, 0.0 }
 0x5d7   :  { %v5754_v54 = vadd.f32 %v5753_v18, %v5752_v15  ;;  %v5775_v18 = vsel %vm1768_vm0, %v10523_v35, 0.0  ;;  %v5785_v35 = vsel %vm1768_vm0, %v13925_v25, 0.0  ;;  %v13934_v25 = vld [vmem:[#allocation75_spill] sm:$0xff] }
 0x5d9   :  { %v5756_v11 = vadd.f32 %v5755_v59, %v5754_v54  ;;  %v13921_v59 = vld [vmem:[#allocation71_spill] sm:$0xff] }
 0x5da   :  { %v5777_v54 = vsel %vm1768_vm0, %v13921_v59, 0.0 }
 0x5db   :  { %v5758_v52 = vadd.f32 %v5757_v23, %v5756_v11  ;;  %v13922_v11 = vld [vmem:[#allocation72_spill] sm:$0xff] }
 0x5dc   :  { %v5779_v40 = vsel %vm1768_vm0, %v13922_v11, 0.0 }
 0x5dd   :  { %v5760_v14 = vadd.f32 %v5759_v12, %v5758_v52  ;;  %v13923_v52 = vld [vmem:[#allocation73_spill] sm:$0xff] }
 0x5de   :  { %v5781_v57 = vsel %vm1768_vm0, %v13923_v52, 0.0  ;;  %v13932_v52 = vld [vmem:[#allocation114_spill] sm:$0xff] }
 0x5df   :  { %v5762_v24 = vadd.f32 %v5761_v48, %v5760_v14  ;;  %v13924_v48 = vld [vmem:[#allocation74_spill] sm:$0xff] }
 0x5e0   :  { %v5783_v58 = vsel %vm1768_vm0, %v13924_v48, 0.0  ;;  %v13933_v48 = vld [vmem:[#allocation45_spill] sm:$0xff] }
 0x5e1   :  { %v5764_v3 = vadd.f32 %v5763_v22, %v5762_v24  ;;  %v5787_v24 = vsel %vm1768_vm0, %v10577_v42, 0.0 }
 0x5e3   :  { %v5766_v38 = vadd.f32 %v5765_v10, %v5764_v3  ;;  %v5789_v10 = vsel %vm1768_vm0, %v10579_v20, 0.0 }
 0x5e5   :  { %v5768_v37 = vadd.f32 %v5767_v26, %v5766_v38  ;;  %v5791_v26 = vsel %vm1768_vm0, %v13926_v2, 0.0 }
 0x5e7   :  { %v5770_v45 = vadd.f32 %v5769_v16, %v5768_v37  ;;  %v5793_v16 = vsel %vm1768_vm0, %v13927_v61, 0.0 }
 0x5e9   :  { %v5772_v50 = vadd.f32 %v5771_v7, %v5770_v45  ;;  %v13928_v7 = vld [vmem:[#allocation44_spill] sm:$0xff] }
 0x5ea   :  { %v5795_v45 = vsel %vm1768_vm0, %v13928_v7, 0.0 }
 0x5eb   :  { %v5774_v15 = vadd.f32 %v5773_v13, %v5772_v50  ;;  %v13929_v50 = vld [vmem:[#allocation173_spill] sm:$0xff] }
 0x5ec   :  { %v5797_v42 = vsel %vm1768_vm0, %v13929_v50, 0.0 }
 0x5ed   :  { %v5776_v23 = vadd.f32 %v5775_v18, %v5774_v15  ;;  %v13930_v15 = vld [vmem:[#allocation174_spill] sm:$0xff] }
 0x5ee   :  { %v5799_v20 = vsel %vm1768_vm0, %v13930_v15, 0.0 }
 0x5ef   :  { %v5778_v12 = vadd.f32 %v5777_v54, %v5776_v23  ;;  %v13931_v54 = vld [vmem:[#allocation175_spill] sm:$0xff] }
 0x5f0   :  { %v5801_v23 = vsel %vm1768_vm0, %v13931_v54, 0.0 }
 0x5f1   :  { %v5780_v39 = vadd.f32 %v5779_v40, %v5778_v12  ;;  %v5803_v40 = vsel %vm1768_vm0, %v10633_v30, 0.0 }
 0x5f3   :  { %v5782_v14 = vadd.f32 %v5781_v57, %v5780_v39  ;;  %v5805_v57 = vsel %vm1768_vm0, %v13932_v52, 0.0 }
 0x5f5   :  { %v5784_v22 = vadd.f32 %v5783_v58, %v5782_v14  ;;  %v5807_v58 = vsel %vm1768_vm0, %v13933_v48, 0.0 }
 0x5f7   :  { %v5786_v19 = vadd.f32 %v5785_v35, %v5784_v22  ;;  %v5809_v35 = vsel %vm1768_vm0, %v13934_v25, 0.0 }
 0x5f9   :  { %v5788_v3 = vadd.f32 %v5787_v24, %v5786_v19  ;;  %v13935_v24 = vld [vmem:[#allocation115_spill] sm:$0xff] }
 0x5fa   :  { %v5811_v19 = vsel %vm1768_vm0, %v13935_v24, 0.0 }
 0x5fb   :  { %v5790_v38 = vadd.f32 %v5789_v10, %v5788_v3  ;;  %v13936_v3 = vld [vmem:[#allocation176_spill] sm:$0xff] }
 0x5fc   :  { %v5813_v30 = vsel %vm1768_vm0, %v13936_v3, 0.0 }
 0x5fd   :  { %v5792_v37 = vadd.f32 %v5791_v26, %v5790_v38  ;;  %v13937_v26 = vld [vmem:[#allocation177_spill] sm:$0xff] }
 0x5fe   :  { %v5815_v38 = vsel %vm1768_vm0, %v13937_v26, 0.0  ;;  %v13947_v26 = vld [vmem:[#allocation17_spill] sm:$0xff] }
 0x5ff   :  { %v5794_v13 = vadd.f32 %v5793_v16, %v5792_v37  ;;  %v13938_v16 = vld [vmem:[#allocation178_spill] sm:$0xff] }
 0x600   :  { %v5817_v37 = vsel %vm1768_vm0, %v13938_v16, 0.0  ;;  %v13948_v16 = vld [vmem:[#allocation46_spill] sm:$0xff] }
 0x601   :  { %v5796_v18 = vadd.f32 %v5795_v45, %v5794_v13  ;;  %v13939_v45 = vld [vmem:[#allocation116_spill] sm:$0xff] }
 0x602   :  { %v5819_v13 = vsel %vm1768_vm0, %v13939_v45, 0.0  ;;  %v13949_v45 = vld [vmem:[#allocation76_spill] sm:$0xff] }
 0x603   :  { %v5798_v59 = vadd.f32 %v5797_v42, %v5796_v18  ;;  %v13940_v42 = vld [vmem:[#allocation117_spill] sm:$0xff] }
 0x604   :  { %v5821_v18 = vsel %vm1768_vm0, %v13940_v42, 0.0  ;;  %v13950_v42 = vld [vmem:[#allocation119_spill] sm:$0xff] }
 0x605   :  { %v5800_v11 = vadd.f32 %v5799_v20, %v5798_v59  ;;  %v13941_v20 = vld [vmem:[#allocation118_spill] sm:$0xff] }
 0x606   :  { %v5823_v59 = vsel %vm1768_vm0, %v13941_v20, 0.0 }
 0x607   :  { %v5802_v12 = vadd.f32 %v5801_v23, %v5800_v11  ;;  %v13942_v23 = vld [vmem:[#allocation27_spill] sm:$0xff] }
 0x608   :  { %v5825_v11 = vsel %vm1768_vm0, %v13942_v23, 0.0 }
 0x609   :  { %v5804_v39 = vadd.f32 %v5803_v40, %v5802_v12  ;;  %v13943_v12 = vld [vmem:[#allocation179_spill] sm:$0xff] }
 0x60a   :  { %v5827_v52 = vsel %vm1768_vm0, %v13943_v12, 0.0  ;;  %v13953_v12 = vld [vmem:[#allocation47_spill] sm:$0xff] }
 0x60b   :  { %v5806_v14 = vadd.f32 %v5805_v57, %v5804_v39  ;;  %v13944_v39 = vld [vmem:[#allocation180_spill] sm:$0xff] }
 0x60c   :  { %v5829_v48 = vsel %vm1768_vm0, %v13944_v39, 0.0  ;;  %v13954_v39 = vld [vmem:[#allocation48_spill] sm:$0xff] }
 0x60d   :  { %v5808_v22 = vadd.f32 %v5807_v58, %v5806_v14  ;;  %v13945_v14 = vld [vmem:[#allocation181_spill] sm:$0xff] }
 0x60e   :  { %v5831_v25 = vsel %vm1768_vm0, %v13945_v14, 0.0  ;;  %v13955_v14 = vld [vmem:[#allocation77_spill] sm:$0xff] }
 0x60f   :  { %v5810_v10 = vadd.f32 %v5809_v35, %v5808_v22  ;;  %v13946_v22 = vld [vmem:[#allocation182_spill] sm:$0xff] }
 0x610   :  { %v5833_v24 = vsel %vm1768_vm0, %v13946_v22, 0.0  ;;  %v13956_v22 = vld [vmem:[#allocation183_spill] sm:$0xff] }
 0x611   :  { %v5812_v2 = vadd.f32 %v5811_v19, %v5810_v10  ;;  %v5835_v10 = vsel %vm1768_vm0, %v10749_v21, 0.0  ;;  %v5845_v21 = vsel %vm1768_vm0, %v13950_v42, 0.0 }
 0x613   :  { %v5814_v61 = vadd.f32 %v5813_v30, %v5812_v2  ;;  %v5837_v30 = vsel %vm1768_vm0, %v10751_v5, 0.0 }
 0x615   :  { %v5816_v7 = vadd.f32 %v5815_v38, %v5814_v61  ;;  %v5839_v38 = vsel %vm1768_vm0, %v13947_v26, 0.0 }
 0x617   :  { %v5818_v50 = vadd.f32 %v5817_v37, %v5816_v7  ;;  %v5841_v37 = vsel %vm1768_vm0, %v13948_v16, 0.0 }
 0x619   :  { %v5820_v15 = vadd.f32 %v5819_v13, %v5818_v50  ;;  %v5843_v13 = vsel %vm1768_vm0, %v13949_v45, 0.0 }
 0x61b   :  { %v5822_v54 = vadd.f32 %v5821_v18, %v5820_v15  ;;  %v13951_v15 = vld [vmem:[#allocation120_spill] sm:$0xff] }
 0x61c   :  { %v5847_v5 = vsel %vm1768_vm0, %v13951_v15, 0.0 }
 0x61d   :  { %v5824_v40 = vadd.f32 %v5823_v59, %v5822_v54  ;;  %v13952_v59 = vld [vmem:[#allocation121_spill] sm:$0xff] }
 0x61e   :  { %v5849_v54 = vsel %vm1768_vm0, %v13952_v59, 0.0 }
 0x61f   :  { %v5826_v57 = vadd.f32 %v5825_v11, %v5824_v40  ;;  %v5851_v11 = vsel %vm1768_vm0, %v10807_v28, 0.0 }
 0x621   :  { %v5828_v58 = vadd.f32 %v5827_v52, %v5826_v57  ;;  %v5853_v52 = vsel %vm1768_vm0, %v13953_v12, 0.0 }
 0x623   :  { %v5830_v35 = vadd.f32 %v5829_v48, %v5828_v58  ;;  %v5855_v48 = vsel %vm1768_vm0, %v13954_v39, 0.0 }
 0x625   :  { %v5832_v19 = vadd.f32 %v5831_v25, %v5830_v35  ;;  %v5857_v25 = vsel %vm1768_vm0, %v13955_v14, 0.0 }
 0x627   :  { %v5834_v3 = vadd.f32 %v5833_v24, %v5832_v19  ;;  %v5859_v24 = vsel %vm1768_vm0, %v13956_v22, 0.0 }
 0x629   :  { %v5836_v2 = vadd.f32 %v5835_v10, %v5834_v3  ;;  %v13957_v10 = vld [vmem:[#allocation184_spill] sm:$0xff] }
 0x62a   :  { %v5861_v28 = vsel %vm1768_vm0, %v13957_v10, 0.0 }
 0x62b   :  { %v5838_v61 = vadd.f32 %v5837_v30, %v5836_v2  ;;  %v13958_v30 = vld [vmem:[#allocation185_spill] sm:$0xff] }
 0x62c   :  { %v5863_v2 = vsel %vm1768_vm0, %v13958_v30, 0.0 }
 0x62d   :  { %v5840_v7 = vadd.f32 %v5839_v38, %v5838_v61  ;;  %v13959_v38 = vld [vmem:[#allocation186_spill] sm:$0xff] }
 0x62e   :  { %v5865_v61 = vsel %vm1768_vm0, %v13959_v38, 0.0 }
 0x62f   :  { %v5842_v50 = vadd.f32 %v5841_v37, %v5840_v7  ;;  %v13960_v37 = vld [vmem:[#allocation78_spill] sm:$0xff] }
 0x630   :  { %v5867_v7 = vsel %vm1768_vm0, %v13960_v37, 0.0 }
 0x631   :  { %v5844_v18 = vadd.f32 %v5843_v13, %v5842_v50  ;;  %v13961_v13 = vld [vmem:[#allocation122_spill] sm:$0xff] }
 0x632   :  { %v5869_v50 = vsel %vm1768_vm0, %v13961_v13, 0.0  ;;  %v13973_v13 = vld [vmem:[#allocation190_spill] sm:$0xff] }
 0x633   :  { %v5846_v20 = vadd.f32 %v5845_v21, %v5844_v18  ;;  %v13962_v21 = vld [vmem:[#allocation123_spill] sm:$0xff] }
 0x634   :  { %v5871_v18 = vsel %vm1768_vm0, %v13962_v21, 0.0  ;;  %v13974_v21 = vld [vmem:[#allocation191_spill] sm:$0xff] }
 0x635   :  { %v5848_v23 = vadd.f32 %v5847_v5, %v5846_v20  ;;  %v13963_v5 = vld [vmem:[#allocation79_spill] sm:$0xff] }
 0x636   :  { %v5873_v20 = vsel %vm1768_vm0, %v13963_v5, 0.0  ;;  %v5899_v5 = vsel %vm1768_vm0, %v10981_v62, 0.0 }
 0x637   :  { %v5850_v40 = vadd.f32 %v5849_v54, %v5848_v23  ;;  %v13964_v54 = vld [vmem:[#allocation80_spill] sm:$0xff] }
 0x638   :  { %v5875_v23 = vsel %vm1768_vm0, %v13964_v54, 0.0 }
 0x639   :  { %v5852_v57 = vadd.f32 %v5851_v11, %v5850_v40  ;;  %v13965_v40 = vld [vmem:[#allocation187_spill] sm:$0xff] }
 0x63a   :  { %v5877_v12 = vsel %vm1768_vm0, %v13965_v40, 0.0 }
 0x63b   :  { %v5854_v58 = vadd.f32 %v5853_v52, %v5852_v57  ;;  %v13966_v57 = vld [vmem:[#allocation188_spill] sm:$0xff] }
 0x63c   :  { %v5879_v39 = vsel %vm1768_vm0, %v13966_v57, 0.0 }
 0x63d   :  { %v5856_v35 = vadd.f32 %v5855_v48, %v5854_v58  ;;  %v13967_v58 = vld [vmem:[#allocation189_spill] sm:$0xff] }
 0x63e   :  { %v5881_v14 = vsel %vm1768_vm0, %v13967_v58, 0.0 }
 0x63f   :  { %v5858_v19 = vadd.f32 %v5857_v25, %v5856_v35  ;;  %v5883_v35 = vsel %vm1768_vm0, %v10923_v49, 0.0 }
 0x641   :  { %v5860_v3 = vadd.f32 %v5859_v24, %v5858_v19  ;;  %v13968_v24 = vld [vmem:[#allocation19_spill] sm:$0xff] }
 0x642   :  { %v5885_v19 = vsel %vm1768_vm0, %v13968_v24, 0.0  ;;  %v13980_v24 = vld [vmem:[#allocation192_spill] sm:$0xff] }
 0x643   :  { %v5862_v26 = vadd.f32 %v5861_v28, %v5860_v3  ;;  %v13969_v28 = vld [vmem:[#allocation29_spill] sm:$0xff] }
 0x644   :  { %v5887_v3 = vsel %vm1768_vm0, %v13969_v28, 0.0  ;;  %v5915_v28 = vsel %vm1768_vm0, %v11039_v56, 0.0 }
 0x645   :  { %v5864_v16 = vadd.f32 %v5863_v2, %v5862_v26  ;;  %v13970_v2 = vld [vmem:[#allocation124_spill] sm:$0xff] }
 0x646   :  { %v5889_v26 = vsel %vm1768_vm0, %v13970_v2, 0.0 }
 0x647   :  { %v5866_v45 = vadd.f32 %v5865_v61, %v5864_v16  ;;  %v13971_v61 = vld [vmem:[#allocation125_spill] sm:$0xff] }
 0x648   :  { %v5891_v16 = vsel %vm1768_vm0, %v13971_v61, 0.0 }
 0x649   :  { %v5868_v42 = vadd.f32 %v5867_v7, %v5866_v45  ;;  %v13972_v7 = vld [vmem:[#allocation126_spill] sm:$0xff] }
 0x64a   :  { %v5893_v49 = vsel %vm1768_vm0, %v13972_v7, 0.0 }
 0x64b   :  { %v5870_v15 = vadd.f32 %v5869_v50, %v5868_v42  ;;  %v5895_v50 = vsel %vm1768_vm0, %v13973_v13, 0.0 }
 0x64d   :  { %v5872_v59 = vadd.f32 %v5871_v18, %v5870_v15  ;;  %v5897_v18 = vsel %vm1768_vm0, %v13974_v21, 0.0 }
 0x64f   :  { %v5874_v11 = vadd.f32 %v5873_v20, %v5872_v59  ;;  %v5901_v59 = vsel %vm1768_vm0, %v10983_v4, 0.0 }
 0x651   :  { %v5876_v52 = vadd.f32 %v5875_v23, %v5874_v11  ;;  %v13975_v23 = vld [vmem:[#allocation49_spill] sm:$0xff] }
 0x652   :  { %v5903_v11 = vsel %vm1768_vm0, %v13975_v23, 0.0  ;;  %v13988_v23 = vld [vmem:[#allocation51_spill] sm:$0xff] }
 0x653   :  { %v5878_v48 = vadd.f32 %v5877_v12, %v5876_v52  ;;  %v13976_v12 = vld [vmem:[#allocation50_spill] sm:$0xff] }
 0x654   :  { %v5905_v52 = vsel %vm1768_vm0, %v13976_v12, 0.0  ;;  %v13989_v12 = vld [vmem:[#allocation83_spill] sm:$0xff] }
 0x655   :  { %v5880_v25 = vadd.f32 %v5879_v39, %v5878_v48  ;;  %v13977_v39 = vld [vmem:[#allocation81_spill] sm:$0xff] }
 0x656   :  { %v5907_v48 = vsel %vm1768_vm0, %v13977_v39, 0.0  ;;  %v13990_v39 = vld [vmem:[#allocation84_spill] sm:$0xff] }
 0x657   :  { %v5882_v22 = vadd.f32 %v5881_v14, %v5880_v25  ;;  %v13978_v14 = vld [vmem:[#allocation82_spill] sm:$0xff] }
 0x658   :  { %v5909_v62 = vsel %vm1768_vm0, %v13978_v14, 0.0  ;;  %v13991_v14 = vld [vmem:[#allocation130_spill] sm:$0xff] }
 0x659   :  { %v5884_v10 = vadd.f32 %v5883_v35, %v5882_v22  ;;  %v13979_v35 = vld [vmem:[#allocation127_spill] sm:$0xff] }
 0x65a   :  { %v5911_v4 = vsel %vm1768_vm0, %v13979_v35, 0.0  ;;  %v13992_v35 = vld [vmem:[#allocation131_spill] sm:$0xff] }
 0x65b   :  { %v5886_v30 = vadd.f32 %v5885_v19, %v5884_v10  ;;  %v5913_v19 = vsel %vm1768_vm0, %v13980_v24, 0.0  ;;  %v13993_v24 = vld [vmem:[#allocation196_spill] sm:$0xff] }
 0x65d   :  { %v5888_v38 = vadd.f32 %v5887_v3, %v5886_v30  ;;  %v13981_v30 = vld [vmem:[#allocation128_spill] sm:$0xff] }
 0x65e   :  { %v5917_v2 = vsel %vm1768_vm0, %v13981_v30, 0.0 }
 0x65f   :  { %v5890_v37 = vadd.f32 %v5889_v26, %v5888_v38  ;;  %v13982_v38 = vld [vmem:[#allocation129_spill] sm:$0xff] }
 0x660   :  { %v5919_v61 = vsel %vm1768_vm0, %v13982_v38, 0.0 }
 0x661   :  { %v5892_v45 = vadd.f32 %v5891_v16, %v5890_v37  ;;  %v13983_v37 = vld [vmem:[#allocation22_spill] sm:$0xff] }
 0x662   :  { %v5921_v7 = vsel %vm1768_vm0, %v13983_v37, 0.0 }
 0x663   :  { %v5894_v42 = vadd.f32 %v5893_v49, %v5892_v45  ;;  %v13984_v45 = vld [vmem:[#allocation30_spill] sm:$0xff] }
 0x664   :  { %v5923_v13 = vsel %vm1768_vm0, %v13984_v45, 0.0 }
 0x665   :  { %v5896_v15 = vadd.f32 %v5895_v50, %v5894_v42  ;;  %v13985_v42 = vld [vmem:[#allocation193_spill] sm:$0xff] }
 0x666   :  { %v5925_v56 = vsel %vm1768_vm0, %v13985_v42, 0.0 }
 0x667   :  { %v5898_v20 = vadd.f32 %v5897_v18, %v5896_v15  ;;  %v13986_v18 = vld [vmem:[#allocation194_spill] sm:$0xff] }
 0x668   :  { %v5927_v15 = vsel %vm1768_vm0, %v13986_v18, 0.0 }
 0x669   :  { %v5900_v54 = vadd.f32 %v5899_v5, %v5898_v20  ;;  %v13987_v20 = vld [vmem:[#allocation195_spill] sm:$0xff] }
 0x66b   :  { %v5902_v40 = vadd.f32 %v5901_v59, %v5900_v54  ;;  %v5929_v59 = vsel %vm1768_vm0, %v13987_v20, 0.0 }
 0x66d   :  { %v5904_v57 = vadd.f32 %v5903_v11, %v5902_v40  ;;  %v5931_v11 = vsel %vm1768_vm0, %v13988_v23, 0.0 }
 0x66f   :  { %v5906_v58 = vadd.f32 %v5905_v52, %v5904_v57  ;;  %v5933_v52 = vsel %vm1768_vm0, %v13989_v12, 0.0 }
 0x671   :  { %v5908_v25 = vadd.f32 %v5907_v48, %v5906_v58  ;;  %v5935_v48 = vsel %vm1768_vm0, %v13990_v39, 0.0 }
 0x673   :  { %v5910_v22 = vadd.f32 %v5909_v62, %v5908_v25  ;;  %v5937_v62 = vsel %vm1768_vm0, %v13991_v14, 0.0 }
 0x675   :  { %v5912_v10 = vadd.f32 %v5911_v4, %v5910_v22  ;;  %v5939_v4 = vsel %vm1768_vm0, %v13992_v35, 0.0 }
 0x677   :  { %v5914_v3 = vadd.f32 %v5913_v19, %v5912_v10  ;;  %v5941_v19 = vsel %vm1768_vm0, %v13993_v24, 0.0 }
 0x679   :  { %v5916_v26 = vadd.f32 %v5915_v28, %v5914_v3  ;;  %v13994_v28 = vld [vmem:[#allocation197_spill] sm:$0xff] }
 0x67a   :  { %v5943_v3 = vsel %vm1768_vm0, %v13994_v28, 0.0 }
 0x67b   :  { %v5918_v16 = vadd.f32 %v5917_v2, %v5916_v26  ;;  %v13995_v2 = vld [vmem:[#allocation198_spill] sm:$0xff] }
 0x67c   :  { %v5945_v26 = vsel %vm1768_vm0, %v13995_v2, 0.0 }
 0x67d   :  { %v5920_v49 = vadd.f32 %v5919_v61, %v5918_v16  ;;  %v13996_v61 = vld [vmem:[#allocation85_spill] sm:$0xff] }
 0x67e   :  { %v5947_v16 = vsel %vm1768_vm0, %v13996_v61, 0.0 }
 0x67f   :  { %v5922_v50 = vadd.f32 %v5921_v7, %v5920_v49  ;;  %v13997_v7 = vld [vmem:[#allocation52_spill] sm:$0xff] }
 0x680   :  { %v5949_v49 = vsel %vm1768_vm0, %v13997_v7, 0.0 }
 0x681   :  { %v5924_v21 = vadd.f32 %v5923_v13, %v5922_v50  ;;  %v13998_v13 = vld [vmem:[#allocation53_spill] sm:$0xff] }
 0x682   :  { %v5951_v50 = vsel %vm1768_vm0, %v13998_v13, 0.0 }
 0x683   :  { %v5926_v5 = vadd.f32 %v5925_v56, %v5924_v21  ;;  %v13999_v56 = vld [vmem:[#allocation31_spill] sm:$0xff] }
 0x684   :  { %v5953_v21 = vsel %vm1768_vm0, %v13999_v56, 0.0 }
 0x685   :  { %v5928_v54 = vadd.f32 %v5927_v15, %v5926_v5  ;;  %v14000_v15 = vld [vmem:[#allocation199_spill] sm:$0xff] }
 0x686   :  { %v5955_v5 = vsel %vm1768_vm0, %v14000_v15, 0.0 }
 0x687   :  { %v5930_v40 = vadd.f32 %v5929_v59, %v5928_v54  ;;  %v14001_v59 = vld [vmem:[#allocation200_spill] sm:$0xff] }
 0x688   :  { %v5957_v54 = vsel %vm1768_vm0, %v14001_v59, 0.0 }
 0x689   :  { %v5932_v57 = vadd.f32 %v5931_v11, %v5930_v40  ;;  %v14002_v11 = vld [vmem:[#allocation201_spill] sm:$0xff] }
 0x68a   :  { %v5959_v40 = vsel %vm1768_vm0, %v14002_v11, 0.0 }
 0x68b   :  { %v5934_v58 = vadd.f32 %v5933_v52, %v5932_v57  ;;  %v14003_v52 = vld [vmem:[#allocation202_spill] sm:$0xff] }
 0x68c   :  { %v5961_v57 = vsel %vm1768_vm0, %v14003_v52, 0.0 }
 0x68d   :  { %v5936_v25 = vadd.f32 %v5935_v48, %v5934_v58  ;;  %v14004_v48 = vld [vmem:[#allocation132_spill] sm:$0xff] }
 0x68e   :  { %v5963_v58 = vsel %vm1768_vm0, %v14004_v48, 0.0 }
 0x68f   :  { %v5938_v22 = vadd.f32 %v5937_v62, %v5936_v25  ;;  %v14005_v62 = vld [vmem:[#allocation133_spill] sm:$0xff] }
 0x690   :  { %v5965_v25 = vsel %vm1768_vm0, %v14005_v62, 0.0 }
 0x691   :  { %v5940_v10 = vadd.f32 %v5939_v4, %v5938_v22  ;;  %v14006_v4 = vld [vmem:[#allocation25_spill] sm:$0xff] }
 0x692   :  { %v5967_v22 = vsel %vm1768_vm0, %v14006_v4, 0.0 }
 0x693   :  { %v5942_v30 = vadd.f32 %v5941_v19, %v5940_v10  ;;  %v14007_v19 = vld [vmem:[#allocation86_spill] sm:$0xff] }
 0x694   :  { %v5969_v10 = vsel %vm1768_vm0, %v14007_v19, 0.0 }
 0x695   :  { %v5944_v38 = vadd.f32 %v5943_v3, %v5942_v30  ;;  %v14008_v3 = vld [vmem:[#allocation87_spill] sm:$0xff] }
 0x696   :  { %v5971_v30 = vsel %vm1768_vm0, %v14008_v3, 0.0 }
 0x697   :  { %v5946_v37 = vadd.f32 %v5945_v26, %v5944_v38  ;;  %v14009_v26 = vld [vmem:[#allocation203_spill] sm:$0xff] }
 0x698   :  { %v5973_v38 = vsel %vm1768_vm0, %v14009_v26, 0.0 }
 0x699   :  { %v5948_v45 = vadd.f32 %v5947_v16, %v5946_v37  ;;  %v14010_v16 = vld [vmem:[#allocation204_spill] sm:$0xff] }
 0x69a   :  { %v5975_v37 = vsel %vm1768_vm0, %v14010_v16, 0.0 }
 0x69b   :  { %v5950_v42 = vadd.f32 %v5949_v49, %v5948_v45  ;;  %v14011_v49 = vld [vmem:[#allocation205_spill] sm:$0xff] }
 0x69c   :  { %v5977_v45 = vsel %vm1768_vm0, %v14011_v49, 0.0 }
 0x69d   :  { %v5952_v18 = vadd.f32 %v5951_v50, %v5950_v42  ;;  %v14012_v50 = vld [vmem:[#allocation88_spill] sm:$0xff] }
 0x69e   :  { %v5979_v42 = vsel %vm1768_vm0, %v14012_v50, 0.0 }
 0x69f   :  { %v5954_v20 = vadd.f32 %v5953_v21, %v5952_v18  ;;  %v14013_v21 = vld [vmem:[#allocation134_spill] sm:$0xff] }
 0x6a0   :  { %v5981_v18 = vsel %vm1768_vm0, %v14013_v21, 0.0 }
 0x6a1   :  { %v5956_v23 = vadd.f32 %v5955_v5, %v5954_v20  ;;  %v14014_v5 = vld [vmem:[#allocation135_spill] sm:$0xff] }
 0x6a2   :  { %v5983_v20 = vsel %vm1768_vm0, %v14014_v5, 0.0 }
 0x6a3   :  { %v5958_v12 = vadd.f32 %v5957_v54, %v5956_v23  ;;  %v14015_v54 = vld [vmem:[#allocation136_spill] sm:$0xff] }
 0x6a4   :  { %v5985_v23 = vsel %vm1768_vm0, %v14015_v54, 0.0 }
 0x6a5   :  { %v5960_v39 = vadd.f32 %v5959_v40, %v5958_v12  ;;  %v14016_v40 = vld [vmem:[#allocation206_spill] sm:$0xff] }
 0x6a6   :  { %v5987_v12 = vsel %vm1768_vm0, %v14016_v40, 0.0 }
 0x6a7   :  { %v5962_v14 = vadd.f32 %v5961_v57, %v5960_v39  ;;  %v14017_v57 = vld [vmem:[#allocation207_spill] sm:$0xff] }
 0x6a8   :  { %v5989_v39 = vsel %vm1768_vm0, %v14017_v57, 0.0 }
 0x6a9   :  { %v5964_v35 = vadd.f32 %v5963_v58, %v5962_v14  ;;  %v14018_v58 = vld [vmem:[#allocation208_spill] sm:$0xff] }
 0x6aa   :  { %v5991_v14 = vsel %vm1768_vm0, %v14018_v58, 0.0 }
 0x6ab   :  { %v5966_v24 = vadd.f32 %v5965_v25, %v5964_v35  ;;  %v14019_v25 = vld [vmem:[#allocation209_spill] sm:$0xff] }
 0x6ac   :  { %v5993_v35 = vsel %vm1768_vm0, %v14019_v25, 0.0 }
 0x6ad   :  { %v5968_v28 = vadd.f32 %v5967_v22, %v5966_v24  ;;  %v14020_v22 = vld [vmem:[#allocation54_spill] sm:$0xff] }
 0x6ae   :  { %v5995_v24 = vsel %vm1768_vm0, %v14020_v22, 0.0 }
 0x6af   :  { %v5970_v2 = vadd.f32 %v5969_v10, %v5968_v28  ;;  %v14021_v10 = vld [vmem:[#allocation55_spill] sm:$0xff] }
 0x6b0   :  { %v5997_v28 = vsel %vm1768_vm0, %v14021_v10, 0.0 }
 0x6b1   :  { %v5972_v61 = vadd.f32 %v5971_v30, %v5970_v2  ;;  %v14022_v30 = vld [vmem:[#allocation56_spill] sm:$0xff] }
 0x6b2   :  { %v5999_v2 = vsel %vm1768_vm0, %v14022_v30, 0.0 }
 0x6b3   :  { %v5974_v7 = vadd.f32 %v5973_v38, %v5972_v61  ;;  %v14023_v38 = vld [vmem:[#allocation57_spill] sm:$0xff] }
 0x6b4   :  { %v6001_v61 = vsel %vm1768_vm0, %v14023_v38, 0.0 }
 0x6b5   :  { %v5976_v13 = vadd.f32 %v5975_v37, %v5974_v7  ;;  %v14024_v37 = vld [vmem:[#allocation210_spill] sm:$0xff] }
 0x6b6   :  { %v6003_v7 = vsel %vm1768_vm0, %v14024_v37, 0.0 }
 0x6b7   :  { %v5978_v56 = vadd.f32 %v5977_v45, %v5976_v13  ;;  %v14025_v45 = vld [vmem:[#allocation211_spill] sm:$0xff] }
 0x6b8   :  { %v6005_v13 = vsel %vm1768_vm0, %v14025_v45, 0.0 }
 0x6b9   :  { %v5980_v15 = vadd.f32 %v5979_v42, %v5978_v56  ;;  %v14026_v42 = vld [vmem:[#allocation212_spill] sm:$0xff] }
 0x6ba   :  { %v6007_v56 = vsel %vm1768_vm0, %v14026_v42, 0.0 }
 0x6bb   :  { %v5982_v59 = vadd.f32 %v5981_v18, %v5980_v15  ;;  %v14027_v18 = vld [vmem:[#allocation213_spill] sm:$0xff] }
 0x6bc   :  { %v6009_v15 = vsel %vm1768_vm0, %v14027_v18, 0.0 }
 0x6bd   :  { %v5984_v11 = vadd.f32 %v5983_v20, %v5982_v59  ;;  %v14028_v20 = vld [vmem:[#allocation89_spill] sm:$0xff] }
 0x6be   :  { %v6011_v59 = vsel %vm1768_vm0, %v14028_v20, 0.0 }
 0x6bf   :  { %v5986_v52 = vadd.f32 %v5985_v23, %v5984_v11  ;;  %v14029_v23 = vld [vmem:[#allocation90_spill] sm:$0xff] }
 0x6c0   :  { %v6013_v11 = vsel %vm1768_vm0, %v14029_v23, 0.0 }
 0x6c1   :  { %v5988_v48 = vadd.f32 %v5987_v12, %v5986_v52  ;;  %v14030_v12 = vld [vmem:[#allocation16_spill] sm:$0xff] }
 0x6c2   :  { %v6015_v52 = vsel %vm1768_vm0, %v14030_v12, 0.0 }
 0x6c3   :  { %v5990_v62 = vadd.f32 %v5989_v39, %v5988_v48  ;;  %v14031_v39 = vld [vmem:[#allocation214_spill] sm:$0xff] }
 0x6c4   :  { %v6017_v48 = vsel %vm1768_vm0, %v14031_v39, 0.0 }
 0x6c5   :  { %v5992_v4 = vadd.f32 %v5991_v14, %v5990_v62  ;;  %v14032_v14 = vld [vmem:[#allocation215_spill] sm:$0xff] }
 0x6c6   :  { %v6019_v62 = vsel %vm1768_vm0, %v14032_v14, 0.0 }
 0x6c7   :  { %v5994_v19 = vadd.f32 %v5993_v35, %v5992_v4  ;;  %v14033_v35 = vld [vmem:[#allocation216_spill] sm:$0xff] }
 0x6c8   :  { %v6021_v4 = vsel %vm1768_vm0, %v14033_v35, 0.0 }
 0x6c9   :  { %v5996_v3 = vadd.f32 %v5995_v24, %v5994_v19  ;;  %v14034_v24 = vld [vmem:[#allocation217_spill] sm:$0xff] }
 0x6ca   :  { %v6023_v19 = vsel %vm1768_vm0, %v14034_v24, 0.0 }
 0x6cb   :  { %v5998_v26 = vadd.f32 %v5997_v28, %v5996_v3  ;;  %v14035_v28 = vld [vmem:[#allocation218_spill] sm:$0xff] }
 0x6cc   :  { %v6025_v3 = vsel %vm1768_vm0, %v14035_v28, 0.0 }
 0x6cd   :  { %v6000_v16 = vadd.f32 %v5999_v2, %v5998_v26  ;;  %v14036_v2 = vld [vmem:[#allocation28_spill] sm:$0xff] }
 0x6ce   :  { %v6027_v26 = vsel %vm1768_vm0, %v14036_v2, 0.0 }
 0x6cf   :  { %v6002_v49 = vadd.f32 %v6001_v61, %v6000_v16  ;;  %v14037_v61 = vld [vmem:[#allocation137_spill] sm:$0xff] }
 0x6d0   :  { %v6029_v16 = vsel %vm1768_vm0, %v14037_v61, 0.0 }
 0x6d1   :  { %v6004_v50 = vadd.f32 %v6003_v7, %v6002_v49  ;;  %v14038_v7 = vld [vmem:[#allocation138_spill] sm:$0xff] }
 0x6d2   :  { %v6031_v49 = vsel %vm1768_vm0, %v14038_v7, 0.0 }
 0x6d3   :  { %v6006_v21 = vadd.f32 %v6005_v13, %v6004_v50  ;;  %v14039_v13 = vld [vmem:[#allocation139_spill] sm:$0xff] }
 0x6d4   :  { %v6033_v50 = vsel %vm1768_vm0, %v14039_v13, 0.0 }
 0x6d5   :  { %v6008_v5 = vadd.f32 %v6007_v56, %v6006_v21  ;;  %v14040_v56 = vld [vmem:[#allocation33_spill] sm:$0xff] }
 0x6d6   :  { %v6035_v21 = vsel %vm1768_vm0, %v14040_v56, 0.0 }
 0x6d7   :  { %v6010_v54 = vadd.f32 %v6009_v15, %v6008_v5  ;;  %v14041_v15 = vld [vmem:[#allocation34_spill] sm:$0xff] }
 0x6d8   :  { %v6037_v5 = vsel %vm1768_vm0, %v14041_v15, 0.0 }
 0x6d9   :  { %v6012_v40 = vadd.f32 %v6011_v59, %v6010_v54  ;;  %v14042_v59 = vld [vmem:[#allocation219_spill] sm:$0xff] }
 0x6da   :  { %v6039_v54 = vsel %vm1768_vm0, %v14042_v59, 0.0 }
 0x6db   :  { %v6014_v57 = vadd.f32 %v6013_v11, %v6012_v40  ;;  %v14043_v11 = vld [vmem:[#allocation220_spill] sm:$0xff] }
 0x6dc   :  { %v6041_v40 = vsel %vm1768_vm0, %v14043_v11, 0.0 }
 0x6dd   :  { %v6016_v58 = vadd.f32 %v6015_v52, %v6014_v57  ;;  %v14044_v52 = vld [vmem:[#allocation91_spill] sm:$0xff] }
 0x6de   :  { %v6043_v57 = vsel %vm1768_vm0, %v14044_v52, 0.0 }
 0x6df   :  { %v6018_v25 = vadd.f32 %v6017_v48, %v6016_v58  ;;  %v14045_v48 = vld [vmem:[#allocation140_spill] sm:$0xff] }
 0x6e0   :  { %v6045_v58 = vsel %vm1768_vm0, %v14045_v48, 0.0 }
 0x6e1   :  { %v6020_v22 = vadd.f32 %v6019_v62, %v6018_v25  ;;  %v14046_v62 = vld [vmem:[#allocation141_spill] sm:$0xff] }
 0x6e2   :  { %v6047_v25 = vsel %vm1768_vm0, %v14046_v62, 0.0 }
 0x6e3   :  { %v6022_v10 = vadd.f32 %v6021_v4, %v6020_v22  ;;  %v14047_v4 = vld [vmem:[#allocation142_spill] sm:$0xff] }
 0x6e4   :  { %v6049_v22 = vsel %vm1768_vm0, %v14047_v4, 0.0 }
 0x6e5   :  { %v6024_v30 = vadd.f32 %v6023_v19, %v6022_v10  ;;  %v14048_v19 = vld [vmem:[#allocation143_spill] sm:$0xff] }
 0x6e6   :  { %v6051_v10 = vsel %vm1768_vm0, %v14048_v19, 0.0 }
 0x6e7   :  { %v6026_v38 = vadd.f32 %v6025_v3, %v6024_v30  ;;  %v14049_v3 = vld [vmem:[#allocation221_spill] sm:$0xff] }
 0x6e8   :  { %v6053_v30 = vsel %vm1768_vm0, %v14049_v3, 0.0 }
 0x6e9   :  { %v6028_v37 = vadd.f32 %v6027_v26, %v6026_v38  ;;  %v14050_v26 = vld [vmem:[#allocation222_spill] sm:$0xff] }
 0x6ea   :  { %v6055_v38 = vsel %vm1768_vm0, %v14050_v26, 0.0 }
 0x6eb   :  { %v6030_v45 = vadd.f32 %v6029_v16, %v6028_v37  ;;  %v14051_v16 = vld [vmem:[#allocation223_spill] sm:$0xff] }
 0x6ec   :  { %v6057_v37 = vsel %vm1768_vm0, %v14051_v16, 0.0 }
 0x6ed   :  { %v6032_v42 = vadd.f32 %v6031_v49, %v6030_v45  ;;  %v14052_v49 = vld [vmem:[#allocation144_spill] sm:$0xff] }
 0x6ee   :  { %v6059_v45 = vsel %vm1768_vm0, %v14052_v49, 0.0 }
 0x6ef   :  { %v6034_v18 = vadd.f32 %v6033_v50, %v6032_v42  ;;  %v14053_v50 = vld [vmem:[#allocation58_spill] sm:$0xff] }
 0x6f0   :  { %v6061_v42 = vsel %vm1768_vm0, %v14053_v50, 0.0 }
 0x6f1   :  { %v6036_v20 = vadd.f32 %v6035_v21, %v6034_v18  ;;  %v14054_v21 = vld [vmem:[#allocation32_spill] sm:$0xff] }
 0x6f2   :  { %v6063_v18 = vsel %vm1768_vm0, %v14054_v21, 0.0 }
 0x6f3   :  { %v6038_v23 = vadd.f32 %v6037_v5, %v6036_v20  ;;  %v14055_v5 = vld [vmem:[#allocation92_spill] sm:$0xff] }
 0x6f4   :  { %v6065_v20 = vsel %vm1768_vm0, %v14055_v5, 0.0 }
 0x6f5   :  { %v6040_v12 = vadd.f32 %v6039_v54, %v6038_v23  ;;  %v14056_v54 = vld [vmem:[#allocation93_spill] sm:$0xff] }
 0x6f6   :  { %v6067_v23 = vsel %vm1768_vm0, %v14056_v54, 0.0 }
 0x6f7   :  { %v6042_v39 = vadd.f32 %v6041_v40, %v6040_v12  ;;  %v14057_v40 = vld [vmem:[#allocation224_spill] sm:$0xff] }
 0x6f8   :  { %v6069_v12 = vsel %vm1768_vm0, %v14057_v40, 0.0 }
 0x6f9   :  { %v6044_v14 = vadd.f32 %v6043_v57, %v6042_v39  ;;  %v14058_v57 = vld [vmem:[#allocation225_spill] sm:$0xff] }
 0x6fa   :  { %v6071_v39 = vsel %vm1768_vm0, %v14058_v57, 0.0 }
 0x6fb   :  { %v6046_v35 = vadd.f32 %v6045_v58, %v6044_v14  ;;  %v14059_v58 = vld [vmem:[#allocation226_spill] sm:$0xff] }
 0x6fc   :  { %v6073_v14 = vsel %vm1768_vm0, %v14059_v58, 0.0 }
 0x6fd   :  { %v6048_v24 = vadd.f32 %v6047_v25, %v6046_v35  ;;  %v14060_v25 = vld [vmem:[#allocation94_spill] sm:$0xff] }
 0x6fe   :  { %v6075_v35 = vsel %vm1768_vm0, %v14060_v25, 0.0 }
 0x6ff   :  { %v6050_v28 = vadd.f32 %v6049_v22, %v6048_v24  ;;  %v14061_v22 = vld [vmem:[#allocation95_spill] sm:$0xff] }
 0x700   :  { %v6077_v24 = vsel %vm1768_vm0, %v14061_v22, 0.0 }
 0x701   :  { %v6052_v2 = vadd.f32 %v6051_v10, %v6050_v28  ;;  %v14062_v10 = vld [vmem:[#allocation145_spill] sm:$0xff] }
 0x702   :  { %v6079_v28 = vsel %vm1768_vm0, %v14062_v10, 0.0 }
 0x703   :  { %v6054_v61 = vadd.f32 %v6053_v30, %v6052_v2  ;;  %v14063_v30 = vld [vmem:[#allocation11_spill] sm:$0xff] }
 0x704   :  { %v6081_v2 = vsel %vm1768_vm0, %v14063_v30, 0.0  ;;  %v6109_v30 = vsel %vm1768_vm0, %v11667_v63, 0.0 }
 0x705   :  { %v6056_v7 = vadd.f32 %v6055_v38, %v6054_v61  ;;  %v14064_v38 = vld [vmem:[#allocation227_spill] sm:$0xff] }
 0x706   :  { %v6083_v61 = vsel %vm1768_vm0, %v14064_v38, 0.0 }
 0x707   :  { %v6058_v13 = vadd.f32 %v6057_v37, %v6056_v7  ;;  %v14065_v37 = vld [vmem:[#allocation228_spill] sm:$0xff] }
 0x708   :  { %v6085_v7 = vsel %vm1768_vm0, %v14065_v37, 0.0  ;;  %v6115_v37 = vsel %vm1768_vm0, %v11675_v1, 0.0  ;;  %v6125_v1 = vsel %vm1768_vm0, %v11711_v41, 0.0 }
 0x709   :  { %v6060_v56 = vadd.f32 %v6059_v45, %v6058_v13  ;;  %v14066_v45 = vld [vmem:[#allocation229_spill] sm:$0xff] }
 0x70a   :  { %v6087_v13 = vsel %vm1768_vm0, %v14066_v45, 0.0 }
 0x70b   :  { %v6062_v15 = vadd.f32 %v6061_v42, %v6060_v56  ;;  %v14067_v42 = vld [vmem:[#allocation230_spill] sm:$0xff] }
 0x70c   :  { %v6089_v56 = vsel %vm1768_vm0, %v14067_v42, 0.0  ;;  %v14078_v42 = vld [vmem:[#allocation98_spill] sm:$0xff] }
 0x70d   :  { %v6064_v59 = vadd.f32 %v6063_v18, %v6062_v15  ;;  %v14068_v18 = vld [vmem:[#allocation18_spill] sm:$0xff] }
 0x70e   :  { %v6091_v15 = vsel %vm1768_vm0, %v14068_v18, 0.0 }
 0x70f   :  { %v6066_v11 = vadd.f32 %v6065_v20, %v6064_v59  ;;  %v14069_v20 = vld [vmem:[#allocation59_spill] sm:$0xff] }
 0x710   :  { %v6093_v59 = vsel %vm1768_vm0, %v14069_v20, 0.0 }
 0x711   :  { %v6068_v52 = vadd.f32 %v6067_v23, %v6066_v11  ;;  %v14070_v23 = vld [vmem:[#allocation60_spill] sm:$0xff] }
 0x712   :  { %v6095_v11 = vsel %vm1768_vm0, %v14070_v23, 0.0 }
 0x713   :  { %v6070_v48 = vadd.f32 %v6069_v12, %v6068_v52  ;;  %v14071_v12 = vld [vmem:[#allocation146_spill] sm:$0xff] }
 0x714   :  { %v6097_v52 = vsel %vm1768_vm0, %v14071_v12, 0.0 }
 0x715   :  { %v6072_v62 = vadd.f32 %v6071_v39, %v6070_v48  ;;  %v14072_v39 = vld [vmem:[#allocation147_spill] sm:$0xff] }
 0x716   :  { %v6099_v48 = vsel %vm1768_vm0, %v14072_v39, 0.0  ;;  %v14083_v39 = vld [vmem:[#allocation151_spill] sm:$0xff] }
 0x717   :  { %v6074_v4 = vadd.f32 %v6073_v14, %v6072_v62  ;;  %v14073_v14 = vld [vmem:[#allocation148_spill] sm:$0xff]  ;;  %v6135_v41 = vsel %vm1768_vm0, %v14083_v39, 0.0 }
 0x718   :  { %v6101_v62 = vsel %vm1768_vm0, %v14073_v14, 0.0 }
 0x719   :  { %v6076_v19 = vadd.f32 %v6075_v35, %v6074_v4  ;;  %v14074_v35 = vld [vmem:[#allocation231_spill] sm:$0xff] }
 0x71a   :  { %v6103_v4 = vsel %vm1768_vm0, %v14074_v35, 0.0 }
 0x71b   :  { %v6078_v3 = vadd.f32 %v6077_v24, %v6076_v19  ;;  %v14075_v24 = vld [vmem:[#allocation232_spill] sm:$0xff] }
 0x71c   :  { %v6105_v19 = vsel %vm1768_vm0, %v14075_v24, 0.0  ;;  %v6143_v24 = vsel %vm1768_vm0, %v11751_v53, 0.0  ;;  %v6153_v53 = vsel %vm1768_vm0, %v11761_v31, 0.0  ;;  %v6163_v31 = vsel %vm1768_vm0, %v11789_v47, 0.0 }
 0x71d   :  { %v6080_v26 = vadd.f32 %v6079_v28, %v6078_v3  ;;  %v6107_v28 = vsel %vm1768_vm0, %v11665_v46, 0.0 }
 0x71f   :  { %v6082_v16 = vadd.f32 %v6081_v2, %v6080_v26  ;;  %v6111_v26 = vsel %vm1768_vm0, %v11669_v8, 0.0  ;;  %v6121_v8 = vsel %vm1768_vm0, %v14078_v42, 0.0  ;;  %v3878_v42 = vld.sshfl [vmem:[#allocation1 + $0x10] sm:$0xff pattern:$0x73625140] }
 0x721   :  { %v6084_v49 = vadd.f32 %v6083_v61, %v6082_v16  ;;  %v6113_v61 = vsel %vm1768_vm0, %v11673_v51, 0.0  ;;  %v6123_v51 = vsel %vm1768_vm0, %v11709_v27, 0.0 }
 0x723   :  { %v6086_v50 = vadd.f32 %v6085_v7, %v6084_v49  ;;  %v14076_v49 = vld [vmem:[#allocation96_spill] sm:$0xff] }
 0x724   :  { %v6117_v46 = vsel %vm1768_vm0, %v14076_v49, 0.0 }
 0x725   :  { %v6088_v21 = vadd.f32 %v6087_v13, %v6086_v50  ;;  %v14077_v13 = vld [vmem:[#allocation97_spill] sm:$0xff] }
 0x726   :  { %v6119_v63 = vsel %vm1768_vm0, %v14077_v13, 0.0 }
 0x727   :  { %v6090_v5 = vadd.f32 %v6089_v56, %v6088_v21 }
 0x729   :  { %v6092_v54 = vadd.f32 %v6091_v15, %v6090_v5  ;;  %v14079_v15 = vld [vmem:[#allocation36_spill] sm:$0xff] }
 0x72a   :  { %v6127_v5 = vsel %vm1768_vm0, %v14079_v15, 0.0 }
 0x72b   :  { %v6094_v40 = vadd.f32 %v6093_v59, %v6092_v54  ;;  %v14080_v59 = vld [vmem:[#allocation35_spill] sm:$0xff] }
 0x72c   :  { %v6129_v54 = vsel %vm1768_vm0, %v14080_v59, 0.0 }
 0x72d   :  { %v6096_v57 = vadd.f32 %v6095_v11, %v6094_v40  ;;  %v14081_v11 = vld [vmem:[#allocation149_spill] sm:$0xff] }
 0x72e   :  { %v6131_v40 = vsel %vm1768_vm0, %v14081_v11, 0.0 }
 0x72f   :  { %v6098_v58 = vadd.f32 %v6097_v52, %v6096_v57  ;;  %v14082_v52 = vld [vmem:[#allocation150_spill] sm:$0xff] }
 0x730   :  { %v6133_v27 = vsel %vm1768_vm0, %v14082_v52, 0.0 }
 0x731   :  { %v6100_v25 = vadd.f32 %v6099_v48, %v6098_v58  ;;  %v14084_v58 = vld [vmem:[#allocation20_spill] sm:$0xff] }
 0x732   :  { %v6137_v14 = vsel %vm1768_vm0, %v14084_v58, 0.0 }
 0x733   :  { %v6102_v22 = vadd.f32 %v6101_v62, %v6100_v25  ;;  %v6139_v25 = vsel %vm1768_vm0, %v11747_v55, 0.0  ;;  %v6149_v55 = vsel %vm1768_vm0, %v11757_v17, 0.0  ;;  %v6159_v17 = vsel %vm1768_vm0, %v11785_v0, 0.0 }
 0x734   :  { %v6169_v0 = vsel %vm1768_vm0, %v11795_v32, 0.0 }
 0x735   :  { %v6104_v10 = vadd.f32 %v6103_v4, %v6102_v22  ;;  %v6141_v4 = vsel %vm1768_vm0, %v11749_v43, 0.0  ;;  %v6151_v43 = vsel %vm1768_vm0, %v11759_v9, 0.0  ;;  %v6161_v9 = vsel %vm1768_vm0, %v11787_v60, 0.0 }
 0x737   :  { %v6106_v3 = vadd.f32 %v6105_v19, %v6104_v10  ;;  %v6145_v10 = vsel %vm1768_vm0, %v11753_v44, 0.0  ;;  %v6155_v44 = vsel %vm1768_vm0, %v11781_v33, 0.0  ;;  %v6165_v33 = vsel %vm1768_vm0, %v11791_v6, 0.0 }
 0x738   :  { %v6175_v6 = vsel %vm1768_vm0, %v3878_v42, 0.0 }
 0x739   :  { %v6108_v2 = vadd.f32 %v6107_v28, %v6106_v3  ;;  %v6147_v3 = vsel %vm1768_vm0, %v11755_v29, 0.0  ;;  %v6157_v29 = vsel %vm1768_vm0, %v11783_v34, 0.0  ;;  %v6167_v34 = vsel %vm1768_vm0, %v11793_v36, 0.0 }
 0x73b   :  { %v6110_v38 = vadd.f32 %v6109_v30, %v6108_v2 }
 0x73d   :  { %v6112_v16 = vadd.f32 %v6111_v26, %v6110_v38 }
 0x73f   :  { %v6114_v7 = vadd.f32 %v6113_v61, %v6112_v16 }
 0x741   :  { %v6116_v45 = vadd.f32 %v6115_v37, %v6114_v7 }
 0x743   :  { %v6118_v50 = vadd.f32 %v6117_v46, %v6116_v45  ;;  %v3876_v45 = vld.sshfl [vmem:[#allocation1] sm:$0xff pattern:$0x73625140] }
 0x744   :  { %v6171_v60 = vsel %vm1768_vm0, %v3876_v45, 0.0 }
 0x745   :  { %v6120_v56 = vadd.f32 %v6119_v63, %v6118_v50  ;;  %v3877_v63 = vld.sshfl [vmem:[#allocation1 + $0x8] sm:$0xff pattern:$0x73625140] }
 0x746   :  { %v6173_v47 = vsel %vm1768_vm0, %v3877_v63, 0.0 }
 0x747   :  { %v6122_v21 = vadd.f32 %v6121_v8, %v6120_v56  ;;  %v3879_v56 = vld.sshfl [vmem:[#allocation1 + $0x18] sm:$0xff pattern:$0x73625140] }
 0x748   :  { %v6177_v36 = vsel %vm1768_vm0, %v3879_v56, 0.0 }
 0x749   :  { %v6124_v18 = vadd.f32 %v6123_v51, %v6122_v21  ;;  %v3880_v21 = vld.sshfl [vmem:[#allocation1 + $0x20] sm:$0xff pattern:$0x73625140] }
 0x74a   :  { %v6179_v32 = vsel %vm1768_vm0, %v3880_v21, 0.0 }
 0x74b   :  { %v6126_v20 = vadd.f32 %v6125_v1, %v6124_v18  ;;  %v3881_v18 = vld.sshfl [vmem:[#allocation1 + $0x28] sm:$0xff pattern:$0x73625140] }
 0x74c   :  { %v6181_v59 = vsel %vm1768_vm0, %v3881_v18, 0.0 }
 0x74d   :  { %v6128_v23 = vadd.f32 %v6127_v5, %v6126_v20  ;;  %v3882_v5 = vld.sshfl [vmem:[#allocation1 + $0x30] sm:$0xff pattern:$0x73625140] }
 0x74e   :  { %v6183_v11 = vsel %vm1768_vm0, %v3882_v5, 0.0 }
 0x74f   :  { %v6130_v12 = vadd.f32 %v6129_v54, %v6128_v23  ;;  %v3883_v54 = vld.sshfl [vmem:[#allocation1 + $0x38] sm:$0xff pattern:$0x73625140] }
 0x751   :  { %v6132_v57 = vadd.f32 %v6131_v40, %v6130_v12  ;;  %v6185_v12 = vsel %vm1768_vm0, %v3883_v54, 0.0 }
 0x753   :  { %v6134_v48 = vadd.f32 %v6133_v27, %v6132_v57 }
 0x755   :  { %v6136_v62 = vadd.f32 %v6135_v41, %v6134_v48 }
 0x757   :  { %v6138_v35 = vadd.f32 %v6137_v14, %v6136_v62 }
 0x759   :  { %v6140_v22 = vadd.f32 %v6139_v25, %v6138_v35 }
 0x75b   :  { %v6142_v19 = vadd.f32 %v6141_v4, %v6140_v22 }
 0x75d   :  { %v6144_v28 = vadd.f32 %v6143_v24, %v6142_v19 }
 0x75f   :  { %v6146_v30 = vadd.f32 %v6145_v10, %v6144_v28 }
 0x761   :  { %v6148_v2 = vadd.f32 %v6147_v3, %v6146_v30 }
 0x763   :  { %v6150_v26 = vadd.f32 %v6149_v55, %v6148_v2 }
 0x765   :  { %v6152_v38 = vadd.f32 %v6151_v43, %v6150_v26 }
 0x767   :  { %v6154_v61 = vadd.f32 %v6153_v53, %v6152_v38 }
 0x769   :  { %v6156_v16 = vadd.f32 %v6155_v44, %v6154_v61 }
 0x76b   :  { %v6158_v37 = vadd.f32 %v6157_v29, %v6156_v16 }
 0x76d   :  { %v6160_v7 = vadd.f32 %v6159_v17, %v6158_v37 }
 0x76f   :  { %v6162_v49 = vadd.f32 %v6161_v9, %v6160_v7 }
 0x771   :  { %v6164_v46 = vadd.f32 %v6163_v31, %v6162_v49 }
 0x773   :  { %v6166_v13 = vadd.f32 %v6165_v33, %v6164_v46 }
 0x775   :  { %v6168_v50 = vadd.f32 %v6167_v34, %v6166_v13 }
 0x777   :  { %v6170_v8 = vadd.f32 %v6169_v0, %v6168_v50 }
 0x779   :  { %v6172_v51 = vadd.f32 %v6171_v60, %v6170_v8 }
 0x77b   :  { %v6174_v1 = vadd.f32 %v6173_v47, %v6172_v51 }
 0x77d   :  { %v6176_v15 = vadd.f32 %v6175_v6, %v6174_v1 }
 0x77f   :  { %v6178_v20 = vadd.f32 %v6177_v36, %v6176_v15 }
 0x781   :  { %v6180_v23 = vadd.f32 %v6179_v32, %v6178_v20 }
 0x783   :  { %v6182_v40 = vadd.f32 %v6181_v59, %v6180_v23 }
 0x785   :  { %v6184_v52 = vadd.f32 %v6183_v11, %v6182_v40 }
 0x787   :  { %v6186_v27 = vadd.f32 %v6185_v12, %v6184_v52 }
 0x789   :  { %6187 = vadd.xlane.f32.xlu0 %v6186_v27 }
 0x7fc   :  { %v6188_v57 = vpop.xlane.xlu0 %6187 }
 0x7fd   :  { %6189 = vst [vmem:[#allocation7] sm:$0x3] %v6188_v57 }
 0x7fe   :  { %6200 = dma.vmem_to_hbm [thread:$0]  %s6196_s1, 32, %s6198_s21, [#allocation4]  }
 0x7ff   :  { %6287 = dma.done.wait [#allocation4], 32  }
 0x800   :  { %6288 = vsyncadd [#allocation4], 4294967264 }
 0x801   :  { %6205 = vsyncpa [#allocation3], 1 }
 0x802   :  { %6206 = vsyncpa [#allocation6], 1 }
 0x803   :  { %6207 = vsyncpa [#allocation4], 1 }

</bundles_post_ra>
